<compile_context>
chip_gen: v7x
topology: tpu7x:2x2x1
jax: 0.10.0
libtpu: 0.0.40
codegen_flags: <defaults>
</compile_context>

<pallas_src>
import functools

import jax
import jax.numpy as jnp
import numpy as np
from jax.experimental import pallas as pl
from jax.experimental.pallas import tpu as pltpu


def _round_up(x, m):
    return ((x + m - 1) // m) * m


# ----------------------------- Pallas kernel ------------------------------ #

def _fused_conv_kernel(apply_relu, negative_slope,
                       p_ref, w_ref, shift_ref, o_ref):
    # bf16 patch tile (TM, K) @ bf16 scale-folded weight (K, TN) on the MXU
    # with f32 accumulation; per-output-channel shift + LeakyReLU on the VPU
    # in f32.
    acc = jnp.dot(p_ref[...], w_ref[...], preferred_element_type=jnp.float32)
    y = acc + shift_ref[...]
    if apply_relu:
        y = jnp.where(y > 0, y, negative_slope * y)
    o_ref[...] = y.astype(o_ref.dtype)


def fused_conv_matmul(patches, w_flat, shift, *, apply_relu,
                      negative_slope=0.2):
    """out[m, n] = act(sum_k patches[m, k] * w_flat[k, n] + shift[n])."""
    M, K = patches.shape
    K2, N = w_flat.shape
    assert K == K2

    # Lane-dense contraction / output-channel dims (multiples of 128) so the
    # MXU sees full columns and stores are unmasked.
    K_pad = _round_up(K, 128)
    N_pad = _round_up(N, 128)
    if K_pad != K:
        patches = jnp.pad(patches, ((0, 0), (0, K_pad - K)))
        w_flat = jnp.pad(w_flat, ((0, K_pad - K), (0, 0)))
    if N_pad != N:
        w_flat = jnp.pad(w_flat, ((0, 0), (0, N_pad - N)))
        shift = jnp.pad(shift, ((0, N_pad - N),))

    # Row tiling: 256-row tiles when M divides evenly (multiple parallel grid
    # steps for v7x megacore, tall MXU feed on v6e); otherwise one full-extent
    # block rounded to the bf16 sublane packing of 16; 128 + pad as fallback.
    if M % 256 == 0:
        TM = 256
    elif M <= 512:
        TM = _round_up(M, 16)
    else:
        TM = 128
    M_pad = _round_up(M, TM)
    if M_pad != M:
        patches = jnp.pad(patches, ((0, M_pad - M), (0, 0)))

    # Output-channel tiling: 256-wide where possible, else the padded width.
    TN = 256 if N_pad % 256 == 0 else 128
    grid = (M_pad // TM, N_pad // TN)

    kernel = functools.partial(_fused_conv_kernel, apply_relu, negative_slope)
    out = pl.pallas_call(
        kernel,
        out_shape=jax.ShapeDtypeStruct((M_pad, N_pad), jnp.float32),
        grid=grid,
        in_specs=[
            pl.BlockSpec((TM, K_pad), lambda i, j: (i, 0)),   # patch rows
            pl.BlockSpec((K_pad, TN), lambda i, j: (0, j)),   # folded weight
            pl.BlockSpec((1, TN), lambda i, j: (0, j)),       # per-chan shift
        ],
        out_specs=pl.BlockSpec((TM, TN), lambda i, j: (i, j)),
        compiler_params=pltpu.CompilerParams(
            dimension_semantics=("parallel", "parallel")),
    )(patches, w_flat, shift.reshape(1, N_pad))
    return out[:M, :N]


# ------------------------------ JAX glue ---------------------------------- #

def im2col(x_nhwc, kh, kw, stride, pad):
    """Extract conv patches.  Returns (N*Ho*Wo, kh*kw*C) and output dims."""
    N, H, W, C = x_nhwc.shape
    xp = jnp.pad(x_nhwc, ((0, 0), (pad, pad), (pad, pad), (0, 0)))
    Ho = (H + 2 * pad - kh) // stride + 1
    Wo = (W + 2 * pad - kw) // stride + 1
    cols = []
    for di in range(kh):
        for dj in range(kw):
            cols.append(xp[:,
                           di:di + (Ho - 1) * stride + 1:stride,
                           dj:dj + (Wo - 1) * stride + 1:stride, :])
    p = jnp.stack(cols, axis=3)                       # (N, Ho, Wo, kh*kw, C)
    return p.reshape(N * Ho * Wo, kh * kw * C), (N, Ho, Wo)


def make_discriminator_params(key, image_channels, num_filters_last=64,
                              n_layers=3):
    """Deterministic synthetic parameters matching nn.Module's layer shapes."""
    # (cin, cout, stride, has_bias, has_bn, relu)
    specs = [(image_channels, num_filters_last, 2, True, False, True)]
    mult = 1
    for i in range(1, n_layers + 1):
        mult_last = mult
        mult = min(2 ** i, 8)
        specs.append((num_filters_last * mult_last, num_filters_last * mult,
                      2 if i < n_layers else 1, False, True, True))
    specs.append((num_filters_last * mult, 1, 1, True, False, False))

    params = []
    for (cin, cout, stride, has_bias, has_bn, relu) in specs:
        key, kw_, kb, kg, kbe, km, kv = jax.random.split(key, 7)
        fan_in = cin * 4 * 4
        w = jax.random.normal(kw_, (cout, cin, 4, 4), jnp.float32) / jnp.sqrt(fan_in)
        b = (0.01 * jax.random.normal(kb, (cout,), jnp.float32)) if has_bias else None
        if has_bn:
            bn = (1.0 + 0.1 * jax.random.normal(kg, (cout,), jnp.float32),   # gamma
                  0.01 * jax.random.normal(kbe, (cout,), jnp.float32),       # beta
                  0.01 * jax.random.normal(km, (cout,), jnp.float32),        # running_mean
                  jax.random.uniform(kv, (cout,), jnp.float32, 0.5, 1.5))    # running_var
        else:
            bn = None
        params.append(dict(w=w, b=b, bn=bn, stride=stride, relu=relu))
    return params


def discriminator_forward(params, x_nchw):
    eps = 1e-5
    x = jnp.transpose(x_nchw, (0, 2, 3, 1)).astype(jnp.float32)   # NCHW -> NHWC
    for layer in params:
        w = layer["w"]                                # (cout, cin, 4, 4)
        cout, cin, kh, kw = w.shape
        if layer["bn"] is not None:
            gamma, beta, mean, var = layer["bn"]
            scale = gamma / jnp.sqrt(var + eps)
            shift = beta - mean * scale
        else:
            scale = jnp.ones((cout,), jnp.float32)
            shift = layer["b"] if layer["b"] is not None else jnp.zeros(
                (cout,), jnp.float32)
        # (kh, kw, cin) flattening matches im2col; fold the per-channel scale
        # into the weight in f32, then cast matmul operands to bf16.
        w_flat = jnp.transpose(w, (2, 3, 1, 0)).reshape(kh * kw * cin, cout)
        w_flat = (w_flat * scale[None, :]).astype(jnp.bfloat16)
        patches, (N, Ho, Wo) = im2col(x.astype(jnp.bfloat16), kh, kw,
                                      layer["stride"], 1)
        y = fused_conv_matmul(patches, w_flat, shift.astype(jnp.float32),
                              apply_relu=layer["relu"])
        x = y.reshape(N, Ho, Wo, cout)
    return jnp.transpose(x, (0, 3, 1, 2))             # NHWC -> NCHW


def reference_forward(params, x_nchw):
    """Pure-JAX reference (lax.conv, f32) used for a correctness check."""
    eps = 1e-5
    x = x_nchw
    for layer in params:
        y = jax.lax.conv_general_dilated(
            x, layer["w"], window_strides=(layer["stride"],) * 2,
            padding=((1, 1), (1, 1)),
            dimension_numbers=("NCHW", "OIHW", "NCHW"))
        if layer["bn"] is not None:
            gamma, beta, mean, var = layer["bn"]
            y = (gamma[None, :, None, None] * (y - mean[None, :, None, None])
                 / jnp.sqrt(var + eps)[None, :, None, None]
                 + beta[None, :, None, None])
        elif layer["b"] is not None:
            y = y + layer["b"][None, :, None, None]
        if layer["relu"]:
            y = jnp.where(y > 0, y, 0.2 * y)
        x = y
    return x


if __name__ == "__main__":
    key = jax.random.PRNGKey(0)
    kx, kp = jax.random.split(key)

    # Small input consistent with the module: batch=2, image_channels=3, 32x32.
    x = jax.random.normal(kx, (2, 3, 32, 32), jnp.float32)      # NCHW, like PyTorch
    params = make_discriminator_params(kp, image_channels=3,
                                       num_filters_last=64, n_layers=3)

    fwd = jax.jit(functools.partial(discriminator_forward, params))
    out = jax.block_until_ready(fwd(x))

    # PatchGAN output for 32x32 input: (2, 1, 2, 2)
    assert out.shape == (2, 1, 2, 2), out.shape

    ref_fn = jax.jit(functools.partial(reference_forward, params))
    ref = jax.block_until_ready(ref_fn(x))
    # Tolerance accounts for bf16 matmul operands (f32 accumulation) over 5
    # stacked conv layers vs. the f32 lax.conv reference.
    np.testing.assert_allclose(np.asarray(out), np.asarray(ref),
                               rtol=2e-2, atol=2e-2)

    print("KERNEL_OK")
</pallas_src>

<mosaic_0001>
module attributes {stable_mosaic.version = 11 : i64} {
  func.func @_fused_conv_kernel(%arg0: i32, %arg1: i32, %arg2: memref<256x128xbf16, #tpu.memory_space<vmem>>, %arg3: memref<128x128xbf16, #tpu.memory_space<vmem>>, %arg4: memref<1x128xf32, #tpu.memory_space<vmem>>, %arg5: memref<256x128xf32, #tpu.memory_space<vmem>>) attributes {dimension_semantics = [#tpu.dimension_semantics<parallel>, #tpu.dimension_semantics<parallel>], iteration_bounds = array<i64: 2, 1>, scalar_prefetch = 0 : i64, scratch_operands = 0 : i64, tpu.core_type = #tpu.core_type<tc>, window_params = [{transform_indices = @transform_0, window_bounds = array<i64: 256, 128>}, {transform_indices = @transform_1, window_bounds = array<i64: 128, 128>}, {transform_indices = @transform_2, window_bounds = array<i64: 1, 128>}, {transform_indices = @transform_3, window_bounds = array<i64: 256, 128>}]} {
    %c0 = arith.constant 0 : index
    %c0_0 = arith.constant 0 : index
    %0 = vector.load %arg2[%c0, %c0_0] : memref<256x128xbf16, #tpu.memory_space<vmem>>, vector<256x128xbf16>
    %c0_1 = arith.constant 0 : index
    %c0_2 = arith.constant 0 : index
    %1 = vector.load %arg3[%c0_1, %c0_2] : memref<128x128xbf16, #tpu.memory_space<vmem>>, vector<128x128xbf16>
    %cst = arith.constant dense<0.000000e+00> : vector<256x128xf32>
    %2 = tpu.matmul %0, %1, %cst {dimension_numbers = #tpu.dot_dimension_numbers<[1], [0], [0], [1], [0, 0, 1, 1], [], []>} : vector<256x128xbf16>, vector<128x128xbf16>, vector<256x128xf32> -> vector<256x128xf32>
    %c0_3 = arith.constant 0 : index
    %c0_4 = arith.constant 0 : index
    %3 = vector.load %arg4[%c0_3, %c0_4] : memref<1x128xf32, #tpu.memory_space<vmem>>, vector<1x128xf32>
    %4 = vector.broadcast %3 : vector<1x128xf32> to vector<256x128xf32>
    %5 = arith.addf %2, %4 : vector<256x128xf32>
    %cst_5 = arith.constant 0.000000e+00 : f32
    %6 = vector.broadcast %cst_5 : f32 to vector<256x128xf32>
    %7 = arith.cmpf ogt, %5, %6 : vector<256x128xf32>
    %cst_6 = arith.constant 2.000000e-01 : f32
    %8 = vector.broadcast %cst_6 : f32 to vector<256x128xf32>
    %9 = arith.mulf %8, %5 : vector<256x128xf32>
    %10 = arith.select %7, %5, %9 : vector<256x128xi1>, vector<256x128xf32>
    %c0_7 = arith.constant 0 : index
    %c0_8 = arith.constant 0 : index
    %11 = vector.load %arg5[%c0_7, %c0_8] : memref<256x128xf32, #tpu.memory_space<vmem>>, vector<256x128xf32>
    tpu.vector_store %arg5[%c0_7, %c0_8], %10 {strides = array<i32>} : memref<256x128xf32, #tpu.memory_space<vmem>>, vector<256x128xf32>,
    return
  }
  func.func @transform_0(%arg0: i32, %arg1: i32) -> (i32, i32) {
    %c0_i32 = arith.constant 0 : i32
    %c0_i32_0 = arith.constant 0 : i32
    return %arg0, %c0_i32 : i32, i32
  }
  func.func @transform_1(%arg0: i32, %arg1: i32) -> (i32, i32) {
    %c0_i32 = arith.constant 0 : i32
    %c0_i32_0 = arith.constant 0 : i32
    return %c0_i32, %arg1 : i32, i32
  }
  func.func @transform_2(%arg0: i32, %arg1: i32) -> (i32, i32) {
    %c0_i32 = arith.constant 0 : i32
    %c0_i32_0 = arith.constant 0 : i32
    return %c0_i32, %arg1 : i32, i32
  }
  func.func @transform_3(%arg0: i32, %arg1: i32) -> (i32, i32) {
    %c0_i32 = arith.constant 0 : i32
    return %arg0, %arg1 : i32, i32
  }
}

module attributes {stable_mosaic.version = 11 : i64} {
  func.func @_fused_conv_kernel(%arg0: i32, %arg1: i32, %arg2: memref<128x1024xbf16, #tpu.memory_space<vmem>>, %arg3: memref<1024x128xbf16, #tpu.memory_space<vmem>>, %arg4: memref<1x128xf32, #tpu.memory_space<vmem>>, %arg5: memref<128x128xf32, #tpu.memory_space<vmem>>) attributes {dimension_semantics = [#tpu.dimension_semantics<parallel>, #tpu.dimension_semantics<parallel>], iteration_bounds = array<i64: 1, 1>, scalar_prefetch = 0 : i64, scratch_operands = 0 : i64, tpu.core_type = #tpu.core_type<tc>, window_params = [{transform_indices = @transform_0, window_bounds = array<i64: 128, 1024>}, {transform_indices = @transform_1, window_bounds = array<i64: 1024, 128>}, {transform_indices = @transform_2, window_bounds = array<i64: 1, 128>}, {transform_indices = @transform_3, window_bounds = array<i64: 128, 128>}]} {
    %c0 = arith.constant 0 : index
    %c0_0 = arith.constant 0 : index
    %0 = vector.load %arg2[%c0, %c0_0] : memref<128x1024xbf16, #tpu.memory_space<vmem>>, vector<128x1024xbf16>
    %c0_1 = arith.constant 0 : index
    %c0_2 = arith.constant 0 : index
    %1 = vector.load %arg3[%c0_1, %c0_2] : memref<1024x128xbf16, #tpu.memory_space<vmem>>, vector<1024x128xbf16>
    %cst = arith.constant dense<0.000000e+00> : vector<128x128xf32>
    %2 = tpu.matmul %0, %1, %cst {dimension_numbers = #tpu.dot_dimension_numbers<[1], [0], [0], [1], [0, 0, 1, 1], [], []>} : vector<128x1024xbf16>, vector<1024x128xbf16>, vector<128x128xf32> -> vector<128x128xf32>
    %c0_3 = arith.constant 0 : index
    %c0_4 = arith.constant 0 : index
    %3 = vector.load %arg4[%c0_3, %c0_4] : memref<1x128xf32, #tpu.memory_space<vmem>>, vector<1x128xf32>
    %4 = vector.broadcast %3 : vector<1x128xf32> to vector<128x128xf32>
    %5 = arith.addf %2, %4 : vector<128x128xf32>
    %cst_5 = arith.constant 0.000000e+00 : f32
    %6 = vector.broadcast %cst_5 : f32 to vector<128x128xf32>
    %7 = arith.cmpf ogt, %5, %6 : vector<128x128xf32>
    %cst_6 = arith.constant 2.000000e-01 : f32
    %8 = vector.broadcast %cst_6 : f32 to vector<128x128xf32>
    %9 = arith.mulf %8, %5 : vector<128x128xf32>
    %10 = arith.select %7, %5, %9 : vector<128x128xi1>, vector<128x128xf32>
    %c0_7 = arith.constant 0 : index
    %c0_8 = arith.constant 0 : index
    %11 = vector.load %arg5[%c0_7, %c0_8] : memref<128x128xf32, #tpu.memory_space<vmem>>, vector<128x128xf32>
    tpu.vector_store %arg5[%c0_7, %c0_8], %10 {strides = array<i32>} : memref<128x128xf32, #tpu.memory_space<vmem>>, vector<128x128xf32>,
    return
  }
  func.func @transform_0(%arg0: i32, %arg1: i32) -> (i32, i32) {
    %c0_i32 = arith.constant 0 : i32
    %c0_i32_0 = arith.constant 0 : i32
    return %arg0, %c0_i32 : i32, i32
  }
  func.func @transform_1(%arg0: i32, %arg1: i32) -> (i32, i32) {
    %c0_i32 = arith.constant 0 : i32
    %c0_i32_0 = arith.constant 0 : i32
    return %c0_i32, %arg1 : i32, i32
  }
  func.func @transform_2(%arg0: i32, %arg1: i32) -> (i32, i32) {
    %c0_i32 = arith.constant 0 : i32
    %c0_i32_0 = arith.constant 0 : i32
    return %c0_i32, %arg1 : i32, i32
  }
  func.func @transform_3(%arg0: i32, %arg1: i32) -> (i32, i32) {
    %c0_i32 = arith.constant 0 : i32
    return %arg0, %arg1 : i32, i32
  }
}

module attributes {stable_mosaic.version = 11 : i64} {
  func.func @_fused_conv_kernel(%arg0: i32, %arg1: i32, %arg2: memref<32x2048xbf16, #tpu.memory_space<vmem>>, %arg3: memref<2048x256xbf16, #tpu.memory_space<vmem>>, %arg4: memref<1x256xf32, #tpu.memory_space<vmem>>, %arg5: memref<32x256xf32, #tpu.memory_space<vmem>>) attributes {dimension_semantics = [#tpu.dimension_semantics<parallel>, #tpu.dimension_semantics<parallel>], iteration_bounds = array<i64: 1, 1>, scalar_prefetch = 0 : i64, scratch_operands = 0 : i64, tpu.core_type = #tpu.core_type<tc>, window_params = [{transform_indices = @transform_0, window_bounds = array<i64: 32, 2048>}, {transform_indices = @transform_1, window_bounds = array<i64: 2048, 256>}, {transform_indices = @transform_2, window_bounds = array<i64: 1, 256>}, {transform_indices = @transform_3, window_bounds = array<i64: 32, 256>}]} {
    %c0 = arith.constant 0 : index
    %c0_0 = arith.constant 0 : index
    %0 = vector.load %arg2[%c0, %c0_0] : memref<32x2048xbf16, #tpu.memory_space<vmem>>, vector<32x2048xbf16>
    %c0_1 = arith.constant 0 : index
    %c0_2 = arith.constant 0 : index
    %1 = vector.load %arg3[%c0_1, %c0_2] : memref<2048x256xbf16, #tpu.memory_space<vmem>>, vector<2048x256xbf16>
    %cst = arith.constant dense<0.000000e+00> : vector<32x256xf32>
    %2 = tpu.matmul %0, %1, %cst {dimension_numbers = #tpu.dot_dimension_numbers<[1], [0], [0], [1], [0, 0, 1, 1], [], []>} : vector<32x2048xbf16>, vector<2048x256xbf16>, vector<32x256xf32> -> vector<32x256xf32>
    %c0_3 = arith.constant 0 : index
    %c0_4 = arith.constant 0 : index
    %3 = vector.load %arg4[%c0_3, %c0_4] : memref<1x256xf32, #tpu.memory_space<vmem>>, vector<1x256xf32>
    %4 = vector.broadcast %3 : vector<1x256xf32> to vector<32x256xf32>
    %5 = arith.addf %2, %4 : vector<32x256xf32>
    %cst_5 = arith.constant 0.000000e+00 : f32
    %6 = vector.broadcast %cst_5 : f32 to vector<32x256xf32>
    %7 = arith.cmpf ogt, %5, %6 : vector<32x256xf32>
    %cst_6 = arith.constant 2.000000e-01 : f32
    %8 = vector.broadcast %cst_6 : f32 to vector<32x256xf32>
    %9 = arith.mulf %8, %5 : vector<32x256xf32>
    %10 = arith.select %7, %5, %9 : vector<32x256xi1>, vector<32x256xf32>
    %c0_7 = arith.constant 0 : index
    %c0_8 = arith.constant 0 : index
    %11 = vector.load %arg5[%c0_7, %c0_8] : memref<32x256xf32, #tpu.memory_space<vmem>>, vector<32x256xf32>
    tpu.vector_store %arg5[%c0_7, %c0_8], %10 {strides = array<i32>} : memref<32x256xf32, #tpu.memory_space<vmem>>, vector<32x256xf32>,
    return
  }
  func.func @transform_0(%arg0: i32, %arg1: i32) -> (i32, i32) {
    %c0_i32 = arith.constant 0 : i32
    %c0_i32_0 = arith.constant 0 : i32
    return %arg0, %c0_i32 : i32, i32
  }
  func.func @transform_1(%arg0: i32, %arg1: i32) -> (i32, i32) {
    %c0_i32 = arith.constant 0 : i32
    %c0_i32_0 = arith.constant 0 : i32
    return %c0_i32, %arg1 : i32, i32
  }
  func.func @transform_2(%arg0: i32, %arg1: i32) -> (i32, i32) {
    %c0_i32 = arith.constant 0 : i32
    %c0_i32_0 = arith.constant 0 : i32
    return %c0_i32, %arg1 : i32, i32
  }
  func.func @transform_3(%arg0: i32, %arg1: i32) -> (i32, i32) {
    %c0_i32 = arith.constant 0 : i32
    return %arg0, %arg1 : i32, i32
  }
}

module attributes {stable_mosaic.version = 11 : i64} {
  func.func @_fused_conv_kernel(%arg0: i32, %arg1: i32, %arg2: memref<32x4096xbf16, #tpu.memory_space<vmem>>, %arg3: memref<4096x256xbf16, #tpu.memory_space<vmem>>, %arg4: memref<1x256xf32, #tpu.memory_space<vmem>>, %arg5: memref<32x256xf32, #tpu.memory_space<vmem>>) attributes {dimension_semantics = [#tpu.dimension_semantics<parallel>, #tpu.dimension_semantics<parallel>], iteration_bounds = array<i64: 1, 2>, scalar_prefetch = 0 : i64, scratch_operands = 0 : i64, tpu.core_type = #tpu.core_type<tc>, window_params = [{transform_indices = @transform_0, window_bounds = array<i64: 32, 4096>}, {transform_indices = @transform_1, window_bounds = array<i64: 4096, 256>}, {transform_indices = @transform_2, window_bounds = array<i64: 1, 256>}, {transform_indices = @transform_3, window_bounds = array<i64: 32, 256>}]} {
    %c0 = arith.constant 0 : index
    %c0_0 = arith.constant 0 : index
    %0 = vector.load %arg2[%c0, %c0_0] : memref<32x4096xbf16, #tpu.memory_space<vmem>>, vector<32x4096xbf16>
    %c0_1 = arith.constant 0 : index
    %c0_2 = arith.constant 0 : index
    %1 = vector.load %arg3[%c0_1, %c0_2] : memref<4096x256xbf16, #tpu.memory_space<vmem>>, vector<4096x256xbf16>
    %cst = arith.constant dense<0.000000e+00> : vector<32x256xf32>
    %2 = tpu.matmul %0, %1, %cst {dimension_numbers = #tpu.dot_dimension_numbers<[1], [0], [0], [1], [0, 0, 1, 1], [], []>} : vector<32x4096xbf16>, vector<4096x256xbf16>, vector<32x256xf32> -> vector<32x256xf32>
    %c0_3 = arith.constant 0 : index
    %c0_4 = arith.constant 0 : index
    %3 = vector.load %arg4[%c0_3, %c0_4] : memref<1x256xf32, #tpu.memory_space<vmem>>, vector<1x256xf32>
    %4 = vector.broadcast %3 : vector<1x256xf32> to vector<32x256xf32>
    %5 = arith.addf %2, %4 : vector<32x256xf32>
    %cst_5 = arith.constant 0.000000e+00 : f32
    %6 = vector.broadcast %cst_5 : f32 to vector<32x256xf32>
    %7 = arith.cmpf ogt, %5, %6 : vector<32x256xf32>
    %cst_6 = arith.constant 2.000000e-01 : f32
    %8 = vector.broadcast %cst_6 : f32 to vector<32x256xf32>
    %9 = arith.mulf %8, %5 : vector<32x256xf32>
    %10 = arith.select %7, %5, %9 : vector<32x256xi1>, vector<32x256xf32>
    %c0_7 = arith.constant 0 : index
    %c0_8 = arith.constant 0 : index
    %11 = vector.load %arg5[%c0_7, %c0_8] : memref<32x256xf32, #tpu.memory_space<vmem>>, vector<32x256xf32>
    tpu.vector_store %arg5[%c0_7, %c0_8], %10 {strides = array<i32>} : memref<32x256xf32, #tpu.memory_space<vmem>>, vector<32x256xf32>,
    return
  }
  func.func @transform_0(%arg0: i32, %arg1: i32) -> (i32, i32) {
    %c0_i32 = arith.constant 0 : i32
    %c0_i32_0 = arith.constant 0 : i32
    return %arg0, %c0_i32 : i32, i32
  }
  func.func @transform_1(%arg0: i32, %arg1: i32) -> (i32, i32) {
    %c0_i32 = arith.constant 0 : i32
    %c0_i32_0 = arith.constant 0 : i32
    return %c0_i32, %arg1 : i32, i32
  }
  func.func @transform_2(%arg0: i32, %arg1: i32) -> (i32, i32) {
    %c0_i32 = arith.constant 0 : i32
    %c0_i32_0 = arith.constant 0 : i32
    return %c0_i32, %arg1 : i32, i32
  }
  func.func @transform_3(%arg0: i32, %arg1: i32) -> (i32, i32) {
    %c0_i32 = arith.constant 0 : i32
    return %arg0, %arg1 : i32, i32
  }
}

module attributes {stable_mosaic.version = 11 : i64} {
  func.func @_fused_conv_kernel(%arg0: i32, %arg1: i32, %arg2: memref<16x8192xbf16, #tpu.memory_space<vmem>>, %arg3: memref<8192x128xbf16, #tpu.memory_space<vmem>>, %arg4: memref<1x128xf32, #tpu.memory_space<vmem>>, %arg5: memref<16x128xf32, #tpu.memory_space<vmem>>) attributes {dimension_semantics = [#tpu.dimension_semantics<parallel>, #tpu.dimension_semantics<parallel>], iteration_bounds = array<i64: 1, 1>, scalar_prefetch = 0 : i64, scratch_operands = 0 : i64, tpu.core_type = #tpu.core_type<tc>, window_params = [{transform_indices = @transform_0, window_bounds = array<i64: 16, 8192>}, {transform_indices = @transform_1, window_bounds = array<i64: 8192, 128>}, {transform_indices = @transform_2, window_bounds = array<i64: 1, 128>}, {transform_indices = @transform_3, window_bounds = array<i64: 16, 128>}]} {
    %c0 = arith.constant 0 : index
    %c0_0 = arith.constant 0 : index
    %0 = vector.load %arg2[%c0, %c0_0] : memref<16x8192xbf16, #tpu.memory_space<vmem>>, vector<16x8192xbf16>
    %c0_1 = arith.constant 0 : index
    %c0_2 = arith.constant 0 : index
    %1 = vector.load %arg3[%c0_1, %c0_2] : memref<8192x128xbf16, #tpu.memory_space<vmem>>, vector<8192x128xbf16>
    %cst = arith.constant dense<0.000000e+00> : vector<16x128xf32>
    %2 = tpu.matmul %0, %1, %cst {dimension_numbers = #tpu.dot_dimension_numbers<[1], [0], [0], [1], [0, 0, 1, 1], [], []>} : vector<16x8192xbf16>, vector<8192x128xbf16>, vector<16x128xf32> -> vector<16x128xf32>
    %c0_3 = arith.constant 0 : index
    %c0_4 = arith.constant 0 : index
    %3 = vector.load %arg4[%c0_3, %c0_4] : memref<1x128xf32, #tpu.memory_space<vmem>>, vector<1x128xf32>
    %4 = vector.broadcast %3 : vector<1x128xf32> to vector<16x128xf32>
    %5 = arith.addf %2, %4 : vector<16x128xf32>
    %c0_5 = arith.constant 0 : index
    %c0_6 = arith.constant 0 : index
    %6 = vector.load %arg5[%c0_5, %c0_6] : memref<16x128xf32, #tpu.memory_space<vmem>>, vector<16x128xf32>
    tpu.vector_store %arg5[%c0_5, %c0_6], %5 {strides = array<i32>} : memref<16x128xf32, #tpu.memory_space<vmem>>, vector<16x128xf32>,
    return
  }
  func.func @transform_0(%arg0: i32, %arg1: i32) -> (i32, i32) {
    %c0_i32 = arith.constant 0 : i32
    %c0_i32_0 = arith.constant 0 : i32
    return %arg0, %c0_i32 : i32, i32
  }
  func.func @transform_1(%arg0: i32, %arg1: i32) -> (i32, i32) {
    %c0_i32 = arith.constant 0 : i32
    %c0_i32_0 = arith.constant 0 : i32
    return %c0_i32, %arg1 : i32, i32
  }
  func.func @transform_2(%arg0: i32, %arg1: i32) -> (i32, i32) {
    %c0_i32 = arith.constant 0 : i32
    %c0_i32_0 = arith.constant 0 : i32
    return %c0_i32, %arg1 : i32, i32
  }
  func.func @transform_3(%arg0: i32, %arg1: i32) -> (i32, i32) {
    %c0_i32 = arith.constant 0 : i32
    return %arg0, %arg1 : i32, i32
  }
}

</mosaic_0001>

<bundles_post_ra>
// kernel: discriminator_forward.5
= control target key start
LH: loop header
LB: loop body
LE: loop exit
PB: predicated region body
PF: predicated region fallthrough
CT: control target
= control target key end

     0   :  { %8 = vsyncpa [#allocation3], 0  ;;  %s1340_s0 = inlined_call_operand.vmem [shape: bf16[512,128], index: 0, kind: input, shape index: {}]   ;;  %s1341_s1 = inlined_call_operand.hbm [shape: bf16[128,128], index: 1, kind: input, shape index: {}]   ;;  %s1342_s2 = inlined_call_operand.hbm [shape: f32[1,128], index: 2, kind: input, shape index: {}]   ;;  %s1343_s3 = inlined_call_operand.vmem [shape: f32[512,128], index: 3, kind: output, shape index: {}]  }
   0x1   :  { %9 = vsyncpa [#allocation5], 0  ;;  %s1137_s12 = smov 0   ;;  %s1139_s13 = smov 0  }
   0x2   :  { %s1141_s14 = smov 0  }
   0x3 LB: > { %s826_s15 = sadd.s32 4294967295, %s1111_s14   ;;  %s27_s16 = sadd.s32 1, %s1107_s13  ;;  %s1111_s14 = sphi %s1141_s14, %s15_s14   ;;  %s1107_s13 = sphi %s1139_s13, %s1353_s13   ;;  %s1103_s12 = sphi %s1137_s12, %s1352_s12  }
   0x4   : > { %p29_p0 = scmp.ge.s32.totalorder %s27_s16, 2  ;;  %p828_p1 = scmp.ge.s32.totalorder %s1111_s14, 1 }
   0x5   : > { %p138_p2 = scmp.lt.s32.totalorder %s1111_s14, 3  ;;  %p1162_p4 = scmp.eq.s32.totalorder %s826_s15, 0 }
   0x6   : > { %s1355_s16 = smov (%p29_p0, %s27_s16), 0  ;;  %s1113_s19 = smov [#allocation2]  }
   0x7   : > { %p1158_p3 = pnand %p828_p1, %p138_p2  ;;  %s152_s20 = sshll.u32 %s1113_s19, 4  ;;  %s153_s20 = int_to_ptr.vmem [resolvable:$true] %s152_s20 }
   0x8   : > { %s1348_s18 = scalar_select %p1162_p4, 1, 0 }
   0x9   : > { %s1347_s17 = scalar_select %p1158_p3, 1, 0 }
   0xa   : > { %p962_p5 = pneg %p1158_p3  ;;  %s1114_s22 = smov [#allocation4]  }
   0xb   : > { %s168_s23 = sshll.u32 %s1114_s22, 4  ;;  %s1025_s26 = scalar_lea.hbm %s1341_s1, 1024  ;;  %s1174_s23 = int_to_ptr.vmem [resolvable:$true] %s168_s23 }
   0xc   : > { %p1170_p6 = pnand %p1162_p4, %p962_p5  ;;  %p1026_p7 = scmp.ne.s32.totalorder %s1341_s1, %s1025_s26 }
   0xd   : > { %p1032_p11 = scmp.lt.u32.totalorder %s1025_s26, %s1341_s1 }
   0xe   : > { %p1027_p8 = pneg %p1170_p6 }
  0x10   : > { %p1028_p9 = pnand %p1027_p8, %p1026_p7 }
  0x12   : > { %p1029_p10 = pneg %p1028_p9 }
  0x14   : > { %p1034_p12 = pnand %p1032_p11, %p1029_p10 }
  0x16   : > { %1037 = shalt.err (!%p1034_p12)
}
  0x17   : > { %s1038_s4 = scalar_lea.vmem %s153_s20, 1024  ;;  %p1046_p2 = scmp.lt.s32.totalorder %s153_s20, %s153_s20 }
  0x18   : > { %p1039_p13 = scmp.ne.s32.totalorder %s153_s20, %s1038_s4  ;;  %p1047_p5 = scmp.lt.s32.totalorder %s1038_s4, %s1038_s4 }
  0x1a   : > { %p1041_p0 = pnand %p1039_p13, %p1027_p8  ;;  %p1048_p4 = por %p1047_p5, %p1046_p2 }
  0x1c   : > { %p1042_p1 = pneg %p1041_p0 }
  0x1e   : > { %p1049_p3 = pnand %p1048_p4, %p1042_p1 }
  0x20   : > { %1052 = shalt.err (!%p1049_p3)
}
  0x21   : > { %s1115_s5 = smov 64   ;;  %s1116_s6 = smov 4  }
  0x22   : > { %965 = dma.hbm_to_vmem [thread:$0]  (!%p1170_p6), %s1341_s1, 1024, %s153_s20, [#allocation3], %s1115_s5, %s1115_s5, %s1116_s6  }
  0x23   : > { %s1053_s11 = scalar_lea.hbm %s1342_s2, 16 }
  0x24   : > { %p1054_p7 = scmp.ne.s32.totalorder %s1342_s2, %s1053_s11  ;;  %p1060_p9 = scmp.lt.u32.totalorder %s1053_s11, %s1342_s2 }
  0x26   : > { %p1056_p3 = pnand %p1054_p7, %p1027_p8 }
  0x28   : > { %p1057_p4 = pneg %p1056_p3 }
  0x2a   : > { %p1062_p10 = pnand %p1060_p9, %p1057_p4 }
  0x2c   : > { %1065 = shalt.err (!%p1062_p10)
}
  0x2d   : > { %s1066_s20 = scalar_lea.vmem %s1174_s23, 16  ;;  %s1073_s25 = scalar_lea.vmem %s1174_s23, 32 }
  0x2e   : > { %p1067_p11 = scmp.ne.s32.totalorder %s1174_s23, %s1066_s20  ;;  %p1074_p0 = scmp.lt.s32.totalorder %s1174_s23, %s1174_s23 }
  0x2f   : > { %p1075_p1 = scmp.lt.s32.totalorder %s1073_s25, %s1066_s20 }
  0x30   : > { %p1069_p12 = pnand %p1067_p11, %p1027_p8 }
  0x31   : > { %p1076_p2 = por %p1075_p1, %p1074_p0 }
  0x32   : > { %p1070_p13 = pneg %p1069_p12 }
  0x34   : > { %p1077_p5 = pnand %p1076_p2, %p1070_p13 }
  0x36   : > { %1080 = shalt.err (!%p1077_p5)
}
  0x37   : > { %968 = dma.hbm_to_vmem [thread:$0]  (!%p1170_p6), %s1342_s2, 16, %s1174_s23, [#allocation5]  }
  0x38   : > { %p1350_p7 = scmp.ne.s32.totalorder %s1347_s17, 0 }
  0x39   : > { %p1351_p8 = scmp.ne.s32.totalorder (!%p1350_p7), %s1348_s18, 0 }
  0x3a   : > { %190 = sbr.rel (%p1350_p7) target bundleno = 350 (0x15e), region = 32 }
  0x41   : > { %1094 = dma.done.wait (%p1351_p8), [#allocation3], 1024  }
  0x42   : > { %1096 = vsyncadd (%p1351_p8), [#allocation3], 4294966272 }
  0x43   : > { %1098 = dma.done.wait (%p1351_p8), [#allocation5], 16  }
  0x44   : > { %1100 = vsyncadd (%p1351_p8), [#allocation5], 4294967280  ;;  %s835_s21 = sshll.u32 %s1103_s12, 5  ;;  %v1001_v0 = vld [vmem:[#allocation2] sm:$0xff]   ;;  %v1002_v1 = vld [vmem:[#allocation2 + $0x8] sm:$0xff]  }
  0x45   : > { %p222_p3 = scmp.lt.s32.totalorder %s835_s21, 63  ;;  %890 = vmatprep.subr.bf16.mxu0 %v1001_v0  ;;  %938 = vmatprep.subr.bf16.mxu1 %v1001_v0  ;;  %v1003_v2 = vld [vmem:[#allocation2 + $0x10] sm:$0xff]   ;;  %v1004_v3 = vld [vmem:[#allocation2 + $0x18] sm:$0xff]   ;;  %v1005_v6 = vld [vmem:[#allocation2 + $0x20] sm:$0xff]  }
  0x46   : > { %891 = vmatpush3.bf16.msra.mxu0 %v1001_v0  ;;  %946 = vmatpush3.bf16.msra.mxu1 %v1001_v0  ;;  %v1006_v7 = vld [vmem:[#allocation2 + $0x28] sm:$0xff]   ;;  %v1007_v8 = vld [vmem:[#allocation2 + $0x30] sm:$0xff]   ;;  %v1008_v9 = vld [vmem:[#allocation2 + $0x38] sm:$0xff]  }
  0x47   : > { %s1357_s21 = smov (!%p222_p3, %s835_s21), 63  ;;  %892 = vmatprep.subr.bf16.mxu0 %v1002_v1  ;;  %939 = vmatprep.subr.bf16.mxu1 %v1002_v1  ;;  %v1259_v24 = vld [vmem:[#allocation4] ss:$0 sm:$0xff] }
  0x48   : > { %s836_s17 = sshll.u32 %s1357_s21, 2  ;;  %s838_s12 = sshll.u32 %s1357_s21, 3 }
  0x49   : > { %s1241_s18 = scalar_lea.vmem %s1340_s0, %s836_s17  ;;  %s1269_s4 = scalar_lea.vmem %s1343_s3, %s838_s12 }
  0x4a   : > { %893 = vmatpush3.bf16.msra.mxu0 %v1002_v1  ;;  %947 = vmatpush3.bf16.msra.mxu1 %v1002_v1  ;;  %v1009_v4 = vld [vmem:[%s1241_s18] sm:$0xff]   ;;  %v1011_v10 = vld [vmem:[%s1241_s18 + $0x8] sm:$0xff]   ;;  %v1013_v12 = vld [vmem:[%s1241_s18 + $0x10] sm:$0xff]  }
  0x4b   : > { %894 = vmatprep.subr.bf16.mxu0 %v1003_v2  ;;  %940 = vmatprep.subr.bf16.mxu1 %v1003_v2  ;;  %v1010_v5 = vld [vmem:[%s1241_s18 + $0x40] sm:$0xff]   ;;  %v1012_v11 = vld [vmem:[%s1241_s18 + $0x48] sm:$0xff]   ;;  %v1014_v13 = vld [vmem:[%s1241_s18 + $0x50] sm:$0xff]  }
  0x4c   : > { %906 = vmatprep.mubr.bf16.mxu0 %v1009_v4  ;;  %922 = vmatprep.mubr.bf16.mxu1 %v1010_v5  ;;  %v1015_v14 = vld [vmem:[%s1241_s18 + $0x18] sm:$0xff]   ;;  %v1017_v16 = vld [vmem:[%s1241_s18 + $0x20] sm:$0xff]   ;;  %v1019_v18 = vld [vmem:[%s1241_s18 + $0x28] sm:$0xff]  }
  0x4d   : > { %v1016_v15 = vld [vmem:[%s1241_s18 + $0x58] sm:$0xff]   ;;  %v1018_v17 = vld [vmem:[%s1241_s18 + $0x60] sm:$0xff]   ;;  %v1020_v19 = vld [vmem:[%s1241_s18 + $0x68] sm:$0xff]  }
  0x4e   : > { %895 = vmatpush3.bf16.msra.mxu0 %v1003_v2  ;;  %948 = vmatpush3.bf16.msra.mxu1 %v1003_v2  ;;  %v1021_v20 = vld [vmem:[%s1241_s18 + $0x30] sm:$0xff]   ;;  %v1023_v22 = vld [vmem:[%s1241_s18 + $0x38] sm:$0xff]  }
  0x4f   : > { %896 = vmatprep.subr.bf16.mxu0 %v1004_v3  ;;  %941 = vmatprep.subr.bf16.mxu1 %v1004_v3  ;;  %v1022_v21 = vld [vmem:[%s1241_s18 + $0x70] sm:$0xff]   ;;  %v1024_v23 = vld [vmem:[%s1241_s18 + $0x78] sm:$0xff]  }
  0x52   : > { %897 = vmatpush3.bf16.msra.mxu0 %v1004_v3  ;;  %949 = vmatpush3.bf16.msra.mxu1 %v1004_v3 }
  0x53   : > { %898 = vmatprep.subr.bf16.mxu0 %v1005_v6  ;;  %942 = vmatprep.subr.bf16.mxu1 %v1005_v6 }
  0x56   : > { %899 = vmatpush3.bf16.msra.mxu0 %v1005_v6  ;;  %950 = vmatpush3.bf16.msra.mxu1 %v1005_v6 }
  0x57   : > { %900 = vmatprep.subr.bf16.mxu0 %v1006_v7  ;;  %943 = vmatprep.subr.bf16.mxu1 %v1006_v7 }
  0x5a   : > { %901 = vmatpush3.bf16.msra.mxu0 %v1006_v7  ;;  %951 = vmatpush3.bf16.msra.mxu1 %v1006_v7 }
  0x5b   : > { %902 = vmatprep.subr.bf16.mxu0 %v1007_v8  ;;  %944 = vmatprep.subr.bf16.mxu1 %v1007_v8 }
  0x5e   : > { %903 = vmatpush3.bf16.msra.mxu0 %v1007_v8  ;;  %952 = vmatpush3.bf16.msra.mxu1 %v1007_v8 }
  0x5f   : > { %904 = vmatprep.subr.bf16.mxu0 %v1008_v9  ;;  %945 = vmatprep.subr.bf16.mxu1 %v1008_v9 }
  0x62   : > { %905 = vmatpush3.bf16.msra.mxu0 %v1008_v9  ;;  %953 = vmatpush3.bf16.msra.mxu1 %v1008_v9 }
  0x65   : > { %907 = vmatmul.mubr.bf16.vlgmr.msra.gmra.mrb[0].mxu0 %v1011_v10  ;;  %923 = vmatmul.mubr.bf16.vlgmr.msra.gmra.mrb[0].mxu1 %v1012_v11 }
  0x66   : > { %910 = vmatprep.mubr.bf16.mxu0 %v1013_v12  ;;  %926 = vmatprep.mubr.bf16.mxu1 %v1014_v13 }
  0x6d   : > { %911 = vmatmul.mubr.bf16.gmra.mrb[4].mxu0 %v1015_v14  ;;  %927 = vmatmul.mubr.bf16.gmra.mrb[4].mxu1 %v1016_v15 }
  0x6e   : > { %914 = vmatprep.mubr.bf16.mxu0 %v1017_v16  ;;  %930 = vmatprep.mubr.bf16.mxu1 %v1018_v17 }
  0x75   : > { %915 = vmatmul.mubr.bf16.gmra.mrb[8].mxu0 %v1019_v18  ;;  %931 = vmatmul.mubr.bf16.gmra.mrb[8].mxu1 %v1020_v19 }
  0x76   : > { %918 = vmatprep.mubr.bf16.mxu0 %v1021_v20  ;;  %934 = vmatprep.mubr.bf16.mxu1 %v1022_v21 }
  0x7d   : > { %919 = vmatmul.mubr.bf16.gmra.mrb[12].mxu0 %v1023_v22  ;;  %935 = vmatmul.mubr.bf16.gmra.mrb[12].mxu1 %v1024_v23 }
 0x138   : > { %v908_v25 = vpop.f32.mrb[0].mxu0  ;;  %v924_v26 = vpop.f32.mrb[0].mxu1 }
 0x139   : > { %v479_v27 = vadd.f32 %v908_v25, %v1259_v24  ;;  %v543_v28 = vadd.f32 %v924_v26, %v1259_v24  ;;  %v470_v29 = vpop.f32.mrb[1].mxu0  ;;  %v534_v30 = vpop.f32.mrb[1].mxu1 }
 0x13a   : > { %v471_v31 = vadd.f32 %v1259_v24, %v470_v29  ;;  %v535_v32 = vadd.f32 %v1259_v24, %v534_v30  ;;  %v909_v33 = vpop.f32.mrb[2].mxu0  ;;  %v925_v34 = vpop.f32.mrb[2].mxu1 }
 0x13b   : > { %vm599_vm0 = vcmp.gt.f32.partialorder %v479_v27, 0.0  ;;  %v631_v35 = vmul.f32 0.2, %v479_v27  ;;  %vm615_vm1 = vcmp.gt.f32.partialorder %v543_v28, 0.0  ;;  %v647_v36 = vmul.f32 0.2, %v543_v28 }
 0x13c   : > { %vm597_vm2 = vcmp.gt.f32.partialorder %v471_v31, 0.0  ;;  %v629_v37 = vmul.f32 0.2, %v471_v31  ;;  %vm613_vm3 = vcmp.gt.f32.partialorder %v535_v32, 0.0  ;;  %v645_v38 = vmul.f32 0.2, %v535_v32 }
 0x13d   : > { %v663_v39 = vsel %vm599_vm0, %v479_v27, %v631_v35  ;;  %v679_v40 = vsel %vm615_vm1, %v543_v28, %v647_v36  ;;  %v482_v41 = vadd.f32 %v909_v33, %v1259_v24  ;;  %v546_v42 = vadd.f32 %v925_v34, %v1259_v24  ;;  %v473_v43 = vpop.f32.mrb[3].mxu0  ;;  %v537_v44 = vpop.f32.mrb[3].mxu1 }
 0x13e   : > { %695 = vst [vmem:[%s1269_s4 + $0x10] sm:$0xff] %v663_v39  ;;  %711 = vst [vmem:[%s1269_s4 + $0x90] sm:$0xff] %v679_v40  ;;  %v661_v45 = vsel %vm597_vm2, %v471_v31, %v629_v37  ;;  %v677_v46 = vsel %vm613_vm3, %v535_v32, %v645_v38  ;;  %v474_v47 = vadd.f32 %v1259_v24, %v473_v43 }
 0x13f   : > { %v538_v48 = vadd.f32 %v1259_v24, %v537_v44  ;;  %693 = vst [vmem:[%s1269_s4] sm:$0xff] %v661_v45  ;;  %709 = vst [vmem:[%s1269_s4 + $0x80] sm:$0xff] %v677_v46  ;;  %vm600_vm4 = vcmp.gt.f32.partialorder %v482_v41, 0.0  ;;  %v632_v49 = vmul.f32 0.2, %v482_v41  ;;  %vm616_vm5 = vcmp.gt.f32.partialorder %v546_v42, 0.0 }
 0x140   : > { %v648_v50 = vmul.f32 0.2, %v546_v42  ;;  %vm598_vm6 = vcmp.gt.f32.partialorder %v474_v47, 0.0  ;;  %v630_v51 = vmul.f32 0.2, %v474_v47  ;;  %v912_v55 = vpop.f32.mrb[4].mxu0 }
 0x141   : > { %vm614_vm7 = vcmp.gt.f32.partialorder %v538_v48, 0.0  ;;  %v646_v52 = vmul.f32 0.2, %v538_v48  ;;  %v664_v53 = vsel %vm600_vm4, %v482_v41, %v632_v49  ;;  %v928_v56 = vpop.f32.mrb[4].mxu1  ;;  %v495_v59 = vadd.f32 %v912_v55, %v1259_v24  ;;  %v486_v61 = vpop.f32.mrb[5].mxu0 }
 0x142   : > { %v680_v54 = vsel %vm616_vm5, %v546_v42, %v648_v50  ;;  %696 = vst [vmem:[%s1269_s4 + $0x18] sm:$0xff] %v664_v53  ;;  %v662_v57 = vsel %vm598_vm6, %v474_v47, %v630_v51  ;;  %v559_v60 = vadd.f32 %v928_v56, %v1259_v24  ;;  %v550_v62 = vpop.f32.mrb[5].mxu1  ;;  %v487_v63 = vadd.f32 %v1259_v24, %v486_v61  ;;  %v913_v1 = vpop.f32.mrb[6].mxu0 }
 0x143   : > { %712 = vst [vmem:[%s1269_s4 + $0x98] sm:$0xff] %v680_v54  ;;  %v678_v58 = vsel %vm614_vm7, %v538_v48, %v646_v52  ;;  %694 = vst [vmem:[%s1269_s4 + $0x8] sm:$0xff] %v662_v57  ;;  %v551_v0 = vadd.f32 %v1259_v24, %v550_v62  ;;  %v929_v2 = vpop.f32.mrb[6].mxu1  ;;  %vm603_vm8 = vcmp.gt.f32.partialorder %v495_v59, 0.0  ;;  %v635_v3 = vmul.f32 0.2, %v495_v59 }
 0x144   : > { %710 = vst [vmem:[%s1269_s4 + $0x88] sm:$0xff] %v678_v58  ;;  %vm619_vm9 = vcmp.gt.f32.partialorder %v559_v60, 0.0  ;;  %v651_v4 = vmul.f32 0.2, %v559_v60  ;;  %vm601_vm10 = vcmp.gt.f32.partialorder %v487_v63, 0.0  ;;  %v498_v9 = vadd.f32 %v913_v1, %v1259_v24  ;;  %v489_v11 = vpop.f32.mrb[7].mxu0 }
 0x145   : > { %v633_v5 = vmul.f32 0.2, %v487_v63  ;;  %vm617_vm11 = vcmp.gt.f32.partialorder %v551_v0, 0.0  ;;  %v649_v6 = vmul.f32 0.2, %v551_v0  ;;  %v667_v7 = vsel %vm603_vm8, %v495_v59, %v635_v3  ;;  %v553_v12 = vpop.f32.mrb[7].mxu1 }
 0x146   : > { %v683_v8 = vsel %vm619_vm9, %v559_v60, %v651_v4  ;;  %v562_v10 = vadd.f32 %v929_v2, %v1259_v24  ;;  %699 = vst [vmem:[%s1269_s4 + $0x30] sm:$0xff] %v667_v7  ;;  %v490_v15 = vadd.f32 %v1259_v24, %v489_v11  ;;  %v554_v16 = vadd.f32 %v1259_v24, %v553_v12 }
 0x147   : > { %715 = vst [vmem:[%s1269_s4 + $0xb0] sm:$0xff] %v683_v8  ;;  %v665_v13 = vsel %vm601_vm10, %v487_v63, %v633_v5  ;;  %v681_v14 = vsel %vm617_vm11, %v551_v0, %v649_v6  ;;  %vm604_vm12 = vcmp.gt.f32.partialorder %v498_v9, 0.0  ;;  %v636_v17 = vmul.f32 0.2, %v498_v9 }
 0x148   : > { %697 = vst [vmem:[%s1269_s4 + $0x20] sm:$0xff] %v665_v13  ;;  %713 = vst [vmem:[%s1269_s4 + $0xa0] sm:$0xff] %v681_v14  ;;  %vm620_vm13 = vcmp.gt.f32.partialorder %v562_v10, 0.0  ;;  %v652_v18 = vmul.f32 0.2, %v562_v10  ;;  %vm602_vm14 = vcmp.gt.f32.partialorder %v490_v15, 0.0 }
 0x149   : > { %v634_v19 = vmul.f32 0.2, %v490_v15  ;;  %vm618_vm15 = vcmp.gt.f32.partialorder %v554_v16, 0.0  ;;  %v650_v20 = vmul.f32 0.2, %v554_v16  ;;  %v668_v21 = vsel %vm604_vm12, %v498_v9, %v636_v17  ;;  %v916_v23 = vpop.f32.mrb[8].mxu0 }
 0x14a   : > { %v684_v22 = vsel %vm620_vm13, %v562_v10, %v652_v18  ;;  %v932_v25 = vpop.f32.mrb[8].mxu1  ;;  %700 = vst [vmem:[%s1269_s4 + $0x38] sm:$0xff] %v668_v21  ;;  %v511_v28 = vadd.f32 %v916_v23, %v1259_v24  ;;  %v502_v30 = vpop.f32.mrb[9].mxu0 }
 0x14b   : > { %716 = vst [vmem:[%s1269_s4 + $0xb8] sm:$0xff] %v684_v22  ;;  %v666_v26 = vsel %vm602_vm14, %v490_v15, %v634_v19  ;;  %v682_v27 = vsel %vm618_vm15, %v554_v16, %v650_v20  ;;  %v575_v29 = vadd.f32 %v932_v25, %v1259_v24  ;;  %v566_v31 = vpop.f32.mrb[9].mxu1  ;;  %v503_v32 = vadd.f32 %v1259_v24, %v502_v30  ;;  %v917_v34 = vpop.f32.mrb[10].mxu0 }
 0x14c   : > { %698 = vst [vmem:[%s1269_s4 + $0x28] sm:$0xff] %v666_v26  ;;  %714 = vst [vmem:[%s1269_s4 + $0xa8] sm:$0xff] %v682_v27  ;;  %v567_v33 = vadd.f32 %v1259_v24, %v566_v31  ;;  %v933_v35 = vpop.f32.mrb[10].mxu1  ;;  %vm607_vm0 = vcmp.gt.f32.partialorder %v511_v28, 0.0  ;;  %v639_v36 = vmul.f32 0.2, %v511_v28  ;;  %v514_v42 = vadd.f32 %v917_v34, %v1259_v24 }
 0x14d   : > { %vm623_vm1 = vcmp.gt.f32.partialorder %v575_v29, 0.0  ;;  %v655_v37 = vmul.f32 0.2, %v575_v29  ;;  %vm605_vm2 = vcmp.gt.f32.partialorder %v503_v32, 0.0  ;;  %v637_v38 = vmul.f32 0.2, %v503_v32 }
 0x14e   : > { %vm621_vm3 = vcmp.gt.f32.partialorder %v567_v33, 0.0  ;;  %v653_v39 = vmul.f32 0.2, %v567_v33  ;;  %v671_v40 = vsel %vm607_vm0, %v511_v28, %v639_v36  ;;  %v578_v43 = vadd.f32 %v933_v35, %v1259_v24  ;;  %v505_v44 = vpop.f32.mrb[11].mxu0  ;;  %v569_v45 = vpop.f32.mrb[11].mxu1 }
 0x14f   : > { %v687_v41 = vsel %vm623_vm1, %v575_v29, %v655_v37  ;;  %703 = vst [vmem:[%s1269_s4 + $0x50] sm:$0xff] %v671_v40  ;;  %v669_v46 = vsel %vm605_vm2, %v503_v32, %v637_v38  ;;  %v506_v48 = vadd.f32 %v1259_v24, %v505_v44  ;;  %v570_v49 = vadd.f32 %v1259_v24, %v569_v45 }
 0x150   : > { %719 = vst [vmem:[%s1269_s4 + $0xd0] sm:$0xff] %v687_v41  ;;  %v685_v47 = vsel %vm621_vm3, %v567_v33, %v653_v39  ;;  %v920_v50 = vpop.f32.mrb[12].mxu0  ;;  %v936_v51 = vpop.f32.mrb[12].mxu1  ;;  %701 = vst [vmem:[%s1269_s4 + $0x40] sm:$0xff] %v669_v46  ;;  %vm608_vm4 = vcmp.gt.f32.partialorder %v514_v42, 0.0  ;;  %vm624_vm5 = vcmp.gt.f32.partialorder %v578_v43, 0.0 }
 0x151   : > { %717 = vst [vmem:[%s1269_s4 + $0xc0] sm:$0xff] %v685_v47  ;;  %v640_v52 = vmul.f32 0.2, %v514_v42  ;;  %v656_v53 = vmul.f32 0.2, %v578_v43  ;;  %vm606_vm6 = vcmp.gt.f32.partialorder %v506_v48, 0.0  ;;  %v527_v58 = vadd.f32 %v920_v50, %v1259_v24 }
 0x152   : > { %v638_v54 = vmul.f32 0.2, %v506_v48  ;;  %vm622_vm7 = vcmp.gt.f32.partialorder %v570_v49, 0.0  ;;  %v654_v55 = vmul.f32 0.2, %v570_v49  ;;  %v591_v59 = vadd.f32 %v936_v51, %v1259_v24  ;;  %v518_v60 = vpop.f32.mrb[13].mxu0 }
 0x153   : > { %v672_v56 = vsel %vm608_vm4, %v514_v42, %v640_v52  ;;  %v688_v57 = vsel %vm624_vm5, %v578_v43, %v656_v53  ;;  %v582_v61 = vpop.f32.mrb[13].mxu1  ;;  %v519_v0 = vadd.f32 %v1259_v24, %v518_v60  ;;  %v921_v2 = vpop.f32.mrb[14].mxu0  ;;  %vm611_vm8 = vcmp.gt.f32.partialorder %v527_v58, 0.0 }
 0x154   : > { %704 = vst [vmem:[%s1269_s4 + $0x58] sm:$0xff] %v672_v56  ;;  %720 = vst [vmem:[%s1269_s4 + $0xd8] sm:$0xff] %v688_v57  ;;  %v670_v62 = vsel %vm606_vm6, %v506_v48, %v638_v54  ;;  %v686_v63 = vsel %vm622_vm7, %v570_v49, %v654_v55  ;;  %v583_v1 = vadd.f32 %v1259_v24, %v582_v61  ;;  %v937_v3 = vpop.f32.mrb[14].mxu1  ;;  %v643_v4 = vmul.f32 0.2, %v527_v58  ;;  %v521_v12 = vpop.f32.mrb[15].mxu0 }
 0x155   : > { %702 = vst [vmem:[%s1269_s4 + $0x48] sm:$0xff] %v670_v62  ;;  %718 = vst [vmem:[%s1269_s4 + $0xc8] sm:$0xff] %v686_v63  ;;  %vm627_vm9 = vcmp.gt.f32.partialorder %v591_v59, 0.0  ;;  %v659_v5 = vmul.f32 0.2, %v591_v59  ;;  %vm609_vm10 = vcmp.gt.f32.partialorder %v519_v0, 0.0  ;;  %v530_v10 = vadd.f32 %v921_v2, %v1259_v24 }
 0x156   : > { %v641_v6 = vmul.f32 0.2, %v519_v0  ;;  %vm625_vm11 = vcmp.gt.f32.partialorder %v583_v1, 0.0  ;;  %v657_v7 = vmul.f32 0.2, %v583_v1  ;;  %v675_v8 = vsel %vm611_vm8, %v527_v58, %v643_v4  ;;  %v585_v13 = vpop.f32.mrb[15].mxu1 }
 0x157   : > { %v691_v9 = vsel %vm627_vm9, %v591_v59, %v659_v5  ;;  %v594_v11 = vadd.f32 %v937_v3, %v1259_v24  ;;  %707 = vst [vmem:[%s1269_s4 + $0x70] sm:$0xff] %v675_v8  ;;  %v522_v16 = vadd.f32 %v1259_v24, %v521_v12  ;;  %v586_v17 = vadd.f32 %v1259_v24, %v585_v13 }
 0x158   : > { %723 = vst [vmem:[%s1269_s4 + $0xf0] sm:$0xff] %v691_v9  ;;  %v673_v14 = vsel %vm609_vm10, %v519_v0, %v641_v6  ;;  %v689_v15 = vsel %vm625_vm11, %v583_v1, %v657_v7  ;;  %vm612_vm12 = vcmp.gt.f32.partialorder %v530_v10, 0.0  ;;  %v644_v18 = vmul.f32 0.2, %v530_v10 }
 0x159   : > { %705 = vst [vmem:[%s1269_s4 + $0x60] sm:$0xff] %v673_v14  ;;  %721 = vst [vmem:[%s1269_s4 + $0xe0] sm:$0xff] %v689_v15  ;;  %vm628_vm13 = vcmp.gt.f32.partialorder %v594_v11, 0.0  ;;  %v660_v19 = vmul.f32 0.2, %v594_v11  ;;  %vm610_vm14 = vcmp.gt.f32.partialorder %v522_v16, 0.0 }
 0x15a   : > { %v642_v20 = vmul.f32 0.2, %v522_v16  ;;  %vm626_vm15 = vcmp.gt.f32.partialorder %v586_v17, 0.0  ;;  %v658_v21 = vmul.f32 0.2, %v586_v17  ;;  %v676_v22 = vsel %vm612_vm12, %v530_v10, %v644_v18 }
 0x15b   : > { %v692_v23 = vsel %vm628_vm13, %v594_v11, %v660_v19  ;;  %708 = vst [vmem:[%s1269_s4 + $0x78] sm:$0xff] %v676_v22 }
 0x15c   : > { %724 = vst [vmem:[%s1269_s4 + $0xf8] sm:$0xff] %v692_v23  ;;  %v674_v25 = vsel %vm610_vm14, %v522_v16, %v642_v20  ;;  %v690_v26 = vsel %vm626_vm15, %v586_v17, %v658_v21 }
 0x15d   : > { %706 = vst [vmem:[%s1269_s4 + $0x68] sm:$0xff] %v674_v25  ;;  %722 = vst [vmem:[%s1269_s4 + $0xe8] sm:$0xff] %v690_v26 }
 0x15e PF: > { %s15_s14 = sadd.s32 1, %s1111_s14   ;;  %s1352_s12 = smov %s1107_s13 }
 0x15f   : > { %p12_p6 = scmp.ge.s32.totalorder %s15_s14, 4   ;;  %s1353_s13 = smov %s1355_s16 }
 0x161   :  { %14 = sbr.rel (!%p12_p6) target bundleno = 3 (0x3), region = 73 }
 0x168   :  { %753 = vsyncpa [#allocation3], 1 }
 0x169   :  { %755 = vsyncpa [#allocation3 + $0x1], 1 }
 0x16a   :  { %756 = vsyncpa [#allocation5], 1 }

// kernel: discriminator_forward.6
= control target key start
LH: loop header
LB: loop body
LE: loop exit
PB: predicated region body
PF: predicated region fallthrough
CT: control target
= control target key end

     0   :  { %s2344_s1 = inlined_call_operand.vmem [shape: bf16[1024,128], index: 1, kind: input, shape index: {}]   ;;  %s2345_s0 = inlined_call_operand.vmem [shape: bf16[128,1024], index: 0, kind: input, shape index: {}]   ;;  %s2346_s2 = inlined_call_operand.vmem [shape: f32[1,128], index: 2, kind: input, shape index: {}]   ;;  %s2347_s3 = inlined_call_operand.vmem [shape: f32[128,128], index: 3, kind: output, shape index: {}]  }
   0x1   :  { %v1759_v0 = vld [vmem:[%s2344_s1 + $0x40] sm:$0xff]   ;;  %v1763_v4 = vld [vmem:[%s2344_s1 + $0x48] sm:$0xff]   ;;  %v1767_v8 = vld [vmem:[%s2344_s1 + $0x50] sm:$0xff]  }
   0x2   :  { %v1760_v1 = vld [vmem:[%s2344_s1 + $0xc0] sm:$0xff]   ;;  %1503 = vmatprep.subr.bf16.mxu0 %v1759_v0  ;;  %v1764_v5 = vld [vmem:[%s2344_s1 + $0xc8] sm:$0xff]   ;;  %v1768_v9 = vld [vmem:[%s2344_s1 + $0xd0] sm:$0xff]  }
   0x3   :  { %v1761_v2 = vld [vmem:[%s2344_s1] sm:$0xff]   ;;  %1567 = vmatprep.subr.bf16.mxu1 %v1760_v1  ;;  %v1765_v6 = vld [vmem:[%s2344_s1 + $0x8] sm:$0xff]   ;;  %v1769_v10 = vld [vmem:[%s2344_s1 + $0x10] sm:$0xff]  }
   0x4   :  { %v1762_v3 = vld [vmem:[%s2344_s1 + $0x80] sm:$0xff]   ;;  %1504 = vmatpush3.bf16.msra.mxu0 %v1761_v2  ;;  %v1766_v7 = vld [vmem:[%s2344_s1 + $0x88] sm:$0xff]   ;;  %v1770_v11 = vld [vmem:[%s2344_s1 + $0x90] sm:$0xff]  }
   0x5   :  { %1568 = vmatpush3.bf16.msra.mxu1 %v1762_v3  ;;  %1505 = vmatprep.subr.bf16.mxu0 %v1763_v4  ;;  %v1771_v12 = vld [vmem:[%s2344_s1 + $0x58] sm:$0xff]   ;;  %v1775_v16 = vld [vmem:[%s2344_s1 + $0x60] sm:$0xff]   ;;  %v1779_v20 = vld [vmem:[%s2344_s1 + $0x68] sm:$0xff]  }
   0x6   :  { %1569 = vmatprep.subr.bf16.mxu1 %v1764_v5  ;;  %v1772_v13 = vld [vmem:[%s2344_s1 + $0xd8] sm:$0xff]   ;;  %v1776_v17 = vld [vmem:[%s2344_s1 + $0xe0] sm:$0xff]   ;;  %v1780_v21 = vld [vmem:[%s2344_s1 + $0xe8] sm:$0xff]  }
   0x7   :  { %v1773_v14 = vld [vmem:[%s2344_s1 + $0x18] sm:$0xff]   ;;  %v1777_v18 = vld [vmem:[%s2344_s1 + $0x20] sm:$0xff]   ;;  %v1781_v22 = vld [vmem:[%s2344_s1 + $0x28] sm:$0xff]  }
   0x8   :  { %1506 = vmatpush3.bf16.msra.mxu0 %v1765_v6  ;;  %v1774_v15 = vld [vmem:[%s2344_s1 + $0x98] sm:$0xff]   ;;  %v1778_v19 = vld [vmem:[%s2344_s1 + $0xa0] sm:$0xff]   ;;  %v1782_v23 = vld [vmem:[%s2344_s1 + $0xa8] sm:$0xff]  }
   0x9   :  { %1570 = vmatpush3.bf16.msra.mxu1 %v1766_v7  ;;  %1507 = vmatprep.subr.bf16.mxu0 %v1767_v8  ;;  %v1783_v24 = vld [vmem:[%s2344_s1 + $0x70] sm:$0xff]   ;;  %v1787_v28 = vld [vmem:[%s2344_s1 + $0x78] sm:$0xff]   ;;  %v15_v32 = vld [vmem:[%s2345_s0] sm:$0xff] }
   0xa   :  { %1571 = vmatprep.subr.bf16.mxu1 %v1768_v9  ;;  %v1784_v25 = vld [vmem:[%s2344_s1 + $0xf0] sm:$0xff]   ;;  %v1788_v29 = vld [vmem:[%s2344_s1 + $0xf8] sm:$0xff]   ;;  %v19_v33 = vld [vmem:[%s2345_s0 + $0x20] sm:$0xff] }
   0xb   :  { %v1785_v26 = vld [vmem:[%s2344_s1 + $0x30] sm:$0xff]   ;;  %v1789_v30 = vld [vmem:[%s2344_s1 + $0x38] sm:$0xff]   ;;  %v16_v34 = vld [vmem:[%s2345_s0 + $0x8] sm:$0xff]  ;;  %v1375_v35 = vcombine.low %v15_v32, %v19_v33  ;;  %v1376_v36 = vcombine.high %v15_v32, %v19_v33 }
   0xc   :  { %1508 = vmatpush3.bf16.msra.mxu0 %v1769_v10  ;;  %v1786_v27 = vld [vmem:[%s2344_s1 + $0xb0] sm:$0xff]   ;;  %v1790_v31 = vld [vmem:[%s2344_s1 + $0xb8] sm:$0xff]   ;;  %v20_v37 = vld [vmem:[%s2345_s0 + $0x28] sm:$0xff] }
   0xd   :  { %1572 = vmatpush3.bf16.msra.mxu1 %v1770_v11  ;;  %1509 = vmatprep.subr.bf16.mxu0 %v1771_v12  ;;  %v1377_v38 = vcombine.low %v16_v34, %v20_v37  ;;  %v1378_v39 = vcombine.high %v16_v34, %v20_v37  ;;  %v1791_v40 = vld [vmem:[%s2344_s1 + $0x140] sm:$0xff]   ;;  %v24_v47 = vld [vmem:[%s2345_s0 + $0x48] sm:$0xff]  ;;  %v1799_v62 = vld [vmem:[%s2344_s1 + $0x150] sm:$0xff]  }
   0xe   :  { %1573 = vmatprep.subr.bf16.mxu1 %v1772_v13  ;;  %950 = vmatprep.mubr.bf16.mxu0 %v1376_v36  ;;  %v1792_v41 = vld [vmem:[%s2344_s1 + $0x100] sm:$0xff]   ;;  %v28_v48 = vld [vmem:[%s2345_s0 + $0x68] sm:$0xff]  ;;  %v1800_v63 = vld [vmem:[%s2344_s1 + $0x110] sm:$0xff]  }
   0xf   :  { %1047 = vmatprep.mubr.bf16.mxu1 %v1378_v39  ;;  %v1793_v42 = vld [vmem:[%s2344_s1 + $0x1c0] sm:$0xff]   ;;  %v1386_v49 = vcombine.high %v24_v47, %v28_v48  ;;  %v1795_v50 = vld [vmem:[%s2344_s1 + $0x148] sm:$0xff]   ;;  %v1385_v53 = vcombine.low %v24_v47, %v28_v48  ;;  %v1801_v0 = vld [vmem:[%s2344_s1 + $0x1d0] sm:$0xff]  }
  0x10   :  { %1510 = vmatpush3.bf16.msra.mxu0 %v1773_v14  ;;  %v1794_v43 = vld [vmem:[%s2344_s1 + $0x180] sm:$0xff]   ;;  %v1796_v52 = vld [vmem:[%s2344_s1 + $0x108] sm:$0xff]   ;;  %v1802_v1 = vld [vmem:[%s2344_s1 + $0x190] sm:$0xff]  }
  0x11   :  { %1574 = vmatpush3.bf16.msra.mxu1 %v1774_v15  ;;  %1511 = vmatprep.subr.bf16.mxu0 %v1775_v16  ;;  %v23_v44 = vld [vmem:[%s2345_s0 + $0x40] sm:$0xff]  ;;  %v1797_v54 = vld [vmem:[%s2344_s1 + $0x1c8] sm:$0xff]   ;;  %v1803_v10 = vld [vmem:[%s2344_s1 + $0x158] sm:$0xff]  }
  0x12   :  { %1575 = vmatprep.subr.bf16.mxu1 %v1776_v17  ;;  %v27_v45 = vld [vmem:[%s2345_s0 + $0x60] sm:$0xff]  ;;  %v1798_v55 = vld [vmem:[%s2344_s1 + $0x188] sm:$0xff]   ;;  %v1804_v11 = vld [vmem:[%s2344_s1 + $0x118] sm:$0xff]  }
  0x13   :  { %v1384_v46 = vcombine.high %v23_v44, %v27_v45  ;;  %v1383_v51 = vcombine.low %v23_v44, %v27_v45  ;;  %v31_v56 = vld [vmem:[%s2345_s0 + $0x80] sm:$0xff]  ;;  %v32_v58 = vld [vmem:[%s2345_s0 + $0x88] sm:$0xff]  ;;  %v1805_v12 = vld [vmem:[%s2344_s1 + $0x1d8] sm:$0xff]  }
  0x14   :  { %1512 = vmatpush3.bf16.msra.mxu0 %v1777_v18  ;;  %v35_v57 = vld [vmem:[%s2345_s0 + $0xa0] sm:$0xff]  ;;  %v36_v59 = vld [vmem:[%s2345_s0 + $0xa8] sm:$0xff]  ;;  %v1806_v13 = vld [vmem:[%s2344_s1 + $0x198] sm:$0xff]  }
  0x15   :  { %1576 = vmatpush3.bf16.msra.mxu1 %v1778_v19  ;;  %1513 = vmatprep.subr.bf16.mxu0 %v1779_v20  ;;  %v1392_v60 = vcombine.high %v31_v56, %v35_v57  ;;  %v1394_v61 = vcombine.high %v32_v58, %v36_v59  ;;  %v1391_v2 = vcombine.low %v31_v56, %v35_v57  ;;  %v39_v3 = vld [vmem:[%s2345_s0 + $0xc0] sm:$0xff]  ;;  %v40_v5 = vld [vmem:[%s2345_s0 + $0xc8] sm:$0xff]  ;;  %v1816_v39 = vld [vmem:[%s2344_s1 + $0x130] sm:$0xff]  }
  0x16   :  { %1577 = vmatprep.subr.bf16.mxu1 %v1780_v21  ;;  %v43_v4 = vld [vmem:[%s2345_s0 + $0xe0] sm:$0xff]  ;;  %v1393_v6 = vcombine.low %v32_v58, %v36_v59  ;;  %v44_v8 = vld [vmem:[%s2345_s0 + $0xe8] sm:$0xff]  ;;  %v1820_v48 = vld [vmem:[%s2344_s1 + $0x138] sm:$0xff]  }
  0x17   :  { %v1400_v7 = vcombine.high %v39_v3, %v43_v4  ;;  %v1402_v9 = vcombine.high %v40_v5, %v44_v8  ;;  %v47_v14 = vld [vmem:[%s2345_s0 + $0x100] sm:$0xff]  ;;  %v48_v16 = vld [vmem:[%s2345_s0 + $0x108] sm:$0xff]  ;;  %v1399_v19 = vcombine.low %v39_v3, %v43_v4  ;;  %v1401_v21 = vcombine.low %v40_v5, %v44_v8  ;;  %v26_v8 = vld [vmem:[%s2345_s0 + $0x58] sm:$0xff] }
  0x18   :  { %1514 = vmatpush3.bf16.msra.mxu0 %v1781_v22  ;;  %v51_v15 = vld [vmem:[%s2345_s0 + $0x120] sm:$0xff]  ;;  %v52_v17 = vld [vmem:[%s2345_s0 + $0x128] sm:$0xff] }
  0x19   :  { %1578 = vmatpush3.bf16.msra.mxu1 %v1782_v23  ;;  %1515 = vmatprep.subr.bf16.mxu0 %v1783_v24  ;;  %v1807_v18 = vld [vmem:[%s2344_s1 + $0x160] sm:$0xff]   ;;  %v1408_v22 = vcombine.high %v47_v14, %v51_v15  ;;  %v1410_v24 = vcombine.high %v48_v16, %v52_v17  ;;  %v1813_v32 = vld [vmem:[%s2344_s1 + $0x1e8] sm:$0xff]   ;;  %v1407_v34 = vcombine.low %v47_v14, %v51_v15  ;;  %v33_v14 = vld [vmem:[%s2345_s0 + $0x90] sm:$0xff] }
  0x1a   :  { %1579 = vmatprep.subr.bf16.mxu1 %v1784_v25  ;;  %v1808_v20 = vld [vmem:[%s2344_s1 + $0x120] sm:$0xff]   ;;  %v1814_v33 = vld [vmem:[%s2344_s1 + $0x1a8] sm:$0xff]   ;;  %v37_v15 = vld [vmem:[%s2345_s0 + $0xb0] sm:$0xff] }
  0x1b   :  { %v1809_v23 = vld [vmem:[%s2344_s1 + $0x1e0] sm:$0xff]   ;;  %v64_v44 = vld [vmem:[%s2345_s0 + $0x188] sm:$0xff] }
  0x1c   :  { %1516 = vmatpush3.bf16.msra.mxu0 %v1785_v26  ;;  %v1810_v25 = vld [vmem:[%s2344_s1 + $0x1a0] sm:$0xff]   ;;  %v68_v45 = vld [vmem:[%s2345_s0 + $0x1a8] sm:$0xff] }
  0x1d   :  { %1580 = vmatpush3.bf16.msra.mxu1 %v1786_v27  ;;  %1517 = vmatprep.subr.bf16.mxu0 %v1787_v28  ;;  %v55_v26 = vld [vmem:[%s2345_s0 + $0x140] sm:$0xff]  ;;  %v1811_v28 = vld [vmem:[%s2344_s1 + $0x168] sm:$0xff]   ;;  %v1425_v59 = vcombine.low %v64_v44, %v68_v45 }
  0x1e   :  { %1581 = vmatprep.subr.bf16.mxu1 %v1788_v29  ;;  %v59_v27 = vld [vmem:[%s2345_s0 + $0x160] sm:$0xff]  ;;  %v56_v29 = vld [vmem:[%s2345_s0 + $0x148] sm:$0xff] }
  0x1f   :  { %v1416_v36 = vcombine.high %v55_v26, %v59_v27  ;;  %v1415_v47 = vcombine.low %v55_v26, %v59_v27  ;;  %v72_v56 = vld [vmem:[%s2345_s0 + $0x1c8] sm:$0xff]  ;;  %v1395_v26 = vcombine.low %v33_v14, %v37_v15 }
  0x20   :  { %1518 = vmatpush3.bf16.msra.mxu0 %v1789_v30  ;;  %v60_v30 = vld [vmem:[%s2345_s0 + $0x168] sm:$0xff] }
  0x21   :  { %1582 = vmatpush3.bf16.msra.mxu1 %v1790_v31  ;;  %1631 = vmatprep.subr.bf16.mxu0 %v1791_v40  ;;  %v1812_v31 = vld [vmem:[%s2344_s1 + $0x128] sm:$0xff]   ;;  %v1418_v37 = vcombine.high %v56_v29, %v60_v30  ;;  %v1817_v40 = vld [vmem:[%s2344_s1 + $0x1f0] sm:$0xff]  }
  0x22   :  { %1695 = vmatprep.subr.bf16.mxu1 %v1793_v42  ;;  %v67_v42 = vld [vmem:[%s2345_s0 + $0x1a0] sm:$0xff]  ;;  %v76_v57 = vld [vmem:[%s2345_s0 + $0x1e8] sm:$0xff] }
  0x23   :  { %951 = vmatmul.mubr.bf16.vlgmr.msra.gmra.mrb[0].mxu0 %v1375_v35  ;;  %v1409_v35 = vcombine.low %v48_v16, %v52_v17  ;;  %v1433_v3 = vcombine.low %v72_v56, %v76_v57  ;;  %v34_v16 = vld [vmem:[%s2345_s0 + $0x98] sm:$0xff] }
  0x24   :  { %1048 = vmatmul.mubr.bf16.vlgmr.msra.gmra.mrb[0].mxu1 %v1377_v38  ;;  %1632 = vmatpush3.bf16.msra.mxu0 %v1792_v41  ;;  %v1815_v38 = vld [vmem:[%s2344_s1 + $0x170] sm:$0xff]   ;;  %v63_v41 = vld [vmem:[%s2345_s0 + $0x180] sm:$0xff]  ;;  %v38_v17 = vld [vmem:[%s2345_s0 + $0xb8] sm:$0xff] }
  0x25   :  { %1696 = vmatpush3.bf16.msra.mxu1 %v1794_v43  ;;  %958 = vmatprep.mubr.bf16.mxu0 %v1384_v46  ;;  %v1818_v43 = vld [vmem:[%s2344_s1 + $0x1b0] sm:$0xff]   ;;  %v1819_v46 = vld [vmem:[%s2344_s1 + $0x178] sm:$0xff]   ;;  %v1423_v58 = vcombine.low %v63_v41, %v67_v42  ;;  %v1397_v27 = vcombine.low %v34_v16, %v38_v17 }
  0x26   :  { %1055 = vmatprep.mubr.bf16.mxu1 %v1386_v49  ;;  %1633 = vmatprep.subr.bf16.mxu0 %v1795_v50  ;;  %v1417_v49 = vcombine.low %v56_v29, %v60_v30  ;;  %v1424_v50 = vcombine.high %v63_v41, %v67_v42  ;;  %v49_v30 = vld [vmem:[%s2345_s0 + $0x110] sm:$0xff]  ;;  %v62_v41 = vld [vmem:[%s2345_s0 + $0x178] sm:$0xff] }
  0x27   :  { %1697 = vmatprep.subr.bf16.mxu1 %v1797_v54  ;;  %v71_v54 = vld [vmem:[%s2345_s0 + $0x1c0] sm:$0xff] }
  0x28   :  { %1634 = vmatpush3.bf16.msra.mxu0 %v1796_v52  ;;  %v1426_v52 = vcombine.high %v64_v44, %v68_v45 }
  0x29   :  { %1698 = vmatpush3.bf16.msra.mxu1 %v1798_v55  ;;  %1635 = vmatprep.subr.bf16.mxu0 %v1799_v62  ;;  %v75_v55 = vld [vmem:[%s2345_s0 + $0x1e0] sm:$0xff]  ;;  %v17_v62 = vld [vmem:[%s2345_s0 + $0x10] sm:$0xff] }
  0x2a   :  { %1699 = vmatprep.subr.bf16.mxu1 %v1801_v0  ;;  %v18_v0 = vld [vmem:[%s2345_s0 + $0x18] sm:$0xff] }
  0x2b   :  { %959 = vmatmul.mubr.bf16.gmra.mrb[4].mxu0 %v1383_v51  ;;  %v1821_v51 = vld [vmem:[%s2344_s1 + $0x1f8] sm:$0xff]  }
  0x2c   :  { %1056 = vmatmul.mubr.bf16.gmra.mrb[4].mxu1 %v1385_v53  ;;  %966 = vmatprep.mubr.bf16.mxu0 %v1392_v60  ;;  %v1822_v53 = vld [vmem:[%s2344_s1 + $0x1b8] sm:$0xff]   ;;  %v1432_v60 = vcombine.high %v71_v54, %v75_v55 }
  0x2d   :  { %1063 = vmatprep.mubr.bf16.mxu1 %v1394_v61  ;;  %1636 = vmatpush3.bf16.msra.mxu0 %v1800_v63  ;;  %v1434_v61 = vcombine.high %v72_v56, %v76_v57  ;;  %v21_v63 = vld [vmem:[%s2345_s0 + $0x30] sm:$0xff]  ;;  %v74_v56 = vld [vmem:[%s2345_s0 + $0x1d8] sm:$0xff] }
  0x2e   :  { %1700 = vmatpush3.bf16.msra.mxu1 %v1802_v1  ;;  %1637 = vmatprep.subr.bf16.mxu0 %v1803_v10  ;;  %v22_v1 = vld [vmem:[%s2345_s0 + $0x38] sm:$0xff]  ;;  %v1380_v4 = vcombine.high %v17_v62, %v21_v63  ;;  %v1379_v10 = vcombine.low %v17_v62, %v21_v63 }
  0x2f   :  { %1701 = vmatprep.subr.bf16.mxu1 %v1805_v12  ;;  %v1382_v5 = vcombine.high %v18_v0, %v22_v1  ;;  %v78_v57 = vld [vmem:[%s2345_s0 + $0x1f8] sm:$0xff] }
  0x30   :  { %v1437_v63 = vcombine.low %v74_v56, %v78_v57 }
  0x31   :  { %1638 = vmatpush3.bf16.msra.mxu0 %v1804_v11  ;;  %v1381_v11 = vcombine.low %v18_v0, %v22_v1 }
  0x32   :  { %1702 = vmatpush3.bf16.msra.mxu1 %v1806_v13  ;;  %1639 = vmatprep.subr.bf16.mxu0 %v1807_v18 }
  0x33   :  { %967 = vmatmul.mubr.bf16.gmra.mrb[8].mxu0 %v1391_v2  ;;  %1703 = vmatprep.subr.bf16.mxu1 %v1809_v23  ;;  %v1431_v2 = vcombine.low %v71_v54, %v75_v55  ;;  %v45_v23 = vld [vmem:[%s2345_s0 + $0xf0] sm:$0xff] }
  0x34   :  { %1064 = vmatmul.mubr.bf16.gmra.mrb[8].mxu1 %v1393_v6  ;;  %974 = vmatprep.mubr.bf16.mxu0 %v1400_v7  ;;  %v25_v6 = vld [vmem:[%s2345_s0 + $0x50] sm:$0xff] }
  0x35   :  { %1071 = vmatprep.mubr.bf16.mxu1 %v1402_v9  ;;  %1640 = vmatpush3.bf16.msra.mxu0 %v1808_v20  ;;  %v29_v7 = vld [vmem:[%s2345_s0 + $0x70] sm:$0xff]  ;;  %v30_v9 = vld [vmem:[%s2345_s0 + $0x78] sm:$0xff]  ;;  %v1396_v20 = vcombine.high %v33_v14, %v37_v15 }
  0x36   :  { %1704 = vmatpush3.bf16.msra.mxu1 %v1810_v25  ;;  %1641 = vmatprep.subr.bf16.mxu0 %v1811_v28  ;;  %v1388_v12 = vcombine.high %v25_v6, %v29_v7  ;;  %v1390_v13 = vcombine.high %v26_v8, %v30_v9  ;;  %v1387_v18 = vcombine.low %v25_v6, %v29_v7  ;;  %v46_v25 = vld [vmem:[%s2345_s0 + $0xf8] sm:$0xff]  ;;  %v73_v54 = vld [vmem:[%s2345_s0 + $0x1d0] sm:$0xff] }
  0x37   :  { %1705 = vmatprep.subr.bf16.mxu1 %v1813_v32  ;;  %v50_v32 = vld [vmem:[%s2345_s0 + $0x118] sm:$0xff]  ;;  %v77_v55 = vld [vmem:[%s2345_s0 + $0x1f0] sm:$0xff] }
  0x38   :  { %v1435_v62 = vcombine.low %v73_v54, %v77_v55 }
  0x39   :  { %1642 = vmatpush3.bf16.msra.mxu0 %v1812_v31  ;;  %v53_v31 = vld [vmem:[%s2345_s0 + $0x130] sm:$0xff] }
  0x3a   :  { %1706 = vmatpush3.bf16.msra.mxu1 %v1814_v33  ;;  %1643 = vmatprep.subr.bf16.mxu0 %v1815_v38  ;;  %v54_v33 = vld [vmem:[%s2345_s0 + $0x138] sm:$0xff]  ;;  %v57_v38 = vld [vmem:[%s2345_s0 + $0x150] sm:$0xff]  ;;  %v1411_v42 = vcombine.low %v49_v30, %v53_v31 }
  0x3b   :  { %975 = vmatmul.mubr.bf16.gmra.mrb[12].mxu0 %v1399_v19  ;;  %1707 = vmatprep.subr.bf16.mxu1 %v1817_v40  ;;  %v1389_v19 = vcombine.low %v26_v8, %v30_v9  ;;  %v58_v40 = vld [vmem:[%s2345_s0 + $0x158] sm:$0xff] }
  0x3c   :  { %1072 = vmatmul.mubr.bf16.gmra.mrb[12].mxu1 %v1401_v21  ;;  %982 = vmatprep.mubr.bf16.mxu0 %v1408_v22  ;;  %v1398_v21 = vcombine.high %v34_v16, %v38_v17  ;;  %v41_v22 = vld [vmem:[%s2345_s0 + $0xd0] sm:$0xff]  ;;  %v1422_v45 = vcombine.high %v58_v40, %v62_v41 }
  0x3d   :  { %1079 = vmatprep.mubr.bf16.mxu1 %v1410_v24  ;;  %1644 = vmatpush3.bf16.msra.mxu0 %v1816_v39  ;;  %v42_v24 = vld [vmem:[%s2345_s0 + $0xd8] sm:$0xff]  ;;  %v1404_v28 = vcombine.high %v41_v22, %v45_v23  ;;  %v61_v39 = vld [vmem:[%s2345_s0 + $0x170] sm:$0xff] }
  0x3e   :  { %1708 = vmatpush3.bf16.msra.mxu1 %v1818_v43  ;;  %1645 = vmatprep.subr.bf16.mxu0 %v1819_v46  ;;  %v1406_v29 = vcombine.high %v42_v24, %v46_v25  ;;  %v1413_v43 = vcombine.low %v50_v32, %v54_v33  ;;  %v1420_v44 = vcombine.high %v57_v38, %v61_v39  ;;  %v65_v46 = vld [vmem:[%s2345_s0 + $0x190] sm:$0xff] }
  0x3f   :  { %1709 = vmatprep.subr.bf16.mxu1 %v1821_v51  ;;  %v1421_v51 = vcombine.low %v58_v40, %v62_v41 }
  0x41   :  { %1646 = vmatpush3.bf16.msra.mxu0 %v1820_v48  ;;  %v66_v48 = vld [vmem:[%s2345_s0 + $0x198] sm:$0xff] }
  0x42   :  { %1710 = vmatpush3.bf16.msra.mxu1 %v1822_v53 }
  0x43   :  { %983 = vmatmul.mubr.bf16.gmra.mrb[16].mxu0 %v1407_v34  ;;  %v1403_v34 = vcombine.low %v41_v22, %v45_v23 }
  0x44   :  { %1080 = vmatmul.mubr.bf16.gmra.mrb[16].mxu1 %v1409_v35  ;;  %990 = vmatprep.mubr.bf16.mxu0 %v1416_v36  ;;  %v1405_v35 = vcombine.low %v42_v24, %v46_v25  ;;  %v1412_v36 = vcombine.high %v49_v30, %v53_v31 }
  0x45   :  { %1087 = vmatprep.mubr.bf16.mxu1 %v1418_v37  ;;  %v1414_v37 = vcombine.high %v50_v32, %v54_v33 }
  0x4b   :  { %991 = vmatmul.mubr.bf16.gmra.mrb[20].mxu0 %v1415_v47  ;;  %v69_v47 = vld [vmem:[%s2345_s0 + $0x1b0] sm:$0xff] }
  0x4c   :  { %1088 = vmatmul.mubr.bf16.gmra.mrb[20].mxu1 %v1417_v49  ;;  %998 = vmatprep.mubr.bf16.mxu0 %v1424_v50  ;;  %v70_v49 = vld [vmem:[%s2345_s0 + $0x1b8] sm:$0xff]  ;;  %v1419_v50 = vcombine.low %v57_v38, %v61_v39 }
  0x4d   :  { %1095 = vmatprep.mubr.bf16.mxu1 %v1426_v52  ;;  %v1428_v52 = vcombine.high %v65_v46, %v69_v47  ;;  %v1430_v53 = vcombine.high %v66_v48, %v70_v49 }
  0x53   :  { %999 = vmatmul.mubr.bf16.gmra.mrb[24].mxu0 %v1423_v58  ;;  %v1427_v58 = vcombine.low %v65_v46, %v69_v47 }
  0x54   :  { %1096 = vmatmul.mubr.bf16.gmra.mrb[24].mxu1 %v1425_v59  ;;  %1006 = vmatprep.mubr.bf16.mxu0 %v1432_v60  ;;  %v1429_v59 = vcombine.low %v66_v48, %v70_v49  ;;  %v1436_v60 = vcombine.high %v73_v54, %v77_v55 }
  0x55   :  { %1103 = vmatprep.mubr.bf16.mxu1 %v1434_v61  ;;  %v1438_v61 = vcombine.high %v74_v56, %v78_v57 }
  0x5b   :  { %1007 = vmatmul.mubr.bf16.gmra.mrb[28].mxu0 %v1431_v2  ;;  %v2230_v2 = vld [vmem:[%s2346_s2] ss:$0 sm:$0xff] }
  0x5c   :  { %1104 = vmatmul.mubr.bf16.gmra.mrb[28].mxu1 %v1433_v3  ;;  %1144 = vmatprep.mubr.bf16.mxu0 %v1380_v4 }
  0x5d   :  { %1241 = vmatprep.mubr.bf16.mxu1 %v1382_v5 }
  0x63   :  { %1145 = vmatmul.mubr.bf16.vlgmr.msra.gmra.mrb[32].mxu0 %v1379_v10 }
  0x64   :  { %1242 = vmatmul.mubr.bf16.vlgmr.msra.gmra.mrb[32].mxu1 %v1381_v11  ;;  %1152 = vmatprep.mubr.bf16.mxu0 %v1388_v12 }
  0x65   :  { %1249 = vmatprep.mubr.bf16.mxu1 %v1390_v13 }
  0x6b   :  { %1153 = vmatmul.mubr.bf16.gmra.mrb[36].mxu0 %v1387_v18 }
  0x6c   :  { %1250 = vmatmul.mubr.bf16.gmra.mrb[36].mxu1 %v1389_v19  ;;  %1160 = vmatprep.mubr.bf16.mxu0 %v1396_v20 }
  0x6d   :  { %1257 = vmatprep.mubr.bf16.mxu1 %v1398_v21 }
  0x73   :  { %1161 = vmatmul.mubr.bf16.gmra.mrb[40].mxu0 %v1395_v26 }
  0x74   :  { %1258 = vmatmul.mubr.bf16.gmra.mrb[40].mxu1 %v1397_v27  ;;  %1168 = vmatprep.mubr.bf16.mxu0 %v1404_v28 }
  0x75   :  { %1265 = vmatprep.mubr.bf16.mxu1 %v1406_v29 }
  0x7b   :  { %1169 = vmatmul.mubr.bf16.gmra.mrb[44].mxu0 %v1403_v34 }
  0x7c   :  { %1266 = vmatmul.mubr.bf16.gmra.mrb[44].mxu1 %v1405_v35  ;;  %1176 = vmatprep.mubr.bf16.mxu0 %v1412_v36 }
  0x7d   :  { %1273 = vmatprep.mubr.bf16.mxu1 %v1414_v37 }
  0x83   :  { %1177 = vmatmul.mubr.bf16.gmra.mrb[48].mxu0 %v1411_v42 }
  0x84   :  { %1274 = vmatmul.mubr.bf16.gmra.mrb[48].mxu1 %v1413_v43  ;;  %1184 = vmatprep.mubr.bf16.mxu0 %v1420_v44 }
  0x85   :  { %1281 = vmatprep.mubr.bf16.mxu1 %v1422_v45 }
  0x8b   :  { %1185 = vmatmul.mubr.bf16.gmra.mrb[52].mxu0 %v1419_v50 }
  0x8c   :  { %1282 = vmatmul.mubr.bf16.gmra.mrb[52].mxu1 %v1421_v51  ;;  %1192 = vmatprep.mubr.bf16.mxu0 %v1428_v52 }
  0x8d   :  { %1289 = vmatprep.mubr.bf16.mxu1 %v1430_v53 }
  0x93   :  { %1193 = vmatmul.mubr.bf16.gmra.mrb[56].mxu0 %v1427_v58 }
  0x94   :  { %1290 = vmatmul.mubr.bf16.gmra.mrb[56].mxu1 %v1429_v59  ;;  %1200 = vmatprep.mubr.bf16.mxu0 %v1436_v60 }
  0x95   :  { %1297 = vmatprep.mubr.bf16.mxu1 %v1438_v61 }
  0x9b   :  { %1201 = vmatmul.mubr.bf16.gmra.mrb[60].mxu0 %v1435_v62 }
  0x9c   :  { %1298 = vmatmul.mubr.bf16.gmra.mrb[60].mxu1 %v1437_v63 }
  0xf6   :  { %v1519_v0 = vpop.f32.mrb[0].mxu0 }
  0xf7   :  { %v1583_v1 = vpop.f32.mrb[0].mxu1  ;;  %v1520_v3 = vpop.f32.mrb[1].mxu0 }
  0xf8   :  { %v1521_v4 = vadd.f32 %v1520_v3, %v1519_v0  ;;  %v1584_v5 = vpop.f32.mrb[1].mxu1  ;;  %v1522_v6 = vpop.f32.mrb[2].mxu0 }
  0xf9   :  { %v1585_v7 = vadd.f32 %v1584_v5, %v1583_v1  ;;  %v1586_v8 = vpop.f32.mrb[2].mxu1  ;;  %v1523_v9 = vpop.f32.mrb[3].mxu0 }
  0xfa   :  { %v953_v10 = vadd.f32 %v1521_v4, %v2230_v2  ;;  %v1524_v11 = vadd.f32 %v1523_v9, %v1522_v6  ;;  %v1587_v12 = vpop.f32.mrb[3].mxu1 }
  0xfb   :  { %v1588_v13 = vadd.f32 %v1587_v12, %v1586_v8 }
  0xfc   :  { %v2233_v14 = vadd.f32 %v1585_v7, %v953_v10  ;;  %v956_v15 = vadd.f32 %v1524_v11, %v2230_v2 }
  0xfe   :  { %v2236_v16 = vadd.f32 %v1588_v13, %v956_v15  ;;  %v1525_v17 = vpop.f32.mrb[4].mxu0 }
  0xff   :  { %v1589_v18 = vpop.f32.mrb[4].mxu1  ;;  %v1526_v19 = vpop.f32.mrb[5].mxu0 }
 0x100   :  { %v1527_v20 = vadd.f32 %v1526_v19, %v1525_v17  ;;  %v1590_v21 = vpop.f32.mrb[5].mxu1  ;;  %v1528_v22 = vpop.f32.mrb[6].mxu0 }
 0x101   :  { %v1591_v23 = vadd.f32 %v1590_v21, %v1589_v18  ;;  %v1592_v24 = vpop.f32.mrb[6].mxu1  ;;  %v1529_v25 = vpop.f32.mrb[7].mxu0 }
 0x102   :  { %v961_v26 = vadd.f32 %v1527_v20, %v2230_v2  ;;  %v1530_v27 = vadd.f32 %v1529_v25, %v1528_v22  ;;  %v1593_v28 = vpop.f32.mrb[7].mxu1 }
 0x103   :  { %v1594_v29 = vadd.f32 %v1593_v28, %v1592_v24 }
 0x104   :  { %v2239_v30 = vadd.f32 %v1591_v23, %v961_v26  ;;  %v964_v31 = vadd.f32 %v1530_v27, %v2230_v2 }
 0x106   :  { %v2242_v32 = vadd.f32 %v1594_v29, %v964_v31  ;;  %v1531_v33 = vpop.f32.mrb[8].mxu0 }
 0x107   :  { %v1595_v34 = vpop.f32.mrb[8].mxu1  ;;  %v1532_v35 = vpop.f32.mrb[9].mxu0 }
 0x108   :  { %v1533_v36 = vadd.f32 %v1532_v35, %v1531_v33  ;;  %v1596_v37 = vpop.f32.mrb[9].mxu1  ;;  %v1534_v38 = vpop.f32.mrb[10].mxu0 }
 0x109   :  { %v1597_v39 = vadd.f32 %v1596_v37, %v1595_v34  ;;  %v1598_v40 = vpop.f32.mrb[10].mxu1  ;;  %v1535_v41 = vpop.f32.mrb[11].mxu0 }
 0x10a   :  { %v969_v42 = vadd.f32 %v1533_v36, %v2230_v2  ;;  %v1536_v43 = vadd.f32 %v1535_v41, %v1534_v38  ;;  %v1599_v44 = vpop.f32.mrb[11].mxu1 }
 0x10b   :  { %v1600_v45 = vadd.f32 %v1599_v44, %v1598_v40 }
 0x10c   :  { %v2245_v46 = vadd.f32 %v1597_v39, %v969_v42  ;;  %v972_v47 = vadd.f32 %v1536_v43, %v2230_v2 }
 0x10e   :  { %v2248_v48 = vadd.f32 %v1600_v45, %v972_v47  ;;  %v1537_v49 = vpop.f32.mrb[12].mxu0 }
 0x10f   :  { %v1601_v50 = vpop.f32.mrb[12].mxu1  ;;  %v1538_v51 = vpop.f32.mrb[13].mxu0 }
 0x110   :  { %v1539_v52 = vadd.f32 %v1538_v51, %v1537_v49  ;;  %v1602_v53 = vpop.f32.mrb[13].mxu1  ;;  %v1540_v54 = vpop.f32.mrb[14].mxu0 }
 0x111   :  { %v1603_v55 = vadd.f32 %v1602_v53, %v1601_v50  ;;  %v1604_v56 = vpop.f32.mrb[14].mxu1  ;;  %v1541_v57 = vpop.f32.mrb[15].mxu0 }
 0x112   :  { %v977_v58 = vadd.f32 %v1539_v52, %v2230_v2  ;;  %v1542_v59 = vadd.f32 %v1541_v57, %v1540_v54  ;;  %v1605_v60 = vpop.f32.mrb[15].mxu1 }
 0x113   :  { %v1606_v61 = vadd.f32 %v1605_v60, %v1604_v56 }
 0x114   :  { %v2251_v62 = vadd.f32 %v1603_v55, %v977_v58  ;;  %v980_v63 = vadd.f32 %v1542_v59, %v2230_v2 }
 0x116   :  { %v2254_v0 = vadd.f32 %v1606_v61, %v980_v63  ;;  %v1543_v1 = vpop.f32.mrb[16].mxu0 }
 0x117   :  { %v1607_v3 = vpop.f32.mrb[16].mxu1  ;;  %v1544_v4 = vpop.f32.mrb[17].mxu0 }
 0x118   :  { %v1545_v5 = vadd.f32 %v1544_v4, %v1543_v1  ;;  %v1608_v6 = vpop.f32.mrb[17].mxu1  ;;  %v1546_v7 = vpop.f32.mrb[18].mxu0 }
 0x119   :  { %v1609_v8 = vadd.f32 %v1608_v6, %v1607_v3  ;;  %v1610_v9 = vpop.f32.mrb[18].mxu1  ;;  %v1547_v10 = vpop.f32.mrb[19].mxu0 }
 0x11a   :  { %v985_v11 = vadd.f32 %v1545_v5, %v2230_v2  ;;  %v1548_v12 = vadd.f32 %v1547_v10, %v1546_v7  ;;  %v1611_v13 = vpop.f32.mrb[19].mxu1 }
 0x11b   :  { %v1612_v15 = vadd.f32 %v1611_v13, %v1610_v9 }
 0x11c   :  { %v2257_v17 = vadd.f32 %v1609_v8, %v985_v11  ;;  %v988_v18 = vadd.f32 %v1548_v12, %v2230_v2 }
 0x11e   :  { %v2260_v19 = vadd.f32 %v1612_v15, %v988_v18  ;;  %v1549_v20 = vpop.f32.mrb[20].mxu0 }
 0x11f   :  { %v1613_v21 = vpop.f32.mrb[20].mxu1  ;;  %v1550_v22 = vpop.f32.mrb[21].mxu0 }
 0x120   :  { %v1551_v23 = vadd.f32 %v1550_v22, %v1549_v20  ;;  %v1614_v24 = vpop.f32.mrb[21].mxu1  ;;  %v1552_v25 = vpop.f32.mrb[22].mxu0 }
 0x121   :  { %v1615_v26 = vadd.f32 %v1614_v24, %v1613_v21  ;;  %v1616_v27 = vpop.f32.mrb[22].mxu1  ;;  %v1553_v28 = vpop.f32.mrb[23].mxu0 }
 0x122   :  { %v993_v29 = vadd.f32 %v1551_v23, %v2230_v2  ;;  %v1554_v31 = vadd.f32 %v1553_v28, %v1552_v25  ;;  %v1617_v33 = vpop.f32.mrb[23].mxu1 }
 0x123   :  { %v1618_v34 = vadd.f32 %v1617_v33, %v1616_v27 }
 0x124   :  { %v2263_v35 = vadd.f32 %v1615_v26, %v993_v29  ;;  %v996_v36 = vadd.f32 %v1554_v31, %v2230_v2 }
 0x126   :  { %v2266_v37 = vadd.f32 %v1618_v34, %v996_v36  ;;  %v1555_v38 = vpop.f32.mrb[24].mxu0 }
 0x127   :  { %v1619_v39 = vpop.f32.mrb[24].mxu1  ;;  %v1556_v40 = vpop.f32.mrb[25].mxu0 }
 0x128   :  { %v1557_v41 = vadd.f32 %v1556_v40, %v1555_v38  ;;  %v1620_v42 = vpop.f32.mrb[25].mxu1  ;;  %v1558_v43 = vpop.f32.mrb[26].mxu0 }
 0x129   :  { %v1621_v44 = vadd.f32 %v1620_v42, %v1619_v39  ;;  %v1622_v45 = vpop.f32.mrb[26].mxu1  ;;  %v1559_v47 = vpop.f32.mrb[27].mxu0 }
 0x12a   :  { %v1001_v49 = vadd.f32 %v1557_v41, %v2230_v2  ;;  %v1560_v50 = vadd.f32 %v1559_v47, %v1558_v43  ;;  %v1623_v51 = vpop.f32.mrb[27].mxu1 }
 0x12b   :  { %v1624_v52 = vadd.f32 %v1623_v51, %v1622_v45 }
 0x12c   :  { %v2269_v53 = vadd.f32 %v1621_v44, %v1001_v49  ;;  %v1004_v54 = vadd.f32 %v1560_v50, %v2230_v2 }
 0x12e   :  { %v2272_v55 = vadd.f32 %v1624_v52, %v1004_v54  ;;  %v1561_v56 = vpop.f32.mrb[28].mxu0 }
 0x12f   :  { %v1625_v57 = vpop.f32.mrb[28].mxu1  ;;  %v1562_v58 = vpop.f32.mrb[29].mxu0 }
 0x130   :  { %v1563_v59 = vadd.f32 %v1562_v58, %v1561_v56  ;;  %v1626_v60 = vpop.f32.mrb[29].mxu1  ;;  %v1564_v61 = vpop.f32.mrb[30].mxu0 }
 0x131   :  { %v1627_v63 = vadd.f32 %v1626_v60, %v1625_v57  ;;  %v1628_v1 = vpop.f32.mrb[30].mxu1  ;;  %v1565_v3 = vpop.f32.mrb[31].mxu0 }
 0x132   :  { %v1009_v4 = vadd.f32 %v1563_v59, %v2230_v2  ;;  %v1566_v5 = vadd.f32 %v1565_v3, %v1564_v61  ;;  %v1629_v6 = vpop.f32.mrb[31].mxu1 }
 0x133   :  { %v1630_v7 = vadd.f32 %v1629_v6, %v1628_v1 }
 0x134   :  { %v2275_v8 = vadd.f32 %v1627_v63, %v1009_v4  ;;  %v1012_v9 = vadd.f32 %v1566_v5, %v2230_v2 }
 0x136   :  { %v2278_v10 = vadd.f32 %v1630_v7, %v1012_v9  ;;  %v1647_v11 = vpop.f32.mrb[32].mxu0 }
 0x137   :  { %v1711_v12 = vpop.f32.mrb[32].mxu1  ;;  %v1648_v13 = vpop.f32.mrb[33].mxu0 }
 0x138   :  { %v1649_v15 = vadd.f32 %v1648_v13, %v1647_v11  ;;  %v1712_v18 = vpop.f32.mrb[33].mxu1  ;;  %v1650_v20 = vpop.f32.mrb[34].mxu0 }
 0x139   :  { %v1713_v21 = vadd.f32 %v1712_v18, %v1711_v12  ;;  %v1714_v22 = vpop.f32.mrb[34].mxu1  ;;  %v1651_v23 = vpop.f32.mrb[35].mxu0 }
 0x13a   :  { %v1147_v24 = vadd.f32 %v1649_v15, %v2233_v14  ;;  %v1652_v25 = vadd.f32 %v1651_v23, %v1650_v20  ;;  %v1715_v26 = vpop.f32.mrb[35].mxu1 }
 0x13b   :  { %v1716_v27 = vadd.f32 %v1715_v26, %v1714_v22 }
 0x13c   :  { %v1244_v28 = vadd.f32 %v1713_v21, %v1147_v24  ;;  %v1150_v29 = vadd.f32 %v1652_v25, %v2236_v16 }
 0x13e   :  { %vm1306_vm0 = vcmp.gt.f32.partialorder %v1244_v28, 0.0  ;;  %v1322_v2 = vmul.f32 0.2, %v1244_v28  ;;  %v1247_v31 = vadd.f32 %v1716_v27, %v1150_v29  ;;  %v1653_v33 = vpop.f32.mrb[36].mxu0 }
 0x13f   :  { %v1717_v34 = vpop.f32.mrb[36].mxu1  ;;  %v1654_v36 = vpop.f32.mrb[37].mxu0 }
 0x140   :  { %v1338_v38 = vsel %vm1306_vm0, %v1244_v28, %v1322_v2  ;;  %vm1307_vm1 = vcmp.gt.f32.partialorder %v1247_v31, 0.0  ;;  %v1323_v39 = vmul.f32 0.2, %v1247_v31  ;;  %v1655_v40 = vadd.f32 %v1654_v36, %v1653_v33  ;;  %v1718_v41 = vpop.f32.mrb[37].mxu1  ;;  %v1656_v42 = vpop.f32.mrb[38].mxu0 }
 0x141   :  { %1354 = vst [vmem:[%s2347_s3] sm:$0xff] %v1338_v38  ;;  %v1719_v14 = vadd.f32 %v1718_v41, %v1717_v34  ;;  %v1720_v43 = vpop.f32.mrb[38].mxu1  ;;  %v1657_v44 = vpop.f32.mrb[39].mxu0 }
 0x142   :  { %v1339_v16 = vsel %vm1307_vm1, %v1247_v31, %v1323_v39  ;;  %v1155_v45 = vadd.f32 %v1655_v40, %v2239_v30  ;;  %v1658_v47 = vadd.f32 %v1657_v44, %v1656_v42  ;;  %v1721_v49 = vpop.f32.mrb[39].mxu1 }
 0x143   :  { %1355 = vst [vmem:[%s2347_s3 + $0x8] sm:$0xff] %v1339_v16  ;;  %v1722_v50 = vadd.f32 %v1721_v49, %v1720_v43 }
 0x144   :  { %v1252_v51 = vadd.f32 %v1719_v14, %v1155_v45  ;;  %v1158_v52 = vadd.f32 %v1658_v47, %v2242_v32 }
 0x146   :  { %vm1308_vm2 = vcmp.gt.f32.partialorder %v1252_v51, 0.0  ;;  %v1324_v54 = vmul.f32 0.2, %v1252_v51  ;;  %v1255_v56 = vadd.f32 %v1722_v50, %v1158_v52  ;;  %v1659_v57 = vpop.f32.mrb[40].mxu0 }
 0x147   :  { %v1723_v58 = vpop.f32.mrb[40].mxu1  ;;  %v1660_v59 = vpop.f32.mrb[41].mxu0 }
 0x148   :  { %v1340_v60 = vsel %vm1308_vm2, %v1252_v51, %v1324_v54  ;;  %vm1309_vm3 = vcmp.gt.f32.partialorder %v1255_v56, 0.0  ;;  %v1325_v61 = vmul.f32 0.2, %v1255_v56  ;;  %v1661_v30 = vadd.f32 %v1660_v59, %v1659_v57  ;;  %v1724_v63 = vpop.f32.mrb[41].mxu1  ;;  %v1662_v1 = vpop.f32.mrb[42].mxu0 }
 0x149   :  { %1356 = vst [vmem:[%s2347_s3 + $0x10] sm:$0xff] %v1340_v60  ;;  %v1725_v3 = vadd.f32 %v1724_v63, %v1723_v58  ;;  %v1726_v4 = vpop.f32.mrb[42].mxu1  ;;  %v1663_v5 = vpop.f32.mrb[43].mxu0 }
 0x14a   :  { %v1341_v32 = vsel %vm1309_vm3, %v1255_v56, %v1325_v61  ;;  %v1163_v6 = vadd.f32 %v1661_v30, %v2245_v46  ;;  %v1664_v7 = vadd.f32 %v1663_v5, %v1662_v1  ;;  %v1727_v9 = vpop.f32.mrb[43].mxu1 }
 0x14b   :  { %1357 = vst [vmem:[%s2347_s3 + $0x18] sm:$0xff] %v1341_v32  ;;  %v1728_v11 = vadd.f32 %v1727_v9, %v1726_v4 }
 0x14c   :  { %v1260_v12 = vadd.f32 %v1725_v3, %v1163_v6  ;;  %v1166_v13 = vadd.f32 %v1664_v7, %v2248_v48 }
 0x14e   :  { %vm1310_vm4 = vcmp.gt.f32.partialorder %v1260_v12, 0.0  ;;  %v1326_v15 = vmul.f32 0.2, %v1260_v12  ;;  %v1263_v18 = vadd.f32 %v1728_v11, %v1166_v13  ;;  %v1665_v20 = vpop.f32.mrb[44].mxu0 }
 0x14f   :  { %v1729_v21 = vpop.f32.mrb[44].mxu1  ;;  %v1666_v22 = vpop.f32.mrb[45].mxu0 }
 0x150   :  { %v1342_v23 = vsel %vm1310_vm4, %v1260_v12, %v1326_v15  ;;  %vm1311_vm5 = vcmp.gt.f32.partialorder %v1263_v18, 0.0  ;;  %v1327_v24 = vmul.f32 0.2, %v1263_v18  ;;  %v1667_v46 = vadd.f32 %v1666_v22, %v1665_v20  ;;  %v1730_v25 = vpop.f32.mrb[45].mxu1  ;;  %v1668_v26 = vpop.f32.mrb[46].mxu0 }
 0x151   :  { %1358 = vst [vmem:[%s2347_s3 + $0x20] sm:$0xff] %v1342_v23  ;;  %v1731_v27 = vadd.f32 %v1730_v25, %v1729_v21  ;;  %v1732_v28 = vpop.f32.mrb[46].mxu1  ;;  %v1669_v29 = vpop.f32.mrb[47].mxu0 }
 0x152   :  { %v1343_v48 = vsel %vm1311_vm5, %v1263_v18, %v1327_v24  ;;  %v1171_v2 = vadd.f32 %v1667_v46, %v2251_v62  ;;  %v1670_v31 = vadd.f32 %v1669_v29, %v1668_v26  ;;  %v1733_v33 = vpop.f32.mrb[47].mxu1 }
 0x153   :  { %1359 = vst [vmem:[%s2347_s3 + $0x28] sm:$0xff] %v1343_v48  ;;  %v1734_v34 = vadd.f32 %v1733_v33, %v1732_v28 }
 0x154   :  { %v1268_v36 = vadd.f32 %v1731_v27, %v1171_v2  ;;  %v1174_v38 = vadd.f32 %v1670_v31, %v2254_v0 }
 0x156   :  { %vm1312_vm6 = vcmp.gt.f32.partialorder %v1268_v36, 0.0  ;;  %v1328_v39 = vmul.f32 0.2, %v1268_v36  ;;  %v1271_v40 = vadd.f32 %v1734_v34, %v1174_v38  ;;  %v1671_v41 = vpop.f32.mrb[48].mxu0 }
 0x157   :  { %v1735_v42 = vpop.f32.mrb[48].mxu1  ;;  %v1672_v14 = vpop.f32.mrb[49].mxu0 }
 0x158   :  { %v1344_v43 = vsel %vm1312_vm6, %v1268_v36, %v1328_v39  ;;  %vm1313_vm7 = vcmp.gt.f32.partialorder %v1271_v40, 0.0  ;;  %v1329_v44 = vmul.f32 0.2, %v1271_v40  ;;  %v1673_v62 = vadd.f32 %v1672_v14, %v1671_v41  ;;  %v1736_v16 = vpop.f32.mrb[49].mxu1  ;;  %v1674_v45 = vpop.f32.mrb[50].mxu0 }
 0x159   :  { %1360 = vst [vmem:[%s2347_s3 + $0x30] sm:$0xff] %v1344_v43  ;;  %v1737_v47 = vadd.f32 %v1736_v16, %v1735_v42  ;;  %v1738_v49 = vpop.f32.mrb[50].mxu1  ;;  %v1675_v50 = vpop.f32.mrb[51].mxu0 }
 0x15a   :  { %v1345_v0 = vsel %vm1313_vm7, %v1271_v40, %v1329_v44  ;;  %v1179_v51 = vadd.f32 %v1673_v62, %v2257_v17  ;;  %v1676_v52 = vadd.f32 %v1675_v50, %v1674_v45  ;;  %v1739_v54 = vpop.f32.mrb[51].mxu1 }
 0x15b   :  { %1361 = vst [vmem:[%s2347_s3 + $0x38] sm:$0xff] %v1345_v0  ;;  %v1740_v56 = vadd.f32 %v1739_v54, %v1738_v49 }
 0x15c   :  { %v1276_v57 = vadd.f32 %v1737_v47, %v1179_v51  ;;  %v1182_v58 = vadd.f32 %v1676_v52, %v2260_v19 }
 0x15e   :  { %vm1314_vm8 = vcmp.gt.f32.partialorder %v1276_v57, 0.0  ;;  %v1330_v59 = vmul.f32 0.2, %v1276_v57  ;;  %v1279_v60 = vadd.f32 %v1740_v56, %v1182_v58  ;;  %v1677_v61 = vpop.f32.mrb[52].mxu0 }
 0x15f   :  { %v1741_v30 = vpop.f32.mrb[52].mxu1  ;;  %v1678_v63 = vpop.f32.mrb[53].mxu0 }
 0x160   :  { %v1346_v1 = vsel %vm1314_vm8, %v1276_v57, %v1330_v59  ;;  %vm1315_vm9 = vcmp.gt.f32.partialorder %v1279_v60, 0.0  ;;  %v1331_v3 = vmul.f32 0.2, %v1279_v60  ;;  %v1679_v17 = vadd.f32 %v1678_v63, %v1677_v61  ;;  %v1742_v4 = vpop.f32.mrb[53].mxu1  ;;  %v1680_v5 = vpop.f32.mrb[54].mxu0 }
 0x161   :  { %1362 = vst [vmem:[%s2347_s3 + $0x40] sm:$0xff] %v1346_v1  ;;  %v1743_v32 = vadd.f32 %v1742_v4, %v1741_v30  ;;  %v1744_v6 = vpop.f32.mrb[54].mxu1  ;;  %v1681_v7 = vpop.f32.mrb[55].mxu0 }
 0x162   :  { %v1347_v19 = vsel %vm1315_vm9, %v1279_v60, %v1331_v3  ;;  %v1187_v9 = vadd.f32 %v1679_v17, %v2263_v35  ;;  %v1682_v11 = vadd.f32 %v1681_v7, %v1680_v5  ;;  %v1745_v12 = vpop.f32.mrb[55].mxu1 }
 0x163   :  { %1363 = vst [vmem:[%s2347_s3 + $0x48] sm:$0xff] %v1347_v19  ;;  %v1746_v13 = vadd.f32 %v1745_v12, %v1744_v6 }
 0x164   :  { %v1284_v15 = vadd.f32 %v1743_v32, %v1187_v9  ;;  %v1190_v18 = vadd.f32 %v1682_v11, %v2266_v37 }
 0x166   :  { %vm1316_vm10 = vcmp.gt.f32.partialorder %v1284_v15, 0.0  ;;  %v1332_v20 = vmul.f32 0.2, %v1284_v15  ;;  %v1287_v21 = vadd.f32 %v1746_v13, %v1190_v18  ;;  %v1683_v22 = vpop.f32.mrb[56].mxu0 }
 0x167   :  { %v1747_v23 = vpop.f32.mrb[56].mxu1  ;;  %v1684_v24 = vpop.f32.mrb[57].mxu0 }
 0x168   :  { %v1348_v46 = vsel %vm1316_vm10, %v1284_v15, %v1332_v20  ;;  %vm1317_vm11 = vcmp.gt.f32.partialorder %v1287_v21, 0.0  ;;  %v1333_v25 = vmul.f32 0.2, %v1287_v21  ;;  %v1685_v35 = vadd.f32 %v1684_v24, %v1683_v22  ;;  %v1748_v26 = vpop.f32.mrb[57].mxu1  ;;  %v1686_v27 = vpop.f32.mrb[58].mxu0 }
 0x169   :  { %1364 = vst [vmem:[%s2347_s3 + $0x50] sm:$0xff] %v1348_v46  ;;  %v1749_v28 = vadd.f32 %v1748_v26, %v1747_v23  ;;  %v1750_v29 = vpop.f32.mrb[58].mxu1  ;;  %v1687_v48 = vpop.f32.mrb[59].mxu0 }
 0x16a   :  { %v1349_v37 = vsel %vm1317_vm11, %v1287_v21, %v1333_v25  ;;  %v1195_v2 = vadd.f32 %v1685_v35, %v2269_v53  ;;  %v1688_v31 = vadd.f32 %v1687_v48, %v1686_v27  ;;  %v1751_v33 = vpop.f32.mrb[59].mxu1 }
 0x16b   :  { %1365 = vst [vmem:[%s2347_s3 + $0x58] sm:$0xff] %v1349_v37  ;;  %v1752_v34 = vadd.f32 %v1751_v33, %v1750_v29 }
 0x16c   :  { %v1292_v36 = vadd.f32 %v1749_v28, %v1195_v2  ;;  %v1198_v38 = vadd.f32 %v1688_v31, %v2272_v55 }
 0x16e   :  { %vm1318_vm12 = vcmp.gt.f32.partialorder %v1292_v36, 0.0  ;;  %v1334_v39 = vmul.f32 0.2, %v1292_v36  ;;  %v1295_v40 = vadd.f32 %v1752_v34, %v1198_v38  ;;  %v1689_v41 = vpop.f32.mrb[60].mxu0 }
 0x16f   :  { %v1753_v42 = vpop.f32.mrb[60].mxu1  ;;  %v1690_v14 = vpop.f32.mrb[61].mxu0 }
 0x170   :  { %v1350_v43 = vsel %vm1318_vm12, %v1292_v36, %v1334_v39  ;;  %vm1319_vm13 = vcmp.gt.f32.partialorder %v1295_v40, 0.0  ;;  %v1335_v44 = vmul.f32 0.2, %v1295_v40  ;;  %v1691_v53 = vadd.f32 %v1690_v14, %v1689_v41  ;;  %v1754_v62 = vpop.f32.mrb[61].mxu1  ;;  %v1692_v16 = vpop.f32.mrb[62].mxu0 }
 0x171   :  { %1366 = vst [vmem:[%s2347_s3 + $0x60] sm:$0xff] %v1350_v43  ;;  %v1755_v45 = vadd.f32 %v1754_v62, %v1753_v42  ;;  %v1756_v47 = vpop.f32.mrb[62].mxu1  ;;  %v1693_v49 = vpop.f32.mrb[63].mxu0 }
 0x172   :  { %v1351_v55 = vsel %vm1319_vm13, %v1295_v40, %v1335_v44  ;;  %v1203_v50 = vadd.f32 %v1691_v53, %v2275_v8  ;;  %v1694_v0 = vadd.f32 %v1693_v49, %v1692_v16  ;;  %v1757_v51 = vpop.f32.mrb[63].mxu1 }
 0x173   :  { %1367 = vst [vmem:[%s2347_s3 + $0x68] sm:$0xff] %v1351_v55  ;;  %v1758_v52 = vadd.f32 %v1757_v51, %v1756_v47 }
 0x174   :  { %v1300_v54 = vadd.f32 %v1755_v45, %v1203_v50  ;;  %v1206_v56 = vadd.f32 %v1694_v0, %v2278_v10 }
 0x176   :  { %vm1320_vm14 = vcmp.gt.f32.partialorder %v1300_v54, 0.0  ;;  %v1336_v57 = vmul.f32 0.2, %v1300_v54  ;;  %v1303_v58 = vadd.f32 %v1758_v52, %v1206_v56 }
 0x178   :  { %v1352_v59 = vsel %vm1320_vm14, %v1300_v54, %v1336_v57  ;;  %vm1321_vm15 = vcmp.gt.f32.partialorder %v1303_v58, 0.0  ;;  %v1337_v60 = vmul.f32 0.2, %v1303_v58 }
 0x179   :  { %1368 = vst [vmem:[%s2347_s3 + $0x70] sm:$0xff] %v1352_v59 }
 0x17a   :  { %v1353_v8 = vsel %vm1321_vm15, %v1303_v58, %v1337_v60 }
 0x17b   :  { %1369 = vst [vmem:[%s2347_s3 + $0x78] sm:$0xff] %v1353_v8 }

// kernel: discriminator_forward.7
= control target key start
LH: loop header
LB: loop body
LE: loop exit
PB: predicated region body
PF: predicated region fallthrough
CT: control target
= control target key end

     0   :  { %s3909_s1 = inlined_call_operand.vmem [shape: bf16[2048,256], index: 1, kind: input, shape index: {}]   ;;  %s3910_s0 = inlined_call_operand.vmem [shape: bf16[32,2048], index: 0, kind: input, shape index: {}]   ;;  %s3911_s2 = inlined_call_operand.vmem [shape: f32[1,256], index: 2, kind: input, shape index: {}]   ;;  %s3912_s3 = inlined_call_operand.vmem [shape: f32[32,256], index: 3, kind: output, shape index: {}]  }
   0x1   :  { %v2566_v0 = vld [vmem:[%s3909_s1 + $0x4] ss:$8 sps:$4 sm:$0xff]   ;;  %v2570_v2 = vld [vmem:[%s3909_s1] ss:$8 sps:$4 sm:$0xff]   ;;  %v2572_v4 = vld [vmem:[%s3909_s1 + $0x14] ss:$8 sps:$4 sm:$0xff]  }
   0x2   :  { %v2568_v1 = vld [vmem:[%s3909_s1 + $0x404] ss:$8 sps:$4 sm:$0xff]   ;;  %1754 = vmatprep.subr.bf16.mxu1 %v2566_v0  ;;  %v2571_v3 = vld [vmem:[%s3909_s1 + $0x400] ss:$8 sps:$4 sm:$0xff]   ;;  %v2574_v5 = vld [vmem:[%s3909_s1 + $0x414] ss:$8 sps:$4 sm:$0xff]  }
   0x3   :  { %1966 = vmatprep.subr.bf16.mxu0 %v2568_v1  ;;  %1755 = vmatpush1.bf16.msra.mxu1 %v2570_v2  ;;  %v2576_v6 = vld [vmem:[%s3909_s1 + $0x10] ss:$8 sps:$4 sm:$0xff]   ;;  %v2578_v8 = vld [vmem:[%s3909_s1 + $0x24] ss:$8 sps:$4 sm:$0xff]   ;;  %v2582_v10 = vld [vmem:[%s3909_s1 + $0x20] ss:$8 sps:$4 sm:$0xff]  }
   0x4   :  { %1967 = vmatpush1.bf16.msra.mxu0 %v2571_v3  ;;  %1756 = vmatprep.subr.bf16.mxu1 %v2572_v4  ;;  %v2577_v7 = vld [vmem:[%s3909_s1 + $0x410] ss:$8 sps:$4 sm:$0xff]   ;;  %v2580_v9 = vld [vmem:[%s3909_s1 + $0x424] ss:$8 sps:$4 sm:$0xff]   ;;  %v2583_v11 = vld [vmem:[%s3909_s1 + $0x420] ss:$8 sps:$4 sm:$0xff]  }
   0x5   :  { %1968 = vmatprep.subr.bf16.mxu0 %v2574_v5  ;;  %v2584_v12 = vld [vmem:[%s3909_s1 + $0x34] ss:$8 sps:$4 sm:$0xff]   ;;  %v2588_v14 = vld [vmem:[%s3909_s1 + $0x30] ss:$8 sps:$4 sm:$0xff]   ;;  %v2590_v16 = vld [vmem:[%s3909_s1 + $0x44] ss:$8 sps:$4 sm:$0xff]  }
   0x6   :  { %v2586_v13 = vld [vmem:[%s3909_s1 + $0x434] ss:$8 sps:$4 sm:$0xff]   ;;  %v2589_v15 = vld [vmem:[%s3909_s1 + $0x430] ss:$8 sps:$4 sm:$0xff]   ;;  %v2592_v17 = vld [vmem:[%s3909_s1 + $0x444] ss:$8 sps:$4 sm:$0xff]  }
   0x7   :  { %1757 = vmatpush1.bf16.msra.mxu1 %v2576_v6  ;;  %v2594_v18 = vld [vmem:[%s3909_s1 + $0x40] ss:$8 sps:$4 sm:$0xff]   ;;  %v2596_v20 = vld [vmem:[%s3909_s1 + $0x54] ss:$8 sps:$4 sm:$0xff]   ;;  %v2600_v22 = vld [vmem:[%s3909_s1 + $0x50] ss:$8 sps:$4 sm:$0xff]  }
   0x8   :  { %1969 = vmatpush1.bf16.msra.mxu0 %v2577_v7  ;;  %1758 = vmatprep.subr.bf16.mxu1 %v2578_v8  ;;  %v2595_v19 = vld [vmem:[%s3909_s1 + $0x440] ss:$8 sps:$4 sm:$0xff]   ;;  %v2598_v21 = vld [vmem:[%s3909_s1 + $0x454] ss:$8 sps:$4 sm:$0xff]   ;;  %v2601_v23 = vld [vmem:[%s3909_s1 + $0x450] ss:$8 sps:$4 sm:$0xff]  }
   0x9   :  { %1970 = vmatprep.subr.bf16.mxu0 %v2580_v9  ;;  %v2602_v24 = vld [vmem:[%s3909_s1 + $0x64] ss:$8 sps:$4 sm:$0xff]   ;;  %v2606_v26 = vld [vmem:[%s3909_s1 + $0x60] ss:$8 sps:$4 sm:$0xff]   ;;  %v2608_v28 = vld [vmem:[%s3909_s1 + $0x74] ss:$8 sps:$4 sm:$0xff]  }
   0xa   :  { %v2604_v25 = vld [vmem:[%s3909_s1 + $0x464] ss:$8 sps:$4 sm:$0xff]   ;;  %v2607_v27 = vld [vmem:[%s3909_s1 + $0x460] ss:$8 sps:$4 sm:$0xff]   ;;  %v2610_v29 = vld [vmem:[%s3909_s1 + $0x474] ss:$8 sps:$4 sm:$0xff]  }
   0xb   :  { %1759 = vmatpush1.bf16.msra.mxu1 %v2582_v10  ;;  %v2612_v30 = vld [vmem:[%s3909_s1 + $0x70] ss:$8 sps:$4 sm:$0xff]   ;;  %v2614_v32 = vld [vmem:[%s3909_s1 + $0x84] ss:$8 sps:$4 sm:$0xff]   ;;  %v2618_v34 = vld [vmem:[%s3909_s1 + $0x80] ss:$8 sps:$4 sm:$0xff]  }
   0xc   :  { %1971 = vmatpush1.bf16.msra.mxu0 %v2583_v11  ;;  %1760 = vmatprep.subr.bf16.mxu1 %v2584_v12  ;;  %v2613_v31 = vld [vmem:[%s3909_s1 + $0x470] ss:$8 sps:$4 sm:$0xff]   ;;  %v2616_v33 = vld [vmem:[%s3909_s1 + $0x484] ss:$8 sps:$4 sm:$0xff]   ;;  %v2619_v35 = vld [vmem:[%s3909_s1 + $0x480] ss:$8 sps:$4 sm:$0xff]  }
   0xd   :  { %1972 = vmatprep.subr.bf16.mxu0 %v2586_v13  ;;  %v2620_v36 = vld [vmem:[%s3909_s1 + $0x94] ss:$8 sps:$4 sm:$0xff]   ;;  %v2624_v38 = vld [vmem:[%s3909_s1 + $0x90] ss:$8 sps:$4 sm:$0xff]   ;;  %v2626_v40 = vld [vmem:[%s3909_s1 + $0xa4] ss:$8 sps:$4 sm:$0xff]  }
   0xe   :  { %v2622_v37 = vld [vmem:[%s3909_s1 + $0x494] ss:$8 sps:$4 sm:$0xff]   ;;  %v2625_v39 = vld [vmem:[%s3909_s1 + $0x490] ss:$8 sps:$4 sm:$0xff]   ;;  %v2628_v41 = vld [vmem:[%s3909_s1 + $0x4a4] ss:$8 sps:$4 sm:$0xff]  }
   0xf   :  { %1761 = vmatpush1.bf16.msra.mxu1 %v2588_v14  ;;  %v2630_v42 = vld [vmem:[%s3909_s1 + $0xa0] ss:$8 sps:$4 sm:$0xff]   ;;  %v2632_v44 = vld [vmem:[%s3909_s1 + $0xb4] ss:$8 sps:$4 sm:$0xff]   ;;  %v2636_v46 = vld [vmem:[%s3909_s1 + $0xb0] ss:$8 sps:$4 sm:$0xff]  }
  0x10   :  { %1973 = vmatpush1.bf16.msra.mxu0 %v2589_v15  ;;  %1762 = vmatprep.subr.bf16.mxu1 %v2590_v16  ;;  %v2631_v43 = vld [vmem:[%s3909_s1 + $0x4a0] ss:$8 sps:$4 sm:$0xff]   ;;  %v2634_v45 = vld [vmem:[%s3909_s1 + $0x4b4] ss:$8 sps:$4 sm:$0xff]   ;;  %v2637_v47 = vld [vmem:[%s3909_s1 + $0x4b0] ss:$8 sps:$4 sm:$0xff]  }
  0x11   :  { %1974 = vmatprep.subr.bf16.mxu0 %v2592_v17  ;;  %v14_v48 = vld [vmem:[%s3910_s0] sm:$0xff]  ;;  %v2644_v58 = vld [vmem:[%s3909_s1 + $0xd4] ss:$8 sps:$4 sm:$0xff]   ;;  %v2648_v60 = vld [vmem:[%s3909_s1 + $0xd0] ss:$8 sps:$4 sm:$0xff]  }
  0x12   :  { %v22_v49 = vld [vmem:[%s3910_s0 + $0x40] sm:$0xff]  ;;  %v2646_v59 = vld [vmem:[%s3909_s1 + $0x4d4] ss:$8 sps:$4 sm:$0xff]   ;;  %v2649_v61 = vld [vmem:[%s3909_s1 + $0x4d0] ss:$8 sps:$4 sm:$0xff]  }
  0x13   :  { %1763 = vmatpush1.bf16.msra.mxu1 %v2594_v18  ;;  %v2638_v50 = vld [vmem:[%s3909_s1 + $0xc4] ss:$8 sps:$4 sm:$0xff]   ;;  %v2215_v52 = vcombine.high %v14_v48, %v22_v49  ;;  %v2642_v56 = vld [vmem:[%s3909_s1 + $0xc0] ss:$8 sps:$4 sm:$0xff]   ;;  %v2656_v2 = vld [vmem:[%s3909_s1 + $0xf4] ss:$8 sps:$4 sm:$0xff]   ;;  %v2214_v8 = vcombine.low %v14_v48, %v22_v49 }
  0x14   :  { %1975 = vmatpush1.bf16.msra.mxu0 %v2595_v19  ;;  %1764 = vmatprep.subr.bf16.mxu1 %v2596_v20  ;;  %v2640_v51 = vld [vmem:[%s3909_s1 + $0x4c4] ss:$8 sps:$4 sm:$0xff]   ;;  %v2643_v57 = vld [vmem:[%s3909_s1 + $0x4c0] ss:$8 sps:$4 sm:$0xff]   ;;  %v2658_v3 = vld [vmem:[%s3909_s1 + $0x4f4] ss:$8 sps:$4 sm:$0xff]  }
  0x15   :  { %1976 = vmatprep.subr.bf16.mxu0 %v2598_v21  ;;  %v18_v53 = vld [vmem:[%s3910_s0 + $0x20] sm:$0xff]  ;;  %1786 = vmatprep.mubr.bf16.mxu1 %v2215_v52  ;;  %v2660_v4 = vld [vmem:[%s3909_s1 + $0xf0] ss:$8 sps:$4 sm:$0xff]   ;;  %v2670_v12 = vld [vmem:[%s3909_s1 + $0x114] ss:$8 sps:$4 sm:$0xff]  }
  0x16   :  { %v26_v54 = vld [vmem:[%s3910_s0 + $0x60] sm:$0xff]  ;;  %v2661_v5 = vld [vmem:[%s3909_s1 + $0x4f0] ss:$8 sps:$4 sm:$0xff]   ;;  %v2673_v13 = vld [vmem:[%s3909_s1 + $0x514] ss:$8 sps:$4 sm:$0xff]  }
  0x17   :  { %1765 = vmatpush1.bf16.msra.mxu1 %v2600_v22  ;;  %v2223_v55 = vcombine.high %v18_v53, %v26_v54  ;;  %v2650_v62 = vld [vmem:[%s3909_s1 + $0xe4] ss:$8 sps:$4 sm:$0xff]   ;;  %v2654_v0 = vld [vmem:[%s3909_s1 + $0xe0] ss:$8 sps:$4 sm:$0xff]   ;;  %v2222_v10 = vcombine.low %v18_v53, %v26_v54  ;;  %v2668_v14 = vld [vmem:[%s3909_s1 + $0x110] ss:$8 sps:$4 sm:$0xff]  }
  0x18   :  { %1977 = vmatpush1.bf16.msra.mxu0 %v2601_v23  ;;  %1766 = vmatprep.subr.bf16.mxu1 %v2602_v24  ;;  %v2652_v63 = vld [vmem:[%s3909_s1 + $0x4e4] ss:$8 sps:$4 sm:$0xff]   ;;  %v2655_v1 = vld [vmem:[%s3909_s1 + $0x4e0] ss:$8 sps:$4 sm:$0xff]   ;;  %v2671_v15 = vld [vmem:[%s3909_s1 + $0x510] ss:$8 sps:$4 sm:$0xff]  }
  0x19   :  { %1978 = vmatprep.subr.bf16.mxu0 %v2604_v25  ;;  %1998 = vmatprep.mubr.bf16.mxu0 %v2223_v55  ;;  %v2664_v6 = vld [vmem:[%s3909_s1 + $0x104] ss:$8 sps:$4 sm:$0xff]   ;;  %v2662_v9 = vld [vmem:[%s3909_s1 + $0x100] ss:$8 sps:$4 sm:$0xff]   ;;  %v2682_v20 = vld [vmem:[%s3909_s1 + $0x134] ss:$8 sps:$4 sm:$0xff]  }
  0x1a   :  { %v2667_v7 = vld [vmem:[%s3909_s1 + $0x504] ss:$8 sps:$4 sm:$0xff]   ;;  %v2665_v11 = vld [vmem:[%s3909_s1 + $0x500] ss:$8 sps:$4 sm:$0xff]   ;;  %v2685_v21 = vld [vmem:[%s3909_s1 + $0x534] ss:$8 sps:$4 sm:$0xff]  }
  0x1b   :  { %1767 = vmatpush1.bf16.msra.mxu1 %v2606_v26  ;;  %v2676_v16 = vld [vmem:[%s3909_s1 + $0x124] ss:$8 sps:$4 sm:$0xff]   ;;  %v2674_v18 = vld [vmem:[%s3909_s1 + $0x120] ss:$8 sps:$4 sm:$0xff]   ;;  %v2680_v22 = vld [vmem:[%s3909_s1 + $0x130] ss:$8 sps:$4 sm:$0xff]  }
  0x1c   :  { %1979 = vmatpush1.bf16.msra.mxu0 %v2607_v27  ;;  %1768 = vmatprep.subr.bf16.mxu1 %v2608_v28  ;;  %v2679_v17 = vld [vmem:[%s3909_s1 + $0x524] ss:$8 sps:$4 sm:$0xff]   ;;  %v2677_v19 = vld [vmem:[%s3909_s1 + $0x520] ss:$8 sps:$4 sm:$0xff]   ;;  %v2683_v23 = vld [vmem:[%s3909_s1 + $0x530] ss:$8 sps:$4 sm:$0xff]  }
  0x1d   :  { %1980 = vmatprep.subr.bf16.mxu0 %v2610_v29  ;;  %v2688_v24 = vld [vmem:[%s3909_s1 + $0x144] ss:$8 sps:$4 sm:$0xff]   ;;  %v2686_v26 = vld [vmem:[%s3909_s1 + $0x140] ss:$8 sps:$4 sm:$0xff]   ;;  %v2694_v28 = vld [vmem:[%s3909_s1 + $0x154] ss:$8 sps:$4 sm:$0xff]  }
  0x1e   :  { %v2691_v25 = vld [vmem:[%s3909_s1 + $0x544] ss:$8 sps:$4 sm:$0xff]   ;;  %v2689_v27 = vld [vmem:[%s3909_s1 + $0x540] ss:$8 sps:$4 sm:$0xff]   ;;  %v2697_v29 = vld [vmem:[%s3909_s1 + $0x554] ss:$8 sps:$4 sm:$0xff]  }
  0x1f   :  { %1769 = vmatpush1.bf16.msra.mxu1 %v2612_v30  ;;  %v30_v30 = vld [vmem:[%s3910_s0 + $0x80] sm:$0xff]  ;;  %v3291_v49 = vld [vmem:[%s3910_s0 + $0x28] sm:$0xff]  ;;  %v2707_v52 = vld [vmem:[%s3909_s1 + $0x570] ss:$8 sps:$4 sm:$0xff]  }
  0x20   :  { %1981 = vmatpush1.bf16.msra.mxu0 %v2613_v31  ;;  %1770 = vmatprep.subr.bf16.mxu1 %v2614_v32  ;;  %v38_v31 = vld [vmem:[%s3910_s0 + $0xc0] sm:$0xff]  ;;  %v2692_v32 = vld [vmem:[%s3909_s1 + $0x150] ss:$8 sps:$4 sm:$0xff]  }
  0x21   :  { %1982 = vmatprep.subr.bf16.mxu0 %v2616_v33  ;;  %v2231_v33 = vcombine.high %v30_v30, %v38_v31  ;;  %v2712_v54 = vld [vmem:[%s3909_s1 + $0x184] ss:$8 sps:$4 sm:$0xff]  }
  0x22   :  { %v2715_v55 = vld [vmem:[%s3909_s1 + $0x584] ss:$8 sps:$4 sm:$0xff]  }
  0x23   :  { %1771 = vmatpush1.bf16.msra.mxu1 %v2618_v34  ;;  %v2695_v34 = vld [vmem:[%s3909_s1 + $0x550] ss:$8 sps:$4 sm:$0xff]  }
  0x24   :  { %1983 = vmatpush1.bf16.msra.mxu0 %v2619_v35  ;;  %1772 = vmatprep.subr.bf16.mxu1 %v2620_v36  ;;  %v34_v35 = vld [vmem:[%s3910_s0 + $0xa0] sm:$0xff] }
  0x25   :  { %1984 = vmatprep.subr.bf16.mxu0 %v2622_v37  ;;  %v42_v36 = vld [vmem:[%s3910_s0 + $0xe0] sm:$0xff]  ;;  %v2230_v37 = vcombine.low %v30_v30, %v38_v31  ;;  %v2766_v30 = vld [vmem:[%s3909_s1 + $0x214] ss:$8 sps:$4 sm:$0xff]  }
  0x26   :  { %v2769_v31 = vld [vmem:[%s3909_s1 + $0x614] ss:$8 sps:$4 sm:$0xff]  }
  0x27   :  { %1773 = vmatpush1.bf16.msra.mxu1 %v2624_v38  ;;  %v2700_v38 = vld [vmem:[%s3909_s1 + $0x164] ss:$8 sps:$4 sm:$0xff]  }
  0x28   :  { %1985 = vmatpush1.bf16.msra.mxu0 %v2625_v39  ;;  %1774 = vmatprep.subr.bf16.mxu1 %v2626_v40  ;;  %v2239_v39 = vcombine.high %v34_v35, %v42_v36  ;;  %v2238_v40 = vcombine.low %v34_v35, %v42_v36  ;;  %v2764_v36 = vld [vmem:[%s3909_s1 + $0x210] ss:$8 sps:$4 sm:$0xff]  }
  0x29   :  { %1986 = vmatprep.subr.bf16.mxu0 %v2628_v41  ;;  %v2703_v41 = vld [vmem:[%s3909_s1 + $0x564] ss:$8 sps:$4 sm:$0xff]  }
  0x2b   :  { %1775 = vmatpush1.bf16.msra.mxu1 %v2630_v42  ;;  %v2698_v42 = vld [vmem:[%s3909_s1 + $0x160] ss:$8 sps:$4 sm:$0xff]  }
  0x2c   :  { %1987 = vmatpush1.bf16.msra.mxu0 %v2631_v43  ;;  %1776 = vmatprep.subr.bf16.mxu1 %v2632_v44  ;;  %v2701_v43 = vld [vmem:[%s3909_s1 + $0x560] ss:$8 sps:$4 sm:$0xff]  }
  0x2d   :  { %1988 = vmatprep.subr.bf16.mxu0 %v2634_v45  ;;  %v3273_v44 = vld [vmem:[%s3910_s0 + $0x8] sm:$0xff] }
  0x2e   :  { %v3278_v45 = vld [vmem:[%s3910_s0 + $0x48] sm:$0xff] }
  0x2f   :  { %1777 = vmatpush1.bf16.msra.mxu1 %v2636_v46  ;;  %v2706_v46 = vld [vmem:[%s3909_s1 + $0x174] ss:$8 sps:$4 sm:$0xff]   ;;  %v2217_v48 = vcombine.high %v3273_v44, %v3278_v45 }
  0x30   :  { %1989 = vmatpush1.bf16.msra.mxu0 %v2637_v47  ;;  %1778 = vmatprep.subr.bf16.mxu1 %v2638_v50  ;;  %v2709_v47 = vld [vmem:[%s3909_s1 + $0x574] ss:$8 sps:$4 sm:$0xff]   ;;  %v3296_v50 = vld [vmem:[%s3910_s0 + $0x68] sm:$0xff] }
  0x31   :  { %1990 = vmatprep.subr.bf16.mxu0 %v2640_v51  ;;  %v2704_v51 = vld [vmem:[%s3909_s1 + $0x170] ss:$8 sps:$4 sm:$0xff]   ;;  %v2225_v53 = vcombine.high %v3291_v49, %v3296_v50 }
  0x33   :  { %1779 = vmatpush1.bf16.msra.mxu1 %v2642_v56  ;;  %v2710_v56 = vld [vmem:[%s3909_s1 + $0x180] ss:$8 sps:$4 sm:$0xff]  }
  0x34   :  { %1991 = vmatpush1.bf16.msra.mxu0 %v2643_v57  ;;  %1780 = vmatprep.subr.bf16.mxu1 %v2644_v58  ;;  %v2713_v57 = vld [vmem:[%s3909_s1 + $0x580] ss:$8 sps:$4 sm:$0xff]   ;;  %v2718_v58 = vld [vmem:[%s3909_s1 + $0x194] ss:$8 sps:$4 sm:$0xff]  }
  0x35   :  { %1992 = vmatprep.subr.bf16.mxu0 %v2646_v59  ;;  %v2721_v59 = vld [vmem:[%s3909_s1 + $0x594] ss:$8 sps:$4 sm:$0xff]  }
  0x37   :  { %1781 = vmatpush1.bf16.msra.mxu1 %v2648_v60  ;;  %v2716_v60 = vld [vmem:[%s3909_s1 + $0x190] ss:$8 sps:$4 sm:$0xff]  }
  0x38   :  { %1993 = vmatpush1.bf16.msra.mxu0 %v2649_v61  ;;  %1782 = vmatprep.subr.bf16.mxu1 %v2650_v62  ;;  %v2719_v61 = vld [vmem:[%s3909_s1 + $0x590] ss:$8 sps:$4 sm:$0xff]   ;;  %v2724_v62 = vld [vmem:[%s3909_s1 + $0x1a4] ss:$8 sps:$4 sm:$0xff]  }
  0x39   :  { %1994 = vmatprep.subr.bf16.mxu0 %v2652_v63  ;;  %v2727_v63 = vld [vmem:[%s3909_s1 + $0x5a4] ss:$8 sps:$4 sm:$0xff]  }
  0x3b   :  { %1783 = vmatpush1.bf16.msra.mxu1 %v2654_v0  ;;  %v2722_v0 = vld [vmem:[%s3909_s1 + $0x1a0] ss:$8 sps:$4 sm:$0xff]  }
  0x3c   :  { %1995 = vmatpush1.bf16.msra.mxu0 %v2655_v1  ;;  %1784 = vmatprep.subr.bf16.mxu1 %v2656_v2  ;;  %v2725_v1 = vld [vmem:[%s3909_s1 + $0x5a0] ss:$8 sps:$4 sm:$0xff]   ;;  %v2730_v2 = vld [vmem:[%s3909_s1 + $0x1b4] ss:$8 sps:$4 sm:$0xff]  }
  0x3d   :  { %1996 = vmatprep.subr.bf16.mxu0 %v2658_v3  ;;  %v2733_v3 = vld [vmem:[%s3909_s1 + $0x5b4] ss:$8 sps:$4 sm:$0xff]  }
  0x3f   :  { %1785 = vmatpush1.bf16.msra.mxu1 %v2660_v4  ;;  %v2728_v4 = vld [vmem:[%s3909_s1 + $0x1b0] ss:$8 sps:$4 sm:$0xff]  }
  0x40   :  { %1997 = vmatpush1.bf16.msra.mxu0 %v2661_v5  ;;  %1807 = vmatprep.subr.bf16.mxu1 %v2664_v6  ;;  %v2731_v5 = vld [vmem:[%s3909_s1 + $0x5b0] ss:$8 sps:$4 sm:$0xff]   ;;  %v2736_v6 = vld [vmem:[%s3909_s1 + $0x1c4] ss:$8 sps:$4 sm:$0xff]  }
  0x41   :  { %2019 = vmatprep.subr.bf16.mxu0 %v2667_v7  ;;  %v2739_v7 = vld [vmem:[%s3909_s1 + $0x5c4] ss:$8 sps:$4 sm:$0xff]  }
  0x42   :  { %1787 = vmatmul.mubr.bf16.vlgmr.msra.gmra.mrb[0].mxu1 %v2214_v8  ;;  %v2734_v8 = vld [vmem:[%s3909_s1 + $0x1c0] ss:$8 sps:$4 sm:$0xff]  }
  0x43   :  { %1999 = vmatmul.mubr.bf16.vlgmr.msra.gmra.mrb[0].mxu0 %v2222_v10  ;;  %1808 = vmatpush1.bf16.msra.mxu1 %v2662_v9  ;;  %v2737_v9 = vld [vmem:[%s3909_s1 + $0x5c0] ss:$8 sps:$4 sm:$0xff]   ;;  %v2742_v10 = vld [vmem:[%s3909_s1 + $0x1d4] ss:$8 sps:$4 sm:$0xff]  }
  0x44   :  { %2020 = vmatpush1.bf16.msra.mxu0 %v2665_v11  ;;  %1809 = vmatprep.subr.bf16.mxu1 %v2670_v12  ;;  %v2745_v11 = vld [vmem:[%s3909_s1 + $0x5d4] ss:$8 sps:$4 sm:$0xff]   ;;  %v2740_v12 = vld [vmem:[%s3909_s1 + $0x1d0] ss:$8 sps:$4 sm:$0xff]  }
  0x45   :  { %2021 = vmatprep.subr.bf16.mxu0 %v2673_v13  ;;  %1796 = vmatprep.mubr.bf16.mxu1 %v2231_v33  ;;  %v2743_v13 = vld [vmem:[%s3909_s1 + $0x5d0] ss:$8 sps:$4 sm:$0xff]   ;;  %v43_v33 = vld [vmem:[%s3910_s0 + $0xe8] sm:$0xff] }
  0x46   :  { %2008 = vmatprep.mubr.bf16.mxu0 %v2239_v39  ;;  %v2775_v39 = vld [vmem:[%s3909_s1 + $0x624] ss:$8 sps:$4 sm:$0xff]  }
  0x47   :  { %1810 = vmatpush1.bf16.msra.mxu1 %v2668_v14  ;;  %v2748_v14 = vld [vmem:[%s3909_s1 + $0x1e4] ss:$8 sps:$4 sm:$0xff]  }
  0x48   :  { %2022 = vmatpush1.bf16.msra.mxu0 %v2671_v15  ;;  %1811 = vmatprep.subr.bf16.mxu1 %v2676_v16  ;;  %v2751_v15 = vld [vmem:[%s3909_s1 + $0x5e4] ss:$8 sps:$4 sm:$0xff]   ;;  %v2746_v16 = vld [vmem:[%s3909_s1 + $0x1e0] ss:$8 sps:$4 sm:$0xff]  }
  0x49   :  { %2023 = vmatprep.subr.bf16.mxu0 %v2679_v17  ;;  %v2749_v17 = vld [vmem:[%s3909_s1 + $0x5e0] ss:$8 sps:$4 sm:$0xff]  }
  0x4a   :  { %1797 = vmatmul.mubr.bf16.gmra.mrb[4].mxu1 %v2230_v37  ;;  %v2767_v37 = vld [vmem:[%s3909_s1 + $0x610] ss:$8 sps:$4 sm:$0xff]  }
  0x4b   :  { %1812 = vmatpush1.bf16.msra.mxu1 %v2674_v18  ;;  %2009 = vmatmul.mubr.bf16.gmra.mrb[4].mxu0 %v2238_v40  ;;  %v2754_v18 = vld [vmem:[%s3909_s1 + $0x1f4] ss:$8 sps:$4 sm:$0xff]   ;;  %v2770_v40 = vld [vmem:[%s3909_s1 + $0x220] ss:$8 sps:$4 sm:$0xff]  }
  0x4c   :  { %2024 = vmatpush1.bf16.msra.mxu0 %v2677_v19  ;;  %1813 = vmatprep.subr.bf16.mxu1 %v2682_v20  ;;  %v2757_v19 = vld [vmem:[%s3909_s1 + $0x5f4] ss:$8 sps:$4 sm:$0xff]   ;;  %v2752_v20 = vld [vmem:[%s3909_s1 + $0x1f0] ss:$8 sps:$4 sm:$0xff]  }
  0x4d   :  { %2025 = vmatprep.subr.bf16.mxu0 %v2685_v21  ;;  %1839 = vmatprep.mubr.bf16.mxu1 %v2217_v48  ;;  %v2755_v21 = vld [vmem:[%s3909_s1 + $0x5f0] ss:$8 sps:$4 sm:$0xff]   ;;  %v2778_v48 = vld [vmem:[%s3909_s1 + $0x234] ss:$8 sps:$4 sm:$0xff]  }
  0x4e   :  { %2051 = vmatprep.mubr.bf16.mxu0 %v2225_v53  ;;  %v2779_v53 = vld [vmem:[%s3909_s1 + $0x630] ss:$8 sps:$4 sm:$0xff]  }
  0x4f   :  { %1814 = vmatpush1.bf16.msra.mxu1 %v2680_v22  ;;  %v2760_v22 = vld [vmem:[%s3909_s1 + $0x204] ss:$8 sps:$4 sm:$0xff]  }
  0x50   :  { %2026 = vmatpush1.bf16.msra.mxu0 %v2683_v23  ;;  %1815 = vmatprep.subr.bf16.mxu1 %v2688_v24  ;;  %v2763_v23 = vld [vmem:[%s3909_s1 + $0x604] ss:$8 sps:$4 sm:$0xff]   ;;  %v2758_v24 = vld [vmem:[%s3909_s1 + $0x200] ss:$8 sps:$4 sm:$0xff]  }
  0x51   :  { %2027 = vmatprep.subr.bf16.mxu0 %v2691_v25  ;;  %v2761_v25 = vld [vmem:[%s3909_s1 + $0x600] ss:$8 sps:$4 sm:$0xff]  }
  0x53   :  { %1816 = vmatpush1.bf16.msra.mxu1 %v2686_v26  ;;  %v31_v26 = vld [vmem:[%s3910_s0 + $0x88] sm:$0xff] }
  0x54   :  { %2028 = vmatpush1.bf16.msra.mxu0 %v2689_v27  ;;  %1817 = vmatprep.subr.bf16.mxu1 %v2694_v28  ;;  %v2216_v27 = vcombine.low %v3273_v44, %v3278_v45  ;;  %v2224_v28 = vcombine.low %v3291_v49, %v3296_v50  ;;  %v3462_v45 = vld [vmem:[%s3910_s0 + $0x50] sm:$0xff] }
  0x55   :  { %2029 = vmatprep.subr.bf16.mxu0 %v2697_v29  ;;  %v39_v29 = vld [vmem:[%s3910_s0 + $0xc8] sm:$0xff]  ;;  %v2781_v49 = vld [vmem:[%s3909_s1 + $0x634] ss:$8 sps:$4 sm:$0xff]  }
  0x57   :  { %1818 = vmatpush1.bf16.msra.mxu1 %v2692_v32  ;;  %v35_v32 = vld [vmem:[%s3910_s0 + $0xa8] sm:$0xff] }
  0x58   :  { %2030 = vmatpush1.bf16.msra.mxu0 %v2695_v34  ;;  %1819 = vmatprep.subr.bf16.mxu1 %v2700_v38  ;;  %v2233_v34 = vcombine.high %v31_v26, %v39_v29  ;;  %v2241_v35 = vcombine.high %v35_v32, %v43_v33  ;;  %v2772_v38 = vld [vmem:[%s3909_s1 + $0x224] ss:$8 sps:$4 sm:$0xff]   ;;  %v2240_v44 = vcombine.low %v35_v32, %v43_v33  ;;  %v2842_v32 = vld [vmem:[%s3909_s1 + $0x2e0] ss:$8 sps:$4 sm:$0xff]  }
  0x59   :  { %2031 = vmatprep.subr.bf16.mxu0 %v2703_v41  ;;  %v2773_v41 = vld [vmem:[%s3909_s1 + $0x620] ss:$8 sps:$4 sm:$0xff]  }
  0x5a   :  { %v2845_v33 = vld [vmem:[%s3909_s1 + $0x6e0] ss:$8 sps:$4 sm:$0xff]  }
  0x5b   :  { %1820 = vmatpush1.bf16.msra.mxu1 %v2698_v42  ;;  %v3457_v42 = vld [vmem:[%s3910_s0 + $0x10] sm:$0xff] }
  0x5c   :  { %2032 = vmatpush1.bf16.msra.mxu0 %v2701_v43  ;;  %1821 = vmatprep.subr.bf16.mxu1 %v2706_v46  ;;  %v2232_v43 = vcombine.low %v31_v26, %v39_v29  ;;  %v3467_v46 = vld [vmem:[%s3910_s0 + $0x30] sm:$0xff]  ;;  %v2219_v50 = vcombine.high %v3457_v42, %v3462_v45 }
  0x5d   :  { %2033 = vmatprep.subr.bf16.mxu0 %v2709_v47  ;;  %v3472_v47 = vld [vmem:[%s3910_s0 + $0x70] sm:$0xff] }
  0x5e   :  { %v2838_v26 = vld [vmem:[%s3909_s1 + $0x2d4] ss:$8 sps:$4 sm:$0xff]   ;;  %v2839_v29 = vld [vmem:[%s3909_s1 + $0x6d0] ss:$8 sps:$4 sm:$0xff]  }
  0x5f   :  { %1822 = vmatpush1.bf16.msra.mxu1 %v2704_v51  ;;  %v2227_v51 = vcombine.high %v3467_v46, %v3472_v47 }
  0x60   :  { %2034 = vmatpush1.bf16.msra.mxu0 %v2707_v52  ;;  %1823 = vmatprep.subr.bf16.mxu1 %v2712_v54  ;;  %v2776_v52 = vld [vmem:[%s3909_s1 + $0x230] ss:$8 sps:$4 sm:$0xff]   ;;  %v2784_v54 = vld [vmem:[%s3909_s1 + $0x244] ss:$8 sps:$4 sm:$0xff]  }
  0x61   :  { %2035 = vmatprep.subr.bf16.mxu0 %v2715_v55  ;;  %v2787_v55 = vld [vmem:[%s3909_s1 + $0x644] ss:$8 sps:$4 sm:$0xff]  }
  0x63   :  { %1824 = vmatpush1.bf16.msra.mxu1 %v2710_v56  ;;  %v2782_v56 = vld [vmem:[%s3909_s1 + $0x240] ss:$8 sps:$4 sm:$0xff]  }
  0x64   :  { %2036 = vmatpush1.bf16.msra.mxu0 %v2713_v57  ;;  %1825 = vmatprep.subr.bf16.mxu1 %v2718_v58  ;;  %v2785_v57 = vld [vmem:[%s3909_s1 + $0x640] ss:$8 sps:$4 sm:$0xff]   ;;  %v2790_v58 = vld [vmem:[%s3909_s1 + $0x254] ss:$8 sps:$4 sm:$0xff]  }
  0x65   :  { %2037 = vmatprep.subr.bf16.mxu0 %v2721_v59  ;;  %v2793_v59 = vld [vmem:[%s3909_s1 + $0x654] ss:$8 sps:$4 sm:$0xff]  }
  0x67   :  { %1826 = vmatpush1.bf16.msra.mxu1 %v2716_v60  ;;  %v2788_v60 = vld [vmem:[%s3909_s1 + $0x250] ss:$8 sps:$4 sm:$0xff]  }
  0x68   :  { %2038 = vmatpush1.bf16.msra.mxu0 %v2719_v61  ;;  %1827 = vmatprep.subr.bf16.mxu1 %v2724_v62  ;;  %v2791_v61 = vld [vmem:[%s3909_s1 + $0x650] ss:$8 sps:$4 sm:$0xff]   ;;  %v2796_v62 = vld [vmem:[%s3909_s1 + $0x264] ss:$8 sps:$4 sm:$0xff]  }
  0x69   :  { %2039 = vmatprep.subr.bf16.mxu0 %v2727_v63  ;;  %v2799_v63 = vld [vmem:[%s3909_s1 + $0x664] ss:$8 sps:$4 sm:$0xff]  }
  0x6b   :  { %1828 = vmatpush1.bf16.msra.mxu1 %v2722_v0  ;;  %v2794_v0 = vld [vmem:[%s3909_s1 + $0x260] ss:$8 sps:$4 sm:$0xff]  }
  0x6c   :  { %2040 = vmatpush1.bf16.msra.mxu0 %v2725_v1  ;;  %1829 = vmatprep.subr.bf16.mxu1 %v2730_v2  ;;  %v2797_v1 = vld [vmem:[%s3909_s1 + $0x660] ss:$8 sps:$4 sm:$0xff]   ;;  %v2802_v2 = vld [vmem:[%s3909_s1 + $0x274] ss:$8 sps:$4 sm:$0xff]  }
  0x6d   :  { %2041 = vmatprep.subr.bf16.mxu0 %v2733_v3  ;;  %v2805_v3 = vld [vmem:[%s3909_s1 + $0x674] ss:$8 sps:$4 sm:$0xff]  }
  0x6f   :  { %1830 = vmatpush1.bf16.msra.mxu1 %v2728_v4  ;;  %v2800_v4 = vld [vmem:[%s3909_s1 + $0x270] ss:$8 sps:$4 sm:$0xff]  }
  0x70   :  { %2042 = vmatpush1.bf16.msra.mxu0 %v2731_v5  ;;  %1831 = vmatprep.subr.bf16.mxu1 %v2736_v6  ;;  %v2803_v5 = vld [vmem:[%s3909_s1 + $0x670] ss:$8 sps:$4 sm:$0xff]   ;;  %v2808_v6 = vld [vmem:[%s3909_s1 + $0x284] ss:$8 sps:$4 sm:$0xff]  }
  0x71   :  { %2043 = vmatprep.subr.bf16.mxu0 %v2739_v7  ;;  %v2811_v7 = vld [vmem:[%s3909_s1 + $0x684] ss:$8 sps:$4 sm:$0xff]  }
  0x73   :  { %1832 = vmatpush1.bf16.msra.mxu1 %v2734_v8  ;;  %v2806_v8 = vld [vmem:[%s3909_s1 + $0x280] ss:$8 sps:$4 sm:$0xff]  }
  0x74   :  { %2044 = vmatpush1.bf16.msra.mxu0 %v2737_v9  ;;  %1833 = vmatprep.subr.bf16.mxu1 %v2742_v10  ;;  %v2809_v9 = vld [vmem:[%s3909_s1 + $0x680] ss:$8 sps:$4 sm:$0xff]   ;;  %v2814_v10 = vld [vmem:[%s3909_s1 + $0x294] ss:$8 sps:$4 sm:$0xff]  }
  0x75   :  { %2045 = vmatprep.subr.bf16.mxu0 %v2745_v11  ;;  %v2817_v11 = vld [vmem:[%s3909_s1 + $0x694] ss:$8 sps:$4 sm:$0xff]  }
  0x77   :  { %1834 = vmatpush1.bf16.msra.mxu1 %v2740_v12  ;;  %v2812_v12 = vld [vmem:[%s3909_s1 + $0x290] ss:$8 sps:$4 sm:$0xff]  }
  0x78   :  { %2046 = vmatpush1.bf16.msra.mxu0 %v2743_v13  ;;  %1835 = vmatprep.subr.bf16.mxu1 %v2748_v14  ;;  %v2815_v13 = vld [vmem:[%s3909_s1 + $0x690] ss:$8 sps:$4 sm:$0xff]   ;;  %v2820_v14 = vld [vmem:[%s3909_s1 + $0x2a4] ss:$8 sps:$4 sm:$0xff]  }
  0x79   :  { %2047 = vmatprep.subr.bf16.mxu0 %v2751_v15  ;;  %v2823_v15 = vld [vmem:[%s3909_s1 + $0x6a4] ss:$8 sps:$4 sm:$0xff]  }
  0x7b   :  { %1836 = vmatpush1.bf16.msra.mxu1 %v2746_v16  ;;  %v2818_v16 = vld [vmem:[%s3909_s1 + $0x2a0] ss:$8 sps:$4 sm:$0xff]  }
  0x7c   :  { %2048 = vmatpush1.bf16.msra.mxu0 %v2749_v17  ;;  %1837 = vmatprep.subr.bf16.mxu1 %v2754_v18  ;;  %v2821_v17 = vld [vmem:[%s3909_s1 + $0x6a0] ss:$8 sps:$4 sm:$0xff]   ;;  %v2826_v18 = vld [vmem:[%s3909_s1 + $0x2b4] ss:$8 sps:$4 sm:$0xff]  }
  0x7d   :  { %2049 = vmatprep.subr.bf16.mxu0 %v2757_v19  ;;  %v2829_v19 = vld [vmem:[%s3909_s1 + $0x6b4] ss:$8 sps:$4 sm:$0xff]  }
  0x7f   :  { %1838 = vmatpush1.bf16.msra.mxu1 %v2752_v20  ;;  %v2824_v20 = vld [vmem:[%s3909_s1 + $0x2b0] ss:$8 sps:$4 sm:$0xff]  }
  0x80   :  { %2050 = vmatpush1.bf16.msra.mxu0 %v2755_v21  ;;  %1860 = vmatprep.subr.bf16.mxu1 %v2760_v22  ;;  %v2827_v21 = vld [vmem:[%s3909_s1 + $0x6b0] ss:$8 sps:$4 sm:$0xff]   ;;  %v2832_v22 = vld [vmem:[%s3909_s1 + $0x2c4] ss:$8 sps:$4 sm:$0xff]  }
  0x81   :  { %2072 = vmatprep.subr.bf16.mxu0 %v2763_v23  ;;  %v2835_v23 = vld [vmem:[%s3909_s1 + $0x6c4] ss:$8 sps:$4 sm:$0xff]  }
  0x82   :  { %1840 = vmatmul.mubr.bf16.vlgmr.msra.gmra.mrb[0].mxu1 %v2216_v27  ;;  %v2841_v27 = vld [vmem:[%s3909_s1 + $0x6d4] ss:$8 sps:$4 sm:$0xff]  }
  0x83   :  { %2052 = vmatmul.mubr.bf16.vlgmr.msra.gmra.mrb[0].mxu0 %v2224_v28  ;;  %1861 = vmatpush1.bf16.msra.mxu1 %v2758_v24  ;;  %v2830_v24 = vld [vmem:[%s3909_s1 + $0x2c0] ss:$8 sps:$4 sm:$0xff]   ;;  %v2836_v28 = vld [vmem:[%s3909_s1 + $0x2d0] ss:$8 sps:$4 sm:$0xff]  }
  0x84   :  { %2073 = vmatpush1.bf16.msra.mxu0 %v2761_v25  ;;  %1862 = vmatprep.subr.bf16.mxu1 %v2766_v30  ;;  %v2833_v25 = vld [vmem:[%s3909_s1 + $0x6c0] ss:$8 sps:$4 sm:$0xff]   ;;  %v2844_v30 = vld [vmem:[%s3909_s1 + $0x2e4] ss:$8 sps:$4 sm:$0xff]  }
  0x85   :  { %2074 = vmatprep.subr.bf16.mxu0 %v2769_v31  ;;  %1849 = vmatprep.mubr.bf16.mxu1 %v2233_v34  ;;  %v2847_v31 = vld [vmem:[%s3909_s1 + $0x6e4] ss:$8 sps:$4 sm:$0xff]   ;;  %v2850_v34 = vld [vmem:[%s3909_s1 + $0x2f4] ss:$8 sps:$4 sm:$0xff]  }
  0x86   :  { %2061 = vmatprep.mubr.bf16.mxu0 %v2241_v35  ;;  %v2853_v35 = vld [vmem:[%s3909_s1 + $0x6f4] ss:$8 sps:$4 sm:$0xff]  }
  0x87   :  { %1863 = vmatpush1.bf16.msra.mxu1 %v2764_v36  ;;  %v2848_v36 = vld [vmem:[%s3909_s1 + $0x2f0] ss:$8 sps:$4 sm:$0xff]  }
  0x88   :  { %2075 = vmatpush1.bf16.msra.mxu0 %v2767_v37  ;;  %1864 = vmatprep.subr.bf16.mxu1 %v2772_v38  ;;  %v2851_v37 = vld [vmem:[%s3909_s1 + $0x6f0] ss:$8 sps:$4 sm:$0xff]   ;;  %v2856_v38 = vld [vmem:[%s3909_s1 + $0x304] ss:$8 sps:$4 sm:$0xff]  }
  0x89   :  { %2076 = vmatprep.subr.bf16.mxu0 %v2775_v39  ;;  %v2859_v39 = vld [vmem:[%s3909_s1 + $0x704] ss:$8 sps:$4 sm:$0xff]  }
  0x8a   :  { %1850 = vmatmul.mubr.bf16.gmra.mrb[4].mxu1 %v2232_v43  ;;  %v2226_v43 = vcombine.low %v3467_v46, %v3472_v47  ;;  %v2862_v46 = vld [vmem:[%s3909_s1 + $0x314] ss:$8 sps:$4 sm:$0xff]  }
  0x8b   :  { %2062 = vmatmul.mubr.bf16.gmra.mrb[4].mxu0 %v2240_v44  ;;  %1865 = vmatpush1.bf16.msra.mxu1 %v2770_v40  ;;  %v32_v40 = vld [vmem:[%s3910_s0 + $0x90] sm:$0xff] }
  0x8c   :  { %2077 = vmatpush1.bf16.msra.mxu0 %v2773_v41  ;;  %1866 = vmatprep.subr.bf16.mxu1 %v2778_v48  ;;  %v2218_v41 = vcombine.low %v3457_v42, %v3462_v45  ;;  %v40_v44 = vld [vmem:[%s3910_s0 + $0xd0] sm:$0xff]  ;;  %v2854_v42 = vld [vmem:[%s3909_s1 + $0x300] ss:$8 sps:$4 sm:$0xff]  }
  0x8d   :  { %2078 = vmatprep.subr.bf16.mxu0 %v2781_v49  ;;  %1892 = vmatprep.mubr.bf16.mxu1 %v2219_v50  ;;  %v36_v48 = vld [vmem:[%s3910_s0 + $0xb0] sm:$0xff]  ;;  %v2857_v45 = vld [vmem:[%s3909_s1 + $0x700] ss:$8 sps:$4 sm:$0xff]   ;;  %v2235_v50 = vcombine.high %v32_v40, %v40_v44 }
  0x8e   :  { %2104 = vmatprep.mubr.bf16.mxu0 %v2227_v51  ;;  %v44_v49 = vld [vmem:[%s3910_s0 + $0xf0] sm:$0xff] }
  0x8f   :  { %1867 = vmatpush1.bf16.msra.mxu1 %v2776_v52  ;;  %v2865_v47 = vld [vmem:[%s3909_s1 + $0x714] ss:$8 sps:$4 sm:$0xff]   ;;  %v2243_v51 = vcombine.high %v36_v48, %v44_v49  ;;  %v2860_v52 = vld [vmem:[%s3909_s1 + $0x310] ss:$8 sps:$4 sm:$0xff]  }
  0x90   :  { %2079 = vmatpush1.bf16.msra.mxu0 %v2779_v53  ;;  %1868 = vmatprep.subr.bf16.mxu1 %v2784_v54  ;;  %v2863_v53 = vld [vmem:[%s3909_s1 + $0x710] ss:$8 sps:$4 sm:$0xff]   ;;  %v2868_v54 = vld [vmem:[%s3909_s1 + $0x324] ss:$8 sps:$4 sm:$0xff]  }
  0x91   :  { %2080 = vmatprep.subr.bf16.mxu0 %v2787_v55  ;;  %v2871_v55 = vld [vmem:[%s3909_s1 + $0x724] ss:$8 sps:$4 sm:$0xff]  }
  0x93   :  { %1869 = vmatpush1.bf16.msra.mxu1 %v2782_v56  ;;  %v3683_v56 = vld [vmem:[%s3910_s0 + $0x18] sm:$0xff] }
  0x94   :  { %2081 = vmatpush1.bf16.msra.mxu0 %v2785_v57  ;;  %1870 = vmatprep.subr.bf16.mxu1 %v2790_v58  ;;  %v2234_v57 = vcombine.low %v32_v40, %v40_v44  ;;  %v2242_v58 = vcombine.low %v36_v48, %v44_v49  ;;  %v2926_v40 = vld [vmem:[%s3909_s1 + $0x3c0] ss:$8 sps:$4 sm:$0xff]   ;;  %v2937_v44 = vld [vmem:[%s3909_s1 + $0x7d4] ss:$8 sps:$4 sm:$0xff]   ;;  %v2932_v48 = vld [vmem:[%s3909_s1 + $0x3d0] ss:$8 sps:$4 sm:$0xff]  }
  0x95   :  { %2082 = vmatprep.subr.bf16.mxu0 %v2793_v59  ;;  %v3688_v59 = vld [vmem:[%s3910_s0 + $0x58] sm:$0xff] }
  0x96   :  { %v2935_v49 = vld [vmem:[%s3909_s1 + $0x7d0] ss:$8 sps:$4 sm:$0xff]  }
  0x97   :  { %1871 = vmatpush1.bf16.msra.mxu1 %v2788_v60  ;;  %v3693_v60 = vld [vmem:[%s3910_s0 + $0x38] sm:$0xff] }
  0x98   :  { %2083 = vmatpush1.bf16.msra.mxu0 %v2791_v61  ;;  %1872 = vmatprep.subr.bf16.mxu1 %v2796_v62  ;;  %v3698_v61 = vld [vmem:[%s3910_s0 + $0x78] sm:$0xff]  ;;  %v2866_v62 = vld [vmem:[%s3909_s1 + $0x320] ss:$8 sps:$4 sm:$0xff]  }
  0x99   :  { %2084 = vmatprep.subr.bf16.mxu0 %v2799_v63  ;;  %v2869_v63 = vld [vmem:[%s3909_s1 + $0x720] ss:$8 sps:$4 sm:$0xff]  }
  0x9b   :  { %1873 = vmatpush1.bf16.msra.mxu1 %v2794_v0  ;;  %v2874_v0 = vld [vmem:[%s3909_s1 + $0x334] ss:$8 sps:$4 sm:$0xff]  }
  0x9c   :  { %2085 = vmatpush1.bf16.msra.mxu0 %v2797_v1  ;;  %1874 = vmatprep.subr.bf16.mxu1 %v2802_v2  ;;  %v2877_v1 = vld [vmem:[%s3909_s1 + $0x734] ss:$8 sps:$4 sm:$0xff]   ;;  %v2221_v2 = vcombine.high %v3683_v56, %v3688_v59 }
  0x9d   :  { %2086 = vmatprep.subr.bf16.mxu0 %v2805_v3  ;;  %v2229_v3 = vcombine.high %v3693_v60, %v3698_v61 }
  0x9f   :  { %1875 = vmatpush1.bf16.msra.mxu1 %v2800_v4  ;;  %v2872_v4 = vld [vmem:[%s3909_s1 + $0x330] ss:$8 sps:$4 sm:$0xff]  }
  0xa0   :  { %2087 = vmatpush1.bf16.msra.mxu0 %v2803_v5  ;;  %1876 = vmatprep.subr.bf16.mxu1 %v2808_v6  ;;  %v2875_v5 = vld [vmem:[%s3909_s1 + $0x730] ss:$8 sps:$4 sm:$0xff]   ;;  %v2880_v6 = vld [vmem:[%s3909_s1 + $0x344] ss:$8 sps:$4 sm:$0xff]  }
  0xa1   :  { %2088 = vmatprep.subr.bf16.mxu0 %v2811_v7  ;;  %v2883_v7 = vld [vmem:[%s3909_s1 + $0x744] ss:$8 sps:$4 sm:$0xff]  }
  0xa3   :  { %1877 = vmatpush1.bf16.msra.mxu1 %v2806_v8  ;;  %v2878_v8 = vld [vmem:[%s3909_s1 + $0x340] ss:$8 sps:$4 sm:$0xff]  }
  0xa4   :  { %2089 = vmatpush1.bf16.msra.mxu0 %v2809_v9  ;;  %1878 = vmatprep.subr.bf16.mxu1 %v2814_v10  ;;  %v2881_v9 = vld [vmem:[%s3909_s1 + $0x740] ss:$8 sps:$4 sm:$0xff]   ;;  %v2886_v10 = vld [vmem:[%s3909_s1 + $0x354] ss:$8 sps:$4 sm:$0xff]  }
  0xa5   :  { %2090 = vmatprep.subr.bf16.mxu0 %v2817_v11  ;;  %v2889_v11 = vld [vmem:[%s3909_s1 + $0x754] ss:$8 sps:$4 sm:$0xff]  }
  0xa7   :  { %1879 = vmatpush1.bf16.msra.mxu1 %v2812_v12  ;;  %v2884_v12 = vld [vmem:[%s3909_s1 + $0x350] ss:$8 sps:$4 sm:$0xff]  }
  0xa8   :  { %2091 = vmatpush1.bf16.msra.mxu0 %v2815_v13  ;;  %1880 = vmatprep.subr.bf16.mxu1 %v2820_v14  ;;  %v2887_v13 = vld [vmem:[%s3909_s1 + $0x750] ss:$8 sps:$4 sm:$0xff]   ;;  %v2892_v14 = vld [vmem:[%s3909_s1 + $0x364] ss:$8 sps:$4 sm:$0xff]  }
  0xa9   :  { %2092 = vmatprep.subr.bf16.mxu0 %v2823_v15  ;;  %v2895_v15 = vld [vmem:[%s3909_s1 + $0x764] ss:$8 sps:$4 sm:$0xff]  }
  0xab   :  { %1881 = vmatpush1.bf16.msra.mxu1 %v2818_v16  ;;  %v2890_v16 = vld [vmem:[%s3909_s1 + $0x360] ss:$8 sps:$4 sm:$0xff]  }
  0xac   :  { %2093 = vmatpush1.bf16.msra.mxu0 %v2821_v17  ;;  %1882 = vmatprep.subr.bf16.mxu1 %v2826_v18  ;;  %v2893_v17 = vld [vmem:[%s3909_s1 + $0x760] ss:$8 sps:$4 sm:$0xff]   ;;  %v2898_v18 = vld [vmem:[%s3909_s1 + $0x374] ss:$8 sps:$4 sm:$0xff]  }
  0xad   :  { %2094 = vmatprep.subr.bf16.mxu0 %v2829_v19  ;;  %v2901_v19 = vld [vmem:[%s3909_s1 + $0x774] ss:$8 sps:$4 sm:$0xff]  }
  0xaf   :  { %1883 = vmatpush1.bf16.msra.mxu1 %v2824_v20  ;;  %v2896_v20 = vld [vmem:[%s3909_s1 + $0x370] ss:$8 sps:$4 sm:$0xff]  }
  0xb0   :  { %2095 = vmatpush1.bf16.msra.mxu0 %v2827_v21  ;;  %1884 = vmatprep.subr.bf16.mxu1 %v2832_v22  ;;  %v2899_v21 = vld [vmem:[%s3909_s1 + $0x770] ss:$8 sps:$4 sm:$0xff]   ;;  %v2904_v22 = vld [vmem:[%s3909_s1 + $0x384] ss:$8 sps:$4 sm:$0xff]  }
  0xb1   :  { %2096 = vmatprep.subr.bf16.mxu0 %v2835_v23  ;;  %v2907_v23 = vld [vmem:[%s3909_s1 + $0x784] ss:$8 sps:$4 sm:$0xff]  }
  0xb3   :  { %1885 = vmatpush1.bf16.msra.mxu1 %v2830_v24  ;;  %v2902_v24 = vld [vmem:[%s3909_s1 + $0x380] ss:$8 sps:$4 sm:$0xff]  }
  0xb4   :  { %2097 = vmatpush1.bf16.msra.mxu0 %v2833_v25  ;;  %1886 = vmatprep.subr.bf16.mxu1 %v2838_v26  ;;  %v2905_v25 = vld [vmem:[%s3909_s1 + $0x780] ss:$8 sps:$4 sm:$0xff]   ;;  %v2910_v26 = vld [vmem:[%s3909_s1 + $0x394] ss:$8 sps:$4 sm:$0xff]  }
  0xb5   :  { %2098 = vmatprep.subr.bf16.mxu0 %v2841_v27  ;;  %v2913_v27 = vld [vmem:[%s3909_s1 + $0x794] ss:$8 sps:$4 sm:$0xff]  }
  0xb7   :  { %1887 = vmatpush1.bf16.msra.mxu1 %v2836_v28  ;;  %v2908_v28 = vld [vmem:[%s3909_s1 + $0x390] ss:$8 sps:$4 sm:$0xff]  }
  0xb8   :  { %2099 = vmatpush1.bf16.msra.mxu0 %v2839_v29  ;;  %1888 = vmatprep.subr.bf16.mxu1 %v2844_v30  ;;  %v2911_v29 = vld [vmem:[%s3909_s1 + $0x790] ss:$8 sps:$4 sm:$0xff]   ;;  %v2916_v30 = vld [vmem:[%s3909_s1 + $0x3a4] ss:$8 sps:$4 sm:$0xff]  }
  0xb9   :  { %2100 = vmatprep.subr.bf16.mxu0 %v2847_v31  ;;  %v2919_v31 = vld [vmem:[%s3909_s1 + $0x7a4] ss:$8 sps:$4 sm:$0xff]  }
  0xbb   :  { %1889 = vmatpush1.bf16.msra.mxu1 %v2842_v32  ;;  %v2914_v32 = vld [vmem:[%s3909_s1 + $0x3a0] ss:$8 sps:$4 sm:$0xff]  }
  0xbc   :  { %2101 = vmatpush1.bf16.msra.mxu0 %v2845_v33  ;;  %1890 = vmatprep.subr.bf16.mxu1 %v2850_v34  ;;  %v2917_v33 = vld [vmem:[%s3909_s1 + $0x7a0] ss:$8 sps:$4 sm:$0xff]   ;;  %v2922_v34 = vld [vmem:[%s3909_s1 + $0x3b4] ss:$8 sps:$4 sm:$0xff]  }
  0xbd   :  { %2102 = vmatprep.subr.bf16.mxu0 %v2853_v35  ;;  %v2925_v35 = vld [vmem:[%s3909_s1 + $0x7b4] ss:$8 sps:$4 sm:$0xff]  }
  0xbf   :  { %1891 = vmatpush1.bf16.msra.mxu1 %v2848_v36  ;;  %v2920_v36 = vld [vmem:[%s3909_s1 + $0x3b0] ss:$8 sps:$4 sm:$0xff]  }
  0xc0   :  { %2103 = vmatpush1.bf16.msra.mxu0 %v2851_v37  ;;  %1913 = vmatprep.subr.bf16.mxu1 %v2856_v38  ;;  %v2923_v37 = vld [vmem:[%s3909_s1 + $0x7b0] ss:$8 sps:$4 sm:$0xff]   ;;  %v2928_v38 = vld [vmem:[%s3909_s1 + $0x3c4] ss:$8 sps:$4 sm:$0xff]  }
  0xc1   :  { %2125 = vmatprep.subr.bf16.mxu0 %v2859_v39  ;;  %v2931_v39 = vld [vmem:[%s3909_s1 + $0x7c4] ss:$8 sps:$4 sm:$0xff]  }
  0xc2   :  { %1893 = vmatmul.mubr.bf16.vlgmr.msra.gmra.mrb[0].mxu1 %v2218_v41  ;;  %v2929_v41 = vld [vmem:[%s3909_s1 + $0x7c0] ss:$8 sps:$4 sm:$0xff]  }
  0xc3   :  { %2105 = vmatmul.mubr.bf16.vlgmr.msra.gmra.mrb[0].mxu0 %v2226_v43  ;;  %1914 = vmatpush1.bf16.msra.mxu1 %v2854_v42  ;;  %v2934_v43 = vld [vmem:[%s3909_s1 + $0x3d4] ss:$8 sps:$4 sm:$0xff]   ;;  %v2940_v42 = vld [vmem:[%s3909_s1 + $0x3e4] ss:$8 sps:$4 sm:$0xff]  }
  0xc4   :  { %2126 = vmatpush1.bf16.msra.mxu0 %v2857_v45  ;;  %1915 = vmatprep.subr.bf16.mxu1 %v2862_v46  ;;  %v2943_v45 = vld [vmem:[%s3909_s1 + $0x7e4] ss:$8 sps:$4 sm:$0xff]   ;;  %v2938_v46 = vld [vmem:[%s3909_s1 + $0x3e0] ss:$8 sps:$4 sm:$0xff]  }
  0xc5   :  { %2127 = vmatprep.subr.bf16.mxu0 %v2865_v47  ;;  %1902 = vmatprep.mubr.bf16.mxu1 %v2235_v50  ;;  %v2941_v47 = vld [vmem:[%s3909_s1 + $0x7e0] ss:$8 sps:$4 sm:$0xff]   ;;  %v2946_v50 = vld [vmem:[%s3909_s1 + $0x3f4] ss:$8 sps:$4 sm:$0xff]  }
  0xc6   :  { %2114 = vmatprep.mubr.bf16.mxu0 %v2243_v51  ;;  %v2949_v51 = vld [vmem:[%s3909_s1 + $0x7f4] ss:$8 sps:$4 sm:$0xff]  }
  0xc7   :  { %1916 = vmatpush1.bf16.msra.mxu1 %v2860_v52  ;;  %v2944_v52 = vld [vmem:[%s3909_s1 + $0x3f0] ss:$8 sps:$4 sm:$0xff]  }
  0xc8   :  { %2128 = vmatpush1.bf16.msra.mxu0 %v2863_v53  ;;  %1917 = vmatprep.subr.bf16.mxu1 %v2868_v54  ;;  %v2947_v53 = vld [vmem:[%s3909_s1 + $0x7f0] ss:$8 sps:$4 sm:$0xff]  }
  0xc9   :  { %2129 = vmatprep.subr.bf16.mxu0 %v2871_v55  ;;  %v33_v54 = vld [vmem:[%s3910_s0 + $0x98] sm:$0xff] }
  0xca   :  { %1903 = vmatmul.mubr.bf16.gmra.mrb[4].mxu1 %v2234_v57  ;;  %v41_v55 = vld [vmem:[%s3910_s0 + $0xd8] sm:$0xff] }
  0xcb   :  { %2115 = vmatmul.mubr.bf16.gmra.mrb[4].mxu0 %v2242_v58  ;;  %1918 = vmatpush1.bf16.msra.mxu1 %v2866_v62  ;;  %v37_v57 = vld [vmem:[%s3910_s0 + $0xb8] sm:$0xff]  ;;  %v2220_v62 = vcombine.low %v3683_v56, %v3688_v59  ;;  %v302_v56 = vld [vmem:[%s3911_s2] sm:$0x3] }
  0xcc   :  { %2130 = vmatpush1.bf16.msra.mxu0 %v2869_v63  ;;  %1919 = vmatprep.subr.bf16.mxu1 %v2874_v0  ;;  %v45_v58 = vld [vmem:[%s3910_s0 + $0xf8] sm:$0xff]  ;;  %v2228_v63 = vcombine.low %v3693_v60, %v3698_v61  ;;  %v2237_v0 = vcombine.high %v33_v54, %v41_v55 }
  0xcd   :  { %2131 = vmatprep.subr.bf16.mxu0 %v2877_v1  ;;  %1945 = vmatprep.mubr.bf16.mxu1 %v2221_v2  ;;  %v2245_v1 = vcombine.high %v37_v57, %v45_v58  ;;  %v2236_v2 = vcombine.low %v33_v54, %v41_v55 }
  0xce   :  { %2157 = vmatprep.mubr.bf16.mxu0 %v2229_v3  ;;  %v2244_v3 = vcombine.low %v37_v57, %v45_v58 }
  0xcf   :  { %1920 = vmatpush1.bf16.msra.mxu1 %v2872_v4  ;;  %v304_v4 = vlaneseq }
  0xd0   :  { %2132 = vmatpush1.bf16.msra.mxu0 %v2875_v5  ;;  %1921 = vmatprep.subr.bf16.mxu1 %v2880_v6 }
  0xd1   :  { %2133 = vmatprep.subr.bf16.mxu0 %v2883_v7  ;;  %v305_v5 = vshrl.u32 %v304_v4, 7 }
  0xd3   :  { %1922 = vmatpush1.bf16.msra.mxu1 %v2878_v8  ;;  %v306_v6 = vsub.s32 0, %v305_v5  ;;  %v310_v59 = vsub.s32 1, %v305_v5 }
  0xd4   :  { %2134 = vmatpush1.bf16.msra.mxu0 %v2881_v9  ;;  %1923 = vmatprep.subr.bf16.mxu1 %v2886_v10 }
  0xd5   :  { %2135 = vmatprep.subr.bf16.mxu0 %v2889_v11  ;;  %v307_v60 = vrot.slane %v302_v56, %v306_v6  ;;  %v311_v61 = vrot.slane %v302_v56, %v310_v59 }
  0xd7   :  { %1924 = vmatpush1.bf16.msra.mxu1 %v2884_v12 }
  0xd8   :  { %2136 = vmatpush1.bf16.msra.mxu0 %v2887_v13  ;;  %1925 = vmatprep.subr.bf16.mxu1 %v2892_v14 }
  0xd9   :  { %2137 = vmatprep.subr.bf16.mxu0 %v2895_v15 }
  0xdb   :  { %1926 = vmatpush1.bf16.msra.mxu1 %v2890_v16 }
  0xdc   :  { %2138 = vmatpush1.bf16.msra.mxu0 %v2893_v17  ;;  %1927 = vmatprep.subr.bf16.mxu1 %v2898_v18 }
  0xdd   :  { %2139 = vmatprep.subr.bf16.mxu0 %v2901_v19 }
  0xdf   :  { %1928 = vmatpush1.bf16.msra.mxu1 %v2896_v20 }
  0xe0   :  { %2140 = vmatpush1.bf16.msra.mxu0 %v2899_v21  ;;  %1929 = vmatprep.subr.bf16.mxu1 %v2904_v22 }
  0xe1   :  { %2141 = vmatprep.subr.bf16.mxu0 %v2907_v23 }
  0xe3   :  { %1930 = vmatpush1.bf16.msra.mxu1 %v2902_v24 }
  0xe4   :  { %2142 = vmatpush1.bf16.msra.mxu0 %v2905_v25  ;;  %1931 = vmatprep.subr.bf16.mxu1 %v2910_v26 }
  0xe5   :  { %2143 = vmatprep.subr.bf16.mxu0 %v2913_v27 }
  0xe7   :  { %1932 = vmatpush1.bf16.msra.mxu1 %v2908_v28 }
  0xe8   :  { %2144 = vmatpush1.bf16.msra.mxu0 %v2911_v29  ;;  %1933 = vmatprep.subr.bf16.mxu1 %v2916_v30 }
  0xe9   :  { %2145 = vmatprep.subr.bf16.mxu0 %v2919_v31 }
  0xeb   :  { %1934 = vmatpush1.bf16.msra.mxu1 %v2914_v32 }
  0xec   :  { %2146 = vmatpush1.bf16.msra.mxu0 %v2917_v33  ;;  %1935 = vmatprep.subr.bf16.mxu1 %v2922_v34 }
  0xed   :  { %2147 = vmatprep.subr.bf16.mxu0 %v2925_v35 }
  0xef   :  { %1936 = vmatpush1.bf16.msra.mxu1 %v2920_v36 }
  0xf0   :  { %2148 = vmatpush1.bf16.msra.mxu0 %v2923_v37  ;;  %1937 = vmatprep.subr.bf16.mxu1 %v2928_v38 }
  0xf1   :  { %2149 = vmatprep.subr.bf16.mxu0 %v2931_v39 }
  0xf3   :  { %1938 = vmatpush1.bf16.msra.mxu1 %v2926_v40 }
  0xf4   :  { %2150 = vmatpush1.bf16.msra.mxu0 %v2929_v41  ;;  %1939 = vmatprep.subr.bf16.mxu1 %v2934_v43 }
  0xf5   :  { %2151 = vmatprep.subr.bf16.mxu0 %v2937_v44 }
  0xf7   :  { %1940 = vmatpush1.bf16.msra.mxu1 %v2932_v48 }
  0xf8   :  { %2152 = vmatpush1.bf16.msra.mxu0 %v2935_v49  ;;  %1941 = vmatprep.subr.bf16.mxu1 %v2940_v42 }
  0xf9   :  { %2153 = vmatprep.subr.bf16.mxu0 %v2943_v45 }
  0xfb   :  { %1942 = vmatpush1.bf16.msra.mxu1 %v2938_v46 }
  0xfc   :  { %2154 = vmatpush1.bf16.msra.mxu0 %v2941_v47  ;;  %1943 = vmatprep.subr.bf16.mxu1 %v2946_v50 }
  0xfd   :  { %2155 = vmatprep.subr.bf16.mxu0 %v2949_v51 }
  0xff   :  { %1944 = vmatpush1.bf16.msra.mxu1 %v2944_v52 }
 0x100   :  { %2156 = vmatpush1.bf16.msra.mxu0 %v2947_v53 }
 0x102   :  { %1946 = vmatmul.mubr.bf16.vlgmr.msra.gmra.mrb[0].mxu1 %v2220_v62 }
 0x103   :  { %2158 = vmatmul.mubr.bf16.vlgmr.msra.gmra.mrb[0].mxu0 %v2228_v63  ;;  %1955 = vmatprep.mubr.bf16.mxu1 %v2237_v0 }
 0x104   :  { %2167 = vmatprep.mubr.bf16.mxu0 %v2245_v1 }
 0x10a   :  { %1956 = vmatmul.mubr.bf16.gmra.mrb[4].mxu1 %v2236_v2 }
 0x10b   :  { %2168 = vmatmul.mubr.bf16.gmra.mrb[4].mxu0 %v2244_v3 }
 0x1d5   :  { %v1947_v7 = vpop.f32.mrb[0].mxu1 }
 0x1d6   :  { %v2159_v8 = vpop.f32.mrb[0].mxu0  ;;  %v2502_v9 = vadd.f32 %v1947_v7, %v307_v60  ;;  %v1949_v10 = vpop.f32.mrb[1].mxu1 }
 0x1d7   :  { %v2161_v11 = vpop.f32.mrb[1].mxu0  ;;  %v2504_v12 = vadd.f32 %v1949_v10, %v311_v61  ;;  %v1951_v13 = vpop.f32.mrb[2].mxu1 }
 0x1d8   :  { %v2163_v14 = vpop.f32.mrb[2].mxu0  ;;  %v2503_v15 = vadd.f32 %v2502_v9, %v2159_v8  ;;  %v2506_v16 = vadd.f32 %v1951_v13, %v307_v60  ;;  %v1953_v17 = vpop.f32.mrb[3].mxu1 }
 0x1d9   :  { %v2165_v18 = vpop.f32.mrb[3].mxu0  ;;  %v2505_v19 = vadd.f32 %v2504_v12, %v2161_v11  ;;  %v2508_v20 = vadd.f32 %v1953_v17, %v311_v61 }
 0x1da   :  { %vm2178_vm0 = vcmp.gt.f32.partialorder %v2503_v15, 0.0  ;;  %v2186_v21 = vmul.f32 0.2, %v2503_v15  ;;  %v2507_v22 = vadd.f32 %v2506_v16, %v2163_v14 }
 0x1db   :  { %vm2179_vm1 = vcmp.gt.f32.partialorder %v2505_v19, 0.0  ;;  %v2187_v23 = vmul.f32 0.2, %v2505_v19  ;;  %v2509_v24 = vadd.f32 %v2508_v20, %v2165_v18 }
 0x1dc   :  { %v2194_v25 = vsel %vm2178_vm0, %v2503_v15, %v2186_v21  ;;  %vm2180_vm2 = vcmp.gt.f32.partialorder %v2507_v22, 0.0  ;;  %v2188_v26 = vmul.f32 0.2, %v2507_v22 }
 0x1dd   :  { %2202 = vst [vmem:[%s3912_s3] sm:$0xff] %v2194_v25  ;;  %v2195_v27 = vsel %vm2179_vm1, %v2505_v19, %v2187_v23  ;;  %vm2181_vm3 = vcmp.gt.f32.partialorder %v2509_v24, 0.0  ;;  %v2189_v28 = vmul.f32 0.2, %v2509_v24  ;;  %v1957_v29 = vpop.f32.mrb[4].mxu1 }
 0x1de   :  { %v2169_v30 = vpop.f32.mrb[4].mxu0  ;;  %2203 = vst [vmem:[%s3912_s3 + $0x8] sm:$0xff] %v2195_v27  ;;  %v2196_v31 = vsel %vm2180_vm2, %v2507_v22, %v2188_v26  ;;  %v2510_v32 = vadd.f32 %v1957_v29, %v307_v60  ;;  %v1959_v33 = vpop.f32.mrb[5].mxu1 }
 0x1df   :  { %v2171_v34 = vpop.f32.mrb[5].mxu0  ;;  %2204 = vst [vmem:[%s3912_s3 + $0x10] sm:$0xff] %v2196_v31  ;;  %v2197_v35 = vsel %vm2181_vm3, %v2509_v24, %v2189_v28  ;;  %v2512_v36 = vadd.f32 %v1959_v33, %v311_v61  ;;  %v1961_v37 = vpop.f32.mrb[6].mxu1 }
 0x1e0   :  { %v2173_v38 = vpop.f32.mrb[6].mxu0  ;;  %2205 = vst [vmem:[%s3912_s3 + $0x18] sm:$0xff] %v2197_v35  ;;  %v2511_v39 = vadd.f32 %v2510_v32, %v2169_v30  ;;  %v2514_v40 = vadd.f32 %v1961_v37, %v307_v60  ;;  %v1963_v41 = vpop.f32.mrb[7].mxu1 }
 0x1e1   :  { %v2175_v43 = vpop.f32.mrb[7].mxu0  ;;  %v2513_v44 = vadd.f32 %v2512_v36, %v2171_v34  ;;  %v2516_v48 = vadd.f32 %v1963_v41, %v311_v61 }
 0x1e2   :  { %vm2182_vm4 = vcmp.gt.f32.partialorder %v2511_v39, 0.0  ;;  %v2190_v49 = vmul.f32 0.2, %v2511_v39  ;;  %v2515_v42 = vadd.f32 %v2514_v40, %v2173_v38 }
 0x1e3   :  { %vm2183_vm5 = vcmp.gt.f32.partialorder %v2513_v44, 0.0  ;;  %v2191_v45 = vmul.f32 0.2, %v2513_v44  ;;  %v2517_v46 = vadd.f32 %v2516_v48, %v2175_v43 }
 0x1e4   :  { %v2198_v47 = vsel %vm2182_vm4, %v2511_v39, %v2190_v49  ;;  %vm2184_vm6 = vcmp.gt.f32.partialorder %v2515_v42, 0.0  ;;  %v2192_v50 = vmul.f32 0.2, %v2515_v42 }
 0x1e5   :  { %2206 = vst [vmem:[%s3912_s3 + $0x20] sm:$0xff] %v2198_v47  ;;  %v2199_v51 = vsel %vm2183_vm5, %v2513_v44, %v2191_v45  ;;  %vm2185_vm7 = vcmp.gt.f32.partialorder %v2517_v46, 0.0  ;;  %v2193_v52 = vmul.f32 0.2, %v2517_v46 }
 0x1e6   :  { %2207 = vst [vmem:[%s3912_s3 + $0x28] sm:$0xff] %v2199_v51  ;;  %v2200_v53 = vsel %vm2184_vm6, %v2515_v42, %v2192_v50 }
 0x1e7   :  { %2208 = vst [vmem:[%s3912_s3 + $0x30] sm:$0xff] %v2200_v53  ;;  %v2201_v54 = vsel %vm2185_vm7, %v2517_v46, %v2193_v52 }
 0x1e8   :  { %2209 = vst [vmem:[%s3912_s3 + $0x38] sm:$0xff] %v2201_v54 }

// kernel: discriminator_forward.8
= control target key start
LH: loop header
LB: loop body
LE: loop exit
PB: predicated region body
PF: predicated region fallthrough
CT: control target
= control target key end

     0   :  { %s10476_s12 = smov 0   ;;  %s10478_s13 = smov 0   ;;  %s12442_s0 = inlined_call_operand.vmem [shape: bf16[32,4096], index: 0, kind: input, shape index: {}]   ;;  %s12443_s1 = inlined_call_operand.vmem [shape: bf16[4096,512], index: 1, kind: input, shape index: {}]   ;;  %s12444_s2 = inlined_call_operand.vmem [shape: f32[1,512], index: 2, kind: input, shape index: {}]   ;;  %s12445_s3 = inlined_call_operand.vmem [shape: f32[32,512], index: 3, kind: output, shape index: {}]  }
   0x1   :  { %s10480_s14 = smov 0   ;;  %s10482_s15 = smov 0  }
   0x2   :  { %s10484_s16 = smov 0  }
   0x3 LB: > { %s22_s17 = sadd.s32 1, %s10450_s15  ;;  %s8885_s18 = sadd.s32 4294967295, %s10454_s16   ;;  %s10454_s16 = sphi %s10484_s16, %s13_s16   ;;  %s10450_s15 = sphi %s10482_s15, %s12450_s15   ;;  %s10446_s14 = sphi %s10480_s14, %s12449_s14   ;;  %s10442_s13 = sphi %s10478_s13, %s12448_s13   ;;  %s10438_s12 = sphi %s10476_s12, %s12447_s12  }
   0x4   : > { %p23_p0 = scmp.ge.s32.totalorder %s22_s17, 2  ;;  %p65_p1 = scmp.ne.s32.totalorder %s10442_s13, %s10438_s12 }
   0x5   : > { %p66_p2 = scmp.eq.s32.totalorder %s10454_s16, 0  ;;  %p123_p4 = scmp.eq.s32.totalorder %s8885_s18, 1 }
   0x6   : > { %s12452_s17 = smov (%p23_p0, %s22_s17), 0  ;;  %s58_s20 = sadd.s32 1, %s10442_s13 }
   0x7   : > { %p67_p3 = por %p66_p2, %p65_p1  ;;  %s55_s19 = ssub.s32 %s10450_s15, %s12452_s17 }
   0x8   : > { %p56_p5 = scmp.eq.s32.totalorder %s55_s19, 0  ;;  %p10511_p6 = por %p123_p4, %p65_p1 }
   0x9   : > { %p8889_p7 = scmp.ge.s32.totalorder %s10454_s16, 2 }
   0xa   : > { %s10516_s22 = scalar_select %p56_p5, %s10442_s13, %s58_s20  }
   0xb   : > { %155 = sbr.rel (%p8889_p7) target bundleno = 278 (0x116), region = 20 }
  0x12   : > { %158 = sbr.rel (!%p67_p3) target bundleno = 278 (0x116), region = 24  ;;  %s160_s23 = sand.u32 (%p67_p3), 1, %s10442_s13  }
  0x13   : > { %s9478_s24 = sshll.u32 (%p67_p3), %s10450_s15, 3  ;;  %s8890_s25 = sshll.u32 (%p67_p3), %s160_s23, 12 }
  0x14   : > { %s10524_s28 = scalar_lea.vmem (%p67_p3), %s12443_s1, %s9478_s24  ;;  %s10529_s29 = scalar_lea.vmem (%p67_p3), [#allocation2], %s8890_s25 }
  0x15   : > { %v1218_v0 = vld [vmem:[%s10524_s28] sm:$0xff] (%p67_p3)  ;;  %v1220_v1 = vld [vmem:[%s10524_s28 + $0x10] sm:$0xff] (%p67_p3) }
  0x16   : > { %v1222_v2 = vld [vmem:[%s10524_s28 + $0x20] sm:$0xff] (%p67_p3)  ;;  %1219 = vst [vmem:[%s10529_s29] sm:$0xff] (%p67_p3), %v1218_v0  ;;  %1221 = vst [vmem:[%s10529_s29 + $0x8] sm:$0xff] (%p67_p3), %v1220_v1  ;;  %v1224_v3 = vld [vmem:[%s10524_s28 + $0x30] sm:$0xff] (%p67_p3) }
  0x17   : > { %1223 = vst [vmem:[%s10529_s29 + $0x10] sm:$0xff] (%p67_p3), %v1222_v2  ;;  %v1226_v4 = vld [vmem:[%s10524_s28 + $0x40] sm:$0xff] (%p67_p3)  ;;  %v1228_v5 = vld [vmem:[%s10524_s28 + $0x50] sm:$0xff] (%p67_p3)  ;;  %1225 = vst [vmem:[%s10529_s29 + $0x18] sm:$0xff] (%p67_p3), %v1224_v3 }
  0x18   : > { %1227 = vst [vmem:[%s10529_s29 + $0x20] sm:$0xff] (%p67_p3), %v1226_v4  ;;  %1229 = vst [vmem:[%s10529_s29 + $0x28] sm:$0xff] (%p67_p3), %v1228_v5  ;;  %v1230_v6 = vld [vmem:[%s10524_s28 + $0x60] sm:$0xff] (%p67_p3)  ;;  %v1232_v7 = vld [vmem:[%s10524_s28 + $0x70] sm:$0xff] (%p67_p3) }
  0x19   : > { %v1234_v8 = vld [vmem:[%s10524_s28 + $0x80] sm:$0xff]  ;;  %1231 = vst [vmem:[%s10529_s29 + $0x30] sm:$0xff] %v1230_v6  ;;  %1233 = vst [vmem:[%s10529_s29 + $0x38] sm:$0xff] %v1232_v7  ;;  %v1236_v9 = vld [vmem:[%s10524_s28 + $0x90] sm:$0xff] }
  0x1a   : > { %1235 = vst [vmem:[%s10529_s29 + $0x40] sm:$0xff] %v1234_v8  ;;  %v1238_v10 = vld [vmem:[%s10524_s28 + $0xa0] sm:$0xff]  ;;  %v1240_v11 = vld [vmem:[%s10524_s28 + $0xb0] sm:$0xff]  ;;  %1237 = vst [vmem:[%s10529_s29 + $0x48] sm:$0xff] %v1236_v9 }
  0x1b   : > { %1239 = vst [vmem:[%s10529_s29 + $0x50] sm:$0xff] %v1238_v10  ;;  %1241 = vst [vmem:[%s10529_s29 + $0x58] sm:$0xff] %v1240_v11  ;;  %v1242_v12 = vld [vmem:[%s10524_s28 + $0xc0] sm:$0xff]  ;;  %v1244_v13 = vld [vmem:[%s10524_s28 + $0xd0] sm:$0xff] }
  0x1c   : > { %v1246_v14 = vld [vmem:[%s10524_s28 + $0xe0] sm:$0xff]  ;;  %1243 = vst [vmem:[%s10529_s29 + $0x60] sm:$0xff] %v1242_v12  ;;  %1245 = vst [vmem:[%s10529_s29 + $0x68] sm:$0xff] %v1244_v13  ;;  %v1248_v15 = vld [vmem:[%s10524_s28 + $0xf0] sm:$0xff] }
  0x1d   : > { %1247 = vst [vmem:[%s10529_s29 + $0x70] sm:$0xff] %v1246_v14  ;;  %v1250_v16 = vld [vmem:[%s10524_s28 + $0x100] sm:$0xff]  ;;  %v1252_v17 = vld [vmem:[%s10524_s28 + $0x110] sm:$0xff]  ;;  %1249 = vst [vmem:[%s10529_s29 + $0x78] sm:$0xff] %v1248_v15 }
  0x1e   : > { %1251 = vst [vmem:[%s10529_s29 + $0x80] sm:$0xff] %v1250_v16  ;;  %1253 = vst [vmem:[%s10529_s29 + $0x88] sm:$0xff] %v1252_v17  ;;  %v1254_v18 = vld [vmem:[%s10524_s28 + $0x120] sm:$0xff]  ;;  %v1256_v19 = vld [vmem:[%s10524_s28 + $0x130] sm:$0xff] }
  0x1f   : > { %v1258_v20 = vld [vmem:[%s10524_s28 + $0x140] sm:$0xff]  ;;  %1255 = vst [vmem:[%s10529_s29 + $0x90] sm:$0xff] %v1254_v18  ;;  %1257 = vst [vmem:[%s10529_s29 + $0x98] sm:$0xff] %v1256_v19  ;;  %v1260_v21 = vld [vmem:[%s10524_s28 + $0x150] sm:$0xff] }
  0x20   : > { %1259 = vst [vmem:[%s10529_s29 + $0xa0] sm:$0xff] %v1258_v20  ;;  %v1262_v22 = vld [vmem:[%s10524_s28 + $0x160] sm:$0xff]  ;;  %v1264_v23 = vld [vmem:[%s10524_s28 + $0x170] sm:$0xff]  ;;  %1261 = vst [vmem:[%s10529_s29 + $0xa8] sm:$0xff] %v1260_v21 }
  0x21   : > { %1263 = vst [vmem:[%s10529_s29 + $0xb0] sm:$0xff] %v1262_v22  ;;  %1265 = vst [vmem:[%s10529_s29 + $0xb8] sm:$0xff] %v1264_v23  ;;  %v1266_v24 = vld [vmem:[%s10524_s28 + $0x180] sm:$0xff]  ;;  %v1268_v25 = vld [vmem:[%s10524_s28 + $0x190] sm:$0xff] }
  0x22   : > { %v1270_v26 = vld [vmem:[%s10524_s28 + $0x1a0] sm:$0xff]  ;;  %1267 = vst [vmem:[%s10529_s29 + $0xc0] sm:$0xff] %v1266_v24  ;;  %1269 = vst [vmem:[%s10529_s29 + $0xc8] sm:$0xff] %v1268_v25  ;;  %v1272_v27 = vld [vmem:[%s10524_s28 + $0x1b0] sm:$0xff] }
  0x23   : > { %1271 = vst [vmem:[%s10529_s29 + $0xd0] sm:$0xff] %v1270_v26  ;;  %v1274_v28 = vld [vmem:[%s10524_s28 + $0x1c0] sm:$0xff]  ;;  %v1276_v29 = vld [vmem:[%s10524_s28 + $0x1d0] sm:$0xff]  ;;  %1273 = vst [vmem:[%s10529_s29 + $0xd8] sm:$0xff] %v1272_v27 }
  0x24   : > { %1275 = vst [vmem:[%s10529_s29 + $0xe0] sm:$0xff] %v1274_v28  ;;  %1277 = vst [vmem:[%s10529_s29 + $0xe8] sm:$0xff] %v1276_v29  ;;  %v1278_v30 = vld [vmem:[%s10524_s28 + $0x1e0] sm:$0xff]  ;;  %v1280_v31 = vld [vmem:[%s10524_s28 + $0x1f0] sm:$0xff] }
  0x25   : > { %v1282_v32 = vld [vmem:[%s10524_s28 + $0x200] sm:$0xff]  ;;  %1279 = vst [vmem:[%s10529_s29 + $0xf0] sm:$0xff] %v1278_v30  ;;  %1281 = vst [vmem:[%s10529_s29 + $0xf8] sm:$0xff] %v1280_v31  ;;  %v1284_v33 = vld [vmem:[%s10524_s28 + $0x210] sm:$0xff] }
  0x26   : > { %1283 = vst [vmem:[%s10529_s29 + $0x100] sm:$0xff] %v1282_v32  ;;  %v1286_v34 = vld [vmem:[%s10524_s28 + $0x220] sm:$0xff]  ;;  %v1288_v35 = vld [vmem:[%s10524_s28 + $0x230] sm:$0xff]  ;;  %1285 = vst [vmem:[%s10529_s29 + $0x108] sm:$0xff] %v1284_v33 }
  0x27   : > { %1287 = vst [vmem:[%s10529_s29 + $0x110] sm:$0xff] %v1286_v34  ;;  %1289 = vst [vmem:[%s10529_s29 + $0x118] sm:$0xff] %v1288_v35  ;;  %v1290_v36 = vld [vmem:[%s10524_s28 + $0x240] sm:$0xff]  ;;  %v1292_v37 = vld [vmem:[%s10524_s28 + $0x250] sm:$0xff] }
  0x28   : > { %v1294_v38 = vld [vmem:[%s10524_s28 + $0x260] sm:$0xff]  ;;  %1291 = vst [vmem:[%s10529_s29 + $0x120] sm:$0xff] %v1290_v36  ;;  %1293 = vst [vmem:[%s10529_s29 + $0x128] sm:$0xff] %v1292_v37  ;;  %v1296_v39 = vld [vmem:[%s10524_s28 + $0x270] sm:$0xff] }
  0x29   : > { %1295 = vst [vmem:[%s10529_s29 + $0x130] sm:$0xff] %v1294_v38  ;;  %v1298_v40 = vld [vmem:[%s10524_s28 + $0x280] sm:$0xff]  ;;  %v1300_v41 = vld [vmem:[%s10524_s28 + $0x290] sm:$0xff]  ;;  %1297 = vst [vmem:[%s10529_s29 + $0x138] sm:$0xff] %v1296_v39 }
  0x2a   : > { %1299 = vst [vmem:[%s10529_s29 + $0x140] sm:$0xff] %v1298_v40  ;;  %1301 = vst [vmem:[%s10529_s29 + $0x148] sm:$0xff] %v1300_v41  ;;  %v1302_v42 = vld [vmem:[%s10524_s28 + $0x2a0] sm:$0xff]  ;;  %v1304_v43 = vld [vmem:[%s10524_s28 + $0x2b0] sm:$0xff] }
  0x2b   : > { %v1306_v44 = vld [vmem:[%s10524_s28 + $0x2c0] sm:$0xff]  ;;  %1303 = vst [vmem:[%s10529_s29 + $0x150] sm:$0xff] %v1302_v42  ;;  %1305 = vst [vmem:[%s10529_s29 + $0x158] sm:$0xff] %v1304_v43  ;;  %v1308_v45 = vld [vmem:[%s10524_s28 + $0x2d0] sm:$0xff] }
  0x2c   : > { %1307 = vst [vmem:[%s10529_s29 + $0x160] sm:$0xff] %v1306_v44  ;;  %v1310_v46 = vld [vmem:[%s10524_s28 + $0x2e0] sm:$0xff]  ;;  %v1312_v47 = vld [vmem:[%s10524_s28 + $0x2f0] sm:$0xff]  ;;  %1309 = vst [vmem:[%s10529_s29 + $0x168] sm:$0xff] %v1308_v45 }
  0x2d   : > { %1311 = vst [vmem:[%s10529_s29 + $0x170] sm:$0xff] %v1310_v46  ;;  %1313 = vst [vmem:[%s10529_s29 + $0x178] sm:$0xff] %v1312_v47  ;;  %v1314_v48 = vld [vmem:[%s10524_s28 + $0x300] sm:$0xff]  ;;  %v1316_v49 = vld [vmem:[%s10524_s28 + $0x310] sm:$0xff] }
  0x2e   : > { %v1318_v50 = vld [vmem:[%s10524_s28 + $0x320] sm:$0xff]  ;;  %1315 = vst [vmem:[%s10529_s29 + $0x180] sm:$0xff] %v1314_v48  ;;  %1317 = vst [vmem:[%s10529_s29 + $0x188] sm:$0xff] %v1316_v49  ;;  %v1320_v51 = vld [vmem:[%s10524_s28 + $0x330] sm:$0xff] }
  0x2f   : > { %1319 = vst [vmem:[%s10529_s29 + $0x190] sm:$0xff] %v1318_v50  ;;  %v1322_v52 = vld [vmem:[%s10524_s28 + $0x340] sm:$0xff]  ;;  %v1324_v53 = vld [vmem:[%s10524_s28 + $0x350] sm:$0xff]  ;;  %1321 = vst [vmem:[%s10529_s29 + $0x198] sm:$0xff] %v1320_v51 }
  0x30   : > { %1323 = vst [vmem:[%s10529_s29 + $0x1a0] sm:$0xff] %v1322_v52  ;;  %1325 = vst [vmem:[%s10529_s29 + $0x1a8] sm:$0xff] %v1324_v53  ;;  %v1326_v54 = vld [vmem:[%s10524_s28 + $0x360] sm:$0xff]  ;;  %v1328_v55 = vld [vmem:[%s10524_s28 + $0x370] sm:$0xff] }
  0x31   : > { %v1330_v56 = vld [vmem:[%s10524_s28 + $0x380] sm:$0xff]  ;;  %1327 = vst [vmem:[%s10529_s29 + $0x1b0] sm:$0xff] %v1326_v54  ;;  %1329 = vst [vmem:[%s10529_s29 + $0x1b8] sm:$0xff] %v1328_v55  ;;  %v1332_v57 = vld [vmem:[%s10524_s28 + $0x390] sm:$0xff] }
  0x32   : > { %1331 = vst [vmem:[%s10529_s29 + $0x1c0] sm:$0xff] %v1330_v56  ;;  %v1334_v58 = vld [vmem:[%s10524_s28 + $0x3a0] sm:$0xff]  ;;  %v1336_v59 = vld [vmem:[%s10524_s28 + $0x3b0] sm:$0xff]  ;;  %1333 = vst [vmem:[%s10529_s29 + $0x1c8] sm:$0xff] %v1332_v57 }
  0x33   : > { %1335 = vst [vmem:[%s10529_s29 + $0x1d0] sm:$0xff] %v1334_v58  ;;  %1337 = vst [vmem:[%s10529_s29 + $0x1d8] sm:$0xff] %v1336_v59  ;;  %v1338_v60 = vld [vmem:[%s10524_s28 + $0x3c0] sm:$0xff]  ;;  %v1340_v61 = vld [vmem:[%s10524_s28 + $0x3d0] sm:$0xff] }
  0x34   : > { %v1342_v62 = vld [vmem:[%s10524_s28 + $0x3e0] sm:$0xff]  ;;  %1339 = vst [vmem:[%s10529_s29 + $0x1e0] sm:$0xff] %v1338_v60  ;;  %1341 = vst [vmem:[%s10529_s29 + $0x1e8] sm:$0xff] %v1340_v61  ;;  %v1344_v63 = vld [vmem:[%s10524_s28 + $0x3f0] sm:$0xff] }
  0x35   : > { %1343 = vst [vmem:[%s10529_s29 + $0x1f0] sm:$0xff] %v1342_v62  ;;  %v1346_v0 = vld [vmem:[%s10524_s28 + $0x400] sm:$0xff]  ;;  %v1348_v1 = vld [vmem:[%s10524_s28 + $0x410] sm:$0xff]  ;;  %1345 = vst [vmem:[%s10529_s29 + $0x1f8] sm:$0xff] %v1344_v63 }
  0x36   : > { %1347 = vst [vmem:[%s10529_s29 + $0x200] sm:$0xff] %v1346_v0  ;;  %1349 = vst [vmem:[%s10529_s29 + $0x208] sm:$0xff] %v1348_v1  ;;  %v1350_v2 = vld [vmem:[%s10524_s28 + $0x420] sm:$0xff]  ;;  %v1352_v3 = vld [vmem:[%s10524_s28 + $0x430] sm:$0xff] }
  0x37   : > { %v1354_v4 = vld [vmem:[%s10524_s28 + $0x440] sm:$0xff]  ;;  %1351 = vst [vmem:[%s10529_s29 + $0x210] sm:$0xff] %v1350_v2  ;;  %1353 = vst [vmem:[%s10529_s29 + $0x218] sm:$0xff] %v1352_v3  ;;  %v1356_v5 = vld [vmem:[%s10524_s28 + $0x450] sm:$0xff] }
  0x38   : > { %1355 = vst [vmem:[%s10529_s29 + $0x220] sm:$0xff] %v1354_v4  ;;  %v1358_v6 = vld [vmem:[%s10524_s28 + $0x460] sm:$0xff]  ;;  %v1360_v7 = vld [vmem:[%s10524_s28 + $0x470] sm:$0xff]  ;;  %1357 = vst [vmem:[%s10529_s29 + $0x228] sm:$0xff] %v1356_v5 }
  0x39   : > { %1359 = vst [vmem:[%s10529_s29 + $0x230] sm:$0xff] %v1358_v6  ;;  %1361 = vst [vmem:[%s10529_s29 + $0x238] sm:$0xff] %v1360_v7  ;;  %v1362_v8 = vld [vmem:[%s10524_s28 + $0x480] sm:$0xff]  ;;  %v1364_v9 = vld [vmem:[%s10524_s28 + $0x490] sm:$0xff] }
  0x3a   : > { %v1366_v10 = vld [vmem:[%s10524_s28 + $0x4a0] sm:$0xff]  ;;  %1363 = vst [vmem:[%s10529_s29 + $0x240] sm:$0xff] %v1362_v8  ;;  %1365 = vst [vmem:[%s10529_s29 + $0x248] sm:$0xff] %v1364_v9  ;;  %v1368_v11 = vld [vmem:[%s10524_s28 + $0x4b0] sm:$0xff] }
  0x3b   : > { %1367 = vst [vmem:[%s10529_s29 + $0x250] sm:$0xff] %v1366_v10  ;;  %v1370_v12 = vld [vmem:[%s10524_s28 + $0x4c0] sm:$0xff]  ;;  %v1372_v13 = vld [vmem:[%s10524_s28 + $0x4d0] sm:$0xff]  ;;  %1369 = vst [vmem:[%s10529_s29 + $0x258] sm:$0xff] %v1368_v11 }
  0x3c   : > { %1371 = vst [vmem:[%s10529_s29 + $0x260] sm:$0xff] %v1370_v12  ;;  %1373 = vst [vmem:[%s10529_s29 + $0x268] sm:$0xff] %v1372_v13  ;;  %v1374_v14 = vld [vmem:[%s10524_s28 + $0x4e0] sm:$0xff]  ;;  %v1376_v15 = vld [vmem:[%s10524_s28 + $0x4f0] sm:$0xff] }
  0x3d   : > { %v1378_v16 = vld [vmem:[%s10524_s28 + $0x500] sm:$0xff]  ;;  %1375 = vst [vmem:[%s10529_s29 + $0x270] sm:$0xff] %v1374_v14  ;;  %1377 = vst [vmem:[%s10529_s29 + $0x278] sm:$0xff] %v1376_v15  ;;  %v1380_v17 = vld [vmem:[%s10524_s28 + $0x510] sm:$0xff] }
  0x3e   : > { %1379 = vst [vmem:[%s10529_s29 + $0x280] sm:$0xff] %v1378_v16  ;;  %v1382_v18 = vld [vmem:[%s10524_s28 + $0x520] sm:$0xff]  ;;  %v1384_v19 = vld [vmem:[%s10524_s28 + $0x530] sm:$0xff]  ;;  %1381 = vst [vmem:[%s10529_s29 + $0x288] sm:$0xff] %v1380_v17 }
  0x3f   : > { %1383 = vst [vmem:[%s10529_s29 + $0x290] sm:$0xff] %v1382_v18  ;;  %1385 = vst [vmem:[%s10529_s29 + $0x298] sm:$0xff] %v1384_v19  ;;  %v1386_v20 = vld [vmem:[%s10524_s28 + $0x540] sm:$0xff]  ;;  %v1388_v21 = vld [vmem:[%s10524_s28 + $0x550] sm:$0xff] }
  0x40   : > { %v1390_v22 = vld [vmem:[%s10524_s28 + $0x560] sm:$0xff]  ;;  %1387 = vst [vmem:[%s10529_s29 + $0x2a0] sm:$0xff] %v1386_v20  ;;  %1389 = vst [vmem:[%s10529_s29 + $0x2a8] sm:$0xff] %v1388_v21  ;;  %v1392_v23 = vld [vmem:[%s10524_s28 + $0x570] sm:$0xff] }
  0x41   : > { %1391 = vst [vmem:[%s10529_s29 + $0x2b0] sm:$0xff] %v1390_v22  ;;  %v1394_v24 = vld [vmem:[%s10524_s28 + $0x580] sm:$0xff]  ;;  %v1396_v25 = vld [vmem:[%s10524_s28 + $0x590] sm:$0xff]  ;;  %1393 = vst [vmem:[%s10529_s29 + $0x2b8] sm:$0xff] %v1392_v23 }
  0x42   : > { %1395 = vst [vmem:[%s10529_s29 + $0x2c0] sm:$0xff] %v1394_v24  ;;  %1397 = vst [vmem:[%s10529_s29 + $0x2c8] sm:$0xff] %v1396_v25  ;;  %v1398_v26 = vld [vmem:[%s10524_s28 + $0x5a0] sm:$0xff]  ;;  %v1400_v27 = vld [vmem:[%s10524_s28 + $0x5b0] sm:$0xff] }
  0x43   : > { %v1402_v28 = vld [vmem:[%s10524_s28 + $0x5c0] sm:$0xff]  ;;  %1399 = vst [vmem:[%s10529_s29 + $0x2d0] sm:$0xff] %v1398_v26  ;;  %1401 = vst [vmem:[%s10529_s29 + $0x2d8] sm:$0xff] %v1400_v27  ;;  %v1404_v29 = vld [vmem:[%s10524_s28 + $0x5d0] sm:$0xff] }
  0x44   : > { %1403 = vst [vmem:[%s10529_s29 + $0x2e0] sm:$0xff] %v1402_v28  ;;  %v1406_v30 = vld [vmem:[%s10524_s28 + $0x5e0] sm:$0xff]  ;;  %v1408_v31 = vld [vmem:[%s10524_s28 + $0x5f0] sm:$0xff]  ;;  %1405 = vst [vmem:[%s10529_s29 + $0x2e8] sm:$0xff] %v1404_v29 }
  0x45   : > { %1407 = vst [vmem:[%s10529_s29 + $0x2f0] sm:$0xff] %v1406_v30  ;;  %1409 = vst [vmem:[%s10529_s29 + $0x2f8] sm:$0xff] %v1408_v31  ;;  %v1410_v32 = vld [vmem:[%s10524_s28 + $0x600] sm:$0xff]  ;;  %v1412_v33 = vld [vmem:[%s10524_s28 + $0x610] sm:$0xff] }
  0x46   : > { %v1414_v34 = vld [vmem:[%s10524_s28 + $0x620] sm:$0xff]  ;;  %1411 = vst [vmem:[%s10529_s29 + $0x300] sm:$0xff] %v1410_v32  ;;  %1413 = vst [vmem:[%s10529_s29 + $0x308] sm:$0xff] %v1412_v33  ;;  %v1416_v35 = vld [vmem:[%s10524_s28 + $0x630] sm:$0xff] }
  0x47   : > { %1415 = vst [vmem:[%s10529_s29 + $0x310] sm:$0xff] %v1414_v34  ;;  %v1418_v36 = vld [vmem:[%s10524_s28 + $0x640] sm:$0xff]  ;;  %v1420_v37 = vld [vmem:[%s10524_s28 + $0x650] sm:$0xff]  ;;  %1417 = vst [vmem:[%s10529_s29 + $0x318] sm:$0xff] %v1416_v35 }
  0x48   : > { %1419 = vst [vmem:[%s10529_s29 + $0x320] sm:$0xff] %v1418_v36  ;;  %1421 = vst [vmem:[%s10529_s29 + $0x328] sm:$0xff] %v1420_v37  ;;  %v1422_v38 = vld [vmem:[%s10524_s28 + $0x660] sm:$0xff]  ;;  %v1424_v39 = vld [vmem:[%s10524_s28 + $0x670] sm:$0xff] }
  0x49   : > { %v1426_v40 = vld [vmem:[%s10524_s28 + $0x680] sm:$0xff]  ;;  %1423 = vst [vmem:[%s10529_s29 + $0x330] sm:$0xff] %v1422_v38  ;;  %1425 = vst [vmem:[%s10529_s29 + $0x338] sm:$0xff] %v1424_v39  ;;  %v1428_v41 = vld [vmem:[%s10524_s28 + $0x690] sm:$0xff] }
  0x4a   : > { %1427 = vst [vmem:[%s10529_s29 + $0x340] sm:$0xff] %v1426_v40  ;;  %v1430_v42 = vld [vmem:[%s10524_s28 + $0x6a0] sm:$0xff]  ;;  %v1432_v43 = vld [vmem:[%s10524_s28 + $0x6b0] sm:$0xff]  ;;  %1429 = vst [vmem:[%s10529_s29 + $0x348] sm:$0xff] %v1428_v41 }
  0x4b   : > { %1431 = vst [vmem:[%s10529_s29 + $0x350] sm:$0xff] %v1430_v42  ;;  %1433 = vst [vmem:[%s10529_s29 + $0x358] sm:$0xff] %v1432_v43  ;;  %v1434_v44 = vld [vmem:[%s10524_s28 + $0x6c0] sm:$0xff]  ;;  %v1436_v45 = vld [vmem:[%s10524_s28 + $0x6d0] sm:$0xff] }
  0x4c   : > { %v1438_v46 = vld [vmem:[%s10524_s28 + $0x6e0] sm:$0xff]  ;;  %1435 = vst [vmem:[%s10529_s29 + $0x360] sm:$0xff] %v1434_v44  ;;  %1437 = vst [vmem:[%s10529_s29 + $0x368] sm:$0xff] %v1436_v45  ;;  %v1440_v47 = vld [vmem:[%s10524_s28 + $0x6f0] sm:$0xff] }
  0x4d   : > { %1439 = vst [vmem:[%s10529_s29 + $0x370] sm:$0xff] %v1438_v46  ;;  %v1442_v48 = vld [vmem:[%s10524_s28 + $0x700] sm:$0xff]  ;;  %v1444_v49 = vld [vmem:[%s10524_s28 + $0x710] sm:$0xff]  ;;  %1441 = vst [vmem:[%s10529_s29 + $0x378] sm:$0xff] %v1440_v47 }
  0x4e   : > { %1443 = vst [vmem:[%s10529_s29 + $0x380] sm:$0xff] %v1442_v48  ;;  %1445 = vst [vmem:[%s10529_s29 + $0x388] sm:$0xff] %v1444_v49  ;;  %v1446_v50 = vld [vmem:[%s10524_s28 + $0x720] sm:$0xff]  ;;  %v1448_v51 = vld [vmem:[%s10524_s28 + $0x730] sm:$0xff] }
  0x4f   : > { %v1450_v52 = vld [vmem:[%s10524_s28 + $0x740] sm:$0xff]  ;;  %1447 = vst [vmem:[%s10529_s29 + $0x390] sm:$0xff] %v1446_v50  ;;  %1449 = vst [vmem:[%s10529_s29 + $0x398] sm:$0xff] %v1448_v51  ;;  %v1452_v53 = vld [vmem:[%s10524_s28 + $0x750] sm:$0xff] }
  0x50   : > { %1451 = vst [vmem:[%s10529_s29 + $0x3a0] sm:$0xff] %v1450_v52  ;;  %v1454_v54 = vld [vmem:[%s10524_s28 + $0x760] sm:$0xff]  ;;  %v1456_v55 = vld [vmem:[%s10524_s28 + $0x770] sm:$0xff]  ;;  %1453 = vst [vmem:[%s10529_s29 + $0x3a8] sm:$0xff] %v1452_v53 }
  0x51   : > { %1455 = vst [vmem:[%s10529_s29 + $0x3b0] sm:$0xff] %v1454_v54  ;;  %1457 = vst [vmem:[%s10529_s29 + $0x3b8] sm:$0xff] %v1456_v55  ;;  %v1458_v56 = vld [vmem:[%s10524_s28 + $0x780] sm:$0xff]  ;;  %v1460_v57 = vld [vmem:[%s10524_s28 + $0x790] sm:$0xff] }
  0x52   : > { %v1462_v58 = vld [vmem:[%s10524_s28 + $0x7a0] sm:$0xff]  ;;  %1459 = vst [vmem:[%s10529_s29 + $0x3c0] sm:$0xff] %v1458_v56  ;;  %1461 = vst [vmem:[%s10529_s29 + $0x3c8] sm:$0xff] %v1460_v57  ;;  %v1464_v59 = vld [vmem:[%s10524_s28 + $0x7b0] sm:$0xff] }
  0x53   : > { %1463 = vst [vmem:[%s10529_s29 + $0x3d0] sm:$0xff] %v1462_v58  ;;  %v1466_v60 = vld [vmem:[%s10524_s28 + $0x7c0] sm:$0xff]  ;;  %v1468_v61 = vld [vmem:[%s10524_s28 + $0x7d0] sm:$0xff]  ;;  %1465 = vst [vmem:[%s10529_s29 + $0x3d8] sm:$0xff] %v1464_v59 }
  0x54   : > { %1467 = vst [vmem:[%s10529_s29 + $0x3e0] sm:$0xff] %v1466_v60  ;;  %1469 = vst [vmem:[%s10529_s29 + $0x3e8] sm:$0xff] %v1468_v61  ;;  %v1470_v62 = vld [vmem:[%s10524_s28 + $0x7e0] sm:$0xff]  ;;  %v1472_v63 = vld [vmem:[%s10524_s28 + $0x7f0] sm:$0xff] }
  0x55   : > { %v1474_v0 = vld [vmem:[%s10524_s28 + $0x800] sm:$0xff]  ;;  %1471 = vst [vmem:[%s10529_s29 + $0x3f0] sm:$0xff] %v1470_v62  ;;  %1473 = vst [vmem:[%s10529_s29 + $0x3f8] sm:$0xff] %v1472_v63  ;;  %v1476_v1 = vld [vmem:[%s10524_s28 + $0x810] sm:$0xff] }
  0x56   : > { %1475 = vst [vmem:[%s10529_s29 + $0x400] sm:$0xff] %v1474_v0  ;;  %v1478_v2 = vld [vmem:[%s10524_s28 + $0x820] sm:$0xff]  ;;  %v1480_v3 = vld [vmem:[%s10524_s28 + $0x830] sm:$0xff]  ;;  %1477 = vst [vmem:[%s10529_s29 + $0x408] sm:$0xff] %v1476_v1 }
  0x57   : > { %1479 = vst [vmem:[%s10529_s29 + $0x410] sm:$0xff] %v1478_v2  ;;  %1481 = vst [vmem:[%s10529_s29 + $0x418] sm:$0xff] %v1480_v3  ;;  %v1482_v4 = vld [vmem:[%s10524_s28 + $0x840] sm:$0xff]  ;;  %v1484_v5 = vld [vmem:[%s10524_s28 + $0x850] sm:$0xff] }
  0x58   : > { %v1486_v6 = vld [vmem:[%s10524_s28 + $0x860] sm:$0xff]  ;;  %1483 = vst [vmem:[%s10529_s29 + $0x420] sm:$0xff] %v1482_v4  ;;  %1485 = vst [vmem:[%s10529_s29 + $0x428] sm:$0xff] %v1484_v5  ;;  %v1488_v7 = vld [vmem:[%s10524_s28 + $0x870] sm:$0xff] }
  0x59   : > { %1487 = vst [vmem:[%s10529_s29 + $0x430] sm:$0xff] %v1486_v6  ;;  %v1490_v8 = vld [vmem:[%s10524_s28 + $0x880] sm:$0xff]  ;;  %v1492_v9 = vld [vmem:[%s10524_s28 + $0x890] sm:$0xff]  ;;  %1489 = vst [vmem:[%s10529_s29 + $0x438] sm:$0xff] %v1488_v7 }
  0x5a   : > { %1491 = vst [vmem:[%s10529_s29 + $0x440] sm:$0xff] %v1490_v8  ;;  %1493 = vst [vmem:[%s10529_s29 + $0x448] sm:$0xff] %v1492_v9  ;;  %v1494_v10 = vld [vmem:[%s10524_s28 + $0x8a0] sm:$0xff]  ;;  %v1496_v11 = vld [vmem:[%s10524_s28 + $0x8b0] sm:$0xff] }
  0x5b   : > { %v1498_v12 = vld [vmem:[%s10524_s28 + $0x8c0] sm:$0xff]  ;;  %1495 = vst [vmem:[%s10529_s29 + $0x450] sm:$0xff] %v1494_v10  ;;  %1497 = vst [vmem:[%s10529_s29 + $0x458] sm:$0xff] %v1496_v11  ;;  %v1500_v13 = vld [vmem:[%s10524_s28 + $0x8d0] sm:$0xff] }
  0x5c   : > { %1499 = vst [vmem:[%s10529_s29 + $0x460] sm:$0xff] %v1498_v12  ;;  %v1502_v14 = vld [vmem:[%s10524_s28 + $0x8e0] sm:$0xff]  ;;  %v1504_v15 = vld [vmem:[%s10524_s28 + $0x8f0] sm:$0xff]  ;;  %1501 = vst [vmem:[%s10529_s29 + $0x468] sm:$0xff] %v1500_v13 }
  0x5d   : > { %1503 = vst [vmem:[%s10529_s29 + $0x470] sm:$0xff] %v1502_v14  ;;  %1505 = vst [vmem:[%s10529_s29 + $0x478] sm:$0xff] %v1504_v15  ;;  %v1506_v16 = vld [vmem:[%s10524_s28 + $0x900] sm:$0xff]  ;;  %v1508_v17 = vld [vmem:[%s10524_s28 + $0x910] sm:$0xff] }
  0x5e   : > { %v1510_v18 = vld [vmem:[%s10524_s28 + $0x920] sm:$0xff]  ;;  %1507 = vst [vmem:[%s10529_s29 + $0x480] sm:$0xff] %v1506_v16  ;;  %1509 = vst [vmem:[%s10529_s29 + $0x488] sm:$0xff] %v1508_v17  ;;  %v1512_v19 = vld [vmem:[%s10524_s28 + $0x930] sm:$0xff] }
  0x5f   : > { %1511 = vst [vmem:[%s10529_s29 + $0x490] sm:$0xff] %v1510_v18  ;;  %v1514_v20 = vld [vmem:[%s10524_s28 + $0x940] sm:$0xff]  ;;  %v1516_v21 = vld [vmem:[%s10524_s28 + $0x950] sm:$0xff]  ;;  %1513 = vst [vmem:[%s10529_s29 + $0x498] sm:$0xff] %v1512_v19 }
  0x60   : > { %1515 = vst [vmem:[%s10529_s29 + $0x4a0] sm:$0xff] %v1514_v20  ;;  %1517 = vst [vmem:[%s10529_s29 + $0x4a8] sm:$0xff] %v1516_v21  ;;  %v1518_v22 = vld [vmem:[%s10524_s28 + $0x960] sm:$0xff]  ;;  %v1520_v23 = vld [vmem:[%s10524_s28 + $0x970] sm:$0xff] }
  0x61   : > { %v1522_v24 = vld [vmem:[%s10524_s28 + $0x980] sm:$0xff]  ;;  %1519 = vst [vmem:[%s10529_s29 + $0x4b0] sm:$0xff] %v1518_v22  ;;  %1521 = vst [vmem:[%s10529_s29 + $0x4b8] sm:$0xff] %v1520_v23  ;;  %v1524_v25 = vld [vmem:[%s10524_s28 + $0x990] sm:$0xff] }
  0x62   : > { %1523 = vst [vmem:[%s10529_s29 + $0x4c0] sm:$0xff] %v1522_v24  ;;  %v1526_v26 = vld [vmem:[%s10524_s28 + $0x9a0] sm:$0xff]  ;;  %v1528_v27 = vld [vmem:[%s10524_s28 + $0x9b0] sm:$0xff]  ;;  %1525 = vst [vmem:[%s10529_s29 + $0x4c8] sm:$0xff] %v1524_v25 }
  0x63   : > { %1527 = vst [vmem:[%s10529_s29 + $0x4d0] sm:$0xff] %v1526_v26  ;;  %1529 = vst [vmem:[%s10529_s29 + $0x4d8] sm:$0xff] %v1528_v27  ;;  %v1530_v28 = vld [vmem:[%s10524_s28 + $0x9c0] sm:$0xff]  ;;  %v1532_v29 = vld [vmem:[%s10524_s28 + $0x9d0] sm:$0xff] }
  0x64   : > { %v1534_v30 = vld [vmem:[%s10524_s28 + $0x9e0] sm:$0xff]  ;;  %1531 = vst [vmem:[%s10529_s29 + $0x4e0] sm:$0xff] %v1530_v28  ;;  %1533 = vst [vmem:[%s10529_s29 + $0x4e8] sm:$0xff] %v1532_v29  ;;  %v1536_v31 = vld [vmem:[%s10524_s28 + $0x9f0] sm:$0xff] }
  0x65   : > { %1535 = vst [vmem:[%s10529_s29 + $0x4f0] sm:$0xff] %v1534_v30  ;;  %v1538_v32 = vld [vmem:[%s10524_s28 + $0xa00] sm:$0xff]  ;;  %v1540_v33 = vld [vmem:[%s10524_s28 + $0xa10] sm:$0xff]  ;;  %1537 = vst [vmem:[%s10529_s29 + $0x4f8] sm:$0xff] %v1536_v31 }
  0x66   : > { %1539 = vst [vmem:[%s10529_s29 + $0x500] sm:$0xff] %v1538_v32  ;;  %1541 = vst [vmem:[%s10529_s29 + $0x508] sm:$0xff] %v1540_v33  ;;  %v1542_v34 = vld [vmem:[%s10524_s28 + $0xa20] sm:$0xff]  ;;  %v1544_v35 = vld [vmem:[%s10524_s28 + $0xa30] sm:$0xff] }
  0x67   : > { %v1546_v36 = vld [vmem:[%s10524_s28 + $0xa40] sm:$0xff]  ;;  %1543 = vst [vmem:[%s10529_s29 + $0x510] sm:$0xff] %v1542_v34  ;;  %1545 = vst [vmem:[%s10529_s29 + $0x518] sm:$0xff] %v1544_v35  ;;  %v1548_v37 = vld [vmem:[%s10524_s28 + $0xa50] sm:$0xff] }
  0x68   : > { %1547 = vst [vmem:[%s10529_s29 + $0x520] sm:$0xff] %v1546_v36  ;;  %v1550_v38 = vld [vmem:[%s10524_s28 + $0xa60] sm:$0xff]  ;;  %v1552_v39 = vld [vmem:[%s10524_s28 + $0xa70] sm:$0xff]  ;;  %1549 = vst [vmem:[%s10529_s29 + $0x528] sm:$0xff] %v1548_v37 }
  0x69   : > { %1551 = vst [vmem:[%s10529_s29 + $0x530] sm:$0xff] %v1550_v38  ;;  %1553 = vst [vmem:[%s10529_s29 + $0x538] sm:$0xff] %v1552_v39  ;;  %v1554_v40 = vld [vmem:[%s10524_s28 + $0xa80] sm:$0xff]  ;;  %v1556_v41 = vld [vmem:[%s10524_s28 + $0xa90] sm:$0xff] }
  0x6a   : > { %v1558_v42 = vld [vmem:[%s10524_s28 + $0xaa0] sm:$0xff]  ;;  %1555 = vst [vmem:[%s10529_s29 + $0x540] sm:$0xff] %v1554_v40  ;;  %1557 = vst [vmem:[%s10529_s29 + $0x548] sm:$0xff] %v1556_v41  ;;  %v1560_v43 = vld [vmem:[%s10524_s28 + $0xab0] sm:$0xff] }
  0x6b   : > { %1559 = vst [vmem:[%s10529_s29 + $0x550] sm:$0xff] %v1558_v42  ;;  %v1562_v44 = vld [vmem:[%s10524_s28 + $0xac0] sm:$0xff]  ;;  %v1564_v45 = vld [vmem:[%s10524_s28 + $0xad0] sm:$0xff]  ;;  %1561 = vst [vmem:[%s10529_s29 + $0x558] sm:$0xff] %v1560_v43 }
  0x6c   : > { %1563 = vst [vmem:[%s10529_s29 + $0x560] sm:$0xff] %v1562_v44  ;;  %1565 = vst [vmem:[%s10529_s29 + $0x568] sm:$0xff] %v1564_v45  ;;  %v1566_v46 = vld [vmem:[%s10524_s28 + $0xae0] sm:$0xff]  ;;  %v1568_v47 = vld [vmem:[%s10524_s28 + $0xaf0] sm:$0xff] }
  0x6d   : > { %v1570_v48 = vld [vmem:[%s10524_s28 + $0xb00] sm:$0xff]  ;;  %1567 = vst [vmem:[%s10529_s29 + $0x570] sm:$0xff] %v1566_v46  ;;  %1569 = vst [vmem:[%s10529_s29 + $0x578] sm:$0xff] %v1568_v47  ;;  %v1572_v49 = vld [vmem:[%s10524_s28 + $0xb10] sm:$0xff] }
  0x6e   : > { %1571 = vst [vmem:[%s10529_s29 + $0x580] sm:$0xff] %v1570_v48  ;;  %v1574_v50 = vld [vmem:[%s10524_s28 + $0xb20] sm:$0xff]  ;;  %v1576_v51 = vld [vmem:[%s10524_s28 + $0xb30] sm:$0xff]  ;;  %1573 = vst [vmem:[%s10529_s29 + $0x588] sm:$0xff] %v1572_v49 }
  0x6f   : > { %1575 = vst [vmem:[%s10529_s29 + $0x590] sm:$0xff] %v1574_v50  ;;  %1577 = vst [vmem:[%s10529_s29 + $0x598] sm:$0xff] %v1576_v51  ;;  %v1578_v52 = vld [vmem:[%s10524_s28 + $0xb40] sm:$0xff]  ;;  %v1580_v53 = vld [vmem:[%s10524_s28 + $0xb50] sm:$0xff] }
  0x70   : > { %v1582_v54 = vld [vmem:[%s10524_s28 + $0xb60] sm:$0xff]  ;;  %1579 = vst [vmem:[%s10529_s29 + $0x5a0] sm:$0xff] %v1578_v52  ;;  %1581 = vst [vmem:[%s10529_s29 + $0x5a8] sm:$0xff] %v1580_v53  ;;  %v1584_v55 = vld [vmem:[%s10524_s28 + $0xb70] sm:$0xff] }
  0x71   : > { %1583 = vst [vmem:[%s10529_s29 + $0x5b0] sm:$0xff] %v1582_v54  ;;  %v1586_v56 = vld [vmem:[%s10524_s28 + $0xb80] sm:$0xff]  ;;  %v1588_v57 = vld [vmem:[%s10524_s28 + $0xb90] sm:$0xff]  ;;  %1585 = vst [vmem:[%s10529_s29 + $0x5b8] sm:$0xff] %v1584_v55 }
  0x72   : > { %1587 = vst [vmem:[%s10529_s29 + $0x5c0] sm:$0xff] %v1586_v56  ;;  %1589 = vst [vmem:[%s10529_s29 + $0x5c8] sm:$0xff] %v1588_v57  ;;  %v1590_v58 = vld [vmem:[%s10524_s28 + $0xba0] sm:$0xff]  ;;  %v1592_v59 = vld [vmem:[%s10524_s28 + $0xbb0] sm:$0xff] }
  0x73   : > { %v1594_v60 = vld [vmem:[%s10524_s28 + $0xbc0] sm:$0xff]  ;;  %1591 = vst [vmem:[%s10529_s29 + $0x5d0] sm:$0xff] %v1590_v58  ;;  %1593 = vst [vmem:[%s10529_s29 + $0x5d8] sm:$0xff] %v1592_v59  ;;  %v1596_v61 = vld [vmem:[%s10524_s28 + $0xbd0] sm:$0xff] }
  0x74   : > { %1595 = vst [vmem:[%s10529_s29 + $0x5e0] sm:$0xff] %v1594_v60  ;;  %v1598_v62 = vld [vmem:[%s10524_s28 + $0xbe0] sm:$0xff]  ;;  %v1600_v63 = vld [vmem:[%s10524_s28 + $0xbf0] sm:$0xff]  ;;  %1597 = vst [vmem:[%s10529_s29 + $0x5e8] sm:$0xff] %v1596_v61 }
  0x75   : > { %1599 = vst [vmem:[%s10529_s29 + $0x5f0] sm:$0xff] %v1598_v62  ;;  %1601 = vst [vmem:[%s10529_s29 + $0x5f8] sm:$0xff] %v1600_v63  ;;  %v1602_v0 = vld [vmem:[%s10524_s28 + $0xc00] sm:$0xff]  ;;  %v1604_v1 = vld [vmem:[%s10524_s28 + $0xc10] sm:$0xff] }
  0x76   : > { %v1606_v2 = vld [vmem:[%s10524_s28 + $0xc20] sm:$0xff]  ;;  %1603 = vst [vmem:[%s10529_s29 + $0x600] sm:$0xff] %v1602_v0  ;;  %1605 = vst [vmem:[%s10529_s29 + $0x608] sm:$0xff] %v1604_v1  ;;  %v1608_v3 = vld [vmem:[%s10524_s28 + $0xc30] sm:$0xff] }
  0x77   : > { %1607 = vst [vmem:[%s10529_s29 + $0x610] sm:$0xff] %v1606_v2  ;;  %v1610_v4 = vld [vmem:[%s10524_s28 + $0xc40] sm:$0xff]  ;;  %v1612_v5 = vld [vmem:[%s10524_s28 + $0xc50] sm:$0xff]  ;;  %1609 = vst [vmem:[%s10529_s29 + $0x618] sm:$0xff] %v1608_v3 }
  0x78   : > { %1611 = vst [vmem:[%s10529_s29 + $0x620] sm:$0xff] %v1610_v4  ;;  %1613 = vst [vmem:[%s10529_s29 + $0x628] sm:$0xff] %v1612_v5  ;;  %v1614_v6 = vld [vmem:[%s10524_s28 + $0xc60] sm:$0xff]  ;;  %v1616_v7 = vld [vmem:[%s10524_s28 + $0xc70] sm:$0xff] }
  0x79   : > { %v1618_v8 = vld [vmem:[%s10524_s28 + $0xc80] sm:$0xff]  ;;  %1615 = vst [vmem:[%s10529_s29 + $0x630] sm:$0xff] %v1614_v6  ;;  %1617 = vst [vmem:[%s10529_s29 + $0x638] sm:$0xff] %v1616_v7  ;;  %v1620_v9 = vld [vmem:[%s10524_s28 + $0xc90] sm:$0xff] }
  0x7a   : > { %1619 = vst [vmem:[%s10529_s29 + $0x640] sm:$0xff] %v1618_v8  ;;  %v1622_v10 = vld [vmem:[%s10524_s28 + $0xca0] sm:$0xff]  ;;  %v1624_v11 = vld [vmem:[%s10524_s28 + $0xcb0] sm:$0xff]  ;;  %1621 = vst [vmem:[%s10529_s29 + $0x648] sm:$0xff] %v1620_v9 }
  0x7b   : > { %1623 = vst [vmem:[%s10529_s29 + $0x650] sm:$0xff] %v1622_v10  ;;  %1625 = vst [vmem:[%s10529_s29 + $0x658] sm:$0xff] %v1624_v11  ;;  %v1626_v12 = vld [vmem:[%s10524_s28 + $0xcc0] sm:$0xff]  ;;  %v1628_v13 = vld [vmem:[%s10524_s28 + $0xcd0] sm:$0xff] }
  0x7c   : > { %v1630_v14 = vld [vmem:[%s10524_s28 + $0xce0] sm:$0xff]  ;;  %1627 = vst [vmem:[%s10529_s29 + $0x660] sm:$0xff] %v1626_v12  ;;  %1629 = vst [vmem:[%s10529_s29 + $0x668] sm:$0xff] %v1628_v13  ;;  %v1632_v15 = vld [vmem:[%s10524_s28 + $0xcf0] sm:$0xff] }
  0x7d   : > { %1631 = vst [vmem:[%s10529_s29 + $0x670] sm:$0xff] %v1630_v14  ;;  %v1634_v16 = vld [vmem:[%s10524_s28 + $0xd00] sm:$0xff]  ;;  %v1636_v17 = vld [vmem:[%s10524_s28 + $0xd10] sm:$0xff]  ;;  %1633 = vst [vmem:[%s10529_s29 + $0x678] sm:$0xff] %v1632_v15 }
  0x7e   : > { %1635 = vst [vmem:[%s10529_s29 + $0x680] sm:$0xff] %v1634_v16  ;;  %1637 = vst [vmem:[%s10529_s29 + $0x688] sm:$0xff] %v1636_v17  ;;  %v1638_v18 = vld [vmem:[%s10524_s28 + $0xd20] sm:$0xff]  ;;  %v1640_v19 = vld [vmem:[%s10524_s28 + $0xd30] sm:$0xff] }
  0x7f   : > { %v1642_v20 = vld [vmem:[%s10524_s28 + $0xd40] sm:$0xff]  ;;  %1639 = vst [vmem:[%s10529_s29 + $0x690] sm:$0xff] %v1638_v18  ;;  %1641 = vst [vmem:[%s10529_s29 + $0x698] sm:$0xff] %v1640_v19  ;;  %v1644_v21 = vld [vmem:[%s10524_s28 + $0xd50] sm:$0xff] }
  0x80   : > { %1643 = vst [vmem:[%s10529_s29 + $0x6a0] sm:$0xff] %v1642_v20  ;;  %v1646_v22 = vld [vmem:[%s10524_s28 + $0xd60] sm:$0xff]  ;;  %v1648_v23 = vld [vmem:[%s10524_s28 + $0xd70] sm:$0xff]  ;;  %1645 = vst [vmem:[%s10529_s29 + $0x6a8] sm:$0xff] %v1644_v21 }
  0x81   : > { %1647 = vst [vmem:[%s10529_s29 + $0x6b0] sm:$0xff] %v1646_v22  ;;  %1649 = vst [vmem:[%s10529_s29 + $0x6b8] sm:$0xff] %v1648_v23  ;;  %v1650_v24 = vld [vmem:[%s10524_s28 + $0xd80] sm:$0xff]  ;;  %v1652_v25 = vld [vmem:[%s10524_s28 + $0xd90] sm:$0xff] }
  0x82   : > { %v1654_v26 = vld [vmem:[%s10524_s28 + $0xda0] sm:$0xff]  ;;  %1651 = vst [vmem:[%s10529_s29 + $0x6c0] sm:$0xff] %v1650_v24  ;;  %1653 = vst [vmem:[%s10529_s29 + $0x6c8] sm:$0xff] %v1652_v25  ;;  %v1656_v27 = vld [vmem:[%s10524_s28 + $0xdb0] sm:$0xff] }
  0x83   : > { %1655 = vst [vmem:[%s10529_s29 + $0x6d0] sm:$0xff] %v1654_v26  ;;  %v1658_v28 = vld [vmem:[%s10524_s28 + $0xdc0] sm:$0xff]  ;;  %v1660_v29 = vld [vmem:[%s10524_s28 + $0xdd0] sm:$0xff]  ;;  %1657 = vst [vmem:[%s10529_s29 + $0x6d8] sm:$0xff] %v1656_v27 }
  0x84   : > { %1659 = vst [vmem:[%s10529_s29 + $0x6e0] sm:$0xff] %v1658_v28  ;;  %1661 = vst [vmem:[%s10529_s29 + $0x6e8] sm:$0xff] %v1660_v29  ;;  %v1662_v30 = vld [vmem:[%s10524_s28 + $0xde0] sm:$0xff]  ;;  %v1664_v31 = vld [vmem:[%s10524_s28 + $0xdf0] sm:$0xff] }
  0x85   : > { %v1666_v32 = vld [vmem:[%s10524_s28 + $0xe00] sm:$0xff]  ;;  %1663 = vst [vmem:[%s10529_s29 + $0x6f0] sm:$0xff] %v1662_v30  ;;  %1665 = vst [vmem:[%s10529_s29 + $0x6f8] sm:$0xff] %v1664_v31  ;;  %v1668_v33 = vld [vmem:[%s10524_s28 + $0xe10] sm:$0xff] }
  0x86   : > { %1667 = vst [vmem:[%s10529_s29 + $0x700] sm:$0xff] %v1666_v32  ;;  %v1670_v34 = vld [vmem:[%s10524_s28 + $0xe20] sm:$0xff]  ;;  %v1672_v35 = vld [vmem:[%s10524_s28 + $0xe30] sm:$0xff]  ;;  %1669 = vst [vmem:[%s10529_s29 + $0x708] sm:$0xff] %v1668_v33 }
  0x87   : > { %1671 = vst [vmem:[%s10529_s29 + $0x710] sm:$0xff] %v1670_v34  ;;  %1673 = vst [vmem:[%s10529_s29 + $0x718] sm:$0xff] %v1672_v35  ;;  %v1674_v36 = vld [vmem:[%s10524_s28 + $0xe40] sm:$0xff]  ;;  %v1676_v37 = vld [vmem:[%s10524_s28 + $0xe50] sm:$0xff] }
  0x88   : > { %v1678_v38 = vld [vmem:[%s10524_s28 + $0xe60] sm:$0xff]  ;;  %1675 = vst [vmem:[%s10529_s29 + $0x720] sm:$0xff] %v1674_v36  ;;  %1677 = vst [vmem:[%s10529_s29 + $0x728] sm:$0xff] %v1676_v37  ;;  %v1680_v39 = vld [vmem:[%s10524_s28 + $0xe70] sm:$0xff] }
  0x89   : > { %1679 = vst [vmem:[%s10529_s29 + $0x730] sm:$0xff] %v1678_v38  ;;  %v1682_v40 = vld [vmem:[%s10524_s28 + $0xe80] sm:$0xff]  ;;  %v1684_v41 = vld [vmem:[%s10524_s28 + $0xe90] sm:$0xff]  ;;  %1681 = vst [vmem:[%s10529_s29 + $0x738] sm:$0xff] %v1680_v39 }
  0x8a   : > { %1683 = vst [vmem:[%s10529_s29 + $0x740] sm:$0xff] %v1682_v40  ;;  %1685 = vst [vmem:[%s10529_s29 + $0x748] sm:$0xff] %v1684_v41  ;;  %v1686_v42 = vld [vmem:[%s10524_s28 + $0xea0] sm:$0xff]  ;;  %v1688_v43 = vld [vmem:[%s10524_s28 + $0xeb0] sm:$0xff] }
  0x8b   : > { %v1690_v44 = vld [vmem:[%s10524_s28 + $0xec0] sm:$0xff]  ;;  %1687 = vst [vmem:[%s10529_s29 + $0x750] sm:$0xff] %v1686_v42  ;;  %1689 = vst [vmem:[%s10529_s29 + $0x758] sm:$0xff] %v1688_v43  ;;  %v1692_v45 = vld [vmem:[%s10524_s28 + $0xed0] sm:$0xff] }
  0x8c   : > { %1691 = vst [vmem:[%s10529_s29 + $0x760] sm:$0xff] %v1690_v44  ;;  %v1694_v46 = vld [vmem:[%s10524_s28 + $0xee0] sm:$0xff]  ;;  %v1696_v47 = vld [vmem:[%s10524_s28 + $0xef0] sm:$0xff]  ;;  %1693 = vst [vmem:[%s10529_s29 + $0x768] sm:$0xff] %v1692_v45 }
  0x8d   : > { %1695 = vst [vmem:[%s10529_s29 + $0x770] sm:$0xff] %v1694_v46  ;;  %1697 = vst [vmem:[%s10529_s29 + $0x778] sm:$0xff] %v1696_v47  ;;  %v1698_v48 = vld [vmem:[%s10524_s28 + $0xf00] sm:$0xff]  ;;  %v1700_v49 = vld [vmem:[%s10524_s28 + $0xf10] sm:$0xff] }
  0x8e   : > { %v1702_v50 = vld [vmem:[%s10524_s28 + $0xf20] sm:$0xff]  ;;  %1699 = vst [vmem:[%s10529_s29 + $0x780] sm:$0xff] %v1698_v48  ;;  %1701 = vst [vmem:[%s10529_s29 + $0x788] sm:$0xff] %v1700_v49  ;;  %v1704_v51 = vld [vmem:[%s10524_s28 + $0xf30] sm:$0xff] }
  0x8f   : > { %1703 = vst [vmem:[%s10529_s29 + $0x790] sm:$0xff] %v1702_v50  ;;  %v1706_v52 = vld [vmem:[%s10524_s28 + $0xf40] sm:$0xff]  ;;  %v1708_v53 = vld [vmem:[%s10524_s28 + $0xf50] sm:$0xff]  ;;  %1705 = vst [vmem:[%s10529_s29 + $0x798] sm:$0xff] %v1704_v51 }
  0x90   : > { %1707 = vst [vmem:[%s10529_s29 + $0x7a0] sm:$0xff] %v1706_v52  ;;  %1709 = vst [vmem:[%s10529_s29 + $0x7a8] sm:$0xff] %v1708_v53  ;;  %v1710_v54 = vld [vmem:[%s10524_s28 + $0xf60] sm:$0xff]  ;;  %v1712_v55 = vld [vmem:[%s10524_s28 + $0xf70] sm:$0xff] }
  0x91   : > { %v1714_v56 = vld [vmem:[%s10524_s28 + $0xf80] sm:$0xff]  ;;  %1711 = vst [vmem:[%s10529_s29 + $0x7b0] sm:$0xff] %v1710_v54  ;;  %1713 = vst [vmem:[%s10529_s29 + $0x7b8] sm:$0xff] %v1712_v55  ;;  %v1716_v57 = vld [vmem:[%s10524_s28 + $0xf90] sm:$0xff] }
  0x92   : > { %1715 = vst [vmem:[%s10529_s29 + $0x7c0] sm:$0xff] %v1714_v56  ;;  %v1718_v58 = vld [vmem:[%s10524_s28 + $0xfa0] sm:$0xff]  ;;  %v1720_v59 = vld [vmem:[%s10524_s28 + $0xfb0] sm:$0xff]  ;;  %1717 = vst [vmem:[%s10529_s29 + $0x7c8] sm:$0xff] %v1716_v57 }
  0x93   : > { %1719 = vst [vmem:[%s10529_s29 + $0x7d0] sm:$0xff] %v1718_v58  ;;  %1721 = vst [vmem:[%s10529_s29 + $0x7d8] sm:$0xff] %v1720_v59  ;;  %v1722_v60 = vld [vmem:[%s10524_s28 + $0xfc0] sm:$0xff]  ;;  %v1724_v61 = vld [vmem:[%s10524_s28 + $0xfd0] sm:$0xff] }
  0x94   : > { %v1726_v62 = vld [vmem:[%s10524_s28 + $0xfe0] sm:$0xff]  ;;  %1723 = vst [vmem:[%s10529_s29 + $0x7e0] sm:$0xff] %v1722_v60  ;;  %1725 = vst [vmem:[%s10529_s29 + $0x7e8] sm:$0xff] %v1724_v61  ;;  %v1728_v63 = vld [vmem:[%s10524_s28 + $0xff0] sm:$0xff] }
  0x95   : > { %1727 = vst [vmem:[%s10529_s29 + $0x7f0] sm:$0xff] %v1726_v62  ;;  %v1730_v0 = vld [vmem:[%s10524_s28 + $0x1000] sm:$0xff]  ;;  %v1732_v1 = vld [vmem:[%s10524_s28 + $0x1010] sm:$0xff]  ;;  %1729 = vst [vmem:[%s10529_s29 + $0x7f8] sm:$0xff] %v1728_v63 }
  0x96   : > { %1731 = vst [vmem:[%s10529_s29 + $0x800] sm:$0xff] %v1730_v0  ;;  %1733 = vst [vmem:[%s10529_s29 + $0x808] sm:$0xff] %v1732_v1  ;;  %v1734_v2 = vld [vmem:[%s10524_s28 + $0x1020] sm:$0xff]  ;;  %v1736_v3 = vld [vmem:[%s10524_s28 + $0x1030] sm:$0xff] }
  0x97   : > { %v1738_v4 = vld [vmem:[%s10524_s28 + $0x1040] sm:$0xff]  ;;  %1735 = vst [vmem:[%s10529_s29 + $0x810] sm:$0xff] %v1734_v2  ;;  %1737 = vst [vmem:[%s10529_s29 + $0x818] sm:$0xff] %v1736_v3  ;;  %v1740_v5 = vld [vmem:[%s10524_s28 + $0x1050] sm:$0xff] }
  0x98   : > { %1739 = vst [vmem:[%s10529_s29 + $0x820] sm:$0xff] %v1738_v4  ;;  %v1742_v6 = vld [vmem:[%s10524_s28 + $0x1060] sm:$0xff]  ;;  %v1744_v7 = vld [vmem:[%s10524_s28 + $0x1070] sm:$0xff]  ;;  %1741 = vst [vmem:[%s10529_s29 + $0x828] sm:$0xff] %v1740_v5 }
  0x99   : > { %1743 = vst [vmem:[%s10529_s29 + $0x830] sm:$0xff] %v1742_v6  ;;  %1745 = vst [vmem:[%s10529_s29 + $0x838] sm:$0xff] %v1744_v7  ;;  %v1746_v8 = vld [vmem:[%s10524_s28 + $0x1080] sm:$0xff]  ;;  %v1748_v9 = vld [vmem:[%s10524_s28 + $0x1090] sm:$0xff] }
  0x9a   : > { %v1750_v10 = vld [vmem:[%s10524_s28 + $0x10a0] sm:$0xff]  ;;  %1747 = vst [vmem:[%s10529_s29 + $0x840] sm:$0xff] %v1746_v8  ;;  %1749 = vst [vmem:[%s10529_s29 + $0x848] sm:$0xff] %v1748_v9  ;;  %v1752_v11 = vld [vmem:[%s10524_s28 + $0x10b0] sm:$0xff] }
  0x9b   : > { %1751 = vst [vmem:[%s10529_s29 + $0x850] sm:$0xff] %v1750_v10  ;;  %v1754_v12 = vld [vmem:[%s10524_s28 + $0x10c0] sm:$0xff]  ;;  %v1756_v13 = vld [vmem:[%s10524_s28 + $0x10d0] sm:$0xff]  ;;  %1753 = vst [vmem:[%s10529_s29 + $0x858] sm:$0xff] %v1752_v11 }
  0x9c   : > { %1755 = vst [vmem:[%s10529_s29 + $0x860] sm:$0xff] %v1754_v12  ;;  %1757 = vst [vmem:[%s10529_s29 + $0x868] sm:$0xff] %v1756_v13  ;;  %v1758_v14 = vld [vmem:[%s10524_s28 + $0x10e0] sm:$0xff]  ;;  %v1760_v15 = vld [vmem:[%s10524_s28 + $0x10f0] sm:$0xff] }
  0x9d   : > { %v1762_v16 = vld [vmem:[%s10524_s28 + $0x1100] sm:$0xff]  ;;  %1759 = vst [vmem:[%s10529_s29 + $0x870] sm:$0xff] %v1758_v14  ;;  %1761 = vst [vmem:[%s10529_s29 + $0x878] sm:$0xff] %v1760_v15  ;;  %v1764_v17 = vld [vmem:[%s10524_s28 + $0x1110] sm:$0xff] }
  0x9e   : > { %1763 = vst [vmem:[%s10529_s29 + $0x880] sm:$0xff] %v1762_v16  ;;  %v1766_v18 = vld [vmem:[%s10524_s28 + $0x1120] sm:$0xff]  ;;  %v1768_v19 = vld [vmem:[%s10524_s28 + $0x1130] sm:$0xff]  ;;  %1765 = vst [vmem:[%s10529_s29 + $0x888] sm:$0xff] %v1764_v17 }
  0x9f   : > { %1767 = vst [vmem:[%s10529_s29 + $0x890] sm:$0xff] %v1766_v18  ;;  %1769 = vst [vmem:[%s10529_s29 + $0x898] sm:$0xff] %v1768_v19  ;;  %v1770_v20 = vld [vmem:[%s10524_s28 + $0x1140] sm:$0xff]  ;;  %v1772_v21 = vld [vmem:[%s10524_s28 + $0x1150] sm:$0xff] }
  0xa0   : > { %v1774_v22 = vld [vmem:[%s10524_s28 + $0x1160] sm:$0xff]  ;;  %1771 = vst [vmem:[%s10529_s29 + $0x8a0] sm:$0xff] %v1770_v20  ;;  %1773 = vst [vmem:[%s10529_s29 + $0x8a8] sm:$0xff] %v1772_v21  ;;  %v1776_v23 = vld [vmem:[%s10524_s28 + $0x1170] sm:$0xff] }
  0xa1   : > { %1775 = vst [vmem:[%s10529_s29 + $0x8b0] sm:$0xff] %v1774_v22  ;;  %v1778_v24 = vld [vmem:[%s10524_s28 + $0x1180] sm:$0xff]  ;;  %v1780_v25 = vld [vmem:[%s10524_s28 + $0x1190] sm:$0xff]  ;;  %1777 = vst [vmem:[%s10529_s29 + $0x8b8] sm:$0xff] %v1776_v23 }
  0xa2   : > { %1779 = vst [vmem:[%s10529_s29 + $0x8c0] sm:$0xff] %v1778_v24  ;;  %1781 = vst [vmem:[%s10529_s29 + $0x8c8] sm:$0xff] %v1780_v25  ;;  %v1782_v26 = vld [vmem:[%s10524_s28 + $0x11a0] sm:$0xff]  ;;  %v1784_v27 = vld [vmem:[%s10524_s28 + $0x11b0] sm:$0xff] }
  0xa3   : > { %v1786_v28 = vld [vmem:[%s10524_s28 + $0x11c0] sm:$0xff]  ;;  %1783 = vst [vmem:[%s10529_s29 + $0x8d0] sm:$0xff] %v1782_v26  ;;  %1785 = vst [vmem:[%s10529_s29 + $0x8d8] sm:$0xff] %v1784_v27  ;;  %v1788_v29 = vld [vmem:[%s10524_s28 + $0x11d0] sm:$0xff] }
  0xa4   : > { %1787 = vst [vmem:[%s10529_s29 + $0x8e0] sm:$0xff] %v1786_v28  ;;  %v1790_v30 = vld [vmem:[%s10524_s28 + $0x11e0] sm:$0xff]  ;;  %v1792_v31 = vld [vmem:[%s10524_s28 + $0x11f0] sm:$0xff]  ;;  %1789 = vst [vmem:[%s10529_s29 + $0x8e8] sm:$0xff] %v1788_v29 }
  0xa5   : > { %1791 = vst [vmem:[%s10529_s29 + $0x8f0] sm:$0xff] %v1790_v30  ;;  %1793 = vst [vmem:[%s10529_s29 + $0x8f8] sm:$0xff] %v1792_v31  ;;  %v1794_v32 = vld [vmem:[%s10524_s28 + $0x1200] sm:$0xff]  ;;  %v1796_v33 = vld [vmem:[%s10524_s28 + $0x1210] sm:$0xff] }
  0xa6   : > { %v1798_v34 = vld [vmem:[%s10524_s28 + $0x1220] sm:$0xff]  ;;  %1795 = vst [vmem:[%s10529_s29 + $0x900] sm:$0xff] %v1794_v32  ;;  %1797 = vst [vmem:[%s10529_s29 + $0x908] sm:$0xff] %v1796_v33  ;;  %v1800_v35 = vld [vmem:[%s10524_s28 + $0x1230] sm:$0xff] }
  0xa7   : > { %1799 = vst [vmem:[%s10529_s29 + $0x910] sm:$0xff] %v1798_v34  ;;  %v1802_v36 = vld [vmem:[%s10524_s28 + $0x1240] sm:$0xff]  ;;  %v1804_v37 = vld [vmem:[%s10524_s28 + $0x1250] sm:$0xff]  ;;  %1801 = vst [vmem:[%s10529_s29 + $0x918] sm:$0xff] %v1800_v35 }
  0xa8   : > { %1803 = vst [vmem:[%s10529_s29 + $0x920] sm:$0xff] %v1802_v36  ;;  %1805 = vst [vmem:[%s10529_s29 + $0x928] sm:$0xff] %v1804_v37  ;;  %v1806_v38 = vld [vmem:[%s10524_s28 + $0x1260] sm:$0xff]  ;;  %v1808_v39 = vld [vmem:[%s10524_s28 + $0x1270] sm:$0xff] }
  0xa9   : > { %v1810_v40 = vld [vmem:[%s10524_s28 + $0x1280] sm:$0xff]  ;;  %1807 = vst [vmem:[%s10529_s29 + $0x930] sm:$0xff] %v1806_v38  ;;  %1809 = vst [vmem:[%s10529_s29 + $0x938] sm:$0xff] %v1808_v39  ;;  %v1812_v41 = vld [vmem:[%s10524_s28 + $0x1290] sm:$0xff] }
  0xaa   : > { %1811 = vst [vmem:[%s10529_s29 + $0x940] sm:$0xff] %v1810_v40  ;;  %v1814_v42 = vld [vmem:[%s10524_s28 + $0x12a0] sm:$0xff]  ;;  %v1816_v43 = vld [vmem:[%s10524_s28 + $0x12b0] sm:$0xff]  ;;  %1813 = vst [vmem:[%s10529_s29 + $0x948] sm:$0xff] %v1812_v41 }
  0xab   : > { %1815 = vst [vmem:[%s10529_s29 + $0x950] sm:$0xff] %v1814_v42  ;;  %1817 = vst [vmem:[%s10529_s29 + $0x958] sm:$0xff] %v1816_v43  ;;  %v1818_v44 = vld [vmem:[%s10524_s28 + $0x12c0] sm:$0xff]  ;;  %v1820_v45 = vld [vmem:[%s10524_s28 + $0x12d0] sm:$0xff] }
  0xac   : > { %v1822_v46 = vld [vmem:[%s10524_s28 + $0x12e0] sm:$0xff]  ;;  %1819 = vst [vmem:[%s10529_s29 + $0x960] sm:$0xff] %v1818_v44  ;;  %1821 = vst [vmem:[%s10529_s29 + $0x968] sm:$0xff] %v1820_v45  ;;  %v1824_v47 = vld [vmem:[%s10524_s28 + $0x12f0] sm:$0xff] }
  0xad   : > { %1823 = vst [vmem:[%s10529_s29 + $0x970] sm:$0xff] %v1822_v46  ;;  %v1826_v48 = vld [vmem:[%s10524_s28 + $0x1300] sm:$0xff]  ;;  %v1828_v49 = vld [vmem:[%s10524_s28 + $0x1310] sm:$0xff]  ;;  %1825 = vst [vmem:[%s10529_s29 + $0x978] sm:$0xff] %v1824_v47 }
  0xae   : > { %1827 = vst [vmem:[%s10529_s29 + $0x980] sm:$0xff] %v1826_v48  ;;  %1829 = vst [vmem:[%s10529_s29 + $0x988] sm:$0xff] %v1828_v49  ;;  %v1830_v50 = vld [vmem:[%s10524_s28 + $0x1320] sm:$0xff]  ;;  %v1832_v51 = vld [vmem:[%s10524_s28 + $0x1330] sm:$0xff] }
  0xaf   : > { %v1834_v52 = vld [vmem:[%s10524_s28 + $0x1340] sm:$0xff]  ;;  %1831 = vst [vmem:[%s10529_s29 + $0x990] sm:$0xff] %v1830_v50  ;;  %1833 = vst [vmem:[%s10529_s29 + $0x998] sm:$0xff] %v1832_v51  ;;  %v1836_v53 = vld [vmem:[%s10524_s28 + $0x1350] sm:$0xff] }
  0xb0   : > { %1835 = vst [vmem:[%s10529_s29 + $0x9a0] sm:$0xff] %v1834_v52  ;;  %v1838_v54 = vld [vmem:[%s10524_s28 + $0x1360] sm:$0xff]  ;;  %v1840_v55 = vld [vmem:[%s10524_s28 + $0x1370] sm:$0xff]  ;;  %1837 = vst [vmem:[%s10529_s29 + $0x9a8] sm:$0xff] %v1836_v53 }
  0xb1   : > { %1839 = vst [vmem:[%s10529_s29 + $0x9b0] sm:$0xff] %v1838_v54  ;;  %1841 = vst [vmem:[%s10529_s29 + $0x9b8] sm:$0xff] %v1840_v55  ;;  %v1842_v56 = vld [vmem:[%s10524_s28 + $0x1380] sm:$0xff]  ;;  %v1844_v57 = vld [vmem:[%s10524_s28 + $0x1390] sm:$0xff] }
  0xb2   : > { %v1846_v58 = vld [vmem:[%s10524_s28 + $0x13a0] sm:$0xff]  ;;  %1843 = vst [vmem:[%s10529_s29 + $0x9c0] sm:$0xff] %v1842_v56  ;;  %1845 = vst [vmem:[%s10529_s29 + $0x9c8] sm:$0xff] %v1844_v57  ;;  %v1848_v59 = vld [vmem:[%s10524_s28 + $0x13b0] sm:$0xff] }
  0xb3   : > { %1847 = vst [vmem:[%s10529_s29 + $0x9d0] sm:$0xff] %v1846_v58  ;;  %v1850_v60 = vld [vmem:[%s10524_s28 + $0x13c0] sm:$0xff]  ;;  %v1852_v61 = vld [vmem:[%s10524_s28 + $0x13d0] sm:$0xff]  ;;  %1849 = vst [vmem:[%s10529_s29 + $0x9d8] sm:$0xff] %v1848_v59 }
  0xb4   : > { %1851 = vst [vmem:[%s10529_s29 + $0x9e0] sm:$0xff] %v1850_v60  ;;  %1853 = vst [vmem:[%s10529_s29 + $0x9e8] sm:$0xff] %v1852_v61  ;;  %v1854_v62 = vld [vmem:[%s10524_s28 + $0x13e0] sm:$0xff]  ;;  %v1856_v63 = vld [vmem:[%s10524_s28 + $0x13f0] sm:$0xff] }
  0xb5   : > { %v1858_v0 = vld [vmem:[%s10524_s28 + $0x1400] sm:$0xff]  ;;  %1855 = vst [vmem:[%s10529_s29 + $0x9f0] sm:$0xff] %v1854_v62  ;;  %1857 = vst [vmem:[%s10529_s29 + $0x9f8] sm:$0xff] %v1856_v63  ;;  %v1860_v1 = vld [vmem:[%s10524_s28 + $0x1410] sm:$0xff] }
  0xb6   : > { %1859 = vst [vmem:[%s10529_s29 + $0xa00] sm:$0xff] %v1858_v0  ;;  %v1862_v2 = vld [vmem:[%s10524_s28 + $0x1420] sm:$0xff]  ;;  %v1864_v3 = vld [vmem:[%s10524_s28 + $0x1430] sm:$0xff]  ;;  %1861 = vst [vmem:[%s10529_s29 + $0xa08] sm:$0xff] %v1860_v1 }
  0xb7   : > { %1863 = vst [vmem:[%s10529_s29 + $0xa10] sm:$0xff] %v1862_v2  ;;  %1865 = vst [vmem:[%s10529_s29 + $0xa18] sm:$0xff] %v1864_v3  ;;  %v1866_v4 = vld [vmem:[%s10524_s28 + $0x1440] sm:$0xff]  ;;  %v1868_v5 = vld [vmem:[%s10524_s28 + $0x1450] sm:$0xff] }
  0xb8   : > { %v1870_v6 = vld [vmem:[%s10524_s28 + $0x1460] sm:$0xff]  ;;  %1867 = vst [vmem:[%s10529_s29 + $0xa20] sm:$0xff] %v1866_v4  ;;  %1869 = vst [vmem:[%s10529_s29 + $0xa28] sm:$0xff] %v1868_v5  ;;  %v1872_v7 = vld [vmem:[%s10524_s28 + $0x1470] sm:$0xff] }
  0xb9   : > { %1871 = vst [vmem:[%s10529_s29 + $0xa30] sm:$0xff] %v1870_v6  ;;  %v1874_v8 = vld [vmem:[%s10524_s28 + $0x1480] sm:$0xff]  ;;  %v1876_v9 = vld [vmem:[%s10524_s28 + $0x1490] sm:$0xff]  ;;  %1873 = vst [vmem:[%s10529_s29 + $0xa38] sm:$0xff] %v1872_v7 }
  0xba   : > { %1875 = vst [vmem:[%s10529_s29 + $0xa40] sm:$0xff] %v1874_v8  ;;  %1877 = vst [vmem:[%s10529_s29 + $0xa48] sm:$0xff] %v1876_v9  ;;  %v1878_v10 = vld [vmem:[%s10524_s28 + $0x14a0] sm:$0xff]  ;;  %v1880_v11 = vld [vmem:[%s10524_s28 + $0x14b0] sm:$0xff] }
  0xbb   : > { %v1882_v12 = vld [vmem:[%s10524_s28 + $0x14c0] sm:$0xff]  ;;  %1879 = vst [vmem:[%s10529_s29 + $0xa50] sm:$0xff] %v1878_v10  ;;  %1881 = vst [vmem:[%s10529_s29 + $0xa58] sm:$0xff] %v1880_v11  ;;  %v1884_v13 = vld [vmem:[%s10524_s28 + $0x14d0] sm:$0xff] }
  0xbc   : > { %1883 = vst [vmem:[%s10529_s29 + $0xa60] sm:$0xff] %v1882_v12  ;;  %v1886_v14 = vld [vmem:[%s10524_s28 + $0x14e0] sm:$0xff]  ;;  %v1888_v15 = vld [vmem:[%s10524_s28 + $0x14f0] sm:$0xff]  ;;  %1885 = vst [vmem:[%s10529_s29 + $0xa68] sm:$0xff] %v1884_v13 }
  0xbd   : > { %1887 = vst [vmem:[%s10529_s29 + $0xa70] sm:$0xff] %v1886_v14  ;;  %1889 = vst [vmem:[%s10529_s29 + $0xa78] sm:$0xff] %v1888_v15  ;;  %v1890_v16 = vld [vmem:[%s10524_s28 + $0x1500] sm:$0xff]  ;;  %v1892_v17 = vld [vmem:[%s10524_s28 + $0x1510] sm:$0xff] }
  0xbe   : > { %v1894_v18 = vld [vmem:[%s10524_s28 + $0x1520] sm:$0xff]  ;;  %1891 = vst [vmem:[%s10529_s29 + $0xa80] sm:$0xff] %v1890_v16  ;;  %1893 = vst [vmem:[%s10529_s29 + $0xa88] sm:$0xff] %v1892_v17  ;;  %v1896_v19 = vld [vmem:[%s10524_s28 + $0x1530] sm:$0xff] }
  0xbf   : > { %1895 = vst [vmem:[%s10529_s29 + $0xa90] sm:$0xff] %v1894_v18  ;;  %v1898_v20 = vld [vmem:[%s10524_s28 + $0x1540] sm:$0xff]  ;;  %v1900_v21 = vld [vmem:[%s10524_s28 + $0x1550] sm:$0xff]  ;;  %1897 = vst [vmem:[%s10529_s29 + $0xa98] sm:$0xff] %v1896_v19 }
  0xc0   : > { %1899 = vst [vmem:[%s10529_s29 + $0xaa0] sm:$0xff] %v1898_v20  ;;  %1901 = vst [vmem:[%s10529_s29 + $0xaa8] sm:$0xff] %v1900_v21  ;;  %v1902_v22 = vld [vmem:[%s10524_s28 + $0x1560] sm:$0xff]  ;;  %v1904_v23 = vld [vmem:[%s10524_s28 + $0x1570] sm:$0xff] }
  0xc1   : > { %v1906_v24 = vld [vmem:[%s10524_s28 + $0x1580] sm:$0xff]  ;;  %1903 = vst [vmem:[%s10529_s29 + $0xab0] sm:$0xff] %v1902_v22  ;;  %1905 = vst [vmem:[%s10529_s29 + $0xab8] sm:$0xff] %v1904_v23  ;;  %v1908_v25 = vld [vmem:[%s10524_s28 + $0x1590] sm:$0xff] }
  0xc2   : > { %1907 = vst [vmem:[%s10529_s29 + $0xac0] sm:$0xff] %v1906_v24  ;;  %v1910_v26 = vld [vmem:[%s10524_s28 + $0x15a0] sm:$0xff]  ;;  %v1912_v27 = vld [vmem:[%s10524_s28 + $0x15b0] sm:$0xff]  ;;  %1909 = vst [vmem:[%s10529_s29 + $0xac8] sm:$0xff] %v1908_v25 }
  0xc3   : > { %1911 = vst [vmem:[%s10529_s29 + $0xad0] sm:$0xff] %v1910_v26  ;;  %1913 = vst [vmem:[%s10529_s29 + $0xad8] sm:$0xff] %v1912_v27  ;;  %v1914_v28 = vld [vmem:[%s10524_s28 + $0x15c0] sm:$0xff]  ;;  %v1916_v29 = vld [vmem:[%s10524_s28 + $0x15d0] sm:$0xff] }
  0xc4   : > { %v1918_v30 = vld [vmem:[%s10524_s28 + $0x15e0] sm:$0xff]  ;;  %1915 = vst [vmem:[%s10529_s29 + $0xae0] sm:$0xff] %v1914_v28  ;;  %1917 = vst [vmem:[%s10529_s29 + $0xae8] sm:$0xff] %v1916_v29  ;;  %v1920_v31 = vld [vmem:[%s10524_s28 + $0x15f0] sm:$0xff] }
  0xc5   : > { %1919 = vst [vmem:[%s10529_s29 + $0xaf0] sm:$0xff] %v1918_v30  ;;  %v1922_v32 = vld [vmem:[%s10524_s28 + $0x1600] sm:$0xff]  ;;  %v1924_v33 = vld [vmem:[%s10524_s28 + $0x1610] sm:$0xff]  ;;  %1921 = vst [vmem:[%s10529_s29 + $0xaf8] sm:$0xff] %v1920_v31 }
  0xc6   : > { %1923 = vst [vmem:[%s10529_s29 + $0xb00] sm:$0xff] %v1922_v32  ;;  %1925 = vst [vmem:[%s10529_s29 + $0xb08] sm:$0xff] %v1924_v33  ;;  %v1926_v34 = vld [vmem:[%s10524_s28 + $0x1620] sm:$0xff]  ;;  %v1928_v35 = vld [vmem:[%s10524_s28 + $0x1630] sm:$0xff] }
  0xc7   : > { %v1930_v36 = vld [vmem:[%s10524_s28 + $0x1640] sm:$0xff]  ;;  %1927 = vst [vmem:[%s10529_s29 + $0xb10] sm:$0xff] %v1926_v34  ;;  %1929 = vst [vmem:[%s10529_s29 + $0xb18] sm:$0xff] %v1928_v35  ;;  %v1932_v37 = vld [vmem:[%s10524_s28 + $0x1650] sm:$0xff] }
  0xc8   : > { %1931 = vst [vmem:[%s10529_s29 + $0xb20] sm:$0xff] %v1930_v36  ;;  %v1934_v38 = vld [vmem:[%s10524_s28 + $0x1660] sm:$0xff]  ;;  %v1936_v39 = vld [vmem:[%s10524_s28 + $0x1670] sm:$0xff]  ;;  %1933 = vst [vmem:[%s10529_s29 + $0xb28] sm:$0xff] %v1932_v37 }
  0xc9   : > { %1935 = vst [vmem:[%s10529_s29 + $0xb30] sm:$0xff] %v1934_v38  ;;  %1937 = vst [vmem:[%s10529_s29 + $0xb38] sm:$0xff] %v1936_v39  ;;  %v1938_v40 = vld [vmem:[%s10524_s28 + $0x1680] sm:$0xff]  ;;  %v1940_v41 = vld [vmem:[%s10524_s28 + $0x1690] sm:$0xff] }
  0xca   : > { %v1942_v42 = vld [vmem:[%s10524_s28 + $0x16a0] sm:$0xff]  ;;  %1939 = vst [vmem:[%s10529_s29 + $0xb40] sm:$0xff] %v1938_v40  ;;  %1941 = vst [vmem:[%s10529_s29 + $0xb48] sm:$0xff] %v1940_v41  ;;  %v1944_v43 = vld [vmem:[%s10524_s28 + $0x16b0] sm:$0xff] }
  0xcb   : > { %1943 = vst [vmem:[%s10529_s29 + $0xb50] sm:$0xff] %v1942_v42  ;;  %v1946_v44 = vld [vmem:[%s10524_s28 + $0x16c0] sm:$0xff]  ;;  %v1948_v45 = vld [vmem:[%s10524_s28 + $0x16d0] sm:$0xff]  ;;  %1945 = vst [vmem:[%s10529_s29 + $0xb58] sm:$0xff] %v1944_v43 }
  0xcc   : > { %1947 = vst [vmem:[%s10529_s29 + $0xb60] sm:$0xff] %v1946_v44  ;;  %1949 = vst [vmem:[%s10529_s29 + $0xb68] sm:$0xff] %v1948_v45  ;;  %v1950_v46 = vld [vmem:[%s10524_s28 + $0x16e0] sm:$0xff]  ;;  %v1952_v47 = vld [vmem:[%s10524_s28 + $0x16f0] sm:$0xff] }
  0xcd   : > { %v1954_v48 = vld [vmem:[%s10524_s28 + $0x1700] sm:$0xff]  ;;  %1951 = vst [vmem:[%s10529_s29 + $0xb70] sm:$0xff] %v1950_v46  ;;  %1953 = vst [vmem:[%s10529_s29 + $0xb78] sm:$0xff] %v1952_v47  ;;  %v1956_v49 = vld [vmem:[%s10524_s28 + $0x1710] sm:$0xff] }
  0xce   : > { %1955 = vst [vmem:[%s10529_s29 + $0xb80] sm:$0xff] %v1954_v48  ;;  %v1958_v50 = vld [vmem:[%s10524_s28 + $0x1720] sm:$0xff]  ;;  %v1960_v51 = vld [vmem:[%s10524_s28 + $0x1730] sm:$0xff]  ;;  %1957 = vst [vmem:[%s10529_s29 + $0xb88] sm:$0xff] %v1956_v49 }
  0xcf   : > { %1959 = vst [vmem:[%s10529_s29 + $0xb90] sm:$0xff] %v1958_v50  ;;  %1961 = vst [vmem:[%s10529_s29 + $0xb98] sm:$0xff] %v1960_v51  ;;  %v1962_v52 = vld [vmem:[%s10524_s28 + $0x1740] sm:$0xff]  ;;  %v1964_v53 = vld [vmem:[%s10524_s28 + $0x1750] sm:$0xff] }
  0xd0   : > { %v1966_v54 = vld [vmem:[%s10524_s28 + $0x1760] sm:$0xff]  ;;  %1963 = vst [vmem:[%s10529_s29 + $0xba0] sm:$0xff] %v1962_v52  ;;  %1965 = vst [vmem:[%s10529_s29 + $0xba8] sm:$0xff] %v1964_v53  ;;  %v1968_v55 = vld [vmem:[%s10524_s28 + $0x1770] sm:$0xff] }
  0xd1   : > { %1967 = vst [vmem:[%s10529_s29 + $0xbb0] sm:$0xff] %v1966_v54  ;;  %v1970_v56 = vld [vmem:[%s10524_s28 + $0x1780] sm:$0xff]  ;;  %v1972_v57 = vld [vmem:[%s10524_s28 + $0x1790] sm:$0xff]  ;;  %1969 = vst [vmem:[%s10529_s29 + $0xbb8] sm:$0xff] %v1968_v55 }
  0xd2   : > { %1971 = vst [vmem:[%s10529_s29 + $0xbc0] sm:$0xff] %v1970_v56  ;;  %1973 = vst [vmem:[%s10529_s29 + $0xbc8] sm:$0xff] %v1972_v57  ;;  %v1974_v58 = vld [vmem:[%s10524_s28 + $0x17a0] sm:$0xff]  ;;  %v1976_v59 = vld [vmem:[%s10524_s28 + $0x17b0] sm:$0xff] }
  0xd3   : > { %v1978_v60 = vld [vmem:[%s10524_s28 + $0x17c0] sm:$0xff]  ;;  %1975 = vst [vmem:[%s10529_s29 + $0xbd0] sm:$0xff] %v1974_v58  ;;  %1977 = vst [vmem:[%s10529_s29 + $0xbd8] sm:$0xff] %v1976_v59  ;;  %v1980_v61 = vld [vmem:[%s10524_s28 + $0x17d0] sm:$0xff] }
  0xd4   : > { %1979 = vst [vmem:[%s10529_s29 + $0xbe0] sm:$0xff] %v1978_v60  ;;  %v1982_v62 = vld [vmem:[%s10524_s28 + $0x17e0] sm:$0xff]  ;;  %v1984_v63 = vld [vmem:[%s10524_s28 + $0x17f0] sm:$0xff]  ;;  %1981 = vst [vmem:[%s10529_s29 + $0xbe8] sm:$0xff] %v1980_v61 }
  0xd5   : > { %1983 = vst [vmem:[%s10529_s29 + $0xbf0] sm:$0xff] %v1982_v62  ;;  %1985 = vst [vmem:[%s10529_s29 + $0xbf8] sm:$0xff] %v1984_v63  ;;  %v1986_v0 = vld [vmem:[%s10524_s28 + $0x1800] sm:$0xff]  ;;  %v1988_v1 = vld [vmem:[%s10524_s28 + $0x1810] sm:$0xff] }
  0xd6   : > { %v1990_v2 = vld [vmem:[%s10524_s28 + $0x1820] sm:$0xff]  ;;  %1987 = vst [vmem:[%s10529_s29 + $0xc00] sm:$0xff] %v1986_v0  ;;  %1989 = vst [vmem:[%s10529_s29 + $0xc08] sm:$0xff] %v1988_v1  ;;  %v1992_v3 = vld [vmem:[%s10524_s28 + $0x1830] sm:$0xff] }
  0xd7   : > { %1991 = vst [vmem:[%s10529_s29 + $0xc10] sm:$0xff] %v1990_v2  ;;  %v1994_v4 = vld [vmem:[%s10524_s28 + $0x1840] sm:$0xff]  ;;  %v1996_v5 = vld [vmem:[%s10524_s28 + $0x1850] sm:$0xff]  ;;  %1993 = vst [vmem:[%s10529_s29 + $0xc18] sm:$0xff] %v1992_v3 }
  0xd8   : > { %1995 = vst [vmem:[%s10529_s29 + $0xc20] sm:$0xff] %v1994_v4  ;;  %1997 = vst [vmem:[%s10529_s29 + $0xc28] sm:$0xff] %v1996_v5  ;;  %v1998_v6 = vld [vmem:[%s10524_s28 + $0x1860] sm:$0xff]  ;;  %v2000_v7 = vld [vmem:[%s10524_s28 + $0x1870] sm:$0xff] }
  0xd9   : > { %v2002_v8 = vld [vmem:[%s10524_s28 + $0x1880] sm:$0xff]  ;;  %1999 = vst [vmem:[%s10529_s29 + $0xc30] sm:$0xff] %v1998_v6  ;;  %2001 = vst [vmem:[%s10529_s29 + $0xc38] sm:$0xff] %v2000_v7  ;;  %v2004_v9 = vld [vmem:[%s10524_s28 + $0x1890] sm:$0xff] }
  0xda   : > { %2003 = vst [vmem:[%s10529_s29 + $0xc40] sm:$0xff] %v2002_v8  ;;  %v2006_v10 = vld [vmem:[%s10524_s28 + $0x18a0] sm:$0xff]  ;;  %v2008_v11 = vld [vmem:[%s10524_s28 + $0x18b0] sm:$0xff]  ;;  %2005 = vst [vmem:[%s10529_s29 + $0xc48] sm:$0xff] %v2004_v9 }
  0xdb   : > { %2007 = vst [vmem:[%s10529_s29 + $0xc50] sm:$0xff] %v2006_v10  ;;  %2009 = vst [vmem:[%s10529_s29 + $0xc58] sm:$0xff] %v2008_v11  ;;  %v2010_v12 = vld [vmem:[%s10524_s28 + $0x18c0] sm:$0xff]  ;;  %v2012_v13 = vld [vmem:[%s10524_s28 + $0x18d0] sm:$0xff] }
  0xdc   : > { %v2014_v14 = vld [vmem:[%s10524_s28 + $0x18e0] sm:$0xff]  ;;  %2011 = vst [vmem:[%s10529_s29 + $0xc60] sm:$0xff] %v2010_v12  ;;  %2013 = vst [vmem:[%s10529_s29 + $0xc68] sm:$0xff] %v2012_v13  ;;  %v2016_v15 = vld [vmem:[%s10524_s28 + $0x18f0] sm:$0xff] }
  0xdd   : > { %2015 = vst [vmem:[%s10529_s29 + $0xc70] sm:$0xff] %v2014_v14  ;;  %v2018_v16 = vld [vmem:[%s10524_s28 + $0x1900] sm:$0xff]  ;;  %v2020_v17 = vld [vmem:[%s10524_s28 + $0x1910] sm:$0xff]  ;;  %2017 = vst [vmem:[%s10529_s29 + $0xc78] sm:$0xff] %v2016_v15 }
  0xde   : > { %2019 = vst [vmem:[%s10529_s29 + $0xc80] sm:$0xff] %v2018_v16  ;;  %2021 = vst [vmem:[%s10529_s29 + $0xc88] sm:$0xff] %v2020_v17  ;;  %v2022_v18 = vld [vmem:[%s10524_s28 + $0x1920] sm:$0xff]  ;;  %v2024_v19 = vld [vmem:[%s10524_s28 + $0x1930] sm:$0xff] }
  0xdf   : > { %v2026_v20 = vld [vmem:[%s10524_s28 + $0x1940] sm:$0xff]  ;;  %2023 = vst [vmem:[%s10529_s29 + $0xc90] sm:$0xff] %v2022_v18  ;;  %2025 = vst [vmem:[%s10529_s29 + $0xc98] sm:$0xff] %v2024_v19  ;;  %v2028_v21 = vld [vmem:[%s10524_s28 + $0x1950] sm:$0xff] }
  0xe0   : > { %2027 = vst [vmem:[%s10529_s29 + $0xca0] sm:$0xff] %v2026_v20  ;;  %v2030_v22 = vld [vmem:[%s10524_s28 + $0x1960] sm:$0xff]  ;;  %v2032_v23 = vld [vmem:[%s10524_s28 + $0x1970] sm:$0xff]  ;;  %2029 = vst [vmem:[%s10529_s29 + $0xca8] sm:$0xff] %v2028_v21 }
  0xe1   : > { %2031 = vst [vmem:[%s10529_s29 + $0xcb0] sm:$0xff] %v2030_v22  ;;  %2033 = vst [vmem:[%s10529_s29 + $0xcb8] sm:$0xff] %v2032_v23  ;;  %v2034_v24 = vld [vmem:[%s10524_s28 + $0x1980] sm:$0xff]  ;;  %v2036_v25 = vld [vmem:[%s10524_s28 + $0x1990] sm:$0xff] }
  0xe2   : > { %v2038_v26 = vld [vmem:[%s10524_s28 + $0x19a0] sm:$0xff]  ;;  %2035 = vst [vmem:[%s10529_s29 + $0xcc0] sm:$0xff] %v2034_v24  ;;  %2037 = vst [vmem:[%s10529_s29 + $0xcc8] sm:$0xff] %v2036_v25  ;;  %v2040_v27 = vld [vmem:[%s10524_s28 + $0x19b0] sm:$0xff] }
  0xe3   : > { %2039 = vst [vmem:[%s10529_s29 + $0xcd0] sm:$0xff] %v2038_v26  ;;  %v2042_v28 = vld [vmem:[%s10524_s28 + $0x19c0] sm:$0xff]  ;;  %v2044_v29 = vld [vmem:[%s10524_s28 + $0x19d0] sm:$0xff]  ;;  %2041 = vst [vmem:[%s10529_s29 + $0xcd8] sm:$0xff] %v2040_v27 }
  0xe4   : > { %2043 = vst [vmem:[%s10529_s29 + $0xce0] sm:$0xff] %v2042_v28  ;;  %2045 = vst [vmem:[%s10529_s29 + $0xce8] sm:$0xff] %v2044_v29  ;;  %v2046_v30 = vld [vmem:[%s10524_s28 + $0x19e0] sm:$0xff]  ;;  %v2048_v31 = vld [vmem:[%s10524_s28 + $0x19f0] sm:$0xff] }
  0xe5   : > { %v2050_v32 = vld [vmem:[%s10524_s28 + $0x1a00] sm:$0xff]  ;;  %2047 = vst [vmem:[%s10529_s29 + $0xcf0] sm:$0xff] %v2046_v30  ;;  %2049 = vst [vmem:[%s10529_s29 + $0xcf8] sm:$0xff] %v2048_v31  ;;  %v2052_v33 = vld [vmem:[%s10524_s28 + $0x1a10] sm:$0xff] }
  0xe6   : > { %2051 = vst [vmem:[%s10529_s29 + $0xd00] sm:$0xff] %v2050_v32  ;;  %v2054_v34 = vld [vmem:[%s10524_s28 + $0x1a20] sm:$0xff]  ;;  %v2056_v35 = vld [vmem:[%s10524_s28 + $0x1a30] sm:$0xff]  ;;  %2053 = vst [vmem:[%s10529_s29 + $0xd08] sm:$0xff] %v2052_v33 }
  0xe7   : > { %2055 = vst [vmem:[%s10529_s29 + $0xd10] sm:$0xff] %v2054_v34  ;;  %2057 = vst [vmem:[%s10529_s29 + $0xd18] sm:$0xff] %v2056_v35  ;;  %v2058_v36 = vld [vmem:[%s10524_s28 + $0x1a40] sm:$0xff]  ;;  %v2060_v37 = vld [vmem:[%s10524_s28 + $0x1a50] sm:$0xff] }
  0xe8   : > { %v2062_v38 = vld [vmem:[%s10524_s28 + $0x1a60] sm:$0xff]  ;;  %2059 = vst [vmem:[%s10529_s29 + $0xd20] sm:$0xff] %v2058_v36  ;;  %2061 = vst [vmem:[%s10529_s29 + $0xd28] sm:$0xff] %v2060_v37  ;;  %v2064_v39 = vld [vmem:[%s10524_s28 + $0x1a70] sm:$0xff] }
  0xe9   : > { %2063 = vst [vmem:[%s10529_s29 + $0xd30] sm:$0xff] %v2062_v38  ;;  %v2066_v40 = vld [vmem:[%s10524_s28 + $0x1a80] sm:$0xff]  ;;  %v2068_v41 = vld [vmem:[%s10524_s28 + $0x1a90] sm:$0xff]  ;;  %2065 = vst [vmem:[%s10529_s29 + $0xd38] sm:$0xff] %v2064_v39 }
  0xea   : > { %2067 = vst [vmem:[%s10529_s29 + $0xd40] sm:$0xff] %v2066_v40  ;;  %2069 = vst [vmem:[%s10529_s29 + $0xd48] sm:$0xff] %v2068_v41  ;;  %v2070_v42 = vld [vmem:[%s10524_s28 + $0x1aa0] sm:$0xff]  ;;  %v2072_v43 = vld [vmem:[%s10524_s28 + $0x1ab0] sm:$0xff] }
  0xeb   : > { %v2074_v44 = vld [vmem:[%s10524_s28 + $0x1ac0] sm:$0xff]  ;;  %2071 = vst [vmem:[%s10529_s29 + $0xd50] sm:$0xff] %v2070_v42  ;;  %2073 = vst [vmem:[%s10529_s29 + $0xd58] sm:$0xff] %v2072_v43  ;;  %v2076_v45 = vld [vmem:[%s10524_s28 + $0x1ad0] sm:$0xff] }
  0xec   : > { %2075 = vst [vmem:[%s10529_s29 + $0xd60] sm:$0xff] %v2074_v44  ;;  %v2078_v46 = vld [vmem:[%s10524_s28 + $0x1ae0] sm:$0xff]  ;;  %v2080_v47 = vld [vmem:[%s10524_s28 + $0x1af0] sm:$0xff]  ;;  %2077 = vst [vmem:[%s10529_s29 + $0xd68] sm:$0xff] %v2076_v45 }
  0xed   : > { %2079 = vst [vmem:[%s10529_s29 + $0xd70] sm:$0xff] %v2078_v46  ;;  %2081 = vst [vmem:[%s10529_s29 + $0xd78] sm:$0xff] %v2080_v47  ;;  %v2082_v48 = vld [vmem:[%s10524_s28 + $0x1b00] sm:$0xff]  ;;  %v2084_v49 = vld [vmem:[%s10524_s28 + $0x1b10] sm:$0xff] }
  0xee   : > { %v2086_v50 = vld [vmem:[%s10524_s28 + $0x1b20] sm:$0xff]  ;;  %2083 = vst [vmem:[%s10529_s29 + $0xd80] sm:$0xff] %v2082_v48  ;;  %2085 = vst [vmem:[%s10529_s29 + $0xd88] sm:$0xff] %v2084_v49  ;;  %v2088_v51 = vld [vmem:[%s10524_s28 + $0x1b30] sm:$0xff] }
  0xef   : > { %2087 = vst [vmem:[%s10529_s29 + $0xd90] sm:$0xff] %v2086_v50  ;;  %v2090_v52 = vld [vmem:[%s10524_s28 + $0x1b40] sm:$0xff]  ;;  %v2092_v53 = vld [vmem:[%s10524_s28 + $0x1b50] sm:$0xff]  ;;  %2089 = vst [vmem:[%s10529_s29 + $0xd98] sm:$0xff] %v2088_v51 }
  0xf0   : > { %2091 = vst [vmem:[%s10529_s29 + $0xda0] sm:$0xff] %v2090_v52  ;;  %2093 = vst [vmem:[%s10529_s29 + $0xda8] sm:$0xff] %v2092_v53  ;;  %v2094_v54 = vld [vmem:[%s10524_s28 + $0x1b60] sm:$0xff]  ;;  %v2096_v55 = vld [vmem:[%s10524_s28 + $0x1b70] sm:$0xff] }
  0xf1   : > { %v2098_v56 = vld [vmem:[%s10524_s28 + $0x1b80] sm:$0xff]  ;;  %2095 = vst [vmem:[%s10529_s29 + $0xdb0] sm:$0xff] %v2094_v54  ;;  %2097 = vst [vmem:[%s10529_s29 + $0xdb8] sm:$0xff] %v2096_v55  ;;  %v2100_v57 = vld [vmem:[%s10524_s28 + $0x1b90] sm:$0xff] }
  0xf2   : > { %2099 = vst [vmem:[%s10529_s29 + $0xdc0] sm:$0xff] %v2098_v56  ;;  %v2102_v58 = vld [vmem:[%s10524_s28 + $0x1ba0] sm:$0xff]  ;;  %v2104_v59 = vld [vmem:[%s10524_s28 + $0x1bb0] sm:$0xff]  ;;  %2101 = vst [vmem:[%s10529_s29 + $0xdc8] sm:$0xff] %v2100_v57 }
  0xf3   : > { %2103 = vst [vmem:[%s10529_s29 + $0xdd0] sm:$0xff] %v2102_v58  ;;  %2105 = vst [vmem:[%s10529_s29 + $0xdd8] sm:$0xff] %v2104_v59  ;;  %v2106_v60 = vld [vmem:[%s10524_s28 + $0x1bc0] sm:$0xff]  ;;  %v2108_v61 = vld [vmem:[%s10524_s28 + $0x1bd0] sm:$0xff] }
  0xf4   : > { %v2110_v62 = vld [vmem:[%s10524_s28 + $0x1be0] sm:$0xff]  ;;  %2107 = vst [vmem:[%s10529_s29 + $0xde0] sm:$0xff] %v2106_v60  ;;  %2109 = vst [vmem:[%s10529_s29 + $0xde8] sm:$0xff] %v2108_v61  ;;  %v2112_v63 = vld [vmem:[%s10524_s28 + $0x1bf0] sm:$0xff] }
  0xf5   : > { %2111 = vst [vmem:[%s10529_s29 + $0xdf0] sm:$0xff] %v2110_v62  ;;  %v2114_v0 = vld [vmem:[%s10524_s28 + $0x1c00] sm:$0xff]  ;;  %v2116_v1 = vld [vmem:[%s10524_s28 + $0x1c10] sm:$0xff]  ;;  %2113 = vst [vmem:[%s10529_s29 + $0xdf8] sm:$0xff] %v2112_v63 }
  0xf6   : > { %2115 = vst [vmem:[%s10529_s29 + $0xe00] sm:$0xff] %v2114_v0  ;;  %2117 = vst [vmem:[%s10529_s29 + $0xe08] sm:$0xff] %v2116_v1  ;;  %v2118_v2 = vld [vmem:[%s10524_s28 + $0x1c20] sm:$0xff]  ;;  %v2120_v3 = vld [vmem:[%s10524_s28 + $0x1c30] sm:$0xff] }
  0xf7   : > { %v2122_v4 = vld [vmem:[%s10524_s28 + $0x1c40] sm:$0xff]  ;;  %2119 = vst [vmem:[%s10529_s29 + $0xe10] sm:$0xff] %v2118_v2  ;;  %2121 = vst [vmem:[%s10529_s29 + $0xe18] sm:$0xff] %v2120_v3  ;;  %v2124_v5 = vld [vmem:[%s10524_s28 + $0x1c50] sm:$0xff] }
  0xf8   : > { %2123 = vst [vmem:[%s10529_s29 + $0xe20] sm:$0xff] %v2122_v4  ;;  %v2126_v6 = vld [vmem:[%s10524_s28 + $0x1c60] sm:$0xff]  ;;  %v2128_v7 = vld [vmem:[%s10524_s28 + $0x1c70] sm:$0xff]  ;;  %2125 = vst [vmem:[%s10529_s29 + $0xe28] sm:$0xff] %v2124_v5 }
  0xf9   : > { %2127 = vst [vmem:[%s10529_s29 + $0xe30] sm:$0xff] %v2126_v6  ;;  %2129 = vst [vmem:[%s10529_s29 + $0xe38] sm:$0xff] %v2128_v7  ;;  %v2130_v8 = vld [vmem:[%s10524_s28 + $0x1c80] sm:$0xff]  ;;  %v2132_v9 = vld [vmem:[%s10524_s28 + $0x1c90] sm:$0xff] }
  0xfa   : > { %v2134_v10 = vld [vmem:[%s10524_s28 + $0x1ca0] sm:$0xff]  ;;  %2131 = vst [vmem:[%s10529_s29 + $0xe40] sm:$0xff] %v2130_v8  ;;  %2133 = vst [vmem:[%s10529_s29 + $0xe48] sm:$0xff] %v2132_v9  ;;  %v2136_v11 = vld [vmem:[%s10524_s28 + $0x1cb0] sm:$0xff] }
  0xfb   : > { %2135 = vst [vmem:[%s10529_s29 + $0xe50] sm:$0xff] %v2134_v10  ;;  %v2138_v12 = vld [vmem:[%s10524_s28 + $0x1cc0] sm:$0xff]  ;;  %v2140_v13 = vld [vmem:[%s10524_s28 + $0x1cd0] sm:$0xff]  ;;  %2137 = vst [vmem:[%s10529_s29 + $0xe58] sm:$0xff] %v2136_v11 }
  0xfc   : > { %2139 = vst [vmem:[%s10529_s29 + $0xe60] sm:$0xff] %v2138_v12  ;;  %2141 = vst [vmem:[%s10529_s29 + $0xe68] sm:$0xff] %v2140_v13  ;;  %v2142_v14 = vld [vmem:[%s10524_s28 + $0x1ce0] sm:$0xff]  ;;  %v2144_v15 = vld [vmem:[%s10524_s28 + $0x1cf0] sm:$0xff] }
  0xfd   : > { %v2146_v16 = vld [vmem:[%s10524_s28 + $0x1d00] sm:$0xff]  ;;  %2143 = vst [vmem:[%s10529_s29 + $0xe70] sm:$0xff] %v2142_v14  ;;  %2145 = vst [vmem:[%s10529_s29 + $0xe78] sm:$0xff] %v2144_v15  ;;  %v2148_v17 = vld [vmem:[%s10524_s28 + $0x1d10] sm:$0xff] }
  0xfe   : > { %2147 = vst [vmem:[%s10529_s29 + $0xe80] sm:$0xff] %v2146_v16  ;;  %v2150_v18 = vld [vmem:[%s10524_s28 + $0x1d20] sm:$0xff]  ;;  %v2152_v19 = vld [vmem:[%s10524_s28 + $0x1d30] sm:$0xff]  ;;  %2149 = vst [vmem:[%s10529_s29 + $0xe88] sm:$0xff] %v2148_v17 }
  0xff   : > { %2151 = vst [vmem:[%s10529_s29 + $0xe90] sm:$0xff] %v2150_v18  ;;  %2153 = vst [vmem:[%s10529_s29 + $0xe98] sm:$0xff] %v2152_v19  ;;  %v2154_v20 = vld [vmem:[%s10524_s28 + $0x1d40] sm:$0xff]  ;;  %v2156_v21 = vld [vmem:[%s10524_s28 + $0x1d50] sm:$0xff] }
 0x100   : > { %v2158_v22 = vld [vmem:[%s10524_s28 + $0x1d60] sm:$0xff]  ;;  %2155 = vst [vmem:[%s10529_s29 + $0xea0] sm:$0xff] %v2154_v20  ;;  %2157 = vst [vmem:[%s10529_s29 + $0xea8] sm:$0xff] %v2156_v21  ;;  %v2160_v23 = vld [vmem:[%s10524_s28 + $0x1d70] sm:$0xff] }
 0x101   : > { %2159 = vst [vmem:[%s10529_s29 + $0xeb0] sm:$0xff] %v2158_v22  ;;  %v2162_v24 = vld [vmem:[%s10524_s28 + $0x1d80] sm:$0xff]  ;;  %v2164_v25 = vld [vmem:[%s10524_s28 + $0x1d90] sm:$0xff]  ;;  %2161 = vst [vmem:[%s10529_s29 + $0xeb8] sm:$0xff] %v2160_v23 }
 0x102   : > { %2163 = vst [vmem:[%s10529_s29 + $0xec0] sm:$0xff] %v2162_v24  ;;  %2165 = vst [vmem:[%s10529_s29 + $0xec8] sm:$0xff] %v2164_v25  ;;  %v2166_v26 = vld [vmem:[%s10524_s28 + $0x1da0] sm:$0xff]  ;;  %v2168_v27 = vld [vmem:[%s10524_s28 + $0x1db0] sm:$0xff] }
 0x103   : > { %v2170_v28 = vld [vmem:[%s10524_s28 + $0x1dc0] sm:$0xff]  ;;  %2167 = vst [vmem:[%s10529_s29 + $0xed0] sm:$0xff] %v2166_v26  ;;  %2169 = vst [vmem:[%s10529_s29 + $0xed8] sm:$0xff] %v2168_v27  ;;  %v2172_v29 = vld [vmem:[%s10524_s28 + $0x1dd0] sm:$0xff] }
 0x104   : > { %2171 = vst [vmem:[%s10529_s29 + $0xee0] sm:$0xff] %v2170_v28  ;;  %v2174_v30 = vld [vmem:[%s10524_s28 + $0x1de0] sm:$0xff]  ;;  %v2176_v31 = vld [vmem:[%s10524_s28 + $0x1df0] sm:$0xff]  ;;  %2173 = vst [vmem:[%s10529_s29 + $0xee8] sm:$0xff] %v2172_v29 }
 0x105   : > { %2175 = vst [vmem:[%s10529_s29 + $0xef0] sm:$0xff] %v2174_v30  ;;  %2177 = vst [vmem:[%s10529_s29 + $0xef8] sm:$0xff] %v2176_v31  ;;  %v2178_v32 = vld [vmem:[%s10524_s28 + $0x1e00] sm:$0xff]  ;;  %v2180_v33 = vld [vmem:[%s10524_s28 + $0x1e10] sm:$0xff] }
 0x106   : > { %v2182_v34 = vld [vmem:[%s10524_s28 + $0x1e20] sm:$0xff]  ;;  %2179 = vst [vmem:[%s10529_s29 + $0xf00] sm:$0xff] %v2178_v32  ;;  %2181 = vst [vmem:[%s10529_s29 + $0xf08] sm:$0xff] %v2180_v33  ;;  %v2184_v35 = vld [vmem:[%s10524_s28 + $0x1e30] sm:$0xff] }
 0x107   : > { %2183 = vst [vmem:[%s10529_s29 + $0xf10] sm:$0xff] %v2182_v34  ;;  %v2186_v36 = vld [vmem:[%s10524_s28 + $0x1e40] sm:$0xff]  ;;  %v2188_v37 = vld [vmem:[%s10524_s28 + $0x1e50] sm:$0xff]  ;;  %2185 = vst [vmem:[%s10529_s29 + $0xf18] sm:$0xff] %v2184_v35 }
 0x108   : > { %2187 = vst [vmem:[%s10529_s29 + $0xf20] sm:$0xff] %v2186_v36  ;;  %2189 = vst [vmem:[%s10529_s29 + $0xf28] sm:$0xff] %v2188_v37  ;;  %v2190_v38 = vld [vmem:[%s10524_s28 + $0x1e60] sm:$0xff]  ;;  %v2192_v39 = vld [vmem:[%s10524_s28 + $0x1e70] sm:$0xff] }
 0x109   : > { %v2194_v40 = vld [vmem:[%s10524_s28 + $0x1e80] sm:$0xff]  ;;  %2191 = vst [vmem:[%s10529_s29 + $0xf30] sm:$0xff] %v2190_v38  ;;  %2193 = vst [vmem:[%s10529_s29 + $0xf38] sm:$0xff] %v2192_v39  ;;  %v2196_v41 = vld [vmem:[%s10524_s28 + $0x1e90] sm:$0xff] }
 0x10a   : > { %2195 = vst [vmem:[%s10529_s29 + $0xf40] sm:$0xff] %v2194_v40  ;;  %v2198_v42 = vld [vmem:[%s10524_s28 + $0x1ea0] sm:$0xff]  ;;  %v2200_v43 = vld [vmem:[%s10524_s28 + $0x1eb0] sm:$0xff]  ;;  %2197 = vst [vmem:[%s10529_s29 + $0xf48] sm:$0xff] %v2196_v41 }
 0x10b   : > { %2199 = vst [vmem:[%s10529_s29 + $0xf50] sm:$0xff] %v2198_v42  ;;  %2201 = vst [vmem:[%s10529_s29 + $0xf58] sm:$0xff] %v2200_v43  ;;  %v2202_v44 = vld [vmem:[%s10524_s28 + $0x1ec0] sm:$0xff]  ;;  %v2204_v45 = vld [vmem:[%s10524_s28 + $0x1ed0] sm:$0xff] }
 0x10c   : > { %v2206_v46 = vld [vmem:[%s10524_s28 + $0x1ee0] sm:$0xff]  ;;  %2203 = vst [vmem:[%s10529_s29 + $0xf60] sm:$0xff] %v2202_v44  ;;  %2205 = vst [vmem:[%s10529_s29 + $0xf68] sm:$0xff] %v2204_v45  ;;  %v2208_v47 = vld [vmem:[%s10524_s28 + $0x1ef0] sm:$0xff] }
 0x10d   : > { %2207 = vst [vmem:[%s10529_s29 + $0xf70] sm:$0xff] %v2206_v46  ;;  %v2210_v48 = vld [vmem:[%s10524_s28 + $0x1f00] sm:$0xff]  ;;  %v2212_v49 = vld [vmem:[%s10524_s28 + $0x1f10] sm:$0xff]  ;;  %2209 = vst [vmem:[%s10529_s29 + $0xf78] sm:$0xff] %v2208_v47 }
 0x10e   : > { %2211 = vst [vmem:[%s10529_s29 + $0xf80] sm:$0xff] %v2210_v48  ;;  %2213 = vst [vmem:[%s10529_s29 + $0xf88] sm:$0xff] %v2212_v49  ;;  %v2214_v50 = vld [vmem:[%s10524_s28 + $0x1f20] sm:$0xff]  ;;  %v2216_v51 = vld [vmem:[%s10524_s28 + $0x1f30] sm:$0xff] }
 0x10f   : > { %v2218_v52 = vld [vmem:[%s10524_s28 + $0x1f40] sm:$0xff]  ;;  %2215 = vst [vmem:[%s10529_s29 + $0xf90] sm:$0xff] %v2214_v50  ;;  %2217 = vst [vmem:[%s10529_s29 + $0xf98] sm:$0xff] %v2216_v51  ;;  %v2220_v53 = vld [vmem:[%s10524_s28 + $0x1f50] sm:$0xff] }
 0x110   : > { %2219 = vst [vmem:[%s10529_s29 + $0xfa0] sm:$0xff] %v2218_v52  ;;  %v2222_v54 = vld [vmem:[%s10524_s28 + $0x1f60] sm:$0xff]  ;;  %v2224_v55 = vld [vmem:[%s10524_s28 + $0x1f70] sm:$0xff]  ;;  %2221 = vst [vmem:[%s10529_s29 + $0xfa8] sm:$0xff] %v2220_v53 }
 0x111   : > { %2223 = vst [vmem:[%s10529_s29 + $0xfb0] sm:$0xff] %v2222_v54  ;;  %2225 = vst [vmem:[%s10529_s29 + $0xfb8] sm:$0xff] %v2224_v55  ;;  %v2226_v56 = vld [vmem:[%s10524_s28 + $0x1f80] sm:$0xff]  ;;  %v2228_v57 = vld [vmem:[%s10524_s28 + $0x1f90] sm:$0xff] }
 0x112   : > { %v2230_v58 = vld [vmem:[%s10524_s28 + $0x1fa0] sm:$0xff]  ;;  %2227 = vst [vmem:[%s10529_s29 + $0xfc0] sm:$0xff] %v2226_v56  ;;  %2229 = vst [vmem:[%s10529_s29 + $0xfc8] sm:$0xff] %v2228_v57  ;;  %v2232_v59 = vld [vmem:[%s10524_s28 + $0x1fb0] sm:$0xff] }
 0x113   : > { %2231 = vst [vmem:[%s10529_s29 + $0xfd0] sm:$0xff] %v2230_v58  ;;  %v2234_v60 = vld [vmem:[%s10524_s28 + $0x1fc0] sm:$0xff]  ;;  %v2236_v61 = vld [vmem:[%s10524_s28 + $0x1fd0] sm:$0xff]  ;;  %2233 = vst [vmem:[%s10529_s29 + $0xfd8] sm:$0xff] %v2232_v59 }
 0x114   : > { %2235 = vst [vmem:[%s10529_s29 + $0xfe0] sm:$0xff] %v2234_v60  ;;  %2237 = vst [vmem:[%s10529_s29 + $0xfe8] sm:$0xff] %v2236_v61  ;;  %v2238_v62 = vld [vmem:[%s10524_s28 + $0x1fe0] sm:$0xff]  ;;  %v2240_v63 = vld [vmem:[%s10524_s28 + $0x1ff0] sm:$0xff] }
 0x115   : > { %2239 = vst [vmem:[%s10529_s29 + $0xff0] sm:$0xff] %v2238_v62  ;;  %2241 = vst [vmem:[%s10529_s29 + $0xff8] sm:$0xff] %v2240_v63 }
 0x116 PF: > { %p8893_p8 = scmp.ge.s32.totalorder %s10454_s16, 1  ;;  %p4338_p9 = scmp.lt.s32.totalorder %s10454_s16, 3 }
 0x118   : > { %p4339_p10 = pnand %p8893_p8, %p4338_p9 }
 0x119   : > { %s4345_s30 = sand.u32 (!%p4339_p10), 1, %s10438_s12   ;;  %v11558_v0 = vld [vmem:[%s12442_s0] sm:$0xff] (!%p4339_p10) }
 0x11a   : > { %4342 = sbr.rel (%p4339_p10) target bundleno = 1038 (0x40e), region = 80  ;;  %v11563_v1 = vld [vmem:[%s12442_s0 + $0x80] sm:$0xff] (!%p4339_p10)  ;;  %s8894_s10 = sshll.u32 (!%p4339_p10), %s4345_s30, 12 }
 0x11b   : > { %v11568_v2 = vld [vmem:[%s12442_s0 + $0x40] sm:$0xff] (!%p4339_p10)  ;;  %v8897_v3 = vcombine.low (!%p4339_p10), %v11558_v0, %v11563_v1  ;;  %v8898_v4 = vcombine.high (!%p4339_p10), %v11558_v0, %v11563_v1  ;;  %s11585_s19 = scalar_lea.vmem (!%p4339_p10), [#allocation2], %s8894_s10  ;;  %s8895_s26 = sshll.u32 (!%p4339_p10), %s4345_s30, 6 }
 0x11c   : > { %v11579_v5 = vld [vmem:[%s12442_s0 + $0xc0] sm:$0xff] (!%p4339_p10)  ;;  %v9654_v12 = vld [vmem:[%s11585_s19 + $0x14] ss:$8 sps:$4 sm:$0xff] (!%p4339_p10)   ;;  %v9658_v14 = vld [vmem:[%s11585_s19 + $0x10] ss:$8 sps:$4 sm:$0xff] (!%p4339_p10)   ;;  %s12403_s12 = scalar_lea.vmem (!%p4339_p10), [#allocation3], %s8895_s26 }
 0x11d   : > { %v8913_v6 = vcombine.low (!%p4339_p10), %v11568_v2, %v11579_v5  ;;  %v8914_v7 = vcombine.high (!%p4339_p10), %v11568_v2, %v11579_v5  ;;  %v9648_v8 = vld [vmem:[%s11585_s19 + $0x4] ss:$8 sps:$4 sm:$0xff] (!%p4339_p10)   ;;  %7892 = vmatprep.mubr.bf16.mxu1 (!%p4339_p10), %v8898_v4  ;;  %v9652_v10 = vld [vmem:[%s11585_s19] ss:$8 sps:$4 sm:$0xff] (!%p4339_p10)   ;;  %v9656_v13 = vld [vmem:[%s11585_s19 + $0x814] ss:$8 sps:$4 sm:$0xff] (!%p4339_p10)  }
 0x11e   : > { %v9650_v9 = vld [vmem:[%s11585_s19 + $0x804] ss:$8 sps:$4 sm:$0xff] (!%p4339_p10)   ;;  %7860 = vmatprep.subr.bf16.mxu1 (!%p4339_p10), %v9648_v8  ;;  %v9653_v11 = vld [vmem:[%s11585_s19 + $0x800] ss:$8 sps:$4 sm:$0xff] (!%p4339_p10)   ;;  %v9659_v15 = vld [vmem:[%s11585_s19 + $0x810] ss:$8 sps:$4 sm:$0xff] (!%p4339_p10)  }
 0x11f   : > { %8316 = vmatprep.mubr.bf16.mxu0 (!%p4339_p10), %v8914_v7  ;;  %8284 = vmatprep.subr.bf16.mxu0 (!%p4339_p10), %v9650_v9  ;;  %v9660_v16 = vld [vmem:[%s11585_s19 + $0x24] ss:$8 sps:$4 sm:$0xff] (!%p4339_p10)   ;;  %v9664_v18 = vld [vmem:[%s11585_s19 + $0x20] ss:$8 sps:$4 sm:$0xff] (!%p4339_p10)   ;;  %v9666_v20 = vld [vmem:[%s11585_s19 + $0x34] ss:$8 sps:$4 sm:$0xff] (!%p4339_p10)  }
 0x120   : > { %7861 = vmatpush1.bf16.msra.mxu1 (!%p4339_p10), %v9652_v10  ;;  %8285 = vmatpush1.bf16.msra.mxu0 (!%p4339_p10), %v9653_v11  ;;  %v9662_v17 = vld [vmem:[%s11585_s19 + $0x824] ss:$8 sps:$4 sm:$0xff] (!%p4339_p10)   ;;  %v9665_v19 = vld [vmem:[%s11585_s19 + $0x820] ss:$8 sps:$4 sm:$0xff] (!%p4339_p10)   ;;  %v9668_v21 = vld [vmem:[%s11585_s19 + $0x834] ss:$8 sps:$4 sm:$0xff] (!%p4339_p10)  }
 0x121   : > { %7862 = vmatprep.subr.bf16.mxu1 %v9654_v12  ;;  %8286 = vmatprep.subr.bf16.mxu0 %v9656_v13  ;;  %v9670_v22 = vld [vmem:[%s11585_s19 + $0x30] ss:$8 sps:$4 sm:$0xff]   ;;  %v9672_v24 = vld [vmem:[%s11585_s19 + $0x44] ss:$8 sps:$4 sm:$0xff]   ;;  %v9676_v26 = vld [vmem:[%s11585_s19 + $0x40] ss:$8 sps:$4 sm:$0xff]  }
 0x122   : > { %v9671_v23 = vld [vmem:[%s11585_s19 + $0x830] ss:$8 sps:$4 sm:$0xff]   ;;  %v9674_v25 = vld [vmem:[%s11585_s19 + $0x844] ss:$8 sps:$4 sm:$0xff]   ;;  %v9677_v27 = vld [vmem:[%s11585_s19 + $0x840] ss:$8 sps:$4 sm:$0xff]  }
 0x123   : > { %v9678_v28 = vld [vmem:[%s11585_s19 + $0x54] ss:$8 sps:$4 sm:$0xff]   ;;  %v9682_v30 = vld [vmem:[%s11585_s19 + $0x50] ss:$8 sps:$4 sm:$0xff]   ;;  %v9684_v32 = vld [vmem:[%s11585_s19 + $0x64] ss:$8 sps:$4 sm:$0xff]  }
 0x124   : > { %7863 = vmatpush1.bf16.msra.mxu1 %v9658_v14  ;;  %8287 = vmatpush1.bf16.msra.mxu0 %v9659_v15  ;;  %v9680_v29 = vld [vmem:[%s11585_s19 + $0x854] ss:$8 sps:$4 sm:$0xff]   ;;  %v9683_v31 = vld [vmem:[%s11585_s19 + $0x850] ss:$8 sps:$4 sm:$0xff]   ;;  %v9686_v33 = vld [vmem:[%s11585_s19 + $0x864] ss:$8 sps:$4 sm:$0xff]  }
 0x125   : > { %7864 = vmatprep.subr.bf16.mxu1 %v9660_v16  ;;  %8288 = vmatprep.subr.bf16.mxu0 %v9662_v17  ;;  %v9688_v34 = vld [vmem:[%s11585_s19 + $0x60] ss:$8 sps:$4 sm:$0xff]   ;;  %v9690_v36 = vld [vmem:[%s11585_s19 + $0x74] ss:$8 sps:$4 sm:$0xff]   ;;  %v9694_v38 = vld [vmem:[%s11585_s19 + $0x70] ss:$8 sps:$4 sm:$0xff]  }
 0x126   : > { %v9689_v35 = vld [vmem:[%s11585_s19 + $0x860] ss:$8 sps:$4 sm:$0xff]   ;;  %v9692_v37 = vld [vmem:[%s11585_s19 + $0x874] ss:$8 sps:$4 sm:$0xff]   ;;  %v9695_v39 = vld [vmem:[%s11585_s19 + $0x870] ss:$8 sps:$4 sm:$0xff]  }
 0x127   : > { %v9696_v40 = vld [vmem:[%s11585_s19 + $0x84] ss:$8 sps:$4 sm:$0xff]   ;;  %v9700_v42 = vld [vmem:[%s11585_s19 + $0x80] ss:$8 sps:$4 sm:$0xff]   ;;  %v9702_v44 = vld [vmem:[%s11585_s19 + $0x94] ss:$8 sps:$4 sm:$0xff]  }
 0x128   : > { %7865 = vmatpush1.bf16.msra.mxu1 %v9664_v18  ;;  %8289 = vmatpush1.bf16.msra.mxu0 %v9665_v19  ;;  %v9698_v41 = vld [vmem:[%s11585_s19 + $0x884] ss:$8 sps:$4 sm:$0xff]   ;;  %v9701_v43 = vld [vmem:[%s11585_s19 + $0x880] ss:$8 sps:$4 sm:$0xff]   ;;  %v9704_v45 = vld [vmem:[%s11585_s19 + $0x894] ss:$8 sps:$4 sm:$0xff]  }
 0x129   : > { %7866 = vmatprep.subr.bf16.mxu1 %v9666_v20  ;;  %8290 = vmatprep.subr.bf16.mxu0 %v9668_v21  ;;  %v9706_v46 = vld [vmem:[%s11585_s19 + $0x90] ss:$8 sps:$4 sm:$0xff]   ;;  %v9708_v48 = vld [vmem:[%s11585_s19 + $0xa4] ss:$8 sps:$4 sm:$0xff]   ;;  %v9712_v50 = vld [vmem:[%s11585_s19 + $0xa0] ss:$8 sps:$4 sm:$0xff]  }
 0x12a   : > { %v9707_v47 = vld [vmem:[%s11585_s19 + $0x890] ss:$8 sps:$4 sm:$0xff]   ;;  %v9710_v49 = vld [vmem:[%s11585_s19 + $0x8a4] ss:$8 sps:$4 sm:$0xff]   ;;  %v9713_v51 = vld [vmem:[%s11585_s19 + $0x8a0] ss:$8 sps:$4 sm:$0xff]  }
 0x12b   : > { %v9714_v52 = vld [vmem:[%s11585_s19 + $0xb4] ss:$8 sps:$4 sm:$0xff]   ;;  %v9718_v54 = vld [vmem:[%s11585_s19 + $0xb0] ss:$8 sps:$4 sm:$0xff]   ;;  %v9720_v56 = vld [vmem:[%s11585_s19 + $0xc4] ss:$8 sps:$4 sm:$0xff]  }
 0x12c   : > { %7867 = vmatpush1.bf16.msra.mxu1 %v9670_v22  ;;  %8291 = vmatpush1.bf16.msra.mxu0 %v9671_v23  ;;  %v9716_v53 = vld [vmem:[%s11585_s19 + $0x8b4] ss:$8 sps:$4 sm:$0xff]   ;;  %v9719_v55 = vld [vmem:[%s11585_s19 + $0x8b0] ss:$8 sps:$4 sm:$0xff]   ;;  %v9722_v57 = vld [vmem:[%s11585_s19 + $0x8c4] ss:$8 sps:$4 sm:$0xff]  }
 0x12d   : > { %7868 = vmatprep.subr.bf16.mxu1 %v9672_v24  ;;  %8292 = vmatprep.subr.bf16.mxu0 %v9674_v25  ;;  %v9724_v58 = vld [vmem:[%s11585_s19 + $0xc0] ss:$8 sps:$4 sm:$0xff]   ;;  %v9726_v60 = vld [vmem:[%s11585_s19 + $0xd4] ss:$8 sps:$4 sm:$0xff]   ;;  %v9730_v62 = vld [vmem:[%s11585_s19 + $0xd0] ss:$8 sps:$4 sm:$0xff]  }
 0x12e   : > { %v9725_v59 = vld [vmem:[%s11585_s19 + $0x8c0] ss:$8 sps:$4 sm:$0xff]   ;;  %v9728_v61 = vld [vmem:[%s11585_s19 + $0x8d4] ss:$8 sps:$4 sm:$0xff]   ;;  %v9731_v63 = vld [vmem:[%s11585_s19 + $0x8d0] ss:$8 sps:$4 sm:$0xff]  }
 0x12f   : > { %v9732_v4 = vld [vmem:[%s11585_s19 + $0xe4] ss:$8 sps:$4 sm:$0xff]   ;;  %v9736_v8 = vld [vmem:[%s11585_s19 + $0xe0] ss:$8 sps:$4 sm:$0xff]   ;;  %v9738_v10 = vld [vmem:[%s11585_s19 + $0xf4] ss:$8 sps:$4 sm:$0xff]  }
 0x130   : > { %7869 = vmatpush1.bf16.msra.mxu1 %v9676_v26  ;;  %8293 = vmatpush1.bf16.msra.mxu0 %v9677_v27  ;;  %v9734_v7 = vld [vmem:[%s11585_s19 + $0x8e4] ss:$8 sps:$4 sm:$0xff]   ;;  %v9737_v9 = vld [vmem:[%s11585_s19 + $0x8e0] ss:$8 sps:$4 sm:$0xff]   ;;  %v9740_v11 = vld [vmem:[%s11585_s19 + $0x8f4] ss:$8 sps:$4 sm:$0xff]  }
 0x131   : > { %7870 = vmatprep.subr.bf16.mxu1 %v9678_v28  ;;  %8294 = vmatprep.subr.bf16.mxu0 %v9680_v29  ;;  %v9742_v12 = vld [vmem:[%s11585_s19 + $0xf0] ss:$8 sps:$4 sm:$0xff]   ;;  %v9746_v14 = vld [vmem:[%s11585_s19 + $0x104] ss:$8 sps:$4 sm:$0xff]   ;;  %v9744_v20 = vld [vmem:[%s11585_s19 + $0x100] ss:$8 sps:$4 sm:$0xff]  }
 0x132   : > { %v9743_v13 = vld [vmem:[%s11585_s19 + $0x8f0] ss:$8 sps:$4 sm:$0xff]   ;;  %v9749_v15 = vld [vmem:[%s11585_s19 + $0x904] ss:$8 sps:$4 sm:$0xff]   ;;  %v9747_v21 = vld [vmem:[%s11585_s19 + $0x900] ss:$8 sps:$4 sm:$0xff]  }
 0x133   : > { %v4424_v16 = vld [vmem:[%s12442_s0 + $0x100] sm:$0xff]  ;;  %v9752_v22 = vld [vmem:[%s11585_s19 + $0x114] ss:$8 sps:$4 sm:$0xff]   ;;  %v9750_v26 = vld [vmem:[%s11585_s19 + $0x110] ss:$8 sps:$4 sm:$0xff]   ;;  %s9479_s30 = sshll.u32 (%p10511_p6), %s10446_s14, 4 }
 0x134   : > { %7871 = vmatpush1.bf16.msra.mxu1 %v9682_v30  ;;  %8295 = vmatpush1.bf16.msra.mxu0 %v9683_v31  ;;  %v4440_v17 = vld [vmem:[%s12442_s0 + $0x180] sm:$0xff]  ;;  %v9755_v23 = vld [vmem:[%s11585_s19 + $0x914] ss:$8 sps:$4 sm:$0xff]   ;;  %v9753_v27 = vld [vmem:[%s11585_s19 + $0x910] ss:$8 sps:$4 sm:$0xff]   ;;  %s8752_s29 = scalar_lea.vmem (%p10511_p6), %s12445_s3, %s9479_s30 }
 0x135   : > { %7872 = vmatprep.subr.bf16.mxu1 %v9684_v32  ;;  %8296 = vmatprep.subr.bf16.mxu0 %v9686_v33  ;;  %v4432_v18 = vld [vmem:[%s12442_s0 + $0x140] sm:$0xff]  ;;  %v8930_v24 = vcombine.high %v4424_v16, %v4440_v17  ;;  %v9764_v5 = vld [vmem:[%s11585_s19 + $0x134] ss:$8 sps:$4 sm:$0xff]   ;;  %v9762_v30 = vld [vmem:[%s11585_s19 + $0x130] ss:$8 sps:$4 sm:$0xff]  }
 0x136   : > { %v4448_v19 = vld [vmem:[%s12442_s0 + $0x1c0] sm:$0xff]  ;;  %v9765_v31 = vld [vmem:[%s11585_s19 + $0x930] ss:$8 sps:$4 sm:$0xff]  }
 0x137   : > { %v8946_v25 = vcombine.high %v4432_v18, %v4448_v19  ;;  %v9758_v28 = vld [vmem:[%s11585_s19 + $0x124] ss:$8 sps:$4 sm:$0xff]   ;;  %v9756_v0 = vld [vmem:[%s11585_s19 + $0x120] ss:$8 sps:$4 sm:$0xff]   ;;  %v8945_v2 = vcombine.low %v4432_v18, %v4448_v19  ;;  %v9822_v18 = vld [vmem:[%s11585_s19 + $0x1d0] ss:$8 sps:$4 sm:$0xff]  }
 0x138   : > { %7873 = vmatpush1.bf16.msra.mxu1 %v9688_v34  ;;  %8297 = vmatpush1.bf16.msra.mxu0 %v9689_v35  ;;  %v9761_v29 = vld [vmem:[%s11585_s19 + $0x924] ss:$8 sps:$4 sm:$0xff]   ;;  %v9759_v1 = vld [vmem:[%s11585_s19 + $0x920] ss:$8 sps:$4 sm:$0xff]   ;;  %v9825_v19 = vld [vmem:[%s11585_s19 + $0x9d0] ss:$8 sps:$4 sm:$0xff]  }
 0x139   : > { %7874 = vmatprep.subr.bf16.mxu1 %v9690_v36  ;;  %8298 = vmatprep.subr.bf16.mxu0 %v9692_v37  ;;  %v9770_v32 = vld [vmem:[%s11585_s19 + $0x144] ss:$8 sps:$4 sm:$0xff]   ;;  %v9768_v34 = vld [vmem:[%s11585_s19 + $0x140] ss:$8 sps:$4 sm:$0xff]   ;;  %v9776_v36 = vld [vmem:[%s11585_s19 + $0x154] ss:$8 sps:$4 sm:$0xff]  }
 0x13a   : > { %v9773_v33 = vld [vmem:[%s11585_s19 + $0x944] ss:$8 sps:$4 sm:$0xff]   ;;  %v9771_v35 = vld [vmem:[%s11585_s19 + $0x940] ss:$8 sps:$4 sm:$0xff]   ;;  %v9779_v37 = vld [vmem:[%s11585_s19 + $0x954] ss:$8 sps:$4 sm:$0xff]  }
 0x13c   : > { %7875 = vmatpush1.bf16.msra.mxu1 %v9694_v38  ;;  %8299 = vmatpush1.bf16.msra.mxu0 %v9695_v39  ;;  %v9774_v38 = vld [vmem:[%s11585_s19 + $0x150] ss:$8 sps:$4 sm:$0xff]  }
 0x13d   : > { %7876 = vmatprep.subr.bf16.mxu1 %v9696_v40  ;;  %8300 = vmatprep.subr.bf16.mxu0 %v9698_v41  ;;  %v9777_v39 = vld [vmem:[%s11585_s19 + $0x950] ss:$8 sps:$4 sm:$0xff]   ;;  %v9782_v40 = vld [vmem:[%s11585_s19 + $0x164] ss:$8 sps:$4 sm:$0xff]  }
 0x13e   : > { %v9785_v41 = vld [vmem:[%s11585_s19 + $0x964] ss:$8 sps:$4 sm:$0xff]  }
 0x140   : > { %7877 = vmatpush1.bf16.msra.mxu1 %v9700_v42  ;;  %8301 = vmatpush1.bf16.msra.mxu0 %v9701_v43  ;;  %v11698_v42 = vld [vmem:[%s12442_s0 + $0x8] sm:$0xff] }
 0x141   : > { %7878 = vmatprep.subr.bf16.mxu1 %v9702_v44  ;;  %8302 = vmatprep.subr.bf16.mxu0 %v9704_v45  ;;  %v11703_v43 = vld [vmem:[%s12442_s0 + $0x88] sm:$0xff] }
 0x142   : > { %v9780_v44 = vld [vmem:[%s11585_s19 + $0x160] ss:$8 sps:$4 sm:$0xff]   ;;  %v8900_v45 = vcombine.high %v11698_v42, %v11703_v43 }
 0x144   : > { %7879 = vmatpush1.bf16.msra.mxu1 %v9706_v46  ;;  %8303 = vmatpush1.bf16.msra.mxu0 %v9707_v47  ;;  %v9783_v46 = vld [vmem:[%s11585_s19 + $0x960] ss:$8 sps:$4 sm:$0xff]  }
 0x145   : > { %7880 = vmatprep.subr.bf16.mxu1 %v9708_v48  ;;  %8304 = vmatprep.subr.bf16.mxu0 %v9710_v49  ;;  %v11712_v47 = vld [vmem:[%s12442_s0 + $0x48] sm:$0xff]  ;;  %v9788_v49 = vld [vmem:[%s11585_s19 + $0x174] ss:$8 sps:$4 sm:$0xff]  }
 0x146   : > { %v11717_v48 = vld [vmem:[%s12442_s0 + $0xc8] sm:$0xff] }
 0x148   : > { %7881 = vmatpush1.bf16.msra.mxu1 %v9712_v50  ;;  %8305 = vmatpush1.bf16.msra.mxu0 %v9713_v51  ;;  %v8916_v50 = vcombine.high %v11712_v47, %v11717_v48  ;;  %v9791_v51 = vld [vmem:[%s11585_s19 + $0x974] ss:$8 sps:$4 sm:$0xff]  }
 0x149   : > { %7882 = vmatprep.subr.bf16.mxu1 %v9714_v52  ;;  %8306 = vmatprep.subr.bf16.mxu0 %v9716_v53  ;;  %v9786_v52 = vld [vmem:[%s11585_s19 + $0x170] ss:$8 sps:$4 sm:$0xff]  }
 0x14a   : > { %v9789_v53 = vld [vmem:[%s11585_s19 + $0x970] ss:$8 sps:$4 sm:$0xff]  }
 0x14c   : > { %7883 = vmatpush1.bf16.msra.mxu1 %v9718_v54  ;;  %8307 = vmatpush1.bf16.msra.mxu0 %v9719_v55  ;;  %v9794_v54 = vld [vmem:[%s11585_s19 + $0x184] ss:$8 sps:$4 sm:$0xff]  }
 0x14d   : > { %7884 = vmatprep.subr.bf16.mxu1 %v9720_v56  ;;  %8308 = vmatprep.subr.bf16.mxu0 %v9722_v57  ;;  %v9797_v55 = vld [vmem:[%s11585_s19 + $0x984] ss:$8 sps:$4 sm:$0xff]   ;;  %v9792_v56 = vld [vmem:[%s11585_s19 + $0x180] ss:$8 sps:$4 sm:$0xff]  }
 0x14e   : > { %v9795_v57 = vld [vmem:[%s11585_s19 + $0x980] ss:$8 sps:$4 sm:$0xff]  }
 0x150   : > { %7885 = vmatpush1.bf16.msra.mxu1 %v9724_v58  ;;  %8309 = vmatpush1.bf16.msra.mxu0 %v9725_v59  ;;  %v9800_v58 = vld [vmem:[%s11585_s19 + $0x194] ss:$8 sps:$4 sm:$0xff]  }
 0x151   : > { %7886 = vmatprep.subr.bf16.mxu1 %v9726_v60  ;;  %8310 = vmatprep.subr.bf16.mxu0 %v9728_v61  ;;  %v9803_v59 = vld [vmem:[%s11585_s19 + $0x994] ss:$8 sps:$4 sm:$0xff]   ;;  %v9798_v60 = vld [vmem:[%s11585_s19 + $0x190] ss:$8 sps:$4 sm:$0xff]  }
 0x152   : > { %v9801_v61 = vld [vmem:[%s11585_s19 + $0x990] ss:$8 sps:$4 sm:$0xff]  }
 0x154   : > { %7887 = vmatpush1.bf16.msra.mxu1 %v9730_v62  ;;  %8311 = vmatpush1.bf16.msra.mxu0 %v9731_v63  ;;  %v9806_v62 = vld [vmem:[%s11585_s19 + $0x1a4] ss:$8 sps:$4 sm:$0xff]  }
 0x155   : > { %7888 = vmatprep.subr.bf16.mxu1 %v9732_v4  ;;  %8312 = vmatprep.subr.bf16.mxu0 %v9734_v7  ;;  %v9809_v63 = vld [vmem:[%s11585_s19 + $0x9a4] ss:$8 sps:$4 sm:$0xff]   ;;  %v9804_v4 = vld [vmem:[%s11585_s19 + $0x1a0] ss:$8 sps:$4 sm:$0xff]  }
 0x156   : > { %v9807_v7 = vld [vmem:[%s11585_s19 + $0x9a0] ss:$8 sps:$4 sm:$0xff]  }
 0x158   : > { %7889 = vmatpush1.bf16.msra.mxu1 %v9736_v8  ;;  %8313 = vmatpush1.bf16.msra.mxu0 %v9737_v9  ;;  %v9812_v8 = vld [vmem:[%s11585_s19 + $0x1b4] ss:$8 sps:$4 sm:$0xff]  }
 0x159   : > { %7890 = vmatprep.subr.bf16.mxu1 %v9738_v10  ;;  %8314 = vmatprep.subr.bf16.mxu0 %v9740_v11  ;;  %v9815_v9 = vld [vmem:[%s11585_s19 + $0x9b4] ss:$8 sps:$4 sm:$0xff]   ;;  %v9810_v10 = vld [vmem:[%s11585_s19 + $0x1b0] ss:$8 sps:$4 sm:$0xff]  }
 0x15a   : > { %v9813_v11 = vld [vmem:[%s11585_s19 + $0x9b0] ss:$8 sps:$4 sm:$0xff]  }
 0x15c   : > { %7891 = vmatpush1.bf16.msra.mxu1 %v9742_v12  ;;  %8315 = vmatpush1.bf16.msra.mxu0 %v9743_v13  ;;  %v9818_v12 = vld [vmem:[%s11585_s19 + $0x1c4] ss:$8 sps:$4 sm:$0xff]  }
 0x15d   : > { %7913 = vmatprep.subr.bf16.mxu1 %v9746_v14  ;;  %8337 = vmatprep.subr.bf16.mxu0 %v9749_v15  ;;  %v9821_v13 = vld [vmem:[%s11585_s19 + $0x9c4] ss:$8 sps:$4 sm:$0xff]   ;;  %v9816_v14 = vld [vmem:[%s11585_s19 + $0x1c0] ss:$8 sps:$4 sm:$0xff]  }
 0x15e   : > { %v9819_v15 = vld [vmem:[%s11585_s19 + $0x9c0] ss:$8 sps:$4 sm:$0xff]  }
 0x15f   : > { %7893 = vmatmul.mubr.bf16.vlgmr.msra.gmra.mrb[0].mxu1 %v8897_v3  ;;  %8317 = vmatmul.mubr.bf16.vlgmr.msra.gmra.mrb[0].mxu0 %v8913_v6  ;;  %v8929_v3 = vcombine.low %v4424_v16, %v4440_v17  ;;  %v9767_v6 = vld [vmem:[%s11585_s19 + $0x934] ss:$8 sps:$4 sm:$0xff]  }
 0x160   : > { %7914 = vmatpush1.bf16.msra.mxu1 %v9744_v20  ;;  %8338 = vmatpush1.bf16.msra.mxu0 %v9747_v21  ;;  %v9824_v16 = vld [vmem:[%s11585_s19 + $0x1d4] ss:$8 sps:$4 sm:$0xff]   ;;  %v9830_v20 = vld [vmem:[%s11585_s19 + $0x1e4] ss:$8 sps:$4 sm:$0xff]  }
 0x161   : > { %7915 = vmatprep.subr.bf16.mxu1 %v9752_v22  ;;  %8339 = vmatprep.subr.bf16.mxu0 %v9755_v23  ;;  %v9827_v17 = vld [vmem:[%s11585_s19 + $0x9d4] ss:$8 sps:$4 sm:$0xff]   ;;  %v9833_v21 = vld [vmem:[%s11585_s19 + $0x9e4] ss:$8 sps:$4 sm:$0xff]   ;;  %v9828_v22 = vld [vmem:[%s11585_s19 + $0x1e0] ss:$8 sps:$4 sm:$0xff]  }
 0x162   : > { %7902 = vmatprep.mubr.bf16.mxu1 %v8930_v24  ;;  %8326 = vmatprep.mubr.bf16.mxu0 %v8946_v25  ;;  %v9831_v23 = vld [vmem:[%s11585_s19 + $0x9e0] ss:$8 sps:$4 sm:$0xff]   ;;  %v9836_v24 = vld [vmem:[%s11585_s19 + $0x1f4] ss:$8 sps:$4 sm:$0xff]  }
 0x163   : > { %v9839_v25 = vld [vmem:[%s11585_s19 + $0x9f4] ss:$8 sps:$4 sm:$0xff]  }
 0x164   : > { %7916 = vmatpush1.bf16.msra.mxu1 %v9750_v26  ;;  %8340 = vmatpush1.bf16.msra.mxu0 %v9753_v27  ;;  %v9834_v26 = vld [vmem:[%s11585_s19 + $0x1f0] ss:$8 sps:$4 sm:$0xff]  }
 0x165   : > { %7917 = vmatprep.subr.bf16.mxu1 %v9758_v28  ;;  %8341 = vmatprep.subr.bf16.mxu0 %v9761_v29  ;;  %v9837_v27 = vld [vmem:[%s11585_s19 + $0x9f0] ss:$8 sps:$4 sm:$0xff]   ;;  %v9842_v28 = vld [vmem:[%s11585_s19 + $0x204] ss:$8 sps:$4 sm:$0xff]  }
 0x166   : > { %v9845_v29 = vld [vmem:[%s11585_s19 + $0xa04] ss:$8 sps:$4 sm:$0xff]  }
 0x167   : > { %7903 = vmatmul.mubr.bf16.gmra.mrb[4].mxu1 %v8929_v3  ;;  %8327 = vmatmul.mubr.bf16.gmra.mrb[4].mxu0 %v8945_v2  ;;  %v4425_v3 = vld [vmem:[%s12442_s0 + $0x108] sm:$0xff] }
 0x168   : > { %7918 = vmatpush1.bf16.msra.mxu1 %v9756_v0  ;;  %8342 = vmatpush1.bf16.msra.mxu0 %v9759_v1  ;;  %v9840_v0 = vld [vmem:[%s11585_s19 + $0x200] ss:$8 sps:$4 sm:$0xff]  }
 0x169   : > { %7919 = vmatprep.subr.bf16.mxu1 %v9764_v5  ;;  %8343 = vmatprep.subr.bf16.mxu0 %v9767_v6  ;;  %v9843_v1 = vld [vmem:[%s11585_s19 + $0xa00] ss:$8 sps:$4 sm:$0xff]   ;;  %v8899_v5 = vcombine.low %v11698_v42, %v11703_v43  ;;  %v8915_v6 = vcombine.low %v11712_v47, %v11717_v48  ;;  %v11788_v42 = vld [vmem:[%s12442_s0 + $0x10] sm:$0xff] }
 0x16a   : > { %7945 = vmatprep.mubr.bf16.mxu1 %v8900_v45  ;;  %8369 = vmatprep.mubr.bf16.mxu0 %v8916_v50  ;;  %v4441_v2 = vld [vmem:[%s12442_s0 + $0x188] sm:$0xff]  ;;  %v11793_v43 = vld [vmem:[%s12442_s0 + $0x90] sm:$0xff] }
 0x16b   : > { %v11803_v47 = vld [vmem:[%s12442_s0 + $0xd0] sm:$0xff]  ;;  %v8902_v50 = vcombine.high %v11788_v42, %v11793_v43 }
 0x16c   : > { %7920 = vmatpush1.bf16.msra.mxu1 %v9762_v30  ;;  %8344 = vmatpush1.bf16.msra.mxu0 %v9765_v31  ;;  %v4433_v30 = vld [vmem:[%s12442_s0 + $0x148] sm:$0xff]  ;;  %v9860_v48 = vld [vmem:[%s11585_s19 + $0x234] ss:$8 sps:$4 sm:$0xff]  }
 0x16d   : > { %7921 = vmatprep.subr.bf16.mxu1 %v9770_v32  ;;  %8345 = vmatprep.subr.bf16.mxu0 %v9773_v33  ;;  %v4449_v31 = vld [vmem:[%s12442_s0 + $0x1c8] sm:$0xff]  ;;  %v9848_v32 = vld [vmem:[%s11585_s19 + $0x214] ss:$8 sps:$4 sm:$0xff]  }
 0x16e   : > { %v9851_v33 = vld [vmem:[%s11585_s19 + $0xa14] ss:$8 sps:$4 sm:$0xff]   ;;  %v8947_v45 = vcombine.low %v4433_v30, %v4449_v31 }
 0x170   : > { %7922 = vmatpush1.bf16.msra.mxu1 %v9768_v34  ;;  %8346 = vmatpush1.bf16.msra.mxu0 %v9771_v35  ;;  %v8932_v34 = vcombine.high %v4425_v3, %v4441_v2  ;;  %v8948_v35 = vcombine.high %v4433_v30, %v4449_v31  ;;  %v9926_v30 = vld [vmem:[%s11585_s19 + $0x2e4] ss:$8 sps:$4 sm:$0xff]  }
 0x171   : > { %7923 = vmatprep.subr.bf16.mxu1 %v9776_v36  ;;  %8347 = vmatprep.subr.bf16.mxu0 %v9779_v37  ;;  %v9846_v36 = vld [vmem:[%s11585_s19 + $0x210] ss:$8 sps:$4 sm:$0xff]   ;;  %v9929_v31 = vld [vmem:[%s11585_s19 + $0xae4] ss:$8 sps:$4 sm:$0xff]  }
 0x172   : > { %v9849_v37 = vld [vmem:[%s11585_s19 + $0xa10] ss:$8 sps:$4 sm:$0xff]  }
 0x174   : > { %7924 = vmatpush1.bf16.msra.mxu1 %v9774_v38  ;;  %8348 = vmatpush1.bf16.msra.mxu0 %v9777_v39  ;;  %v9854_v38 = vld [vmem:[%s11585_s19 + $0x224] ss:$8 sps:$4 sm:$0xff]  }
 0x175   : > { %7925 = vmatprep.subr.bf16.mxu1 %v9782_v40  ;;  %8349 = vmatprep.subr.bf16.mxu0 %v9785_v41  ;;  %v9857_v39 = vld [vmem:[%s11585_s19 + $0xa24] ss:$8 sps:$4 sm:$0xff]   ;;  %v9852_v40 = vld [vmem:[%s11585_s19 + $0x220] ss:$8 sps:$4 sm:$0xff]  }
 0x176   : > { %v9855_v41 = vld [vmem:[%s11585_s19 + $0xa20] ss:$8 sps:$4 sm:$0xff]  }
 0x178   : > { %7926 = vmatpush1.bf16.msra.mxu1 %v9780_v44  ;;  %8350 = vmatpush1.bf16.msra.mxu0 %v9783_v46  ;;  %v8931_v44 = vcombine.low %v4425_v3, %v4441_v2  ;;  %v11798_v46 = vld [vmem:[%s12442_s0 + $0x50] sm:$0xff] }
 0x179   : > { %7927 = vmatprep.subr.bf16.mxu1 %v9788_v49  ;;  %8351 = vmatprep.subr.bf16.mxu0 %v9791_v51  ;;  %v9863_v49 = vld [vmem:[%s11585_s19 + $0xa34] ss:$8 sps:$4 sm:$0xff]   ;;  %v8918_v51 = vcombine.high %v11798_v46, %v11803_v47 }
 0x17a   : > { %v9920_v3 = vld [vmem:[%s11585_s19 + $0x2d4] ss:$8 sps:$4 sm:$0xff]  }
 0x17b   : > { %v9923_v2 = vld [vmem:[%s11585_s19 + $0xad4] ss:$8 sps:$4 sm:$0xff]  }
 0x17c   : > { %7928 = vmatpush1.bf16.msra.mxu1 %v9786_v52  ;;  %8352 = vmatpush1.bf16.msra.mxu0 %v9789_v53  ;;  %v9858_v52 = vld [vmem:[%s11585_s19 + $0x230] ss:$8 sps:$4 sm:$0xff]  }
 0x17d   : > { %7929 = vmatprep.subr.bf16.mxu1 %v9794_v54  ;;  %8353 = vmatprep.subr.bf16.mxu0 %v9797_v55  ;;  %v9861_v53 = vld [vmem:[%s11585_s19 + $0xa30] ss:$8 sps:$4 sm:$0xff]   ;;  %v9866_v54 = vld [vmem:[%s11585_s19 + $0x244] ss:$8 sps:$4 sm:$0xff]  }
 0x17e   : > { %v9869_v55 = vld [vmem:[%s11585_s19 + $0xa44] ss:$8 sps:$4 sm:$0xff]  }
 0x180   : > { %7930 = vmatpush1.bf16.msra.mxu1 %v9792_v56  ;;  %8354 = vmatpush1.bf16.msra.mxu0 %v9795_v57  ;;  %v9864_v56 = vld [vmem:[%s11585_s19 + $0x240] ss:$8 sps:$4 sm:$0xff]  }
 0x181   : > { %7931 = vmatprep.subr.bf16.mxu1 %v9800_v58  ;;  %8355 = vmatprep.subr.bf16.mxu0 %v9803_v59  ;;  %v9867_v57 = vld [vmem:[%s11585_s19 + $0xa40] ss:$8 sps:$4 sm:$0xff]   ;;  %v9872_v58 = vld [vmem:[%s11585_s19 + $0x254] ss:$8 sps:$4 sm:$0xff]  }
 0x182   : > { %v9875_v59 = vld [vmem:[%s11585_s19 + $0xa54] ss:$8 sps:$4 sm:$0xff]  }
 0x184   : > { %7932 = vmatpush1.bf16.msra.mxu1 %v9798_v60  ;;  %8356 = vmatpush1.bf16.msra.mxu0 %v9801_v61  ;;  %v9870_v60 = vld [vmem:[%s11585_s19 + $0x250] ss:$8 sps:$4 sm:$0xff]  }
 0x185   : > { %7933 = vmatprep.subr.bf16.mxu1 %v9806_v62  ;;  %8357 = vmatprep.subr.bf16.mxu0 %v9809_v63  ;;  %v9873_v61 = vld [vmem:[%s11585_s19 + $0xa50] ss:$8 sps:$4 sm:$0xff]   ;;  %v9878_v62 = vld [vmem:[%s11585_s19 + $0x264] ss:$8 sps:$4 sm:$0xff]  }
 0x186   : > { %v9881_v63 = vld [vmem:[%s11585_s19 + $0xa64] ss:$8 sps:$4 sm:$0xff]  }
 0x188   : > { %7934 = vmatpush1.bf16.msra.mxu1 %v9804_v4  ;;  %8358 = vmatpush1.bf16.msra.mxu0 %v9807_v7  ;;  %v9876_v4 = vld [vmem:[%s11585_s19 + $0x260] ss:$8 sps:$4 sm:$0xff]  }
 0x189   : > { %7935 = vmatprep.subr.bf16.mxu1 %v9812_v8  ;;  %8359 = vmatprep.subr.bf16.mxu0 %v9815_v9  ;;  %v9879_v7 = vld [vmem:[%s11585_s19 + $0xa60] ss:$8 sps:$4 sm:$0xff]   ;;  %v9884_v8 = vld [vmem:[%s11585_s19 + $0x274] ss:$8 sps:$4 sm:$0xff]  }
 0x18a   : > { %v9887_v9 = vld [vmem:[%s11585_s19 + $0xa74] ss:$8 sps:$4 sm:$0xff]  }
 0x18c   : > { %7936 = vmatpush1.bf16.msra.mxu1 %v9810_v10  ;;  %8360 = vmatpush1.bf16.msra.mxu0 %v9813_v11  ;;  %v9882_v10 = vld [vmem:[%s11585_s19 + $0x270] ss:$8 sps:$4 sm:$0xff]  }
 0x18d   : > { %7937 = vmatprep.subr.bf16.mxu1 %v9818_v12  ;;  %8361 = vmatprep.subr.bf16.mxu0 %v9821_v13  ;;  %v9885_v11 = vld [vmem:[%s11585_s19 + $0xa70] ss:$8 sps:$4 sm:$0xff]   ;;  %v9890_v12 = vld [vmem:[%s11585_s19 + $0x284] ss:$8 sps:$4 sm:$0xff]  }
 0x18e   : > { %v9893_v13 = vld [vmem:[%s11585_s19 + $0xa84] ss:$8 sps:$4 sm:$0xff]  }
 0x190   : > { %7938 = vmatpush1.bf16.msra.mxu1 %v9816_v14  ;;  %8362 = vmatpush1.bf16.msra.mxu0 %v9819_v15  ;;  %v9888_v14 = vld [vmem:[%s11585_s19 + $0x280] ss:$8 sps:$4 sm:$0xff]  }
 0x191   : > { %7939 = vmatprep.subr.bf16.mxu1 %v9824_v16  ;;  %8363 = vmatprep.subr.bf16.mxu0 %v9827_v17  ;;  %v9891_v15 = vld [vmem:[%s11585_s19 + $0xa80] ss:$8 sps:$4 sm:$0xff]   ;;  %v9896_v16 = vld [vmem:[%s11585_s19 + $0x294] ss:$8 sps:$4 sm:$0xff]  }
 0x192   : > { %v9899_v17 = vld [vmem:[%s11585_s19 + $0xa94] ss:$8 sps:$4 sm:$0xff]  }
 0x194   : > { %7940 = vmatpush1.bf16.msra.mxu1 %v9822_v18  ;;  %8364 = vmatpush1.bf16.msra.mxu0 %v9825_v19  ;;  %v9894_v18 = vld [vmem:[%s11585_s19 + $0x290] ss:$8 sps:$4 sm:$0xff]  }
 0x195   : > { %7941 = vmatprep.subr.bf16.mxu1 %v9830_v20  ;;  %8365 = vmatprep.subr.bf16.mxu0 %v9833_v21  ;;  %v9897_v19 = vld [vmem:[%s11585_s19 + $0xa90] ss:$8 sps:$4 sm:$0xff]   ;;  %v9902_v20 = vld [vmem:[%s11585_s19 + $0x2a4] ss:$8 sps:$4 sm:$0xff]  }
 0x196   : > { %v9905_v21 = vld [vmem:[%s11585_s19 + $0xaa4] ss:$8 sps:$4 sm:$0xff]  }
 0x198   : > { %7942 = vmatpush1.bf16.msra.mxu1 %v9828_v22  ;;  %8366 = vmatpush1.bf16.msra.mxu0 %v9831_v23  ;;  %v9900_v22 = vld [vmem:[%s11585_s19 + $0x2a0] ss:$8 sps:$4 sm:$0xff]  }
 0x199   : > { %7943 = vmatprep.subr.bf16.mxu1 %v9836_v24  ;;  %8367 = vmatprep.subr.bf16.mxu0 %v9839_v25  ;;  %v9903_v23 = vld [vmem:[%s11585_s19 + $0xaa0] ss:$8 sps:$4 sm:$0xff]   ;;  %v9908_v24 = vld [vmem:[%s11585_s19 + $0x2b4] ss:$8 sps:$4 sm:$0xff]  }
 0x19a   : > { %v9911_v25 = vld [vmem:[%s11585_s19 + $0xab4] ss:$8 sps:$4 sm:$0xff]  }
 0x19c   : > { %7944 = vmatpush1.bf16.msra.mxu1 %v9834_v26  ;;  %8368 = vmatpush1.bf16.msra.mxu0 %v9837_v27  ;;  %v9906_v26 = vld [vmem:[%s11585_s19 + $0x2b0] ss:$8 sps:$4 sm:$0xff]  }
 0x19d   : > { %7966 = vmatprep.subr.bf16.mxu1 %v9842_v28  ;;  %8390 = vmatprep.subr.bf16.mxu0 %v9845_v29  ;;  %v9909_v27 = vld [vmem:[%s11585_s19 + $0xab0] ss:$8 sps:$4 sm:$0xff]   ;;  %v9914_v28 = vld [vmem:[%s11585_s19 + $0x2c4] ss:$8 sps:$4 sm:$0xff]  }
 0x19e   : > { %v9917_v29 = vld [vmem:[%s11585_s19 + $0xac4] ss:$8 sps:$4 sm:$0xff]  }
 0x19f   : > { %7946 = vmatmul.mubr.bf16.vlgmr.msra.gmra.mrb[0].mxu1 %v8899_v5  ;;  %8370 = vmatmul.mubr.bf16.vlgmr.msra.gmra.mrb[0].mxu0 %v8915_v6  ;;  %v9918_v5 = vld [vmem:[%s11585_s19 + $0x2d0] ss:$8 sps:$4 sm:$0xff]  }
 0x1a0   : > { %7967 = vmatpush1.bf16.msra.mxu1 %v9840_v0  ;;  %8391 = vmatpush1.bf16.msra.mxu0 %v9843_v1  ;;  %v9912_v0 = vld [vmem:[%s11585_s19 + $0x2c0] ss:$8 sps:$4 sm:$0xff]   ;;  %v9921_v6 = vld [vmem:[%s11585_s19 + $0xad0] ss:$8 sps:$4 sm:$0xff]  }
 0x1a1   : > { %7968 = vmatprep.subr.bf16.mxu1 %v9848_v32  ;;  %8392 = vmatprep.subr.bf16.mxu0 %v9851_v33  ;;  %v9915_v1 = vld [vmem:[%s11585_s19 + $0xac0] ss:$8 sps:$4 sm:$0xff]  }
 0x1a2   : > { %7955 = vmatprep.mubr.bf16.mxu1 %v8932_v34  ;;  %8379 = vmatprep.mubr.bf16.mxu0 %v8948_v35  ;;  %v9924_v32 = vld [vmem:[%s11585_s19 + $0x2e0] ss:$8 sps:$4 sm:$0xff]   ;;  %v9932_v34 = vld [vmem:[%s11585_s19 + $0x2f4] ss:$8 sps:$4 sm:$0xff]  }
 0x1a3   : > { %v9927_v33 = vld [vmem:[%s11585_s19 + $0xae0] ss:$8 sps:$4 sm:$0xff]   ;;  %v9935_v35 = vld [vmem:[%s11585_s19 + $0xaf4] ss:$8 sps:$4 sm:$0xff]  }
 0x1a4   : > { %7969 = vmatpush1.bf16.msra.mxu1 %v9846_v36  ;;  %8393 = vmatpush1.bf16.msra.mxu0 %v9849_v37  ;;  %v9930_v36 = vld [vmem:[%s11585_s19 + $0x2f0] ss:$8 sps:$4 sm:$0xff]  }
 0x1a5   : > { %7970 = vmatprep.subr.bf16.mxu1 %v9854_v38  ;;  %8394 = vmatprep.subr.bf16.mxu0 %v9857_v39  ;;  %v9933_v37 = vld [vmem:[%s11585_s19 + $0xaf0] ss:$8 sps:$4 sm:$0xff]   ;;  %v9938_v38 = vld [vmem:[%s11585_s19 + $0x304] ss:$8 sps:$4 sm:$0xff]  }
 0x1a6   : > { %v9941_v39 = vld [vmem:[%s11585_s19 + $0xb04] ss:$8 sps:$4 sm:$0xff]  }
 0x1a7   : > { %7956 = vmatmul.mubr.bf16.gmra.mrb[4].mxu1 %v8931_v44  ;;  %8380 = vmatmul.mubr.bf16.gmra.mrb[4].mxu0 %v8947_v45  ;;  %v4426_v44 = vld [vmem:[%s12442_s0 + $0x110] sm:$0xff] }
 0x1a8   : > { %7971 = vmatpush1.bf16.msra.mxu1 %v9852_v40  ;;  %8395 = vmatpush1.bf16.msra.mxu0 %v9855_v41  ;;  %v9936_v40 = vld [vmem:[%s11585_s19 + $0x300] ss:$8 sps:$4 sm:$0xff]   ;;  %v4442_v45 = vld [vmem:[%s12442_s0 + $0x190] sm:$0xff] }
 0x1a9   : > { %7972 = vmatprep.subr.bf16.mxu1 %v9860_v48  ;;  %8396 = vmatprep.subr.bf16.mxu0 %v9863_v49  ;;  %v9939_v41 = vld [vmem:[%s11585_s19 + $0xb00] ss:$8 sps:$4 sm:$0xff]   ;;  %v8901_v48 = vcombine.low %v11788_v42, %v11793_v43  ;;  %v8917_v49 = vcombine.low %v11798_v46, %v11803_v47  ;;  %v9947_v42 = vld [vmem:[%s11585_s19 + $0xb14] ss:$8 sps:$4 sm:$0xff]   ;;  %v8934_v43 = vcombine.high %v4426_v44, %v4442_v45  ;;  %v9942_v47 = vld [vmem:[%s11585_s19 + $0x310] ss:$8 sps:$4 sm:$0xff]  }
 0x1aa   : > { %7998 = vmatprep.mubr.bf16.mxu1 %v8902_v50  ;;  %8422 = vmatprep.mubr.bf16.mxu0 %v8918_v51  ;;  %v4434_v50 = vld [vmem:[%s12442_s0 + $0x150] sm:$0xff] }
 0x1ab   : > { %v4450_v51 = vld [vmem:[%s12442_s0 + $0x1d0] sm:$0xff] }
 0x1ac   : > { %7973 = vmatpush1.bf16.msra.mxu1 %v9858_v52  ;;  %8397 = vmatpush1.bf16.msra.mxu0 %v9861_v53  ;;  %v9944_v52 = vld [vmem:[%s11585_s19 + $0x314] ss:$8 sps:$4 sm:$0xff]   ;;  %v8950_v46 = vcombine.high %v4434_v50, %v4450_v51  ;;  %v9945_v53 = vld [vmem:[%s11585_s19 + $0xb10] ss:$8 sps:$4 sm:$0xff]  }
 0x1ad   : > { %7974 = vmatprep.subr.bf16.mxu1 %v9866_v54  ;;  %8398 = vmatprep.subr.bf16.mxu0 %v9869_v55  ;;  %v9950_v54 = vld [vmem:[%s11585_s19 + $0x324] ss:$8 sps:$4 sm:$0xff]  }
 0x1ae   : > { %v9953_v55 = vld [vmem:[%s11585_s19 + $0xb24] ss:$8 sps:$4 sm:$0xff]  }
 0x1b0   : > { %7975 = vmatpush1.bf16.msra.mxu1 %v9864_v56  ;;  %8399 = vmatpush1.bf16.msra.mxu0 %v9867_v57  ;;  %v9948_v56 = vld [vmem:[%s11585_s19 + $0x320] ss:$8 sps:$4 sm:$0xff]  }
 0x1b1   : > { %7976 = vmatprep.subr.bf16.mxu1 %v9872_v58  ;;  %8400 = vmatprep.subr.bf16.mxu0 %v9875_v59  ;;  %v9951_v57 = vld [vmem:[%s11585_s19 + $0xb20] ss:$8 sps:$4 sm:$0xff]   ;;  %v11892_v58 = vld [vmem:[%s12442_s0 + $0x18] sm:$0xff] }
 0x1b2   : > { %v11897_v59 = vld [vmem:[%s12442_s0 + $0x98] sm:$0xff] }
 0x1b4   : > { %7977 = vmatpush1.bf16.msra.mxu1 %v9870_v60  ;;  %8401 = vmatpush1.bf16.msra.mxu0 %v9873_v61  ;;  %v8933_v60 = vcombine.low %v4426_v44, %v4442_v45  ;;  %v8949_v61 = vcombine.low %v4434_v50, %v4450_v51  ;;  %v10016_v44 = vld [vmem:[%s11585_s19 + $0x3d4] ss:$8 sps:$4 sm:$0xff]   ;;  %v10022_v50 = vld [vmem:[%s11585_s19 + $0x3e4] ss:$8 sps:$4 sm:$0xff]  }
 0x1b5   : > { %7978 = vmatprep.subr.bf16.mxu1 %v9878_v62  ;;  %8402 = vmatprep.subr.bf16.mxu0 %v9881_v63  ;;  %v11902_v62 = vld [vmem:[%s12442_s0 + $0x58] sm:$0xff]  ;;  %v10025_v51 = vld [vmem:[%s11585_s19 + $0xbe4] ss:$8 sps:$4 sm:$0xff]  }
 0x1b6   : > { %v11907_v63 = vld [vmem:[%s12442_s0 + $0xd8] sm:$0xff] }
 0x1b7   : > { %v10019_v45 = vld [vmem:[%s11585_s19 + $0xbd4] ss:$8 sps:$4 sm:$0xff]  }
 0x1b8   : > { %7979 = vmatpush1.bf16.msra.mxu1 %v9876_v4  ;;  %8403 = vmatpush1.bf16.msra.mxu0 %v9879_v7  ;;  %v9956_v4 = vld [vmem:[%s11585_s19 + $0x334] ss:$8 sps:$4 sm:$0xff]  }
 0x1b9   : > { %7980 = vmatprep.subr.bf16.mxu1 %v9884_v8  ;;  %8404 = vmatprep.subr.bf16.mxu0 %v9887_v9  ;;  %v9959_v7 = vld [vmem:[%s11585_s19 + $0xb34] ss:$8 sps:$4 sm:$0xff]   ;;  %v8904_v8 = vcombine.high %v11892_v58, %v11897_v59  ;;  %v8920_v9 = vcombine.high %v11902_v62, %v11907_v63 }
 0x1bc   : > { %7981 = vmatpush1.bf16.msra.mxu1 %v9882_v10  ;;  %8405 = vmatpush1.bf16.msra.mxu0 %v9885_v11  ;;  %v9954_v10 = vld [vmem:[%s11585_s19 + $0x330] ss:$8 sps:$4 sm:$0xff]  }
 0x1bd   : > { %7982 = vmatprep.subr.bf16.mxu1 %v9890_v12  ;;  %8406 = vmatprep.subr.bf16.mxu0 %v9893_v13  ;;  %v9957_v11 = vld [vmem:[%s11585_s19 + $0xb30] ss:$8 sps:$4 sm:$0xff]   ;;  %v9962_v12 = vld [vmem:[%s11585_s19 + $0x344] ss:$8 sps:$4 sm:$0xff]  }
 0x1be   : > { %v9965_v13 = vld [vmem:[%s11585_s19 + $0xb44] ss:$8 sps:$4 sm:$0xff]  }
 0x1c0   : > { %7983 = vmatpush1.bf16.msra.mxu1 %v9888_v14  ;;  %8407 = vmatpush1.bf16.msra.mxu0 %v9891_v15  ;;  %v9960_v14 = vld [vmem:[%s11585_s19 + $0x340] ss:$8 sps:$4 sm:$0xff]  }
 0x1c1   : > { %7984 = vmatprep.subr.bf16.mxu1 %v9896_v16  ;;  %8408 = vmatprep.subr.bf16.mxu0 %v9899_v17  ;;  %v9963_v15 = vld [vmem:[%s11585_s19 + $0xb40] ss:$8 sps:$4 sm:$0xff]   ;;  %v9968_v16 = vld [vmem:[%s11585_s19 + $0x354] ss:$8 sps:$4 sm:$0xff]  }
 0x1c2   : > { %v9971_v17 = vld [vmem:[%s11585_s19 + $0xb54] ss:$8 sps:$4 sm:$0xff]  }
 0x1c4   : > { %7985 = vmatpush1.bf16.msra.mxu1 %v9894_v18  ;;  %8409 = vmatpush1.bf16.msra.mxu0 %v9897_v19  ;;  %v9966_v18 = vld [vmem:[%s11585_s19 + $0x350] ss:$8 sps:$4 sm:$0xff]  }
 0x1c5   : > { %7986 = vmatprep.subr.bf16.mxu1 %v9902_v20  ;;  %8410 = vmatprep.subr.bf16.mxu0 %v9905_v21  ;;  %v9969_v19 = vld [vmem:[%s11585_s19 + $0xb50] ss:$8 sps:$4 sm:$0xff]   ;;  %v9974_v20 = vld [vmem:[%s11585_s19 + $0x364] ss:$8 sps:$4 sm:$0xff]  }
 0x1c6   : > { %v9977_v21 = vld [vmem:[%s11585_s19 + $0xb64] ss:$8 sps:$4 sm:$0xff]  }
 0x1c8   : > { %7987 = vmatpush1.bf16.msra.mxu1 %v9900_v22  ;;  %8411 = vmatpush1.bf16.msra.mxu0 %v9903_v23  ;;  %v9972_v22 = vld [vmem:[%s11585_s19 + $0x360] ss:$8 sps:$4 sm:$0xff]  }
 0x1c9   : > { %7988 = vmatprep.subr.bf16.mxu1 %v9908_v24  ;;  %8412 = vmatprep.subr.bf16.mxu0 %v9911_v25  ;;  %v9975_v23 = vld [vmem:[%s11585_s19 + $0xb60] ss:$8 sps:$4 sm:$0xff]   ;;  %v9980_v24 = vld [vmem:[%s11585_s19 + $0x374] ss:$8 sps:$4 sm:$0xff]  }
 0x1ca   : > { %v9983_v25 = vld [vmem:[%s11585_s19 + $0xb74] ss:$8 sps:$4 sm:$0xff]  }
 0x1cc   : > { %7989 = vmatpush1.bf16.msra.mxu1 %v9906_v26  ;;  %8413 = vmatpush1.bf16.msra.mxu0 %v9909_v27  ;;  %v9978_v26 = vld [vmem:[%s11585_s19 + $0x370] ss:$8 sps:$4 sm:$0xff]  }
 0x1cd   : > { %7990 = vmatprep.subr.bf16.mxu1 %v9914_v28  ;;  %8414 = vmatprep.subr.bf16.mxu0 %v9917_v29  ;;  %v9981_v27 = vld [vmem:[%s11585_s19 + $0xb70] ss:$8 sps:$4 sm:$0xff]   ;;  %v9986_v28 = vld [vmem:[%s11585_s19 + $0x384] ss:$8 sps:$4 sm:$0xff]  }
 0x1ce   : > { %v9989_v29 = vld [vmem:[%s11585_s19 + $0xb84] ss:$8 sps:$4 sm:$0xff]  }
 0x1d0   : > { %7991 = vmatpush1.bf16.msra.mxu1 %v9912_v0  ;;  %8415 = vmatpush1.bf16.msra.mxu0 %v9915_v1  ;;  %v9984_v0 = vld [vmem:[%s11585_s19 + $0x380] ss:$8 sps:$4 sm:$0xff]  }
 0x1d1   : > { %7992 = vmatprep.subr.bf16.mxu1 %v9920_v3  ;;  %8416 = vmatprep.subr.bf16.mxu0 %v9923_v2  ;;  %v9987_v1 = vld [vmem:[%s11585_s19 + $0xb80] ss:$8 sps:$4 sm:$0xff]   ;;  %v9992_v3 = vld [vmem:[%s11585_s19 + $0x394] ss:$8 sps:$4 sm:$0xff]  }
 0x1d2   : > { %v9995_v2 = vld [vmem:[%s11585_s19 + $0xb94] ss:$8 sps:$4 sm:$0xff]  }
 0x1d4   : > { %7993 = vmatpush1.bf16.msra.mxu1 %v9918_v5  ;;  %8417 = vmatpush1.bf16.msra.mxu0 %v9921_v6  ;;  %v9990_v5 = vld [vmem:[%s11585_s19 + $0x390] ss:$8 sps:$4 sm:$0xff]  }
 0x1d5   : > { %7994 = vmatprep.subr.bf16.mxu1 %v9926_v30  ;;  %8418 = vmatprep.subr.bf16.mxu0 %v9929_v31  ;;  %v9993_v6 = vld [vmem:[%s11585_s19 + $0xb90] ss:$8 sps:$4 sm:$0xff]   ;;  %v9998_v30 = vld [vmem:[%s11585_s19 + $0x3a4] ss:$8 sps:$4 sm:$0xff]  }
 0x1d6   : > { %v10001_v31 = vld [vmem:[%s11585_s19 + $0xba4] ss:$8 sps:$4 sm:$0xff]  }
 0x1d8   : > { %7995 = vmatpush1.bf16.msra.mxu1 %v9924_v32  ;;  %8419 = vmatpush1.bf16.msra.mxu0 %v9927_v33  ;;  %v9996_v32 = vld [vmem:[%s11585_s19 + $0x3a0] ss:$8 sps:$4 sm:$0xff]  }
 0x1d9   : > { %7996 = vmatprep.subr.bf16.mxu1 %v9932_v34  ;;  %8420 = vmatprep.subr.bf16.mxu0 %v9935_v35  ;;  %v9999_v33 = vld [vmem:[%s11585_s19 + $0xba0] ss:$8 sps:$4 sm:$0xff]   ;;  %v10004_v34 = vld [vmem:[%s11585_s19 + $0x3b4] ss:$8 sps:$4 sm:$0xff]  }
 0x1da   : > { %v10007_v35 = vld [vmem:[%s11585_s19 + $0xbb4] ss:$8 sps:$4 sm:$0xff]  }
 0x1dc   : > { %7997 = vmatpush1.bf16.msra.mxu1 %v9930_v36  ;;  %8421 = vmatpush1.bf16.msra.mxu0 %v9933_v37  ;;  %v10002_v36 = vld [vmem:[%s11585_s19 + $0x3b0] ss:$8 sps:$4 sm:$0xff]  }
 0x1dd   : > { %8019 = vmatprep.subr.bf16.mxu1 %v9938_v38  ;;  %8443 = vmatprep.subr.bf16.mxu0 %v9941_v39  ;;  %v10005_v37 = vld [vmem:[%s11585_s19 + $0xbb0] ss:$8 sps:$4 sm:$0xff]   ;;  %v10010_v38 = vld [vmem:[%s11585_s19 + $0x3c4] ss:$8 sps:$4 sm:$0xff]  }
 0x1de   : > { %v10013_v39 = vld [vmem:[%s11585_s19 + $0xbc4] ss:$8 sps:$4 sm:$0xff]  }
 0x1df   : > { %7999 = vmatmul.mubr.bf16.vlgmr.msra.gmra.mrb[0].mxu1 %v8901_v48  ;;  %8423 = vmatmul.mubr.bf16.vlgmr.msra.gmra.mrb[0].mxu0 %v8917_v49  ;;  %v10014_v48 = vld [vmem:[%s11585_s19 + $0x3d0] ss:$8 sps:$4 sm:$0xff]  }
 0x1e0   : > { %8020 = vmatpush1.bf16.msra.mxu1 %v9936_v40  ;;  %8444 = vmatpush1.bf16.msra.mxu0 %v9939_v41  ;;  %v10008_v40 = vld [vmem:[%s11585_s19 + $0x3c0] ss:$8 sps:$4 sm:$0xff]   ;;  %v10017_v49 = vld [vmem:[%s11585_s19 + $0xbd0] ss:$8 sps:$4 sm:$0xff]  }
 0x1e1   : > { %8021 = vmatprep.subr.bf16.mxu1 %v9944_v52  ;;  %8445 = vmatprep.subr.bf16.mxu0 %v9947_v42  ;;  %v10011_v41 = vld [vmem:[%s11585_s19 + $0xbc0] ss:$8 sps:$4 sm:$0xff]  }
 0x1e2   : > { %8008 = vmatprep.mubr.bf16.mxu1 %v8934_v43  ;;  %8432 = vmatprep.mubr.bf16.mxu0 %v8950_v46  ;;  %v10020_v52 = vld [vmem:[%s11585_s19 + $0x3e0] ss:$8 sps:$4 sm:$0xff]   ;;  %v10028_v43 = vld [vmem:[%s11585_s19 + $0x3f4] ss:$8 sps:$4 sm:$0xff]  }
 0x1e3   : > { %v10023_v42 = vld [vmem:[%s11585_s19 + $0xbe0] ss:$8 sps:$4 sm:$0xff]   ;;  %v10031_v46 = vld [vmem:[%s11585_s19 + $0xbf4] ss:$8 sps:$4 sm:$0xff]  }
 0x1e4   : > { %8022 = vmatpush1.bf16.msra.mxu1 %v9942_v47  ;;  %8446 = vmatpush1.bf16.msra.mxu0 %v9945_v53  ;;  %v10026_v47 = vld [vmem:[%s11585_s19 + $0x3f0] ss:$8 sps:$4 sm:$0xff]  }
 0x1e5   : > { %8023 = vmatprep.subr.bf16.mxu1 %v9950_v54  ;;  %8447 = vmatprep.subr.bf16.mxu0 %v9953_v55  ;;  %v10029_v53 = vld [vmem:[%s11585_s19 + $0xbf0] ss:$8 sps:$4 sm:$0xff]   ;;  %v10034_v54 = vld [vmem:[%s11585_s19 + $0x404] ss:$8 sps:$4 sm:$0xff]  }
 0x1e6   : > { %v10037_v55 = vld [vmem:[%s11585_s19 + $0xc04] ss:$8 sps:$4 sm:$0xff]  }
 0x1e7   : > { %8009 = vmatmul.mubr.bf16.gmra.mrb[4].mxu1 %v8933_v60  ;;  %8433 = vmatmul.mubr.bf16.gmra.mrb[4].mxu0 %v8949_v61  ;;  %v4427_v60 = vld [vmem:[%s12442_s0 + $0x118] sm:$0xff] }
 0x1e8   : > { %8024 = vmatpush1.bf16.msra.mxu1 %v9948_v56  ;;  %8448 = vmatpush1.bf16.msra.mxu0 %v9951_v57  ;;  %v10032_v56 = vld [vmem:[%s11585_s19 + $0x400] ss:$8 sps:$4 sm:$0xff]   ;;  %v4443_v61 = vld [vmem:[%s12442_s0 + $0x198] sm:$0xff] }
 0x1e9   : > { %8025 = vmatprep.subr.bf16.mxu1 %v9956_v4  ;;  %8449 = vmatprep.subr.bf16.mxu0 %v9959_v7  ;;  %v10035_v57 = vld [vmem:[%s11585_s19 + $0xc00] ss:$8 sps:$4 sm:$0xff]   ;;  %v8903_v4 = vcombine.low %v11892_v58, %v11897_v59  ;;  %v8919_v7 = vcombine.low %v11902_v62, %v11907_v63  ;;  %v10043_v58 = vld [vmem:[%s11585_s19 + $0xc14] ss:$8 sps:$4 sm:$0xff]   ;;  %v8936_v59 = vcombine.high %v4427_v60, %v4443_v61  ;;  %v10038_v63 = vld [vmem:[%s11585_s19 + $0x410] ss:$8 sps:$4 sm:$0xff]  }
 0x1ea   : > { %8051 = vmatprep.mubr.bf16.mxu1 %v8904_v8  ;;  %8475 = vmatprep.mubr.bf16.mxu0 %v8920_v9  ;;  %v4435_v8 = vld [vmem:[%s12442_s0 + $0x158] sm:$0xff] }
 0x1eb   : > { %v4451_v9 = vld [vmem:[%s12442_s0 + $0x1d8] sm:$0xff] }
 0x1ec   : > { %8026 = vmatpush1.bf16.msra.mxu1 %v9954_v10  ;;  %8450 = vmatpush1.bf16.msra.mxu0 %v9957_v11  ;;  %v10040_v10 = vld [vmem:[%s11585_s19 + $0x414] ss:$8 sps:$4 sm:$0xff]   ;;  %v8952_v62 = vcombine.high %v4435_v8, %v4451_v9  ;;  %v10041_v11 = vld [vmem:[%s11585_s19 + $0xc10] ss:$8 sps:$4 sm:$0xff]  }
 0x1ed   : > { %8027 = vmatprep.subr.bf16.mxu1 %v9962_v12  ;;  %8451 = vmatprep.subr.bf16.mxu0 %v9965_v13  ;;  %v10046_v12 = vld [vmem:[%s11585_s19 + $0x424] ss:$8 sps:$4 sm:$0xff]  }
 0x1ee   : > { %v10049_v13 = vld [vmem:[%s11585_s19 + $0xc24] ss:$8 sps:$4 sm:$0xff]  }
 0x1f0   : > { %8028 = vmatpush1.bf16.msra.mxu1 %v9960_v14  ;;  %8452 = vmatpush1.bf16.msra.mxu0 %v9963_v15  ;;  %v10044_v14 = vld [vmem:[%s11585_s19 + $0x420] ss:$8 sps:$4 sm:$0xff]  }
 0x1f1   : > { %8029 = vmatprep.subr.bf16.mxu1 %v9968_v16  ;;  %8453 = vmatprep.subr.bf16.mxu0 %v9971_v17  ;;  %v10047_v15 = vld [vmem:[%s11585_s19 + $0xc20] ss:$8 sps:$4 sm:$0xff]  }
 0x1f2   : > { %v11996_v16 = vld [vmem:[%s12442_s0 + $0x20] sm:$0xff] }
 0x1f3   : > { %v12001_v17 = vld [vmem:[%s12442_s0 + $0xa0] sm:$0xff] }
 0x1f4   : > { %8030 = vmatpush1.bf16.msra.mxu1 %v9966_v18  ;;  %8454 = vmatpush1.bf16.msra.mxu0 %v9969_v19  ;;  %v8935_v18 = vcombine.low %v4427_v60, %v4443_v61  ;;  %v8951_v19 = vcombine.low %v4435_v8, %v4451_v9  ;;  %v10112_v60 = vld [vmem:[%s11585_s19 + $0x4d4] ss:$8 sps:$4 sm:$0xff]   ;;  %v10118_v8 = vld [vmem:[%s11585_s19 + $0x4e4] ss:$8 sps:$4 sm:$0xff]  }
 0x1f5   : > { %8031 = vmatprep.subr.bf16.mxu1 %v9974_v20  ;;  %8455 = vmatprep.subr.bf16.mxu0 %v9977_v21  ;;  %v12006_v20 = vld [vmem:[%s12442_s0 + $0x60] sm:$0xff]  ;;  %v10115_v61 = vld [vmem:[%s11585_s19 + $0xcd4] ss:$8 sps:$4 sm:$0xff]  }
 0x1f6   : > { %v12011_v21 = vld [vmem:[%s12442_s0 + $0xe0] sm:$0xff] }
 0x1f7   : > { %v10121_v9 = vld [vmem:[%s11585_s19 + $0xce4] ss:$8 sps:$4 sm:$0xff]  }
 0x1f8   : > { %8032 = vmatpush1.bf16.msra.mxu1 %v9972_v22  ;;  %8456 = vmatpush1.bf16.msra.mxu0 %v9975_v23  ;;  %v10052_v22 = vld [vmem:[%s11585_s19 + $0x434] ss:$8 sps:$4 sm:$0xff]  }
 0x1f9   : > { %8033 = vmatprep.subr.bf16.mxu1 %v9980_v24  ;;  %8457 = vmatprep.subr.bf16.mxu0 %v9983_v25  ;;  %v10055_v23 = vld [vmem:[%s11585_s19 + $0xc34] ss:$8 sps:$4 sm:$0xff]   ;;  %v8906_v24 = vcombine.high %v11996_v16, %v12001_v17  ;;  %v8922_v25 = vcombine.high %v12006_v20, %v12011_v21 }
 0x1fc   : > { %8034 = vmatpush1.bf16.msra.mxu1 %v9978_v26  ;;  %8458 = vmatpush1.bf16.msra.mxu0 %v9981_v27  ;;  %v10050_v26 = vld [vmem:[%s11585_s19 + $0x430] ss:$8 sps:$4 sm:$0xff]  }
 0x1fd   : > { %8035 = vmatprep.subr.bf16.mxu1 %v9986_v28  ;;  %8459 = vmatprep.subr.bf16.mxu0 %v9989_v29  ;;  %v10053_v27 = vld [vmem:[%s11585_s19 + $0xc30] ss:$8 sps:$4 sm:$0xff]   ;;  %v10058_v28 = vld [vmem:[%s11585_s19 + $0x444] ss:$8 sps:$4 sm:$0xff]  }
 0x1fe   : > { %v10061_v29 = vld [vmem:[%s11585_s19 + $0xc44] ss:$8 sps:$4 sm:$0xff]  }
 0x200   : > { %8036 = vmatpush1.bf16.msra.mxu1 %v9984_v0  ;;  %8460 = vmatpush1.bf16.msra.mxu0 %v9987_v1  ;;  %v10056_v0 = vld [vmem:[%s11585_s19 + $0x440] ss:$8 sps:$4 sm:$0xff]  }
 0x201   : > { %8037 = vmatprep.subr.bf16.mxu1 %v9992_v3  ;;  %8461 = vmatprep.subr.bf16.mxu0 %v9995_v2  ;;  %v10059_v1 = vld [vmem:[%s11585_s19 + $0xc40] ss:$8 sps:$4 sm:$0xff]   ;;  %v10064_v3 = vld [vmem:[%s11585_s19 + $0x454] ss:$8 sps:$4 sm:$0xff]  }
 0x202   : > { %v10067_v2 = vld [vmem:[%s11585_s19 + $0xc54] ss:$8 sps:$4 sm:$0xff]  }
 0x204   : > { %8038 = vmatpush1.bf16.msra.mxu1 %v9990_v5  ;;  %8462 = vmatpush1.bf16.msra.mxu0 %v9993_v6  ;;  %v10062_v5 = vld [vmem:[%s11585_s19 + $0x450] ss:$8 sps:$4 sm:$0xff]  }
 0x205   : > { %8039 = vmatprep.subr.bf16.mxu1 %v9998_v30  ;;  %8463 = vmatprep.subr.bf16.mxu0 %v10001_v31  ;;  %v10065_v6 = vld [vmem:[%s11585_s19 + $0xc50] ss:$8 sps:$4 sm:$0xff]   ;;  %v10070_v30 = vld [vmem:[%s11585_s19 + $0x464] ss:$8 sps:$4 sm:$0xff]  }
 0x206   : > { %v10073_v31 = vld [vmem:[%s11585_s19 + $0xc64] ss:$8 sps:$4 sm:$0xff]  }
 0x208   : > { %8040 = vmatpush1.bf16.msra.mxu1 %v9996_v32  ;;  %8464 = vmatpush1.bf16.msra.mxu0 %v9999_v33  ;;  %v10068_v32 = vld [vmem:[%s11585_s19 + $0x460] ss:$8 sps:$4 sm:$0xff]  }
 0x209   : > { %8041 = vmatprep.subr.bf16.mxu1 %v10004_v34  ;;  %8465 = vmatprep.subr.bf16.mxu0 %v10007_v35  ;;  %v10071_v33 = vld [vmem:[%s11585_s19 + $0xc60] ss:$8 sps:$4 sm:$0xff]   ;;  %v10076_v34 = vld [vmem:[%s11585_s19 + $0x474] ss:$8 sps:$4 sm:$0xff]  }
 0x20a   : > { %v10079_v35 = vld [vmem:[%s11585_s19 + $0xc74] ss:$8 sps:$4 sm:$0xff]  }
 0x20c   : > { %8042 = vmatpush1.bf16.msra.mxu1 %v10002_v36  ;;  %8466 = vmatpush1.bf16.msra.mxu0 %v10005_v37  ;;  %v10074_v36 = vld [vmem:[%s11585_s19 + $0x470] ss:$8 sps:$4 sm:$0xff]  }
 0x20d   : > { %8043 = vmatprep.subr.bf16.mxu1 %v10010_v38  ;;  %8467 = vmatprep.subr.bf16.mxu0 %v10013_v39  ;;  %v10077_v37 = vld [vmem:[%s11585_s19 + $0xc70] ss:$8 sps:$4 sm:$0xff]   ;;  %v10082_v38 = vld [vmem:[%s11585_s19 + $0x484] ss:$8 sps:$4 sm:$0xff]  }
 0x20e   : > { %v10085_v39 = vld [vmem:[%s11585_s19 + $0xc84] ss:$8 sps:$4 sm:$0xff]  }
 0x210   : > { %8044 = vmatpush1.bf16.msra.mxu1 %v10008_v40  ;;  %8468 = vmatpush1.bf16.msra.mxu0 %v10011_v41  ;;  %v10080_v40 = vld [vmem:[%s11585_s19 + $0x480] ss:$8 sps:$4 sm:$0xff]  }
 0x211   : > { %8045 = vmatprep.subr.bf16.mxu1 %v10016_v44  ;;  %8469 = vmatprep.subr.bf16.mxu0 %v10019_v45  ;;  %v10083_v41 = vld [vmem:[%s11585_s19 + $0xc80] ss:$8 sps:$4 sm:$0xff]   ;;  %v10088_v44 = vld [vmem:[%s11585_s19 + $0x494] ss:$8 sps:$4 sm:$0xff]  }
 0x212   : > { %v10091_v45 = vld [vmem:[%s11585_s19 + $0xc94] ss:$8 sps:$4 sm:$0xff]  }
 0x214   : > { %8046 = vmatpush1.bf16.msra.mxu1 %v10014_v48  ;;  %8470 = vmatpush1.bf16.msra.mxu0 %v10017_v49  ;;  %v10086_v48 = vld [vmem:[%s11585_s19 + $0x490] ss:$8 sps:$4 sm:$0xff]  }
 0x215   : > { %8047 = vmatprep.subr.bf16.mxu1 %v10022_v50  ;;  %8471 = vmatprep.subr.bf16.mxu0 %v10025_v51  ;;  %v10089_v49 = vld [vmem:[%s11585_s19 + $0xc90] ss:$8 sps:$4 sm:$0xff]   ;;  %v10094_v50 = vld [vmem:[%s11585_s19 + $0x4a4] ss:$8 sps:$4 sm:$0xff]  }
 0x216   : > { %v10097_v51 = vld [vmem:[%s11585_s19 + $0xca4] ss:$8 sps:$4 sm:$0xff]  }
 0x218   : > { %8048 = vmatpush1.bf16.msra.mxu1 %v10020_v52  ;;  %8472 = vmatpush1.bf16.msra.mxu0 %v10023_v42  ;;  %v10092_v52 = vld [vmem:[%s11585_s19 + $0x4a0] ss:$8 sps:$4 sm:$0xff]  }
 0x219   : > { %8049 = vmatprep.subr.bf16.mxu1 %v10028_v43  ;;  %8473 = vmatprep.subr.bf16.mxu0 %v10031_v46  ;;  %v10095_v42 = vld [vmem:[%s11585_s19 + $0xca0] ss:$8 sps:$4 sm:$0xff]   ;;  %v10100_v43 = vld [vmem:[%s11585_s19 + $0x4b4] ss:$8 sps:$4 sm:$0xff]  }
 0x21a   : > { %v10103_v46 = vld [vmem:[%s11585_s19 + $0xcb4] ss:$8 sps:$4 sm:$0xff]  }
 0x21c   : > { %8050 = vmatpush1.bf16.msra.mxu1 %v10026_v47  ;;  %8474 = vmatpush1.bf16.msra.mxu0 %v10029_v53  ;;  %v10098_v47 = vld [vmem:[%s11585_s19 + $0x4b0] ss:$8 sps:$4 sm:$0xff]  }
 0x21d   : > { %8072 = vmatprep.subr.bf16.mxu1 %v10034_v54  ;;  %8496 = vmatprep.subr.bf16.mxu0 %v10037_v55  ;;  %v10101_v53 = vld [vmem:[%s11585_s19 + $0xcb0] ss:$8 sps:$4 sm:$0xff]   ;;  %v10106_v54 = vld [vmem:[%s11585_s19 + $0x4c4] ss:$8 sps:$4 sm:$0xff]  }
 0x21e   : > { %v10109_v55 = vld [vmem:[%s11585_s19 + $0xcc4] ss:$8 sps:$4 sm:$0xff]  }
 0x21f   : > { %8052 = vmatmul.mubr.bf16.vlgmr.msra.gmra.mrb[0].mxu1 %v8903_v4  ;;  %8476 = vmatmul.mubr.bf16.vlgmr.msra.gmra.mrb[0].mxu0 %v8919_v7  ;;  %v10110_v4 = vld [vmem:[%s11585_s19 + $0x4d0] ss:$8 sps:$4 sm:$0xff]  }
 0x220   : > { %8073 = vmatpush1.bf16.msra.mxu1 %v10032_v56  ;;  %8497 = vmatpush1.bf16.msra.mxu0 %v10035_v57  ;;  %v10104_v56 = vld [vmem:[%s11585_s19 + $0x4c0] ss:$8 sps:$4 sm:$0xff]   ;;  %v10113_v7 = vld [vmem:[%s11585_s19 + $0xcd0] ss:$8 sps:$4 sm:$0xff]  }
 0x221   : > { %8074 = vmatprep.subr.bf16.mxu1 %v10040_v10  ;;  %8498 = vmatprep.subr.bf16.mxu0 %v10043_v58  ;;  %v10107_v57 = vld [vmem:[%s11585_s19 + $0xcc0] ss:$8 sps:$4 sm:$0xff]  }
 0x222   : > { %8061 = vmatprep.mubr.bf16.mxu1 %v8936_v59  ;;  %8485 = vmatprep.mubr.bf16.mxu0 %v8952_v62  ;;  %v10116_v10 = vld [vmem:[%s11585_s19 + $0x4e0] ss:$8 sps:$4 sm:$0xff]   ;;  %v10124_v59 = vld [vmem:[%s11585_s19 + $0x4f4] ss:$8 sps:$4 sm:$0xff]  }
 0x223   : > { %v10119_v58 = vld [vmem:[%s11585_s19 + $0xce0] ss:$8 sps:$4 sm:$0xff]   ;;  %v10127_v62 = vld [vmem:[%s11585_s19 + $0xcf4] ss:$8 sps:$4 sm:$0xff]  }
 0x224   : > { %8075 = vmatpush1.bf16.msra.mxu1 %v10038_v63  ;;  %8499 = vmatpush1.bf16.msra.mxu0 %v10041_v11  ;;  %v10122_v63 = vld [vmem:[%s11585_s19 + $0x4f0] ss:$8 sps:$4 sm:$0xff]  }
 0x225   : > { %8076 = vmatprep.subr.bf16.mxu1 %v10046_v12  ;;  %8500 = vmatprep.subr.bf16.mxu0 %v10049_v13  ;;  %v10125_v11 = vld [vmem:[%s11585_s19 + $0xcf0] ss:$8 sps:$4 sm:$0xff]   ;;  %v10130_v12 = vld [vmem:[%s11585_s19 + $0x504] ss:$8 sps:$4 sm:$0xff]  }
 0x226   : > { %v10133_v13 = vld [vmem:[%s11585_s19 + $0xd04] ss:$8 sps:$4 sm:$0xff]  }
 0x227   : > { %8062 = vmatmul.mubr.bf16.gmra.mrb[4].mxu1 %v8935_v18  ;;  %8486 = vmatmul.mubr.bf16.gmra.mrb[4].mxu0 %v8951_v19  ;;  %v4436_v18 = vld [vmem:[%s12442_s0 + $0x160] sm:$0xff] }
 0x228   : > { %8077 = vmatpush1.bf16.msra.mxu1 %v10044_v14  ;;  %8501 = vmatpush1.bf16.msra.mxu0 %v10047_v15  ;;  %v4428_v14 = vld [vmem:[%s12442_s0 + $0x120] sm:$0xff] }
 0x229   : > { %8078 = vmatprep.subr.bf16.mxu1 %v10052_v22  ;;  %8502 = vmatprep.subr.bf16.mxu0 %v10055_v23  ;;  %v4444_v15 = vld [vmem:[%s12442_s0 + $0x1a0] sm:$0xff]  ;;  %v8905_v22 = vcombine.low %v11996_v16, %v12001_v17  ;;  %v8921_v23 = vcombine.low %v12006_v20, %v12011_v21  ;;  %v12098_v20 = vld [vmem:[%s12442_s0 + $0x28] sm:$0xff] }
 0x22a   : > { %8104 = vmatprep.mubr.bf16.mxu1 %v8906_v24  ;;  %8528 = vmatprep.mubr.bf16.mxu0 %v8922_v25  ;;  %v4452_v19 = vld [vmem:[%s12442_s0 + $0x1e0] sm:$0xff]  ;;  %v12103_v21 = vld [vmem:[%s12442_s0 + $0xa8] sm:$0xff] }
 0x22b   : > { %v10128_v24 = vld [vmem:[%s11585_s19 + $0x500] ss:$8 sps:$4 sm:$0xff]   ;;  %v10142_v16 = vld [vmem:[%s11585_s19 + $0x524] ss:$8 sps:$4 sm:$0xff]  }
 0x22c   : > { %8079 = vmatpush1.bf16.msra.mxu1 %v10050_v26  ;;  %8503 = vmatpush1.bf16.msra.mxu0 %v10053_v27  ;;  %v10131_v25 = vld [vmem:[%s11585_s19 + $0xd00] ss:$8 sps:$4 sm:$0xff]   ;;  %v10136_v26 = vld [vmem:[%s11585_s19 + $0x514] ss:$8 sps:$4 sm:$0xff]   ;;  %v10145_v17 = vld [vmem:[%s11585_s19 + $0xd24] ss:$8 sps:$4 sm:$0xff]  }
 0x22d   : > { %8080 = vmatprep.subr.bf16.mxu1 %v10058_v28  ;;  %8504 = vmatprep.subr.bf16.mxu0 %v10061_v29  ;;  %v10139_v27 = vld [vmem:[%s11585_s19 + $0xd14] ss:$8 sps:$4 sm:$0xff]   ;;  %v10134_v28 = vld [vmem:[%s11585_s19 + $0x510] ss:$8 sps:$4 sm:$0xff]  }
 0x22e   : > { %v10137_v29 = vld [vmem:[%s11585_s19 + $0xd10] ss:$8 sps:$4 sm:$0xff]  }
 0x230   : > { %8081 = vmatpush1.bf16.msra.mxu1 %v10056_v0  ;;  %8505 = vmatpush1.bf16.msra.mxu0 %v10059_v1  ;;  %v8938_v0 = vcombine.high %v4428_v14, %v4444_v15  ;;  %v8954_v1 = vcombine.high %v4436_v18, %v4452_v19 }
 0x231   : > { %8082 = vmatprep.subr.bf16.mxu1 %v10064_v3  ;;  %8506 = vmatprep.subr.bf16.mxu0 %v10067_v2  ;;  %v12108_v3 = vld [vmem:[%s12442_s0 + $0x68] sm:$0xff] }
 0x232   : > { %v12113_v2 = vld [vmem:[%s12442_s0 + $0xe8] sm:$0xff] }
 0x234   : > { %8083 = vmatpush1.bf16.msra.mxu1 %v10062_v5  ;;  %8507 = vmatpush1.bf16.msra.mxu0 %v10065_v6  ;;  %v8937_v5 = vcombine.low %v4428_v14, %v4444_v15  ;;  %v8953_v6 = vcombine.low %v4436_v18, %v4452_v19  ;;  %v10200_v14 = vld [vmem:[%s11585_s19 + $0x5c0] ss:$8 sps:$4 sm:$0xff]   ;;  %v10208_v18 = vld [vmem:[%s11585_s19 + $0x5d4] ss:$8 sps:$4 sm:$0xff]  }
 0x235   : > { %8084 = vmatprep.subr.bf16.mxu1 %v10070_v30  ;;  %8508 = vmatprep.subr.bf16.mxu0 %v10073_v31  ;;  %v10140_v30 = vld [vmem:[%s11585_s19 + $0x520] ss:$8 sps:$4 sm:$0xff]   ;;  %v10211_v19 = vld [vmem:[%s11585_s19 + $0xdd4] ss:$8 sps:$4 sm:$0xff]  }
 0x236   : > { %v10143_v31 = vld [vmem:[%s11585_s19 + $0xd20] ss:$8 sps:$4 sm:$0xff]  }
 0x237   : > { %v10203_v15 = vld [vmem:[%s11585_s19 + $0xdc0] ss:$8 sps:$4 sm:$0xff]  }
 0x238   : > { %8085 = vmatpush1.bf16.msra.mxu1 %v10068_v32  ;;  %8509 = vmatpush1.bf16.msra.mxu0 %v10071_v33  ;;  %v10148_v32 = vld [vmem:[%s11585_s19 + $0x534] ss:$8 sps:$4 sm:$0xff]  }
 0x239   : > { %8086 = vmatprep.subr.bf16.mxu1 %v10076_v34  ;;  %8510 = vmatprep.subr.bf16.mxu0 %v10079_v35  ;;  %v10151_v33 = vld [vmem:[%s11585_s19 + $0xd34] ss:$8 sps:$4 sm:$0xff]   ;;  %v8908_v34 = vcombine.high %v12098_v20, %v12103_v21  ;;  %v8924_v35 = vcombine.high %v12108_v3, %v12113_v2 }
 0x23c   : > { %8087 = vmatpush1.bf16.msra.mxu1 %v10074_v36  ;;  %8511 = vmatpush1.bf16.msra.mxu0 %v10077_v37  ;;  %v10146_v36 = vld [vmem:[%s11585_s19 + $0x530] ss:$8 sps:$4 sm:$0xff]  }
 0x23d   : > { %8088 = vmatprep.subr.bf16.mxu1 %v10082_v38  ;;  %8512 = vmatprep.subr.bf16.mxu0 %v10085_v39  ;;  %v10149_v37 = vld [vmem:[%s11585_s19 + $0xd30] ss:$8 sps:$4 sm:$0xff]   ;;  %v10154_v38 = vld [vmem:[%s11585_s19 + $0x544] ss:$8 sps:$4 sm:$0xff]  }
 0x23e   : > { %v10157_v39 = vld [vmem:[%s11585_s19 + $0xd44] ss:$8 sps:$4 sm:$0xff]  }
 0x240   : > { %8089 = vmatpush1.bf16.msra.mxu1 %v10080_v40  ;;  %8513 = vmatpush1.bf16.msra.mxu0 %v10083_v41  ;;  %v10152_v40 = vld [vmem:[%s11585_s19 + $0x540] ss:$8 sps:$4 sm:$0xff]  }
 0x241   : > { %8090 = vmatprep.subr.bf16.mxu1 %v10088_v44  ;;  %8514 = vmatprep.subr.bf16.mxu0 %v10091_v45  ;;  %v10155_v41 = vld [vmem:[%s11585_s19 + $0xd40] ss:$8 sps:$4 sm:$0xff]   ;;  %v10160_v44 = vld [vmem:[%s11585_s19 + $0x554] ss:$8 sps:$4 sm:$0xff]  }
 0x242   : > { %v10163_v45 = vld [vmem:[%s11585_s19 + $0xd54] ss:$8 sps:$4 sm:$0xff]  }
 0x244   : > { %8091 = vmatpush1.bf16.msra.mxu1 %v10086_v48  ;;  %8515 = vmatpush1.bf16.msra.mxu0 %v10089_v49  ;;  %v10158_v48 = vld [vmem:[%s11585_s19 + $0x550] ss:$8 sps:$4 sm:$0xff]  }
 0x245   : > { %8092 = vmatprep.subr.bf16.mxu1 %v10094_v50  ;;  %8516 = vmatprep.subr.bf16.mxu0 %v10097_v51  ;;  %v10161_v49 = vld [vmem:[%s11585_s19 + $0xd50] ss:$8 sps:$4 sm:$0xff]   ;;  %v10166_v50 = vld [vmem:[%s11585_s19 + $0x564] ss:$8 sps:$4 sm:$0xff]  }
 0x246   : > { %v10169_v51 = vld [vmem:[%s11585_s19 + $0xd64] ss:$8 sps:$4 sm:$0xff]  }
 0x248   : > { %8093 = vmatpush1.bf16.msra.mxu1 %v10092_v52  ;;  %8517 = vmatpush1.bf16.msra.mxu0 %v10095_v42  ;;  %v10164_v52 = vld [vmem:[%s11585_s19 + $0x560] ss:$8 sps:$4 sm:$0xff]  }
 0x249   : > { %8094 = vmatprep.subr.bf16.mxu1 %v10100_v43  ;;  %8518 = vmatprep.subr.bf16.mxu0 %v10103_v46  ;;  %v10167_v42 = vld [vmem:[%s11585_s19 + $0xd60] ss:$8 sps:$4 sm:$0xff]   ;;  %v10172_v43 = vld [vmem:[%s11585_s19 + $0x574] ss:$8 sps:$4 sm:$0xff]  }
 0x24a   : > { %v10175_v46 = vld [vmem:[%s11585_s19 + $0xd74] ss:$8 sps:$4 sm:$0xff]  }
 0x24c   : > { %8095 = vmatpush1.bf16.msra.mxu1 %v10098_v47  ;;  %8519 = vmatpush1.bf16.msra.mxu0 %v10101_v53  ;;  %v10170_v47 = vld [vmem:[%s11585_s19 + $0x570] ss:$8 sps:$4 sm:$0xff]  }
 0x24d   : > { %8096 = vmatprep.subr.bf16.mxu1 %v10106_v54  ;;  %8520 = vmatprep.subr.bf16.mxu0 %v10109_v55  ;;  %v10173_v53 = vld [vmem:[%s11585_s19 + $0xd70] ss:$8 sps:$4 sm:$0xff]   ;;  %v10178_v54 = vld [vmem:[%s11585_s19 + $0x584] ss:$8 sps:$4 sm:$0xff]  }
 0x24e   : > { %v10181_v55 = vld [vmem:[%s11585_s19 + $0xd84] ss:$8 sps:$4 sm:$0xff]  }
 0x250   : > { %8097 = vmatpush1.bf16.msra.mxu1 %v10104_v56  ;;  %8521 = vmatpush1.bf16.msra.mxu0 %v10107_v57  ;;  %v10176_v56 = vld [vmem:[%s11585_s19 + $0x580] ss:$8 sps:$4 sm:$0xff]  }
 0x251   : > { %8098 = vmatprep.subr.bf16.mxu1 %v10112_v60  ;;  %8522 = vmatprep.subr.bf16.mxu0 %v10115_v61  ;;  %v10179_v57 = vld [vmem:[%s11585_s19 + $0xd80] ss:$8 sps:$4 sm:$0xff]   ;;  %v10184_v60 = vld [vmem:[%s11585_s19 + $0x594] ss:$8 sps:$4 sm:$0xff]  }
 0x252   : > { %v10187_v61 = vld [vmem:[%s11585_s19 + $0xd94] ss:$8 sps:$4 sm:$0xff]  }
 0x254   : > { %8099 = vmatpush1.bf16.msra.mxu1 %v10110_v4  ;;  %8523 = vmatpush1.bf16.msra.mxu0 %v10113_v7  ;;  %v10182_v4 = vld [vmem:[%s11585_s19 + $0x590] ss:$8 sps:$4 sm:$0xff]  }
 0x255   : > { %8100 = vmatprep.subr.bf16.mxu1 %v10118_v8  ;;  %8524 = vmatprep.subr.bf16.mxu0 %v10121_v9  ;;  %v10185_v7 = vld [vmem:[%s11585_s19 + $0xd90] ss:$8 sps:$4 sm:$0xff]   ;;  %v10190_v8 = vld [vmem:[%s11585_s19 + $0x5a4] ss:$8 sps:$4 sm:$0xff]  }
 0x256   : > { %v10193_v9 = vld [vmem:[%s11585_s19 + $0xda4] ss:$8 sps:$4 sm:$0xff]  }
 0x258   : > { %8101 = vmatpush1.bf16.msra.mxu1 %v10116_v10  ;;  %8525 = vmatpush1.bf16.msra.mxu0 %v10119_v58  ;;  %v10188_v10 = vld [vmem:[%s11585_s19 + $0x5a0] ss:$8 sps:$4 sm:$0xff]  }
 0x259   : > { %8102 = vmatprep.subr.bf16.mxu1 %v10124_v59  ;;  %8526 = vmatprep.subr.bf16.mxu0 %v10127_v62  ;;  %v10191_v58 = vld [vmem:[%s11585_s19 + $0xda0] ss:$8 sps:$4 sm:$0xff]   ;;  %v10196_v59 = vld [vmem:[%s11585_s19 + $0x5b4] ss:$8 sps:$4 sm:$0xff]  }
 0x25a   : > { %v10199_v62 = vld [vmem:[%s11585_s19 + $0xdb4] ss:$8 sps:$4 sm:$0xff]  }
 0x25c   : > { %8103 = vmatpush1.bf16.msra.mxu1 %v10122_v63  ;;  %8527 = vmatpush1.bf16.msra.mxu0 %v10125_v11  ;;  %v10194_v63 = vld [vmem:[%s11585_s19 + $0x5b0] ss:$8 sps:$4 sm:$0xff]  }
 0x25d   : > { %8125 = vmatprep.subr.bf16.mxu1 %v10130_v12  ;;  %8549 = vmatprep.subr.bf16.mxu0 %v10133_v13  ;;  %v10197_v11 = vld [vmem:[%s11585_s19 + $0xdb0] ss:$8 sps:$4 sm:$0xff]   ;;  %v10202_v12 = vld [vmem:[%s11585_s19 + $0x5c4] ss:$8 sps:$4 sm:$0xff]  }
 0x25e   : > { %v10205_v13 = vld [vmem:[%s11585_s19 + $0xdc4] ss:$8 sps:$4 sm:$0xff]  }
 0x25f   : > { %8105 = vmatmul.mubr.bf16.vlgmr.msra.gmra.mrb[0].mxu1 %v8905_v22  ;;  %8529 = vmatmul.mubr.bf16.vlgmr.msra.gmra.mrb[0].mxu0 %v8921_v23  ;;  %v10206_v22 = vld [vmem:[%s11585_s19 + $0x5d0] ss:$8 sps:$4 sm:$0xff]  }
 0x260   : > { %8126 = vmatpush1.bf16.msra.mxu1 %v10128_v24  ;;  %8550 = vmatpush1.bf16.msra.mxu0 %v10131_v25  ;;  %v10209_v23 = vld [vmem:[%s11585_s19 + $0xdd0] ss:$8 sps:$4 sm:$0xff]   ;;  %v10214_v24 = vld [vmem:[%s11585_s19 + $0x5e4] ss:$8 sps:$4 sm:$0xff]  }
 0x261   : > { %8127 = vmatprep.subr.bf16.mxu1 %v10136_v26  ;;  %8551 = vmatprep.subr.bf16.mxu0 %v10139_v27  ;;  %v10217_v25 = vld [vmem:[%s11585_s19 + $0xde4] ss:$8 sps:$4 sm:$0xff]   ;;  %v10212_v26 = vld [vmem:[%s11585_s19 + $0x5e0] ss:$8 sps:$4 sm:$0xff]  }
 0x262   : > { %8114 = vmatprep.mubr.bf16.mxu1 %v8938_v0  ;;  %8538 = vmatprep.mubr.bf16.mxu0 %v8954_v1  ;;  %v10215_v27 = vld [vmem:[%s11585_s19 + $0xde0] ss:$8 sps:$4 sm:$0xff]   ;;  %v10218_v0 = vld [vmem:[%s11585_s19 + $0x5f0] ss:$8 sps:$4 sm:$0xff]  }
 0x263   : > { %v10221_v1 = vld [vmem:[%s11585_s19 + $0xdf0] ss:$8 sps:$4 sm:$0xff]  }
 0x264   : > { %8128 = vmatpush1.bf16.msra.mxu1 %v10134_v28  ;;  %8552 = vmatpush1.bf16.msra.mxu0 %v10137_v29  ;;  %v10220_v28 = vld [vmem:[%s11585_s19 + $0x5f4] ss:$8 sps:$4 sm:$0xff]  }
 0x265   : > { %8129 = vmatprep.subr.bf16.mxu1 %v10142_v16  ;;  %8553 = vmatprep.subr.bf16.mxu0 %v10145_v17  ;;  %v10223_v29 = vld [vmem:[%s11585_s19 + $0xdf4] ss:$8 sps:$4 sm:$0xff]   ;;  %v10226_v16 = vld [vmem:[%s11585_s19 + $0x604] ss:$8 sps:$4 sm:$0xff]  }
 0x266   : > { %v10229_v17 = vld [vmem:[%s11585_s19 + $0xe04] ss:$8 sps:$4 sm:$0xff]  }
 0x267   : > { %8115 = vmatmul.mubr.bf16.gmra.mrb[4].mxu1 %v8937_v5  ;;  %8539 = vmatmul.mubr.bf16.gmra.mrb[4].mxu0 %v8953_v6  ;;  %v4429_v5 = vld [vmem:[%s12442_s0 + $0x128] sm:$0xff]  ;;  %v8907_v6 = vcombine.low %v12098_v20, %v12103_v21 }
 0x268   : > { %8130 = vmatpush1.bf16.msra.mxu1 %v10140_v30  ;;  %8554 = vmatpush1.bf16.msra.mxu0 %v10143_v31  ;;  %v8923_v30 = vcombine.low %v12108_v3, %v12113_v2  ;;  %v4445_v31 = vld [vmem:[%s12442_s0 + $0x1a8] sm:$0xff]  ;;  %v10232_v3 = vld [vmem:[%s11585_s19 + $0x614] ss:$8 sps:$4 sm:$0xff]  }
 0x269   : > { %8131 = vmatprep.subr.bf16.mxu1 %v10148_v32  ;;  %8555 = vmatprep.subr.bf16.mxu0 %v10151_v33  ;;  %v4437_v32 = vld [vmem:[%s12442_s0 + $0x168] sm:$0xff]  ;;  %v10235_v2 = vld [vmem:[%s11585_s19 + $0xe14] ss:$8 sps:$4 sm:$0xff]  }
 0x26a   : > { %8157 = vmatprep.mubr.bf16.mxu1 %v8908_v34  ;;  %8581 = vmatprep.mubr.bf16.mxu0 %v8924_v35  ;;  %v4453_v33 = vld [vmem:[%s12442_s0 + $0x1e8] sm:$0xff]  ;;  %v8940_v34 = vcombine.high %v4429_v5, %v4445_v31 }
 0x26b   : > { %v10224_v20 = vld [vmem:[%s11585_s19 + $0x600] ss:$8 sps:$4 sm:$0xff]   ;;  %v8956_v35 = vcombine.high %v4437_v32, %v4453_v33 }
 0x26c   : > { %8132 = vmatpush1.bf16.msra.mxu1 %v10146_v36  ;;  %8556 = vmatpush1.bf16.msra.mxu0 %v10149_v37  ;;  %v10227_v21 = vld [vmem:[%s11585_s19 + $0xe00] ss:$8 sps:$4 sm:$0xff]   ;;  %v10230_v36 = vld [vmem:[%s11585_s19 + $0x610] ss:$8 sps:$4 sm:$0xff]  }
 0x26d   : > { %8133 = vmatprep.subr.bf16.mxu1 %v10154_v38  ;;  %8557 = vmatprep.subr.bf16.mxu0 %v10157_v39  ;;  %v10233_v37 = vld [vmem:[%s11585_s19 + $0xe10] ss:$8 sps:$4 sm:$0xff]   ;;  %v10238_v38 = vld [vmem:[%s11585_s19 + $0x624] ss:$8 sps:$4 sm:$0xff]  }
 0x26e   : > { %v10241_v39 = vld [vmem:[%s11585_s19 + $0xe24] ss:$8 sps:$4 sm:$0xff]  }
 0x270   : > { %8134 = vmatpush1.bf16.msra.mxu1 %v10152_v40  ;;  %8558 = vmatpush1.bf16.msra.mxu0 %v10155_v41  ;;  %v12202_v40 = vld [vmem:[%s12442_s0 + $0x30] sm:$0xff]  ;;  %v8939_v41 = vcombine.low %v4429_v5, %v4445_v31  ;;  %v10296_v5 = vld [vmem:[%s11585_s19 + $0x6c0] ss:$8 sps:$4 sm:$0xff]  }
 0x271   : > { %8135 = vmatprep.subr.bf16.mxu1 %v10160_v44  ;;  %8559 = vmatprep.subr.bf16.mxu0 %v10163_v45  ;;  %v8955_v44 = vcombine.low %v4437_v32, %v4453_v33  ;;  %v12207_v45 = vld [vmem:[%s12442_s0 + $0xb0] sm:$0xff] }
 0x272   : > { %v10307_v31 = vld [vmem:[%s11585_s19 + $0xed4] ss:$8 sps:$4 sm:$0xff]   ;;  %v10302_v32 = vld [vmem:[%s11585_s19 + $0x6d0] ss:$8 sps:$4 sm:$0xff]  }
 0x273   : > { %v10305_v33 = vld [vmem:[%s11585_s19 + $0xed0] ss:$8 sps:$4 sm:$0xff]  }
 0x274   : > { %8136 = vmatpush1.bf16.msra.mxu1 %v10158_v48  ;;  %8560 = vmatpush1.bf16.msra.mxu0 %v10161_v49  ;;  %v12212_v48 = vld [vmem:[%s12442_s0 + $0x70] sm:$0xff] }
 0x275   : > { %8137 = vmatprep.subr.bf16.mxu1 %v10166_v50  ;;  %8561 = vmatprep.subr.bf16.mxu0 %v10169_v51  ;;  %v12217_v49 = vld [vmem:[%s12442_s0 + $0xf0] sm:$0xff]  ;;  %v10236_v50 = vld [vmem:[%s11585_s19 + $0x620] ss:$8 sps:$4 sm:$0xff]  }
 0x276   : > { %v10239_v51 = vld [vmem:[%s11585_s19 + $0xe20] ss:$8 sps:$4 sm:$0xff]  }
 0x278   : > { %8138 = vmatpush1.bf16.msra.mxu1 %v10164_v52  ;;  %8562 = vmatpush1.bf16.msra.mxu0 %v10167_v42  ;;  %v10244_v52 = vld [vmem:[%s11585_s19 + $0x634] ss:$8 sps:$4 sm:$0xff]  }
 0x279   : > { %8139 = vmatprep.subr.bf16.mxu1 %v10172_v43  ;;  %8563 = vmatprep.subr.bf16.mxu0 %v10175_v46  ;;  %v10247_v42 = vld [vmem:[%s11585_s19 + $0xe34] ss:$8 sps:$4 sm:$0xff]   ;;  %v8910_v43 = vcombine.high %v12202_v40, %v12207_v45  ;;  %v8926_v46 = vcombine.high %v12212_v48, %v12217_v49 }
 0x27c   : > { %8140 = vmatpush1.bf16.msra.mxu1 %v10170_v47  ;;  %8564 = vmatpush1.bf16.msra.mxu0 %v10173_v53  ;;  %v10242_v47 = vld [vmem:[%s11585_s19 + $0x630] ss:$8 sps:$4 sm:$0xff]  }
 0x27d   : > { %8141 = vmatprep.subr.bf16.mxu1 %v10178_v54  ;;  %8565 = vmatprep.subr.bf16.mxu0 %v10181_v55  ;;  %v10245_v53 = vld [vmem:[%s11585_s19 + $0xe30] ss:$8 sps:$4 sm:$0xff]   ;;  %v10250_v54 = vld [vmem:[%s11585_s19 + $0x644] ss:$8 sps:$4 sm:$0xff]  }
 0x27e   : > { %v10253_v55 = vld [vmem:[%s11585_s19 + $0xe44] ss:$8 sps:$4 sm:$0xff]  }
 0x280   : > { %8142 = vmatpush1.bf16.msra.mxu1 %v10176_v56  ;;  %8566 = vmatpush1.bf16.msra.mxu0 %v10179_v57  ;;  %v10248_v56 = vld [vmem:[%s11585_s19 + $0x640] ss:$8 sps:$4 sm:$0xff]  }
 0x281   : > { %8143 = vmatprep.subr.bf16.mxu1 %v10184_v60  ;;  %8567 = vmatprep.subr.bf16.mxu0 %v10187_v61  ;;  %v10251_v57 = vld [vmem:[%s11585_s19 + $0xe40] ss:$8 sps:$4 sm:$0xff]   ;;  %v10256_v60 = vld [vmem:[%s11585_s19 + $0x654] ss:$8 sps:$4 sm:$0xff]  }
 0x282   : > { %v10259_v61 = vld [vmem:[%s11585_s19 + $0xe54] ss:$8 sps:$4 sm:$0xff]  }
 0x284   : > { %8144 = vmatpush1.bf16.msra.mxu1 %v10182_v4  ;;  %8568 = vmatpush1.bf16.msra.mxu0 %v10185_v7  ;;  %v10254_v4 = vld [vmem:[%s11585_s19 + $0x650] ss:$8 sps:$4 sm:$0xff]  }
 0x285   : > { %8145 = vmatprep.subr.bf16.mxu1 %v10190_v8  ;;  %8569 = vmatprep.subr.bf16.mxu0 %v10193_v9  ;;  %v10257_v7 = vld [vmem:[%s11585_s19 + $0xe50] ss:$8 sps:$4 sm:$0xff]   ;;  %v10262_v8 = vld [vmem:[%s11585_s19 + $0x664] ss:$8 sps:$4 sm:$0xff]  }
 0x286   : > { %v10265_v9 = vld [vmem:[%s11585_s19 + $0xe64] ss:$8 sps:$4 sm:$0xff]  }
 0x288   : > { %8146 = vmatpush1.bf16.msra.mxu1 %v10188_v10  ;;  %8570 = vmatpush1.bf16.msra.mxu0 %v10191_v58  ;;  %v10260_v10 = vld [vmem:[%s11585_s19 + $0x660] ss:$8 sps:$4 sm:$0xff]  }
 0x289   : > { %8147 = vmatprep.subr.bf16.mxu1 %v10196_v59  ;;  %8571 = vmatprep.subr.bf16.mxu0 %v10199_v62  ;;  %v10263_v58 = vld [vmem:[%s11585_s19 + $0xe60] ss:$8 sps:$4 sm:$0xff]   ;;  %v10268_v59 = vld [vmem:[%s11585_s19 + $0x674] ss:$8 sps:$4 sm:$0xff]  }
 0x28a   : > { %v10271_v62 = vld [vmem:[%s11585_s19 + $0xe74] ss:$8 sps:$4 sm:$0xff]  }
 0x28c   : > { %8148 = vmatpush1.bf16.msra.mxu1 %v10194_v63  ;;  %8572 = vmatpush1.bf16.msra.mxu0 %v10197_v11  ;;  %v10266_v63 = vld [vmem:[%s11585_s19 + $0x670] ss:$8 sps:$4 sm:$0xff]  }
 0x28d   : > { %8149 = vmatprep.subr.bf16.mxu1 %v10202_v12  ;;  %8573 = vmatprep.subr.bf16.mxu0 %v10205_v13  ;;  %v10269_v11 = vld [vmem:[%s11585_s19 + $0xe70] ss:$8 sps:$4 sm:$0xff]   ;;  %v10274_v12 = vld [vmem:[%s11585_s19 + $0x684] ss:$8 sps:$4 sm:$0xff]  }
 0x28e   : > { %v10277_v13 = vld [vmem:[%s11585_s19 + $0xe84] ss:$8 sps:$4 sm:$0xff]  }
 0x290   : > { %8150 = vmatpush1.bf16.msra.mxu1 %v10200_v14  ;;  %8574 = vmatpush1.bf16.msra.mxu0 %v10203_v15  ;;  %v10272_v14 = vld [vmem:[%s11585_s19 + $0x680] ss:$8 sps:$4 sm:$0xff]  }
 0x291   : > { %8151 = vmatprep.subr.bf16.mxu1 %v10208_v18  ;;  %8575 = vmatprep.subr.bf16.mxu0 %v10211_v19  ;;  %v10275_v15 = vld [vmem:[%s11585_s19 + $0xe80] ss:$8 sps:$4 sm:$0xff]   ;;  %v10280_v18 = vld [vmem:[%s11585_s19 + $0x694] ss:$8 sps:$4 sm:$0xff]  }
 0x292   : > { %v10283_v19 = vld [vmem:[%s11585_s19 + $0xe94] ss:$8 sps:$4 sm:$0xff]  }
 0x294   : > { %8152 = vmatpush1.bf16.msra.mxu1 %v10206_v22  ;;  %8576 = vmatpush1.bf16.msra.mxu0 %v10209_v23  ;;  %v10278_v22 = vld [vmem:[%s11585_s19 + $0x690] ss:$8 sps:$4 sm:$0xff]  }
 0x295   : > { %8153 = vmatprep.subr.bf16.mxu1 %v10214_v24  ;;  %8577 = vmatprep.subr.bf16.mxu0 %v10217_v25  ;;  %v10281_v23 = vld [vmem:[%s11585_s19 + $0xe90] ss:$8 sps:$4 sm:$0xff]   ;;  %v10286_v24 = vld [vmem:[%s11585_s19 + $0x6a4] ss:$8 sps:$4 sm:$0xff]  }
 0x296   : > { %v10289_v25 = vld [vmem:[%s11585_s19 + $0xea4] ss:$8 sps:$4 sm:$0xff]  }
 0x298   : > { %8154 = vmatpush1.bf16.msra.mxu1 %v10212_v26  ;;  %8578 = vmatpush1.bf16.msra.mxu0 %v10215_v27  ;;  %v10284_v26 = vld [vmem:[%s11585_s19 + $0x6a0] ss:$8 sps:$4 sm:$0xff]  }
 0x299   : > { %8155 = vmatprep.subr.bf16.mxu1 %v10220_v28  ;;  %8579 = vmatprep.subr.bf16.mxu0 %v10223_v29  ;;  %v10287_v27 = vld [vmem:[%s11585_s19 + $0xea0] ss:$8 sps:$4 sm:$0xff]   ;;  %v10292_v28 = vld [vmem:[%s11585_s19 + $0x6b4] ss:$8 sps:$4 sm:$0xff]  }
 0x29a   : > { %v10295_v29 = vld [vmem:[%s11585_s19 + $0xeb4] ss:$8 sps:$4 sm:$0xff]  }
 0x29c   : > { %8156 = vmatpush1.bf16.msra.mxu1 %v10218_v0  ;;  %8580 = vmatpush1.bf16.msra.mxu0 %v10221_v1  ;;  %v10290_v0 = vld [vmem:[%s11585_s19 + $0x6b0] ss:$8 sps:$4 sm:$0xff]  }
 0x29d   : > { %8178 = vmatprep.subr.bf16.mxu1 %v10226_v16  ;;  %8602 = vmatprep.subr.bf16.mxu0 %v10229_v17  ;;  %v10293_v1 = vld [vmem:[%s11585_s19 + $0xeb0] ss:$8 sps:$4 sm:$0xff]   ;;  %v10298_v16 = vld [vmem:[%s11585_s19 + $0x6c4] ss:$8 sps:$4 sm:$0xff]  }
 0x29e   : > { %v10301_v17 = vld [vmem:[%s11585_s19 + $0xec4] ss:$8 sps:$4 sm:$0xff]  }
 0x29f   : > { %8158 = vmatmul.mubr.bf16.vlgmr.msra.gmra.mrb[0].mxu1 %v8907_v6  ;;  %8582 = vmatmul.mubr.bf16.vlgmr.msra.gmra.mrb[0].mxu0 %v8923_v30  ;;  %v10299_v6 = vld [vmem:[%s11585_s19 + $0xec0] ss:$8 sps:$4 sm:$0xff]   ;;  %v10304_v30 = vld [vmem:[%s11585_s19 + $0x6d4] ss:$8 sps:$4 sm:$0xff]  }
 0x2a0   : > { %8179 = vmatpush1.bf16.msra.mxu1 %v10224_v20  ;;  %8603 = vmatpush1.bf16.msra.mxu0 %v10227_v21  ;;  %v10310_v20 = vld [vmem:[%s11585_s19 + $0x6e4] ss:$8 sps:$4 sm:$0xff]  }
 0x2a1   : > { %8180 = vmatprep.subr.bf16.mxu1 %v10232_v3  ;;  %8604 = vmatprep.subr.bf16.mxu0 %v10235_v2  ;;  %v10313_v21 = vld [vmem:[%s11585_s19 + $0xee4] ss:$8 sps:$4 sm:$0xff]   ;;  %v10308_v3 = vld [vmem:[%s11585_s19 + $0x6e0] ss:$8 sps:$4 sm:$0xff]  }
 0x2a2   : > { %8167 = vmatprep.mubr.bf16.mxu1 %v8940_v34  ;;  %8591 = vmatprep.mubr.bf16.mxu0 %v8956_v35  ;;  %v10311_v2 = vld [vmem:[%s11585_s19 + $0xee0] ss:$8 sps:$4 sm:$0xff]   ;;  %v10316_v34 = vld [vmem:[%s11585_s19 + $0x6f4] ss:$8 sps:$4 sm:$0xff]  }
 0x2a3   : > { %v10319_v35 = vld [vmem:[%s11585_s19 + $0xef4] ss:$8 sps:$4 sm:$0xff]  }
 0x2a4   : > { %8181 = vmatpush1.bf16.msra.mxu1 %v10230_v36  ;;  %8605 = vmatpush1.bf16.msra.mxu0 %v10233_v37  ;;  %v10314_v36 = vld [vmem:[%s11585_s19 + $0x6f0] ss:$8 sps:$4 sm:$0xff]  }
 0x2a5   : > { %8182 = vmatprep.subr.bf16.mxu1 %v10238_v38  ;;  %8606 = vmatprep.subr.bf16.mxu0 %v10241_v39  ;;  %v10317_v37 = vld [vmem:[%s11585_s19 + $0xef0] ss:$8 sps:$4 sm:$0xff]   ;;  %v10322_v38 = vld [vmem:[%s11585_s19 + $0x704] ss:$8 sps:$4 sm:$0xff]  }
 0x2a6   : > { %v10325_v39 = vld [vmem:[%s11585_s19 + $0xf04] ss:$8 sps:$4 sm:$0xff]  }
 0x2a7   : > { %8168 = vmatmul.mubr.bf16.gmra.mrb[4].mxu1 %v8939_v41  ;;  %8592 = vmatmul.mubr.bf16.gmra.mrb[4].mxu0 %v8955_v44  ;;  %v4430_v41 = vld [vmem:[%s12442_s0 + $0x130] sm:$0xff]  ;;  %v8909_v44 = vcombine.low %v12202_v40, %v12207_v45  ;;  %v10320_v40 = vld [vmem:[%s11585_s19 + $0x700] ss:$8 sps:$4 sm:$0xff]  }
 0x2a8   : > { %8183 = vmatpush1.bf16.msra.mxu1 %v10236_v50  ;;  %8607 = vmatpush1.bf16.msra.mxu0 %v10239_v51  ;;  %v8925_v50 = vcombine.low %v12212_v48, %v12217_v49  ;;  %v4446_v51 = vld [vmem:[%s12442_s0 + $0x1b0] sm:$0xff]  ;;  %v10323_v45 = vld [vmem:[%s11585_s19 + $0xf00] ss:$8 sps:$4 sm:$0xff]  }
 0x2a9   : > { %8184 = vmatprep.subr.bf16.mxu1 %v10244_v52  ;;  %8608 = vmatprep.subr.bf16.mxu0 %v10247_v42  ;;  %v4438_v52 = vld [vmem:[%s12442_s0 + $0x170] sm:$0xff] }
 0x2aa   : > { %8210 = vmatprep.mubr.bf16.mxu1 %v8910_v43  ;;  %8634 = vmatprep.mubr.bf16.mxu0 %v8926_v46  ;;  %v4454_v42 = vld [vmem:[%s12442_s0 + $0x1f0] sm:$0xff]  ;;  %v8942_v43 = vcombine.high %v4430_v41, %v4446_v51 }
 0x2ab   : > { %v10328_v48 = vld [vmem:[%s11585_s19 + $0x714] ss:$8 sps:$4 sm:$0xff]   ;;  %v8958_v46 = vcombine.high %v4438_v52, %v4454_v42 }
 0x2ac   : > { %8185 = vmatpush1.bf16.msra.mxu1 %v10242_v47  ;;  %8609 = vmatpush1.bf16.msra.mxu0 %v10245_v53  ;;  %v10331_v49 = vld [vmem:[%s11585_s19 + $0xf14] ss:$8 sps:$4 sm:$0xff]   ;;  %v10326_v47 = vld [vmem:[%s11585_s19 + $0x710] ss:$8 sps:$4 sm:$0xff]  }
 0x2ad   : > { %8186 = vmatprep.subr.bf16.mxu1 %v10250_v54  ;;  %8610 = vmatprep.subr.bf16.mxu0 %v10253_v55  ;;  %v10329_v53 = vld [vmem:[%s11585_s19 + $0xf10] ss:$8 sps:$4 sm:$0xff]   ;;  %v10334_v54 = vld [vmem:[%s11585_s19 + $0x724] ss:$8 sps:$4 sm:$0xff]  }
 0x2ae   : > { %v10337_v55 = vld [vmem:[%s11585_s19 + $0xf24] ss:$8 sps:$4 sm:$0xff]  }
 0x2b0   : > { %8187 = vmatpush1.bf16.msra.mxu1 %v10248_v56  ;;  %8611 = vmatpush1.bf16.msra.mxu0 %v10251_v57  ;;  %v12306_v56 = vld [vmem:[%s12442_s0 + $0x38] sm:$0xff]  ;;  %v8941_v57 = vcombine.low %v4430_v41, %v4446_v51  ;;  %v10392_v41 = vld [vmem:[%s11585_s19 + $0x7c0] ss:$8 sps:$4 sm:$0xff]  }
 0x2b1   : > { %8188 = vmatprep.subr.bf16.mxu1 %v10256_v60  ;;  %8612 = vmatprep.subr.bf16.mxu0 %v10259_v61  ;;  %v8957_v60 = vcombine.low %v4438_v52, %v4454_v42  ;;  %v12311_v61 = vld [vmem:[%s12442_s0 + $0xb8] sm:$0xff] }
 0x2b2   : > { %v10403_v51 = vld [vmem:[%s11585_s19 + $0xfd4] ss:$8 sps:$4 sm:$0xff]   ;;  %v10398_v52 = vld [vmem:[%s11585_s19 + $0x7d0] ss:$8 sps:$4 sm:$0xff]  }
 0x2b3   : > { %v10401_v42 = vld [vmem:[%s11585_s19 + $0xfd0] ss:$8 sps:$4 sm:$0xff]  }
 0x2b4   : > { %8189 = vmatpush1.bf16.msra.mxu1 %v10254_v4  ;;  %8613 = vmatpush1.bf16.msra.mxu0 %v10257_v7  ;;  %v12316_v4 = vld [vmem:[%s12442_s0 + $0x78] sm:$0xff] }
 0x2b5   : > { %8190 = vmatprep.subr.bf16.mxu1 %v10262_v8  ;;  %8614 = vmatprep.subr.bf16.mxu0 %v10265_v9  ;;  %v12321_v7 = vld [vmem:[%s12442_s0 + $0xf8] sm:$0xff]  ;;  %v10332_v8 = vld [vmem:[%s11585_s19 + $0x720] ss:$8 sps:$4 sm:$0xff]  }
 0x2b6   : > { %v10335_v9 = vld [vmem:[%s11585_s19 + $0xf20] ss:$8 sps:$4 sm:$0xff]  }
 0x2b8   : > { %8191 = vmatpush1.bf16.msra.mxu1 %v10260_v10  ;;  %8615 = vmatpush1.bf16.msra.mxu0 %v10263_v58  ;;  %v10340_v10 = vld [vmem:[%s11585_s19 + $0x734] ss:$8 sps:$4 sm:$0xff]  }
 0x2b9   : > { %8192 = vmatprep.subr.bf16.mxu1 %v10268_v59  ;;  %8616 = vmatprep.subr.bf16.mxu0 %v10271_v62  ;;  %v10343_v58 = vld [vmem:[%s11585_s19 + $0xf34] ss:$8 sps:$4 sm:$0xff]   ;;  %v8912_v59 = vcombine.high %v12306_v56, %v12311_v61  ;;  %v8928_v62 = vcombine.high %v12316_v4, %v12321_v7 }
 0x2bc   : > { %8193 = vmatpush1.bf16.msra.mxu1 %v10266_v63  ;;  %8617 = vmatpush1.bf16.msra.mxu0 %v10269_v11  ;;  %v10338_v63 = vld [vmem:[%s11585_s19 + $0x730] ss:$8 sps:$4 sm:$0xff]  }
 0x2bd   : > { %8194 = vmatprep.subr.bf16.mxu1 %v10274_v12  ;;  %8618 = vmatprep.subr.bf16.mxu0 %v10277_v13  ;;  %v10341_v11 = vld [vmem:[%s11585_s19 + $0xf30] ss:$8 sps:$4 sm:$0xff]   ;;  %v10346_v12 = vld [vmem:[%s11585_s19 + $0x744] ss:$8 sps:$4 sm:$0xff]  }
 0x2be   : > { %v10349_v13 = vld [vmem:[%s11585_s19 + $0xf44] ss:$8 sps:$4 sm:$0xff]  }
 0x2c0   : > { %8195 = vmatpush1.bf16.msra.mxu1 %v10272_v14  ;;  %8619 = vmatpush1.bf16.msra.mxu0 %v10275_v15  ;;  %v10344_v14 = vld [vmem:[%s11585_s19 + $0x740] ss:$8 sps:$4 sm:$0xff]  }
 0x2c1   : > { %8196 = vmatprep.subr.bf16.mxu1 %v10280_v18  ;;  %8620 = vmatprep.subr.bf16.mxu0 %v10283_v19  ;;  %v10347_v15 = vld [vmem:[%s11585_s19 + $0xf40] ss:$8 sps:$4 sm:$0xff]   ;;  %v10352_v18 = vld [vmem:[%s11585_s19 + $0x754] ss:$8 sps:$4 sm:$0xff]  }
 0x2c2   : > { %v10355_v19 = vld [vmem:[%s11585_s19 + $0xf54] ss:$8 sps:$4 sm:$0xff]  }
 0x2c4   : > { %8197 = vmatpush1.bf16.msra.mxu1 %v10278_v22  ;;  %8621 = vmatpush1.bf16.msra.mxu0 %v10281_v23  ;;  %v10350_v22 = vld [vmem:[%s11585_s19 + $0x750] ss:$8 sps:$4 sm:$0xff]  }
 0x2c5   : > { %8198 = vmatprep.subr.bf16.mxu1 %v10286_v24  ;;  %8622 = vmatprep.subr.bf16.mxu0 %v10289_v25  ;;  %v10353_v23 = vld [vmem:[%s11585_s19 + $0xf50] ss:$8 sps:$4 sm:$0xff]   ;;  %v10358_v24 = vld [vmem:[%s11585_s19 + $0x764] ss:$8 sps:$4 sm:$0xff]  }
 0x2c6   : > { %v10361_v25 = vld [vmem:[%s11585_s19 + $0xf64] ss:$8 sps:$4 sm:$0xff]  }
 0x2c8   : > { %8199 = vmatpush1.bf16.msra.mxu1 %v10284_v26  ;;  %8623 = vmatpush1.bf16.msra.mxu0 %v10287_v27  ;;  %v10356_v26 = vld [vmem:[%s11585_s19 + $0x760] ss:$8 sps:$4 sm:$0xff]  }
 0x2c9   : > { %8200 = vmatprep.subr.bf16.mxu1 %v10292_v28  ;;  %8624 = vmatprep.subr.bf16.mxu0 %v10295_v29  ;;  %v10359_v27 = vld [vmem:[%s11585_s19 + $0xf60] ss:$8 sps:$4 sm:$0xff]   ;;  %v10364_v28 = vld [vmem:[%s11585_s19 + $0x774] ss:$8 sps:$4 sm:$0xff]  }
 0x2ca   : > { %v10367_v29 = vld [vmem:[%s11585_s19 + $0xf74] ss:$8 sps:$4 sm:$0xff]  }
 0x2cc   : > { %8201 = vmatpush1.bf16.msra.mxu1 %v10290_v0  ;;  %8625 = vmatpush1.bf16.msra.mxu0 %v10293_v1  ;;  %v10362_v0 = vld [vmem:[%s11585_s19 + $0x770] ss:$8 sps:$4 sm:$0xff]  }
 0x2cd   : > { %8202 = vmatprep.subr.bf16.mxu1 %v10298_v16  ;;  %8626 = vmatprep.subr.bf16.mxu0 %v10301_v17  ;;  %v10365_v1 = vld [vmem:[%s11585_s19 + $0xf70] ss:$8 sps:$4 sm:$0xff]   ;;  %v10370_v16 = vld [vmem:[%s11585_s19 + $0x784] ss:$8 sps:$4 sm:$0xff]  }
 0x2ce   : > { %v10373_v17 = vld [vmem:[%s11585_s19 + $0xf84] ss:$8 sps:$4 sm:$0xff]  }
 0x2d0   : > { %8203 = vmatpush1.bf16.msra.mxu1 %v10296_v5  ;;  %8627 = vmatpush1.bf16.msra.mxu0 %v10299_v6  ;;  %v10368_v5 = vld [vmem:[%s11585_s19 + $0x780] ss:$8 sps:$4 sm:$0xff]  }
 0x2d1   : > { %8204 = vmatprep.subr.bf16.mxu1 %v10304_v30  ;;  %8628 = vmatprep.subr.bf16.mxu0 %v10307_v31  ;;  %v10371_v6 = vld [vmem:[%s11585_s19 + $0xf80] ss:$8 sps:$4 sm:$0xff]   ;;  %v10376_v30 = vld [vmem:[%s11585_s19 + $0x794] ss:$8 sps:$4 sm:$0xff]  }
 0x2d2   : > { %v10379_v31 = vld [vmem:[%s11585_s19 + $0xf94] ss:$8 sps:$4 sm:$0xff]  }
 0x2d4   : > { %8205 = vmatpush1.bf16.msra.mxu1 %v10302_v32  ;;  %8629 = vmatpush1.bf16.msra.mxu0 %v10305_v33  ;;  %v10374_v32 = vld [vmem:[%s11585_s19 + $0x790] ss:$8 sps:$4 sm:$0xff]  }
 0x2d5   : > { %8206 = vmatprep.subr.bf16.mxu1 %v10310_v20  ;;  %8630 = vmatprep.subr.bf16.mxu0 %v10313_v21  ;;  %v10377_v33 = vld [vmem:[%s11585_s19 + $0xf90] ss:$8 sps:$4 sm:$0xff]   ;;  %v10382_v20 = vld [vmem:[%s11585_s19 + $0x7a4] ss:$8 sps:$4 sm:$0xff]  }
 0x2d6   : > { %v10385_v21 = vld [vmem:[%s11585_s19 + $0xfa4] ss:$8 sps:$4 sm:$0xff]  }
 0x2d8   : > { %8207 = vmatpush1.bf16.msra.mxu1 %v10308_v3  ;;  %8631 = vmatpush1.bf16.msra.mxu0 %v10311_v2  ;;  %v10380_v3 = vld [vmem:[%s11585_s19 + $0x7a0] ss:$8 sps:$4 sm:$0xff]  }
 0x2d9   : > { %8208 = vmatprep.subr.bf16.mxu1 %v10316_v34  ;;  %8632 = vmatprep.subr.bf16.mxu0 %v10319_v35  ;;  %v10383_v2 = vld [vmem:[%s11585_s19 + $0xfa0] ss:$8 sps:$4 sm:$0xff]   ;;  %v10388_v34 = vld [vmem:[%s11585_s19 + $0x7b4] ss:$8 sps:$4 sm:$0xff]  }
 0x2da   : > { %v10391_v35 = vld [vmem:[%s11585_s19 + $0xfb4] ss:$8 sps:$4 sm:$0xff]  }
 0x2dc   : > { %8209 = vmatpush1.bf16.msra.mxu1 %v10314_v36  ;;  %8633 = vmatpush1.bf16.msra.mxu0 %v10317_v37  ;;  %v10386_v36 = vld [vmem:[%s11585_s19 + $0x7b0] ss:$8 sps:$4 sm:$0xff]  }
 0x2dd   : > { %8231 = vmatprep.subr.bf16.mxu1 %v10322_v38  ;;  %8655 = vmatprep.subr.bf16.mxu0 %v10325_v39  ;;  %v10389_v37 = vld [vmem:[%s11585_s19 + $0xfb0] ss:$8 sps:$4 sm:$0xff]   ;;  %v10394_v38 = vld [vmem:[%s11585_s19 + $0x7c4] ss:$8 sps:$4 sm:$0xff]  }
 0x2de   : > { %v10397_v39 = vld [vmem:[%s11585_s19 + $0xfc4] ss:$8 sps:$4 sm:$0xff]  }
 0x2df   : > { %8211 = vmatmul.mubr.bf16.vlgmr.msra.gmra.mrb[0].mxu1 %v8909_v44  ;;  %8635 = vmatmul.mubr.bf16.vlgmr.msra.gmra.mrb[0].mxu0 %v8925_v50  ;;  %v10395_v44 = vld [vmem:[%s11585_s19 + $0xfc0] ss:$8 sps:$4 sm:$0xff]   ;;  %v10400_v50 = vld [vmem:[%s11585_s19 + $0x7d4] ss:$8 sps:$4 sm:$0xff]  }
 0x2e0   : > { %8232 = vmatpush1.bf16.msra.mxu1 %v10320_v40  ;;  %8656 = vmatpush1.bf16.msra.mxu0 %v10323_v45  ;;  %v10406_v40 = vld [vmem:[%s11585_s19 + $0x7e4] ss:$8 sps:$4 sm:$0xff]  }
 0x2e1   : > { %8233 = vmatprep.subr.bf16.mxu1 %v10328_v48  ;;  %8657 = vmatprep.subr.bf16.mxu0 %v10331_v49  ;;  %v10409_v45 = vld [vmem:[%s11585_s19 + $0xfe4] ss:$8 sps:$4 sm:$0xff]   ;;  %v10404_v48 = vld [vmem:[%s11585_s19 + $0x7e0] ss:$8 sps:$4 sm:$0xff]  }
 0x2e2   : > { %8220 = vmatprep.mubr.bf16.mxu1 %v8942_v43  ;;  %8644 = vmatprep.mubr.bf16.mxu0 %v8958_v46  ;;  %v10407_v49 = vld [vmem:[%s11585_s19 + $0xfe0] ss:$8 sps:$4 sm:$0xff]   ;;  %v10412_v43 = vld [vmem:[%s11585_s19 + $0x7f4] ss:$8 sps:$4 sm:$0xff]  }
 0x2e3   : > { %v10415_v46 = vld [vmem:[%s11585_s19 + $0xff4] ss:$8 sps:$4 sm:$0xff]  }
 0x2e4   : > { %8234 = vmatpush1.bf16.msra.mxu1 %v10326_v47  ;;  %8658 = vmatpush1.bf16.msra.mxu0 %v10329_v53  ;;  %v10410_v47 = vld [vmem:[%s11585_s19 + $0x7f0] ss:$8 sps:$4 sm:$0xff]  }
 0x2e5   : > { %8235 = vmatprep.subr.bf16.mxu1 %v10334_v54  ;;  %8659 = vmatprep.subr.bf16.mxu0 %v10337_v55  ;;  %v10413_v53 = vld [vmem:[%s11585_s19 + $0xff0] ss:$8 sps:$4 sm:$0xff]   ;;  %s8896_s19 = sshll.u32 %s10446_s14, 1 }
 0x2e6   : > { %v4431_v54 = vld [vmem:[%s12442_s0 + $0x138] sm:$0xff]  ;;  %p4386_p11 = scmp.lt.s32.totalorder %s8896_s19, 3 }
 0x2e7   : > { %8221 = vmatmul.mubr.bf16.gmra.mrb[4].mxu1 %v8941_v57  ;;  %8645 = vmatmul.mubr.bf16.gmra.mrb[4].mxu0 %v8957_v60  ;;  %v4447_v55 = vld [vmem:[%s12442_s0 + $0x1b8] sm:$0xff] }
 0x2e8   : > { %8236 = vmatpush1.bf16.msra.mxu1 %v10332_v8  ;;  %8660 = vmatpush1.bf16.msra.mxu0 %v10335_v9  ;;  %v4439_v57 = vld [vmem:[%s12442_s0 + $0x178] sm:$0xff]  ;;  %v8911_v8 = vcombine.low %v12306_v56, %v12311_v61  ;;  %v8927_v9 = vcombine.low %v12316_v4, %v12321_v7  ;;  %s12454_s19 = smov (!%p4386_p11, %s8896_s19), 3 }
 0x2e9   : > { %8237 = vmatprep.subr.bf16.mxu1 %v10340_v10  ;;  %8661 = vmatprep.subr.bf16.mxu0 %v10343_v58  ;;  %v4455_v60 = vld [vmem:[%s12442_s0 + $0x1f8] sm:$0xff]  ;;  %v8944_v10 = vcombine.high %v4431_v54, %v4447_v55  ;;  %s4388_s25 = scalar_lea.vmem %s12444_s2, %s12454_s19 }
 0x2ea   : > { %8263 = vmatprep.mubr.bf16.mxu1 %v8912_v59  ;;  %8687 = vmatprep.mubr.bf16.mxu0 %v8928_v62  ;;  %v8960_v58 = vcombine.high %v4439_v57, %v4455_v60  ;;  %v8943_v59 = vcombine.low %v4431_v54, %v4447_v55  ;;  %v8959_v62 = vcombine.low %v4439_v57, %v4455_v60  ;;  %v4968_v4 = vld [vmem:[%s4388_s25] sm:$0x3] }
 0x2ec   : > { %8238 = vmatpush1.bf16.msra.mxu1 %v10338_v63  ;;  %8662 = vmatpush1.bf16.msra.mxu0 %v10341_v11  ;;  %v4970_v63 = vlaneseq }
 0x2ed   : > { %8239 = vmatprep.subr.bf16.mxu1 %v10346_v12  ;;  %8663 = vmatprep.subr.bf16.mxu0 %v10349_v13 }
 0x2ee   : > { %v4971_v56 = vshrl.u32 %v4970_v63, 7 }
 0x2f0   : > { %8240 = vmatpush1.bf16.msra.mxu1 %v10344_v14  ;;  %8664 = vmatpush1.bf16.msra.mxu0 %v10347_v15  ;;  %v4972_v61 = vsub.s32 0, %v4971_v56  ;;  %v4976_v7 = vsub.s32 1, %v4971_v56 }
 0x2f1   : > { %8241 = vmatprep.subr.bf16.mxu1 %v10352_v18  ;;  %8665 = vmatprep.subr.bf16.mxu0 %v10355_v19 }
 0x2f2   : > { %v4973_v11 = vrot.slane %v4968_v4, %v4972_v61  ;;  %v4977_v12 = vrot.slane %v4968_v4, %v4976_v7 }
 0x2f4   : > { %8242 = vmatpush1.bf16.msra.mxu1 %v10350_v22  ;;  %8666 = vmatpush1.bf16.msra.mxu0 %v10353_v23 }
 0x2f5   : > { %8243 = vmatprep.subr.bf16.mxu1 %v10358_v24  ;;  %8667 = vmatprep.subr.bf16.mxu0 %v10361_v25 }
 0x2f8   : > { %8244 = vmatpush1.bf16.msra.mxu1 %v10356_v26  ;;  %8668 = vmatpush1.bf16.msra.mxu0 %v10359_v27 }
 0x2f9   : > { %8245 = vmatprep.subr.bf16.mxu1 %v10364_v28  ;;  %8669 = vmatprep.subr.bf16.mxu0 %v10367_v29 }
 0x2fc   : > { %8246 = vmatpush1.bf16.msra.mxu1 %v10362_v0  ;;  %8670 = vmatpush1.bf16.msra.mxu0 %v10365_v1 }
 0x2fd   : > { %8247 = vmatprep.subr.bf16.mxu1 %v10370_v16  ;;  %8671 = vmatprep.subr.bf16.mxu0 %v10373_v17 }
 0x300   : > { %8248 = vmatpush1.bf16.msra.mxu1 %v10368_v5  ;;  %8672 = vmatpush1.bf16.msra.mxu0 %v10371_v6 }
 0x301   : > { %8249 = vmatprep.subr.bf16.mxu1 %v10376_v30  ;;  %8673 = vmatprep.subr.bf16.mxu0 %v10379_v31 }
 0x304   : > { %8250 = vmatpush1.bf16.msra.mxu1 %v10374_v32  ;;  %8674 = vmatpush1.bf16.msra.mxu0 %v10377_v33 }
 0x305   : > { %8251 = vmatprep.subr.bf16.mxu1 %v10382_v20  ;;  %8675 = vmatprep.subr.bf16.mxu0 %v10385_v21 }
 0x308   : > { %8252 = vmatpush1.bf16.msra.mxu1 %v10380_v3  ;;  %8676 = vmatpush1.bf16.msra.mxu0 %v10383_v2 }
 0x309   : > { %8253 = vmatprep.subr.bf16.mxu1 %v10388_v34  ;;  %8677 = vmatprep.subr.bf16.mxu0 %v10391_v35 }
 0x30c   : > { %8254 = vmatpush1.bf16.msra.mxu1 %v10386_v36  ;;  %8678 = vmatpush1.bf16.msra.mxu0 %v10389_v37 }
 0x30d   : > { %8255 = vmatprep.subr.bf16.mxu1 %v10394_v38  ;;  %8679 = vmatprep.subr.bf16.mxu0 %v10397_v39 }
 0x310   : > { %8256 = vmatpush1.bf16.msra.mxu1 %v10392_v41  ;;  %8680 = vmatpush1.bf16.msra.mxu0 %v10395_v44 }
 0x311   : > { %8257 = vmatprep.subr.bf16.mxu1 %v10400_v50  ;;  %8681 = vmatprep.subr.bf16.mxu0 %v10403_v51 }
 0x314   : > { %8258 = vmatpush1.bf16.msra.mxu1 %v10398_v52  ;;  %8682 = vmatpush1.bf16.msra.mxu0 %v10401_v42 }
 0x315   : > { %8259 = vmatprep.subr.bf16.mxu1 %v10406_v40  ;;  %8683 = vmatprep.subr.bf16.mxu0 %v10409_v45 }
 0x318   : > { %8260 = vmatpush1.bf16.msra.mxu1 %v10404_v48  ;;  %8684 = vmatpush1.bf16.msra.mxu0 %v10407_v49 }
 0x319   : > { %8261 = vmatprep.subr.bf16.mxu1 %v10412_v43  ;;  %8685 = vmatprep.subr.bf16.mxu0 %v10415_v46 }
 0x31c   : > { %8262 = vmatpush1.bf16.msra.mxu1 %v10410_v47  ;;  %8686 = vmatpush1.bf16.msra.mxu0 %v10413_v53 }
 0x31f   : > { %8264 = vmatmul.mubr.bf16.vlgmr.msra.gmra.mrb[0].mxu1 %v8911_v8  ;;  %8688 = vmatmul.mubr.bf16.vlgmr.msra.gmra.mrb[0].mxu0 %v8927_v9 }
 0x320   : > { %8273 = vmatprep.mubr.bf16.mxu1 %v8944_v10  ;;  %8697 = vmatprep.mubr.bf16.mxu0 %v8960_v58 }
 0x327   : > { %8274 = vmatmul.mubr.bf16.gmra.mrb[4].mxu1 %v8943_v59  ;;  %8698 = vmatmul.mubr.bf16.gmra.mrb[4].mxu0 %v8959_v62 }
 0x3f2   : > { %v8265_v13 = vpop.f32.mrb[0].mxu1  ;;  %v8689_v14 = vpop.f32.mrb[0].mxu0 }
 0x3f3   : > { %v9480_v15 = vadd.f32 %v8265_v13, %v4973_v11  ;;  %v8267_v18 = vpop.f32.mrb[1].mxu1  ;;  %v8691_v19 = vpop.f32.mrb[1].mxu0 }
 0x3f4   : > { %v9482_v22 = vadd.f32 %v8267_v18, %v4977_v12  ;;  %v8269_v23 = vpop.f32.mrb[2].mxu1  ;;  %v8693_v24 = vpop.f32.mrb[2].mxu0 }
 0x3f5   : > { %v9481_v25 = vadd.f32 %v9480_v15, %v8689_v14  ;;  %v9484_v26 = vadd.f32 %v8269_v23, %v4973_v11  ;;  %v8271_v27 = vpop.f32.mrb[3].mxu1  ;;  %v8695_v28 = vpop.f32.mrb[3].mxu0 }
 0x3f6   : > { %v9483_v29 = vadd.f32 %v9482_v22, %v8691_v19  ;;  %v9486_v0 = vadd.f32 %v8271_v27, %v4977_v12 }
 0x3f7   : > { %vm8708_vm0 = vcmp.gt.f32.partialorder %v9481_v25, 0.0  ;;  %v8716_v1 = vmul.f32 0.2, %v9481_v25  ;;  %v9485_v16 = vadd.f32 %v9484_v26, %v8693_v24 }
 0x3f8   : > { %vm8709_vm1 = vcmp.gt.f32.partialorder %v9483_v29, 0.0  ;;  %v8717_v17 = vmul.f32 0.2, %v9483_v29  ;;  %v9487_v5 = vadd.f32 %v9486_v0, %v8695_v28 }
 0x3f9   : > { %v8724_v6 = vsel %vm8708_vm0, %v9481_v25, %v8716_v1  ;;  %vm8710_vm2 = vcmp.gt.f32.partialorder %v9485_v16, 0.0  ;;  %v8718_v30 = vmul.f32 0.2, %v9485_v16 }
 0x3fa   : > { %8732 = vst [vmem:[%s12403_s12] sm:$0xff] %v8724_v6  ;;  %v8725_v31 = vsel %vm8709_vm1, %v9483_v29, %v8717_v17  ;;  %vm8711_vm3 = vcmp.gt.f32.partialorder %v9487_v5, 0.0  ;;  %v8719_v32 = vmul.f32 0.2, %v9487_v5  ;;  %v8275_v33 = vpop.f32.mrb[4].mxu1  ;;  %v8699_v20 = vpop.f32.mrb[4].mxu0 }
 0x3fb   : > { %8733 = vst [vmem:[%s12403_s12 + $0x8] sm:$0xff] %v8725_v31  ;;  %v8726_v21 = vsel %vm8710_vm2, %v9485_v16, %v8718_v30  ;;  %v9488_v3 = vadd.f32 %v8275_v33, %v4973_v11  ;;  %v8277_v2 = vpop.f32.mrb[5].mxu1  ;;  %v8701_v34 = vpop.f32.mrb[5].mxu0 }
 0x3fc   : > { %8734 = vst [vmem:[%s12403_s12 + $0x10] sm:$0xff] %v8726_v21  ;;  %v8727_v35 = vsel %vm8711_vm3, %v9487_v5, %v8719_v32  ;;  %v9490_v36 = vadd.f32 %v8277_v2, %v4977_v12  ;;  %v8279_v37 = vpop.f32.mrb[6].mxu1  ;;  %v8703_v38 = vpop.f32.mrb[6].mxu0 }
 0x3fd   : > { %8735 = vst [vmem:[%s12403_s12 + $0x18] sm:$0xff] %v8727_v35  ;;  %v9489_v39 = vadd.f32 %v9488_v3, %v8699_v20  ;;  %v9492_v41 = vadd.f32 %v8279_v37, %v4973_v11  ;;  %v8281_v44 = vpop.f32.mrb[7].mxu1  ;;  %v8705_v50 = vpop.f32.mrb[7].mxu0 }
 0x3fe   : > { %v9491_v51 = vadd.f32 %v9490_v36, %v8701_v34  ;;  %v9494_v52 = vadd.f32 %v8281_v44, %v4977_v12 }
 0x3ff   : > { %vm8712_vm4 = vcmp.gt.f32.partialorder %v9489_v39, 0.0  ;;  %v8720_v42 = vmul.f32 0.2, %v9489_v39  ;;  %v9493_v40 = vadd.f32 %v9492_v41, %v8703_v38  ;;  %8746 = sbr.rel (!%p10511_p6) target bundleno = 1038 (0x40e), region = 88 }
 0x400   : > { %vm8713_vm5 = vcmp.gt.f32.partialorder %v9491_v51, 0.0  ;;  %v8721_v45 = vmul.f32 0.2, %v9491_v51  ;;  %v9495_v48 = vadd.f32 %v9494_v52, %v8705_v50 }
 0x401   : > { %v8728_v49 = vsel %vm8712_vm4, %v9489_v39, %v8720_v42  ;;  %vm8714_vm6 = vcmp.gt.f32.partialorder %v9493_v40, 0.0  ;;  %v8722_v43 = vmul.f32 0.2, %v9493_v40  ;;  %v8765_v55 = vld [vmem:[%s12403_s12] sm:$0xff] (%p10511_p6) }
 0x402   : > { %8736 = vst [vmem:[%s12403_s12 + $0x20] sm:$0xff] %v8728_v49  ;;  %v8729_v46 = vsel %vm8713_vm5, %v9491_v51, %v8721_v45  ;;  %vm8715_vm7 = vcmp.gt.f32.partialorder %v9495_v48, 0.0  ;;  %v8723_v47 = vmul.f32 0.2, %v9495_v48  ;;  %v8767_v57 = vld [vmem:[%s12403_s12 + $0x8] sm:$0xff] (%p10511_p6)  ;;  %8766 = vst [vmem:[%s8752_s29] sm:$0xff] (%p10511_p6), %v8765_v55 }
 0x403   : > { %8737 = vst [vmem:[%s12403_s12 + $0x28] sm:$0xff] %v8729_v46  ;;  %v8730_v53 = vsel %vm8714_vm6, %v9493_v40, %v8722_v43  ;;  %v8769_v60 = vld [vmem:[%s12403_s12 + $0x10] sm:$0xff] (%p10511_p6)  ;;  %8768 = vst [vmem:[%s8752_s29 + $0x8] sm:$0xff] (%p10511_p6), %v8767_v57 }
 0x404   : > { %8738 = vst [vmem:[%s12403_s12 + $0x30] sm:$0xff] %v8730_v53  ;;  %v8731_v54 = vsel %vm8715_vm7, %v9495_v48, %v8723_v47  ;;  %v8771_v8 = vld [vmem:[%s12403_s12 + $0x18] sm:$0xff] (%p10511_p6)  ;;  %8770 = vst [vmem:[%s8752_s29 + $0x20] sm:$0xff] (%p10511_p6), %v8769_v60 }
 0x405   : > { %8739 = vst [vmem:[%s12403_s12 + $0x38] sm:$0xff] %v8731_v54  ;;  %8772 = vst [vmem:[%s8752_s29 + $0x28] sm:$0xff] (%p10511_p6), %v8771_v8 }
 0x409   : > { %v8773_v9 = vld [vmem:[%s12403_s12 + $0x20] sm:$0xff] }
 0x40a   : > { %v8775_v10 = vld [vmem:[%s12403_s12 + $0x28] sm:$0xff]  ;;  %8774 = vst [vmem:[%s8752_s29 + $0x40] sm:$0xff] %v8773_v9 }
 0x40b   : > { %8776 = vst [vmem:[%s8752_s29 + $0x48] sm:$0xff] %v8775_v10  ;;  %v8777_v58 = vld [vmem:[%s12403_s12 + $0x30] sm:$0xff] }
 0x40c   : > { %v8779_v59 = vld [vmem:[%s12403_s12 + $0x38] sm:$0xff]  ;;  %8778 = vst [vmem:[%s8752_s29 + $0x60] sm:$0xff] %v8777_v58 }
 0x40d   : > { %8780 = vst [vmem:[%s8752_s29 + $0x68] sm:$0xff] %v8779_v59 }
 0x40e PF: > { %s13_s16 = sadd.s32 1, %s10454_s16   ;;  %s12447_s12 = smov %s10442_s13 }
 0x40f   : > { %p10_p12 = scmp.ge.s32.totalorder %s13_s16, 4   ;;  %s12448_s13 = smov %s10516_s22 }
 0x410   : > { %s12449_s14 = smov %s10450_s15  ;;  %s12450_s15 = smov %s12452_s17 }
 0x411   :  { %12 = sbr.rel (!%p10_p12) target bundleno = 3 (0x3), region = 154 }

// kernel: discriminator_forward.9
= control target key start
LH: loop header
LB: loop body
LE: loop exit
PB: predicated region body
PF: predicated region fallthrough
CT: control target
= control target key end

     0   :  { %s9418_s1 = inlined_call_operand.vmem [shape: bf16[8192,128], index: 1, kind: input, shape index: {}]   ;;  %s9419_s0 = inlined_call_operand.vmem [shape: bf16[16,8192], index: 0, kind: input, shape index: {}]   ;;  %s9420_s2 = inlined_call_operand.vmem [shape: f32[1,128], index: 2, kind: input, shape index: {}]   ;;  %s9421_s3 = inlined_call_operand.vmem [shape: f32[16,128], index: 3, kind: output, shape index: {}]  }
   0x1   :  { %v7101_v0 = vld [vmem:[%s9418_s1 + $0x40] sm:$0xff]   ;;  %v7105_v4 = vld [vmem:[%s9418_s1 + $0x48] sm:$0xff]   ;;  %v7109_v8 = vld [vmem:[%s9418_s1 + $0x50] sm:$0xff]  }
   0x2   :  { %v7102_v1 = vld [vmem:[%s9418_s1 + $0xc0] sm:$0xff]   ;;  %6397 = vmatprep.subr.bf16.mxu0 %v7101_v0  ;;  %v7106_v5 = vld [vmem:[%s9418_s1 + $0xc8] sm:$0xff]   ;;  %v7110_v9 = vld [vmem:[%s9418_s1 + $0xd0] sm:$0xff]  }
   0x3   :  { %v7103_v2 = vld [vmem:[%s9418_s1] sm:$0xff]   ;;  %6419 = vmatprep.subr.bf16.mxu1 %v7102_v1  ;;  %v7107_v6 = vld [vmem:[%s9418_s1 + $0x8] sm:$0xff]   ;;  %v7111_v10 = vld [vmem:[%s9418_s1 + $0x10] sm:$0xff]  }
   0x4   :  { %v7104_v3 = vld [vmem:[%s9418_s1 + $0x80] sm:$0xff]   ;;  %6398 = vmatpush3.bf16.msra.mxu0 %v7103_v2  ;;  %v7108_v7 = vld [vmem:[%s9418_s1 + $0x88] sm:$0xff]   ;;  %v7112_v11 = vld [vmem:[%s9418_s1 + $0x90] sm:$0xff]  }
   0x5   :  { %6420 = vmatpush3.bf16.msra.mxu1 %v7104_v3  ;;  %6399 = vmatprep.subr.bf16.mxu0 %v7105_v4  ;;  %v7113_v12 = vld [vmem:[%s9418_s1 + $0x58] sm:$0xff]   ;;  %v7117_v16 = vld [vmem:[%s9418_s1 + $0x60] sm:$0xff]   ;;  %v7121_v20 = vld [vmem:[%s9418_s1 + $0x68] sm:$0xff]  }
   0x6   :  { %6421 = vmatprep.subr.bf16.mxu1 %v7106_v5  ;;  %v7114_v13 = vld [vmem:[%s9418_s1 + $0xd8] sm:$0xff]   ;;  %v7118_v17 = vld [vmem:[%s9418_s1 + $0xe0] sm:$0xff]   ;;  %v7122_v21 = vld [vmem:[%s9418_s1 + $0xe8] sm:$0xff]  }
   0x7   :  { %v7115_v14 = vld [vmem:[%s9418_s1 + $0x18] sm:$0xff]   ;;  %v7119_v18 = vld [vmem:[%s9418_s1 + $0x20] sm:$0xff]   ;;  %v7123_v22 = vld [vmem:[%s9418_s1 + $0x28] sm:$0xff]  }
   0x8   :  { %6400 = vmatpush3.bf16.msra.mxu0 %v7107_v6  ;;  %v7116_v15 = vld [vmem:[%s9418_s1 + $0x98] sm:$0xff]   ;;  %v7120_v19 = vld [vmem:[%s9418_s1 + $0xa0] sm:$0xff]   ;;  %v7124_v23 = vld [vmem:[%s9418_s1 + $0xa8] sm:$0xff]  }
   0x9   :  { %6422 = vmatpush3.bf16.msra.mxu1 %v7108_v7  ;;  %6401 = vmatprep.subr.bf16.mxu0 %v7109_v8  ;;  %v7125_v24 = vld [vmem:[%s9418_s1 + $0x70] sm:$0xff]   ;;  %v7129_v28 = vld [vmem:[%s9418_s1 + $0x78] sm:$0xff]   ;;  %v15_v32 = vld [vmem:[%s9419_s0] sm:$0xff] }
   0xa   :  { %6423 = vmatprep.subr.bf16.mxu1 %v7110_v9  ;;  %v7126_v25 = vld [vmem:[%s9418_s1 + $0xf0] sm:$0xff]   ;;  %v7130_v29 = vld [vmem:[%s9418_s1 + $0xf8] sm:$0xff]   ;;  %v47_v33 = vld [vmem:[%s9419_s0 + $0x100] sm:$0xff] }
   0xb   :  { %v7127_v26 = vld [vmem:[%s9418_s1 + $0x30] sm:$0xff]   ;;  %v7131_v30 = vld [vmem:[%s9418_s1 + $0x38] sm:$0xff]   ;;  %v16_v34 = vld [vmem:[%s9419_s0 + $0x8] sm:$0xff]  ;;  %v5821_v35 = vcombine.low %v15_v32, %v47_v33  ;;  %v5822_v36 = vcombine.high %v15_v32, %v47_v33 }
   0xc   :  { %6402 = vmatpush3.bf16.msra.mxu0 %v7111_v10  ;;  %v7128_v27 = vld [vmem:[%s9418_s1 + $0xb0] sm:$0xff]   ;;  %v7132_v31 = vld [vmem:[%s9418_s1 + $0xb8] sm:$0xff]   ;;  %v48_v37 = vld [vmem:[%s9419_s0 + $0x108] sm:$0xff] }
   0xd   :  { %6424 = vmatpush3.bf16.msra.mxu1 %v7112_v11  ;;  %6403 = vmatprep.subr.bf16.mxu0 %v7113_v12  ;;  %v5823_v38 = vcombine.low %v16_v34, %v48_v37  ;;  %v5824_v39 = vcombine.high %v16_v34, %v48_v37  ;;  %v7133_v40 = vld [vmem:[%s9418_s1 + $0x140] sm:$0xff]   ;;  %v7137_v44 = vld [vmem:[%s9418_s1 + $0x148] sm:$0xff]   ;;  %v7141_v48 = vld [vmem:[%s9418_s1 + $0x150] sm:$0xff]  }
   0xe   :  { %6425 = vmatprep.subr.bf16.mxu1 %v7114_v13  ;;  %4534 = vmatprep.mubr.bf16.mxu0 %v5822_v36  ;;  %v7134_v41 = vld [vmem:[%s9418_s1 + $0x1c0] sm:$0xff]   ;;  %v7138_v45 = vld [vmem:[%s9418_s1 + $0x1c8] sm:$0xff]   ;;  %v7142_v49 = vld [vmem:[%s9418_s1 + $0x1d0] sm:$0xff]  }
   0xf   :  { %4575 = vmatprep.mubr.bf16.mxu1 %v5824_v39  ;;  %v7135_v42 = vld [vmem:[%s9418_s1 + $0x100] sm:$0xff]   ;;  %v7139_v46 = vld [vmem:[%s9418_s1 + $0x108] sm:$0xff]   ;;  %v7143_v50 = vld [vmem:[%s9418_s1 + $0x110] sm:$0xff]  }
  0x10   :  { %6404 = vmatpush3.bf16.msra.mxu0 %v7115_v14  ;;  %v7136_v43 = vld [vmem:[%s9418_s1 + $0x180] sm:$0xff]   ;;  %v7140_v47 = vld [vmem:[%s9418_s1 + $0x188] sm:$0xff]   ;;  %v7144_v51 = vld [vmem:[%s9418_s1 + $0x190] sm:$0xff]  }
  0x11   :  { %6426 = vmatpush3.bf16.msra.mxu1 %v7116_v15  ;;  %6405 = vmatprep.subr.bf16.mxu0 %v7117_v16  ;;  %v7145_v52 = vld [vmem:[%s9418_s1 + $0x158] sm:$0xff]   ;;  %v7149_v56 = vld [vmem:[%s9418_s1 + $0x160] sm:$0xff]   ;;  %v7153_v60 = vld [vmem:[%s9418_s1 + $0x168] sm:$0xff]  }
  0x12   :  { %6427 = vmatprep.subr.bf16.mxu1 %v7118_v17  ;;  %v7146_v53 = vld [vmem:[%s9418_s1 + $0x1d8] sm:$0xff]   ;;  %v7150_v57 = vld [vmem:[%s9418_s1 + $0x1e0] sm:$0xff]   ;;  %v7154_v61 = vld [vmem:[%s9418_s1 + $0x1e8] sm:$0xff]  }
  0x13   :  { %v7147_v54 = vld [vmem:[%s9418_s1 + $0x118] sm:$0xff]   ;;  %v7151_v58 = vld [vmem:[%s9418_s1 + $0x120] sm:$0xff]   ;;  %v7155_v62 = vld [vmem:[%s9418_s1 + $0x128] sm:$0xff]  }
  0x14   :  { %6406 = vmatpush3.bf16.msra.mxu0 %v7119_v18  ;;  %v7148_v55 = vld [vmem:[%s9418_s1 + $0x198] sm:$0xff]   ;;  %v7152_v59 = vld [vmem:[%s9418_s1 + $0x1a0] sm:$0xff]   ;;  %v7156_v63 = vld [vmem:[%s9418_s1 + $0x1a8] sm:$0xff]  }
  0x15   :  { %6428 = vmatpush3.bf16.msra.mxu1 %v7120_v19  ;;  %6407 = vmatprep.subr.bf16.mxu0 %v7121_v20  ;;  %v7157_v0 = vld [vmem:[%s9418_s1 + $0x170] sm:$0xff]   ;;  %v7161_v4 = vld [vmem:[%s9418_s1 + $0x178] sm:$0xff]   ;;  %v7165_v16 = vld [vmem:[%s9418_s1 + $0x240] sm:$0xff]  }
  0x16   :  { %6429 = vmatprep.subr.bf16.mxu1 %v7122_v21  ;;  %v7158_v1 = vld [vmem:[%s9418_s1 + $0x1f0] sm:$0xff]   ;;  %v7162_v5 = vld [vmem:[%s9418_s1 + $0x1f8] sm:$0xff]   ;;  %v7166_v17 = vld [vmem:[%s9418_s1 + $0x2c0] sm:$0xff]  }
  0x17   :  { %v7159_v2 = vld [vmem:[%s9418_s1 + $0x130] sm:$0xff]   ;;  %v7163_v6 = vld [vmem:[%s9418_s1 + $0x138] sm:$0xff]   ;;  %v7167_v18 = vld [vmem:[%s9418_s1 + $0x200] sm:$0xff]  }
  0x18   :  { %6408 = vmatpush3.bf16.msra.mxu0 %v7123_v22  ;;  %v7160_v3 = vld [vmem:[%s9418_s1 + $0x1b0] sm:$0xff]   ;;  %v7164_v7 = vld [vmem:[%s9418_s1 + $0x1b8] sm:$0xff]   ;;  %v7168_v19 = vld [vmem:[%s9418_s1 + $0x280] sm:$0xff]  }
  0x19   :  { %6430 = vmatpush3.bf16.msra.mxu1 %v7124_v23  ;;  %6409 = vmatprep.subr.bf16.mxu0 %v7125_v24  ;;  %v17_v8 = vld [vmem:[%s9419_s0 + $0x10] sm:$0xff]  ;;  %v18_v12 = vld [vmem:[%s9419_s0 + $0x18] sm:$0xff]  ;;  %v7169_v20 = vld [vmem:[%s9418_s1 + $0x248] sm:$0xff]  }
  0x1a   :  { %6431 = vmatprep.subr.bf16.mxu1 %v7126_v25  ;;  %v49_v9 = vld [vmem:[%s9419_s0 + $0x110] sm:$0xff]  ;;  %v50_v13 = vld [vmem:[%s9419_s0 + $0x118] sm:$0xff]  ;;  %v7170_v21 = vld [vmem:[%s9418_s1 + $0x2c8] sm:$0xff]  }
  0x1b   :  { %v5825_v10 = vcombine.low %v17_v8, %v49_v9  ;;  %v5826_v11 = vcombine.high %v17_v8, %v49_v9  ;;  %v5827_v14 = vcombine.low %v18_v12, %v50_v13  ;;  %v5828_v15 = vcombine.high %v18_v12, %v50_v13  ;;  %v7171_v22 = vld [vmem:[%s9418_s1 + $0x208] sm:$0xff]   ;;  %v7173_v24 = vld [vmem:[%s9418_s1 + $0x250] sm:$0xff]   ;;  %v7181_v32 = vld [vmem:[%s9418_s1 + $0x260] sm:$0xff]  }
  0x1c   :  { %6410 = vmatpush3.bf16.msra.mxu0 %v7127_v26  ;;  %v7172_v23 = vld [vmem:[%s9418_s1 + $0x288] sm:$0xff]   ;;  %v7174_v25 = vld [vmem:[%s9418_s1 + $0x2d0] sm:$0xff]   ;;  %v7182_v33 = vld [vmem:[%s9418_s1 + $0x2e0] sm:$0xff]  }
  0x1d   :  { %6432 = vmatpush3.bf16.msra.mxu1 %v7128_v27  ;;  %6411 = vmatprep.subr.bf16.mxu0 %v7129_v28  ;;  %v7175_v26 = vld [vmem:[%s9418_s1 + $0x210] sm:$0xff]   ;;  %v7177_v28 = vld [vmem:[%s9418_s1 + $0x258] sm:$0xff]   ;;  %v7183_v34 = vld [vmem:[%s9418_s1 + $0x220] sm:$0xff]  }
  0x1e   :  { %6433 = vmatprep.subr.bf16.mxu1 %v7130_v29  ;;  %v7176_v27 = vld [vmem:[%s9418_s1 + $0x290] sm:$0xff]   ;;  %v7178_v29 = vld [vmem:[%s9418_s1 + $0x2d8] sm:$0xff]   ;;  %v7185_v36 = vld [vmem:[%s9418_s1 + $0x268] sm:$0xff]  }
  0x1f   :  { %v7186_v37 = vld [vmem:[%s9418_s1 + $0x2e8] sm:$0xff]   ;;  %v7213_v8 = vld [vmem:[%s9418_s1 + $0x360] sm:$0xff]  }
  0x20   :  { %6412 = vmatpush3.bf16.msra.mxu0 %v7131_v30  ;;  %v7179_v30 = vld [vmem:[%s9418_s1 + $0x218] sm:$0xff]   ;;  %v7188_v39 = vld [vmem:[%s9418_s1 + $0x2a8] sm:$0xff]   ;;  %v7214_v9 = vld [vmem:[%s9418_s1 + $0x3e0] sm:$0xff]  }
  0x21   :  { %6434 = vmatpush3.bf16.msra.mxu1 %v7132_v31  ;;  %6441 = vmatprep.subr.bf16.mxu0 %v7133_v40  ;;  %v7180_v31 = vld [vmem:[%s9418_s1 + $0x298] sm:$0xff]   ;;  %v7189_v40 = vld [vmem:[%s9418_s1 + $0x270] sm:$0xff]   ;;  %v7217_v12 = vld [vmem:[%s9418_s1 + $0x368] sm:$0xff]  }
  0x22   :  { %6463 = vmatprep.subr.bf16.mxu1 %v7134_v41  ;;  %v7190_v41 = vld [vmem:[%s9418_s1 + $0x2f0] sm:$0xff]   ;;  %v7218_v13 = vld [vmem:[%s9418_s1 + $0x3e8] sm:$0xff]  }
  0x23   :  { %4535 = vmatmul.mubr.bf16.vlgmr.msra.gmra.mrb[0].mxu0 %v5821_v35  ;;  %v7184_v35 = vld [vmem:[%s9418_s1 + $0x2a0] sm:$0xff]  }
  0x24   :  { %4576 = vmatmul.mubr.bf16.vlgmr.msra.gmra.mrb[0].mxu1 %v5823_v38  ;;  %6442 = vmatpush3.bf16.msra.mxu0 %v7135_v42  ;;  %v7187_v38 = vld [vmem:[%s9418_s1 + $0x228] sm:$0xff]   ;;  %v7191_v42 = vld [vmem:[%s9418_s1 + $0x230] sm:$0xff]  }
  0x25   :  { %6464 = vmatpush3.bf16.msra.mxu1 %v7136_v43  ;;  %6443 = vmatprep.subr.bf16.mxu0 %v7137_v44  ;;  %v7192_v43 = vld [vmem:[%s9418_s1 + $0x2b0] sm:$0xff]   ;;  %v7193_v44 = vld [vmem:[%s9418_s1 + $0x278] sm:$0xff]  }
  0x26   :  { %6465 = vmatprep.subr.bf16.mxu1 %v7138_v45  ;;  %4616 = vmatprep.mubr.bf16.mxu0 %v5826_v11  ;;  %v7194_v45 = vld [vmem:[%s9418_s1 + $0x2f8] sm:$0xff]   ;;  %v7216_v11 = vld [vmem:[%s9418_s1 + $0x3a0] sm:$0xff]  }
  0x27   :  { %4657 = vmatprep.mubr.bf16.mxu1 %v5828_v15  ;;  %v7220_v15 = vld [vmem:[%s9418_s1 + $0x3a8] sm:$0xff]  }
  0x28   :  { %6444 = vmatpush3.bf16.msra.mxu0 %v7139_v46  ;;  %v7195_v46 = vld [vmem:[%s9418_s1 + $0x238] sm:$0xff]  }
  0x29   :  { %6466 = vmatpush3.bf16.msra.mxu1 %v7140_v47  ;;  %6445 = vmatprep.subr.bf16.mxu0 %v7141_v48  ;;  %v7196_v47 = vld [vmem:[%s9418_s1 + $0x2b8] sm:$0xff]   ;;  %v19_v48 = vld [vmem:[%s9419_s0 + $0x20] sm:$0xff] }
  0x2a   :  { %6467 = vmatprep.subr.bf16.mxu1 %v7142_v49  ;;  %v51_v49 = vld [vmem:[%s9419_s0 + $0x120] sm:$0xff] }
  0x2c   :  { %6446 = vmatpush3.bf16.msra.mxu0 %v7143_v50  ;;  %v20_v50 = vld [vmem:[%s9419_s0 + $0x28] sm:$0xff] }
  0x2d   :  { %6468 = vmatpush3.bf16.msra.mxu1 %v7144_v51  ;;  %6447 = vmatprep.subr.bf16.mxu0 %v7145_v52  ;;  %v52_v51 = vld [vmem:[%s9419_s0 + $0x128] sm:$0xff]  ;;  %v5829_v52 = vcombine.low %v19_v48, %v51_v49 }
  0x2e   :  { %6469 = vmatprep.subr.bf16.mxu1 %v7146_v53  ;;  %v5830_v53 = vcombine.high %v19_v48, %v51_v49  ;;  %v7245_v48 = vld [vmem:[%s9418_s1 + $0x460] sm:$0xff]  }
  0x2f   :  { %v7246_v49 = vld [vmem:[%s9418_s1 + $0x4e0] sm:$0xff]  }
  0x30   :  { %6448 = vmatpush3.bf16.msra.mxu0 %v7147_v54  ;;  %v5831_v54 = vcombine.low %v20_v50, %v52_v51 }
  0x31   :  { %6470 = vmatpush3.bf16.msra.mxu1 %v7148_v55  ;;  %6449 = vmatprep.subr.bf16.mxu0 %v7149_v56  ;;  %v5832_v55 = vcombine.high %v20_v50, %v52_v51  ;;  %v7197_v56 = vld [vmem:[%s9418_s1 + $0x340] sm:$0xff]  }
  0x32   :  { %6471 = vmatprep.subr.bf16.mxu1 %v7150_v57  ;;  %v7198_v57 = vld [vmem:[%s9418_s1 + $0x3c0] sm:$0xff]  }
  0x33   :  { %v7247_v50 = vld [vmem:[%s9418_s1 + $0x420] sm:$0xff]  }
  0x34   :  { %6450 = vmatpush3.bf16.msra.mxu0 %v7151_v58  ;;  %v7199_v58 = vld [vmem:[%s9418_s1 + $0x300] sm:$0xff]  }
  0x35   :  { %6472 = vmatpush3.bf16.msra.mxu1 %v7152_v59  ;;  %6451 = vmatprep.subr.bf16.mxu0 %v7153_v60  ;;  %v7200_v59 = vld [vmem:[%s9418_s1 + $0x380] sm:$0xff]   ;;  %v7201_v60 = vld [vmem:[%s9418_s1 + $0x348] sm:$0xff]  }
  0x36   :  { %6473 = vmatprep.subr.bf16.mxu1 %v7154_v61  ;;  %v7202_v61 = vld [vmem:[%s9418_s1 + $0x3c8] sm:$0xff]   ;;  %v7248_v51 = vld [vmem:[%s9418_s1 + $0x4a0] sm:$0xff]  }
  0x38   :  { %6452 = vmatpush3.bf16.msra.mxu0 %v7155_v62  ;;  %v7203_v62 = vld [vmem:[%s9418_s1 + $0x308] sm:$0xff]  }
  0x39   :  { %6474 = vmatpush3.bf16.msra.mxu1 %v7156_v63  ;;  %6453 = vmatprep.subr.bf16.mxu0 %v7157_v0  ;;  %v7204_v63 = vld [vmem:[%s9418_s1 + $0x388] sm:$0xff]   ;;  %v7205_v0 = vld [vmem:[%s9418_s1 + $0x350] sm:$0xff]  }
  0x3a   :  { %6475 = vmatprep.subr.bf16.mxu1 %v7158_v1  ;;  %v7206_v1 = vld [vmem:[%s9418_s1 + $0x3d0] sm:$0xff]  }
  0x3c   :  { %6454 = vmatpush3.bf16.msra.mxu0 %v7159_v2  ;;  %v7207_v2 = vld [vmem:[%s9418_s1 + $0x310] sm:$0xff]  }
  0x3d   :  { %6476 = vmatpush3.bf16.msra.mxu1 %v7160_v3  ;;  %6455 = vmatprep.subr.bf16.mxu0 %v7161_v4  ;;  %v7208_v3 = vld [vmem:[%s9418_s1 + $0x390] sm:$0xff]   ;;  %v7209_v4 = vld [vmem:[%s9418_s1 + $0x358] sm:$0xff]  }
  0x3e   :  { %6477 = vmatprep.subr.bf16.mxu1 %v7162_v5  ;;  %v7210_v5 = vld [vmem:[%s9418_s1 + $0x3d8] sm:$0xff]  }
  0x40   :  { %6456 = vmatpush3.bf16.msra.mxu0 %v7163_v6  ;;  %v7211_v6 = vld [vmem:[%s9418_s1 + $0x318] sm:$0xff]  }
  0x41   :  { %6478 = vmatpush3.bf16.msra.mxu1 %v7164_v7  ;;  %6485 = vmatprep.subr.bf16.mxu0 %v7165_v16  ;;  %v7212_v7 = vld [vmem:[%s9418_s1 + $0x398] sm:$0xff]   ;;  %v7221_v16 = vld [vmem:[%s9418_s1 + $0x370] sm:$0xff]  }
  0x42   :  { %6507 = vmatprep.subr.bf16.mxu1 %v7166_v17  ;;  %v7222_v17 = vld [vmem:[%s9418_s1 + $0x3f0] sm:$0xff]  }
  0x43   :  { %4617 = vmatmul.mubr.bf16.vlgmr.msra.gmra.mrb[4].mxu0 %v5825_v10  ;;  %v7215_v10 = vld [vmem:[%s9418_s1 + $0x320] sm:$0xff]  }
  0x44   :  { %4658 = vmatmul.mubr.bf16.vlgmr.msra.gmra.mrb[4].mxu1 %v5827_v14  ;;  %6486 = vmatpush3.bf16.msra.mxu0 %v7167_v18  ;;  %v7219_v14 = vld [vmem:[%s9418_s1 + $0x328] sm:$0xff]   ;;  %v7223_v18 = vld [vmem:[%s9418_s1 + $0x330] sm:$0xff]  }
  0x45   :  { %6508 = vmatpush3.bf16.msra.mxu1 %v7168_v19  ;;  %6487 = vmatprep.subr.bf16.mxu0 %v7169_v20  ;;  %v7224_v19 = vld [vmem:[%s9418_s1 + $0x3b0] sm:$0xff]   ;;  %v7225_v20 = vld [vmem:[%s9418_s1 + $0x378] sm:$0xff]  }
  0x46   :  { %6509 = vmatprep.subr.bf16.mxu1 %v7170_v21  ;;  %4698 = vmatprep.mubr.bf16.mxu0 %v5830_v53  ;;  %v7226_v21 = vld [vmem:[%s9418_s1 + $0x3f8] sm:$0xff]   ;;  %v7250_v53 = vld [vmem:[%s9418_s1 + $0x4e8] sm:$0xff]  }
  0x47   :  { %4739 = vmatprep.mubr.bf16.mxu1 %v5832_v55  ;;  %v7252_v55 = vld [vmem:[%s9418_s1 + $0x4a8] sm:$0xff]  }
  0x48   :  { %6488 = vmatpush3.bf16.msra.mxu0 %v7171_v22  ;;  %v7227_v22 = vld [vmem:[%s9418_s1 + $0x338] sm:$0xff]  }
  0x49   :  { %6510 = vmatpush3.bf16.msra.mxu1 %v7172_v23  ;;  %6489 = vmatprep.subr.bf16.mxu0 %v7173_v24  ;;  %v7228_v23 = vld [vmem:[%s9418_s1 + $0x3b8] sm:$0xff]   ;;  %v21_v24 = vld [vmem:[%s9419_s0 + $0x30] sm:$0xff] }
  0x4a   :  { %6511 = vmatprep.subr.bf16.mxu1 %v7174_v25  ;;  %v53_v25 = vld [vmem:[%s9419_s0 + $0x130] sm:$0xff] }
  0x4c   :  { %6490 = vmatpush3.bf16.msra.mxu0 %v7175_v26  ;;  %v22_v26 = vld [vmem:[%s9419_s0 + $0x38] sm:$0xff] }
  0x4d   :  { %6512 = vmatpush3.bf16.msra.mxu1 %v7176_v27  ;;  %6491 = vmatprep.subr.bf16.mxu0 %v7177_v28  ;;  %v5833_v27 = vcombine.low %v21_v24, %v53_v25  ;;  %v5834_v28 = vcombine.high %v21_v24, %v53_v25  ;;  %v7277_v24 = vld [vmem:[%s9418_s1 + $0x560] sm:$0xff]  }
  0x4e   :  { %6513 = vmatprep.subr.bf16.mxu1 %v7178_v29  ;;  %v54_v29 = vld [vmem:[%s9419_s0 + $0x138] sm:$0xff]  ;;  %v7278_v25 = vld [vmem:[%s9418_s1 + $0x5e0] sm:$0xff]  }
  0x50   :  { %6492 = vmatpush3.bf16.msra.mxu0 %v7179_v30  ;;  %v5835_v30 = vcombine.low %v22_v26, %v54_v29 }
  0x51   :  { %6514 = vmatpush3.bf16.msra.mxu1 %v7180_v31  ;;  %6493 = vmatprep.subr.bf16.mxu0 %v7181_v32  ;;  %v5836_v31 = vcombine.high %v22_v26, %v54_v29  ;;  %v7229_v32 = vld [vmem:[%s9418_s1 + $0x440] sm:$0xff]   ;;  %v7282_v29 = vld [vmem:[%s9418_s1 + $0x5e8] sm:$0xff]  }
  0x52   :  { %6515 = vmatprep.subr.bf16.mxu1 %v7182_v33  ;;  %v7230_v33 = vld [vmem:[%s9418_s1 + $0x4c0] sm:$0xff]  }
  0x53   :  { %v7279_v26 = vld [vmem:[%s9418_s1 + $0x520] sm:$0xff]  }
  0x54   :  { %6494 = vmatpush3.bf16.msra.mxu0 %v7183_v34  ;;  %v7231_v34 = vld [vmem:[%s9418_s1 + $0x400] sm:$0xff]  }
  0x55   :  { %6516 = vmatpush3.bf16.msra.mxu1 %v7184_v35  ;;  %6495 = vmatprep.subr.bf16.mxu0 %v7185_v36  ;;  %v7232_v35 = vld [vmem:[%s9418_s1 + $0x480] sm:$0xff]   ;;  %v7233_v36 = vld [vmem:[%s9418_s1 + $0x448] sm:$0xff]  }
  0x56   :  { %6517 = vmatprep.subr.bf16.mxu1 %v7186_v37  ;;  %v7234_v37 = vld [vmem:[%s9418_s1 + $0x4c8] sm:$0xff]  }
  0x58   :  { %6496 = vmatpush3.bf16.msra.mxu0 %v7187_v38  ;;  %v7235_v38 = vld [vmem:[%s9418_s1 + $0x408] sm:$0xff]  }
  0x59   :  { %6518 = vmatpush3.bf16.msra.mxu1 %v7188_v39  ;;  %6497 = vmatprep.subr.bf16.mxu0 %v7189_v40  ;;  %v7236_v39 = vld [vmem:[%s9418_s1 + $0x488] sm:$0xff]   ;;  %v7237_v40 = vld [vmem:[%s9418_s1 + $0x450] sm:$0xff]  }
  0x5a   :  { %6519 = vmatprep.subr.bf16.mxu1 %v7190_v41  ;;  %v7238_v41 = vld [vmem:[%s9418_s1 + $0x4d0] sm:$0xff]  }
  0x5c   :  { %6498 = vmatpush3.bf16.msra.mxu0 %v7191_v42  ;;  %v7239_v42 = vld [vmem:[%s9418_s1 + $0x410] sm:$0xff]  }
  0x5d   :  { %6520 = vmatpush3.bf16.msra.mxu1 %v7192_v43  ;;  %6499 = vmatprep.subr.bf16.mxu0 %v7193_v44  ;;  %v7240_v43 = vld [vmem:[%s9418_s1 + $0x490] sm:$0xff]   ;;  %v7241_v44 = vld [vmem:[%s9418_s1 + $0x458] sm:$0xff]  }
  0x5e   :  { %6521 = vmatprep.subr.bf16.mxu1 %v7194_v45  ;;  %v7242_v45 = vld [vmem:[%s9418_s1 + $0x4d8] sm:$0xff]  }
  0x60   :  { %6500 = vmatpush3.bf16.msra.mxu0 %v7195_v46  ;;  %v7243_v46 = vld [vmem:[%s9418_s1 + $0x418] sm:$0xff]  }
  0x61   :  { %6522 = vmatpush3.bf16.msra.mxu1 %v7196_v47  ;;  %6529 = vmatprep.subr.bf16.mxu0 %v7197_v56  ;;  %v7244_v47 = vld [vmem:[%s9418_s1 + $0x498] sm:$0xff]   ;;  %v7253_v56 = vld [vmem:[%s9418_s1 + $0x470] sm:$0xff]  }
  0x62   :  { %6551 = vmatprep.subr.bf16.mxu1 %v7198_v57  ;;  %v7254_v57 = vld [vmem:[%s9418_s1 + $0x4f0] sm:$0xff]  }
  0x63   :  { %4699 = vmatmul.mubr.bf16.vlgmr.msra.gmra.mrb[8].mxu0 %v5829_v52  ;;  %v7249_v52 = vld [vmem:[%s9418_s1 + $0x468] sm:$0xff]  }
  0x64   :  { %4740 = vmatmul.mubr.bf16.vlgmr.msra.gmra.mrb[8].mxu1 %v5831_v54  ;;  %6530 = vmatpush3.bf16.msra.mxu0 %v7199_v58  ;;  %v7251_v54 = vld [vmem:[%s9418_s1 + $0x428] sm:$0xff]   ;;  %v7255_v58 = vld [vmem:[%s9418_s1 + $0x430] sm:$0xff]  }
  0x65   :  { %6552 = vmatpush3.bf16.msra.mxu1 %v7200_v59  ;;  %6531 = vmatprep.subr.bf16.mxu0 %v7201_v60  ;;  %v7256_v59 = vld [vmem:[%s9418_s1 + $0x4b0] sm:$0xff]   ;;  %v7257_v60 = vld [vmem:[%s9418_s1 + $0x478] sm:$0xff]  }
  0x66   :  { %6553 = vmatprep.subr.bf16.mxu1 %v7202_v61  ;;  %4780 = vmatprep.mubr.bf16.mxu0 %v5834_v28  ;;  %v7258_v61 = vld [vmem:[%s9418_s1 + $0x4f8] sm:$0xff]   ;;  %v7281_v28 = vld [vmem:[%s9418_s1 + $0x568] sm:$0xff]  }
  0x67   :  { %4821 = vmatprep.mubr.bf16.mxu1 %v5836_v31  ;;  %v7284_v31 = vld [vmem:[%s9418_s1 + $0x5a8] sm:$0xff]  }
  0x68   :  { %6532 = vmatpush3.bf16.msra.mxu0 %v7203_v62  ;;  %v7259_v62 = vld [vmem:[%s9418_s1 + $0x438] sm:$0xff]  }
  0x69   :  { %6554 = vmatpush3.bf16.msra.mxu1 %v7204_v63  ;;  %6533 = vmatprep.subr.bf16.mxu0 %v7205_v0  ;;  %v7260_v63 = vld [vmem:[%s9418_s1 + $0x4b8] sm:$0xff]   ;;  %v23_v0 = vld [vmem:[%s9419_s0 + $0x40] sm:$0xff] }
  0x6a   :  { %6555 = vmatprep.subr.bf16.mxu1 %v7206_v1  ;;  %v55_v1 = vld [vmem:[%s9419_s0 + $0x140] sm:$0xff] }
  0x6c   :  { %6534 = vmatpush3.bf16.msra.mxu0 %v7207_v2  ;;  %v5837_v2 = vcombine.low %v23_v0, %v55_v1 }
  0x6d   :  { %6556 = vmatpush3.bf16.msra.mxu1 %v7208_v3  ;;  %6535 = vmatprep.subr.bf16.mxu0 %v7209_v4  ;;  %v5838_v3 = vcombine.high %v23_v0, %v55_v1  ;;  %v24_v4 = vld [vmem:[%s9419_s0 + $0x48] sm:$0xff]  ;;  %v7309_v0 = vld [vmem:[%s9418_s1 + $0x660] sm:$0xff]  }
  0x6e   :  { %6557 = vmatprep.subr.bf16.mxu1 %v7210_v5  ;;  %v56_v5 = vld [vmem:[%s9419_s0 + $0x148] sm:$0xff]  ;;  %v7310_v1 = vld [vmem:[%s9418_s1 + $0x6e0] sm:$0xff]  }
  0x70   :  { %6536 = vmatpush3.bf16.msra.mxu0 %v7211_v6  ;;  %v5839_v6 = vcombine.low %v24_v4, %v56_v5 }
  0x71   :  { %6558 = vmatpush3.bf16.msra.mxu1 %v7212_v7  ;;  %6537 = vmatprep.subr.bf16.mxu0 %v7213_v8  ;;  %v5840_v7 = vcombine.high %v24_v4, %v56_v5  ;;  %v7261_v8 = vld [vmem:[%s9418_s1 + $0x540] sm:$0xff]   ;;  %v7313_v4 = vld [vmem:[%s9418_s1 + $0x668] sm:$0xff]  }
  0x72   :  { %6559 = vmatprep.subr.bf16.mxu1 %v7214_v9  ;;  %v7262_v9 = vld [vmem:[%s9418_s1 + $0x5c0] sm:$0xff]   ;;  %v7314_v5 = vld [vmem:[%s9418_s1 + $0x6e8] sm:$0xff]  }
  0x74   :  { %6538 = vmatpush3.bf16.msra.mxu0 %v7215_v10  ;;  %v7263_v10 = vld [vmem:[%s9418_s1 + $0x500] sm:$0xff]  }
  0x75   :  { %6560 = vmatpush3.bf16.msra.mxu1 %v7216_v11  ;;  %6539 = vmatprep.subr.bf16.mxu0 %v7217_v12  ;;  %v7264_v11 = vld [vmem:[%s9418_s1 + $0x580] sm:$0xff]   ;;  %v7265_v12 = vld [vmem:[%s9418_s1 + $0x548] sm:$0xff]  }
  0x76   :  { %6561 = vmatprep.subr.bf16.mxu1 %v7218_v13  ;;  %v7266_v13 = vld [vmem:[%s9418_s1 + $0x5c8] sm:$0xff]  }
  0x78   :  { %6540 = vmatpush3.bf16.msra.mxu0 %v7219_v14  ;;  %v7267_v14 = vld [vmem:[%s9418_s1 + $0x508] sm:$0xff]  }
  0x79   :  { %6562 = vmatpush3.bf16.msra.mxu1 %v7220_v15  ;;  %6541 = vmatprep.subr.bf16.mxu0 %v7221_v16  ;;  %v7268_v15 = vld [vmem:[%s9418_s1 + $0x588] sm:$0xff]   ;;  %v7269_v16 = vld [vmem:[%s9418_s1 + $0x550] sm:$0xff]  }
  0x7a   :  { %6563 = vmatprep.subr.bf16.mxu1 %v7222_v17  ;;  %v7270_v17 = vld [vmem:[%s9418_s1 + $0x5d0] sm:$0xff]  }
  0x7c   :  { %6542 = vmatpush3.bf16.msra.mxu0 %v7223_v18  ;;  %v7271_v18 = vld [vmem:[%s9418_s1 + $0x510] sm:$0xff]  }
  0x7d   :  { %6564 = vmatpush3.bf16.msra.mxu1 %v7224_v19  ;;  %6543 = vmatprep.subr.bf16.mxu0 %v7225_v20  ;;  %v7272_v19 = vld [vmem:[%s9418_s1 + $0x590] sm:$0xff]   ;;  %v7273_v20 = vld [vmem:[%s9418_s1 + $0x558] sm:$0xff]  }
  0x7e   :  { %6565 = vmatprep.subr.bf16.mxu1 %v7226_v21  ;;  %v7274_v21 = vld [vmem:[%s9418_s1 + $0x5d8] sm:$0xff]  }
  0x80   :  { %6544 = vmatpush3.bf16.msra.mxu0 %v7227_v22  ;;  %v7275_v22 = vld [vmem:[%s9418_s1 + $0x518] sm:$0xff]  }
  0x81   :  { %6566 = vmatpush3.bf16.msra.mxu1 %v7228_v23  ;;  %6573 = vmatprep.subr.bf16.mxu0 %v7229_v32  ;;  %v7276_v23 = vld [vmem:[%s9418_s1 + $0x598] sm:$0xff]   ;;  %v7285_v32 = vld [vmem:[%s9418_s1 + $0x570] sm:$0xff]  }
  0x82   :  { %6595 = vmatprep.subr.bf16.mxu1 %v7230_v33  ;;  %v7286_v33 = vld [vmem:[%s9418_s1 + $0x5f0] sm:$0xff]  }
  0x83   :  { %4781 = vmatmul.mubr.bf16.vlgmr.msra.gmra.mrb[12].mxu0 %v5833_v27  ;;  %v7280_v27 = vld [vmem:[%s9418_s1 + $0x5a0] sm:$0xff]  }
  0x84   :  { %4822 = vmatmul.mubr.bf16.vlgmr.msra.gmra.mrb[12].mxu1 %v5835_v30  ;;  %6574 = vmatpush3.bf16.msra.mxu0 %v7231_v34  ;;  %v7283_v30 = vld [vmem:[%s9418_s1 + $0x528] sm:$0xff]   ;;  %v7287_v34 = vld [vmem:[%s9418_s1 + $0x530] sm:$0xff]  }
  0x85   :  { %6596 = vmatpush3.bf16.msra.mxu1 %v7232_v35  ;;  %6575 = vmatprep.subr.bf16.mxu0 %v7233_v36  ;;  %v7288_v35 = vld [vmem:[%s9418_s1 + $0x5b0] sm:$0xff]   ;;  %v7289_v36 = vld [vmem:[%s9418_s1 + $0x578] sm:$0xff]  }
  0x86   :  { %6597 = vmatprep.subr.bf16.mxu1 %v7234_v37  ;;  %4862 = vmatprep.mubr.bf16.mxu0 %v5838_v3  ;;  %v7290_v37 = vld [vmem:[%s9418_s1 + $0x5f8] sm:$0xff]   ;;  %v7312_v3 = vld [vmem:[%s9418_s1 + $0x6a0] sm:$0xff]  }
  0x87   :  { %4903 = vmatprep.mubr.bf16.mxu1 %v5840_v7  ;;  %v7316_v7 = vld [vmem:[%s9418_s1 + $0x6a8] sm:$0xff]  }
  0x88   :  { %6576 = vmatpush3.bf16.msra.mxu0 %v7235_v38  ;;  %v7291_v38 = vld [vmem:[%s9418_s1 + $0x538] sm:$0xff]  }
  0x89   :  { %6598 = vmatpush3.bf16.msra.mxu1 %v7236_v39  ;;  %6577 = vmatprep.subr.bf16.mxu0 %v7237_v40  ;;  %v7292_v39 = vld [vmem:[%s9418_s1 + $0x5b8] sm:$0xff]   ;;  %v25_v40 = vld [vmem:[%s9419_s0 + $0x50] sm:$0xff] }
  0x8a   :  { %6599 = vmatprep.subr.bf16.mxu1 %v7238_v41  ;;  %v57_v41 = vld [vmem:[%s9419_s0 + $0x150] sm:$0xff] }
  0x8c   :  { %6578 = vmatpush3.bf16.msra.mxu0 %v7239_v42  ;;  %v26_v42 = vld [vmem:[%s9419_s0 + $0x58] sm:$0xff] }
  0x8d   :  { %6600 = vmatpush3.bf16.msra.mxu1 %v7240_v43  ;;  %6579 = vmatprep.subr.bf16.mxu0 %v7241_v44  ;;  %v58_v43 = vld [vmem:[%s9419_s0 + $0x158] sm:$0xff]  ;;  %v5841_v44 = vcombine.low %v25_v40, %v57_v41 }
  0x8e   :  { %6601 = vmatprep.subr.bf16.mxu1 %v7242_v45  ;;  %v5842_v45 = vcombine.high %v25_v40, %v57_v41  ;;  %v7340_v41 = vld [vmem:[%s9418_s1 + $0x798] sm:$0xff]  }
  0x90   :  { %6580 = vmatpush3.bf16.msra.mxu0 %v7243_v46  ;;  %v5843_v46 = vcombine.low %v26_v42, %v58_v43 }
  0x91   :  { %6602 = vmatpush3.bf16.msra.mxu1 %v7244_v47  ;;  %6581 = vmatprep.subr.bf16.mxu0 %v7245_v48  ;;  %v5844_v47 = vcombine.high %v26_v42, %v58_v43  ;;  %v7293_v48 = vld [vmem:[%s9418_s1 + $0x640] sm:$0xff]  }
  0x92   :  { %6603 = vmatprep.subr.bf16.mxu1 %v7246_v49  ;;  %v7294_v49 = vld [vmem:[%s9418_s1 + $0x6c0] sm:$0xff]  }
  0x93   :  { %v7341_v43 = vld [vmem:[%s9418_s1 + $0x760] sm:$0xff]  }
  0x94   :  { %6582 = vmatpush3.bf16.msra.mxu0 %v7247_v50  ;;  %v7295_v50 = vld [vmem:[%s9418_s1 + $0x600] sm:$0xff]  }
  0x95   :  { %6604 = vmatpush3.bf16.msra.mxu1 %v7248_v51  ;;  %6583 = vmatprep.subr.bf16.mxu0 %v7249_v52  ;;  %v7296_v51 = vld [vmem:[%s9418_s1 + $0x680] sm:$0xff]   ;;  %v7297_v52 = vld [vmem:[%s9418_s1 + $0x648] sm:$0xff]  }
  0x96   :  { %6605 = vmatprep.subr.bf16.mxu1 %v7250_v53  ;;  %v7298_v53 = vld [vmem:[%s9418_s1 + $0x6c8] sm:$0xff]  }
  0x98   :  { %6584 = vmatpush3.bf16.msra.mxu0 %v7251_v54  ;;  %v7299_v54 = vld [vmem:[%s9418_s1 + $0x608] sm:$0xff]  }
  0x99   :  { %6606 = vmatpush3.bf16.msra.mxu1 %v7252_v55  ;;  %6585 = vmatprep.subr.bf16.mxu0 %v7253_v56  ;;  %v7300_v55 = vld [vmem:[%s9418_s1 + $0x688] sm:$0xff]   ;;  %v7301_v56 = vld [vmem:[%s9418_s1 + $0x650] sm:$0xff]  }
  0x9a   :  { %6607 = vmatprep.subr.bf16.mxu1 %v7254_v57  ;;  %v7302_v57 = vld [vmem:[%s9418_s1 + $0x6d0] sm:$0xff]  }
  0x9c   :  { %6586 = vmatpush3.bf16.msra.mxu0 %v7255_v58  ;;  %v7303_v58 = vld [vmem:[%s9418_s1 + $0x610] sm:$0xff]  }
  0x9d   :  { %6608 = vmatpush3.bf16.msra.mxu1 %v7256_v59  ;;  %6587 = vmatprep.subr.bf16.mxu0 %v7257_v60  ;;  %v7304_v59 = vld [vmem:[%s9418_s1 + $0x690] sm:$0xff]   ;;  %v7305_v60 = vld [vmem:[%s9418_s1 + $0x658] sm:$0xff]  }
  0x9e   :  { %6609 = vmatprep.subr.bf16.mxu1 %v7258_v61  ;;  %v7306_v61 = vld [vmem:[%s9418_s1 + $0x6d8] sm:$0xff]  }
  0xa0   :  { %6588 = vmatpush3.bf16.msra.mxu0 %v7259_v62  ;;  %v7307_v62 = vld [vmem:[%s9418_s1 + $0x618] sm:$0xff]  }
  0xa1   :  { %6610 = vmatpush3.bf16.msra.mxu1 %v7260_v63  ;;  %6617 = vmatprep.subr.bf16.mxu0 %v7261_v8  ;;  %v7308_v63 = vld [vmem:[%s9418_s1 + $0x698] sm:$0xff]   ;;  %v7317_v8 = vld [vmem:[%s9418_s1 + $0x670] sm:$0xff]  }
  0xa2   :  { %6639 = vmatprep.subr.bf16.mxu1 %v7262_v9  ;;  %v7318_v9 = vld [vmem:[%s9418_s1 + $0x6f0] sm:$0xff]  }
  0xa3   :  { %4863 = vmatmul.mubr.bf16.vlgmr.msra.gmra.mrb[16].mxu0 %v5837_v2  ;;  %v7311_v2 = vld [vmem:[%s9418_s1 + $0x620] sm:$0xff]  }
  0xa4   :  { %4904 = vmatmul.mubr.bf16.vlgmr.msra.gmra.mrb[16].mxu1 %v5839_v6  ;;  %6618 = vmatpush3.bf16.msra.mxu0 %v7263_v10  ;;  %v7315_v6 = vld [vmem:[%s9418_s1 + $0x628] sm:$0xff]   ;;  %v7319_v10 = vld [vmem:[%s9418_s1 + $0x630] sm:$0xff]  }
  0xa5   :  { %6640 = vmatpush3.bf16.msra.mxu1 %v7264_v11  ;;  %6619 = vmatprep.subr.bf16.mxu0 %v7265_v12  ;;  %v7320_v11 = vld [vmem:[%s9418_s1 + $0x6b0] sm:$0xff]   ;;  %v7321_v12 = vld [vmem:[%s9418_s1 + $0x678] sm:$0xff]  }
  0xa6   :  { %6641 = vmatprep.subr.bf16.mxu1 %v7266_v13  ;;  %4944 = vmatprep.mubr.bf16.mxu0 %v5842_v45  ;;  %v7322_v13 = vld [vmem:[%s9418_s1 + $0x6f8] sm:$0xff]  }
  0xa7   :  { %4985 = vmatprep.mubr.bf16.mxu1 %v5844_v47 }
  0xa8   :  { %6620 = vmatpush3.bf16.msra.mxu0 %v7267_v14  ;;  %v7323_v14 = vld [vmem:[%s9418_s1 + $0x638] sm:$0xff]  }
  0xa9   :  { %6642 = vmatpush3.bf16.msra.mxu1 %v7268_v15  ;;  %6621 = vmatprep.subr.bf16.mxu0 %v7269_v16  ;;  %v7324_v15 = vld [vmem:[%s9418_s1 + $0x6b8] sm:$0xff]   ;;  %v27_v16 = vld [vmem:[%s9419_s0 + $0x60] sm:$0xff] }
  0xaa   :  { %6643 = vmatprep.subr.bf16.mxu1 %v7270_v17  ;;  %v59_v17 = vld [vmem:[%s9419_s0 + $0x160] sm:$0xff] }
  0xac   :  { %6622 = vmatpush3.bf16.msra.mxu0 %v7271_v18  ;;  %v28_v18 = vld [vmem:[%s9419_s0 + $0x68] sm:$0xff] }
  0xad   :  { %6644 = vmatpush3.bf16.msra.mxu1 %v7272_v19  ;;  %6623 = vmatprep.subr.bf16.mxu0 %v7273_v20  ;;  %v5845_v19 = vcombine.low %v27_v16, %v59_v17  ;;  %v5846_v20 = vcombine.high %v27_v16, %v59_v17  ;;  %v7357_v17 = vld [vmem:[%s9418_s1 + $0x840] sm:$0xff]  }
  0xae   :  { %6645 = vmatprep.subr.bf16.mxu1 %v7274_v21  ;;  %v60_v21 = vld [vmem:[%s9419_s0 + $0x168] sm:$0xff] }
  0xb0   :  { %6624 = vmatpush3.bf16.msra.mxu0 %v7275_v22  ;;  %v5847_v22 = vcombine.low %v28_v18, %v60_v21 }
  0xb1   :  { %6646 = vmatpush3.bf16.msra.mxu1 %v7276_v23  ;;  %6625 = vmatprep.subr.bf16.mxu0 %v7277_v24  ;;  %v5848_v23 = vcombine.high %v28_v18, %v60_v21  ;;  %v7325_v24 = vld [vmem:[%s9418_s1 + $0x740] sm:$0xff]   ;;  %v7361_v21 = vld [vmem:[%s9418_s1 + $0x848] sm:$0xff]  }
  0xb2   :  { %6647 = vmatprep.subr.bf16.mxu1 %v7278_v25  ;;  %v7326_v25 = vld [vmem:[%s9418_s1 + $0x7c0] sm:$0xff]  }
  0xb3   :  { %v7358_v18 = vld [vmem:[%s9418_s1 + $0x8c0] sm:$0xff]  }
  0xb4   :  { %6626 = vmatpush3.bf16.msra.mxu0 %v7279_v26  ;;  %v7327_v26 = vld [vmem:[%s9418_s1 + $0x700] sm:$0xff]  }
  0xb5   :  { %6648 = vmatpush3.bf16.msra.mxu1 %v7280_v27  ;;  %6627 = vmatprep.subr.bf16.mxu0 %v7281_v28  ;;  %v7328_v27 = vld [vmem:[%s9418_s1 + $0x780] sm:$0xff]   ;;  %v7329_v28 = vld [vmem:[%s9418_s1 + $0x748] sm:$0xff]  }
  0xb6   :  { %6649 = vmatprep.subr.bf16.mxu1 %v7282_v29  ;;  %v7330_v29 = vld [vmem:[%s9418_s1 + $0x7c8] sm:$0xff]  }
  0xb8   :  { %6628 = vmatpush3.bf16.msra.mxu0 %v7283_v30  ;;  %v7331_v30 = vld [vmem:[%s9418_s1 + $0x708] sm:$0xff]  }
  0xb9   :  { %6650 = vmatpush3.bf16.msra.mxu1 %v7284_v31  ;;  %6629 = vmatprep.subr.bf16.mxu0 %v7285_v32  ;;  %v7332_v31 = vld [vmem:[%s9418_s1 + $0x788] sm:$0xff]   ;;  %v7333_v32 = vld [vmem:[%s9418_s1 + $0x750] sm:$0xff]  }
  0xba   :  { %6651 = vmatprep.subr.bf16.mxu1 %v7286_v33  ;;  %v7334_v33 = vld [vmem:[%s9418_s1 + $0x7d0] sm:$0xff]  }
  0xbc   :  { %6630 = vmatpush3.bf16.msra.mxu0 %v7287_v34  ;;  %v7335_v34 = vld [vmem:[%s9418_s1 + $0x710] sm:$0xff]  }
  0xbd   :  { %6652 = vmatpush3.bf16.msra.mxu1 %v7288_v35  ;;  %6631 = vmatprep.subr.bf16.mxu0 %v7289_v36  ;;  %v7336_v35 = vld [vmem:[%s9418_s1 + $0x790] sm:$0xff]   ;;  %v7337_v36 = vld [vmem:[%s9418_s1 + $0x758] sm:$0xff]  }
  0xbe   :  { %6653 = vmatprep.subr.bf16.mxu1 %v7290_v37  ;;  %v7338_v37 = vld [vmem:[%s9418_s1 + $0x7d8] sm:$0xff]  }
  0xc0   :  { %6632 = vmatpush3.bf16.msra.mxu0 %v7291_v38 }
  0xc1   :  { %6654 = vmatpush3.bf16.msra.mxu1 %v7292_v39  ;;  %6661 = vmatprep.subr.bf16.mxu0 %v7293_v48  ;;  %v7339_v39 = vld [vmem:[%s9418_s1 + $0x718] sm:$0xff]  }
  0xc2   :  { %6683 = vmatprep.subr.bf16.mxu1 %v7294_v49  ;;  %v7343_v49 = vld [vmem:[%s9418_s1 + $0x720] sm:$0xff]  }
  0xc3   :  { %4945 = vmatmul.mubr.bf16.vlgmr.msra.gmra.mrb[20].mxu0 %v5841_v44 }
  0xc4   :  { %4986 = vmatmul.mubr.bf16.vlgmr.msra.gmra.mrb[20].mxu1 %v5843_v46  ;;  %6662 = vmatpush3.bf16.msra.mxu0 %v7295_v50  ;;  %v7342_v46 = vld [vmem:[%s9418_s1 + $0x7e0] sm:$0xff]  }
  0xc5   :  { %6684 = vmatpush3.bf16.msra.mxu1 %v7296_v51  ;;  %6663 = vmatprep.subr.bf16.mxu0 %v7297_v52  ;;  %v7344_v51 = vld [vmem:[%s9418_s1 + $0x7a0] sm:$0xff]  }
  0xc6   :  { %6685 = vmatprep.subr.bf16.mxu1 %v7298_v53  ;;  %5026 = vmatprep.mubr.bf16.mxu0 %v5846_v20  ;;  %v5820_v52 = vld [vmem:[%s9420_s2] ss:$0 sm:$0xff] }
  0xc7   :  { %5067 = vmatprep.mubr.bf16.mxu1 %v5848_v23  ;;  %v7360_v20 = vld [vmem:[%s9418_s1 + $0x880] sm:$0xff]   ;;  %v7363_v23 = vld [vmem:[%s9418_s1 + $0x808] sm:$0xff]  }
  0xc8   :  { %6664 = vmatpush3.bf16.msra.mxu0 %v7299_v54 }
  0xc9   :  { %6686 = vmatpush3.bf16.msra.mxu1 %v7300_v55  ;;  %6665 = vmatprep.subr.bf16.mxu0 %v7301_v56  ;;  %v7345_v55 = vld [vmem:[%s9418_s1 + $0x768] sm:$0xff]  }
  0xca   :  { %6687 = vmatprep.subr.bf16.mxu1 %v7302_v57 }
  0xcc   :  { %6666 = vmatpush3.bf16.msra.mxu0 %v7303_v58  ;;  %v7346_v58 = vld [vmem:[%s9418_s1 + $0x7e8] sm:$0xff]  }
  0xcd   :  { %6688 = vmatpush3.bf16.msra.mxu1 %v7304_v59  ;;  %6667 = vmatprep.subr.bf16.mxu0 %v7305_v60 }
  0xce   :  { %6689 = vmatprep.subr.bf16.mxu1 %v7306_v61  ;;  %v7347_v61 = vld [vmem:[%s9418_s1 + $0x728] sm:$0xff]  }
  0xd0   :  { %6668 = vmatpush3.bf16.msra.mxu0 %v7307_v62 }
  0xd1   :  { %6690 = vmatpush3.bf16.msra.mxu1 %v7308_v63  ;;  %6669 = vmatprep.subr.bf16.mxu0 %v7309_v0  ;;  %v7348_v63 = vld [vmem:[%s9418_s1 + $0x7a8] sm:$0xff]  }
  0xd2   :  { %6691 = vmatprep.subr.bf16.mxu1 %v7310_v1  ;;  %v7349_v1 = vld [vmem:[%s9418_s1 + $0x770] sm:$0xff]  }
  0xd4   :  { %6670 = vmatpush3.bf16.msra.mxu0 %v7311_v2  ;;  %v7350_v2 = vld [vmem:[%s9418_s1 + $0x7f0] sm:$0xff]  }
  0xd5   :  { %6692 = vmatpush3.bf16.msra.mxu1 %v7312_v3  ;;  %6671 = vmatprep.subr.bf16.mxu0 %v7313_v4  ;;  %v7351_v3 = vld [vmem:[%s9418_s1 + $0x730] sm:$0xff]  }
  0xd6   :  { %6693 = vmatprep.subr.bf16.mxu1 %v7314_v5  ;;  %v7352_v4 = vld [vmem:[%s9418_s1 + $0x7b0] sm:$0xff]   ;;  %v7353_v5 = vld [vmem:[%s9418_s1 + $0x778] sm:$0xff]  }
  0xd8   :  { %6672 = vmatpush3.bf16.msra.mxu0 %v7315_v6  ;;  %v7354_v6 = vld [vmem:[%s9418_s1 + $0x7f8] sm:$0xff]  }
  0xd9   :  { %6694 = vmatpush3.bf16.msra.mxu1 %v7316_v7  ;;  %6673 = vmatprep.subr.bf16.mxu0 %v7317_v8  ;;  %v7355_v7 = vld [vmem:[%s9418_s1 + $0x738] sm:$0xff]  }
  0xda   :  { %6695 = vmatprep.subr.bf16.mxu1 %v7318_v9  ;;  %v7356_v8 = vld [vmem:[%s9418_s1 + $0x7b8] sm:$0xff]   ;;  %v29_v9 = vld [vmem:[%s9419_s0 + $0x70] sm:$0xff] }
  0xdc   :  { %6674 = vmatpush3.bf16.msra.mxu0 %v7319_v10  ;;  %v61_v10 = vld [vmem:[%s9419_s0 + $0x170] sm:$0xff] }
  0xdd   :  { %6696 = vmatpush3.bf16.msra.mxu1 %v7320_v11  ;;  %6675 = vmatprep.subr.bf16.mxu0 %v7321_v12  ;;  %v30_v11 = vld [vmem:[%s9419_s0 + $0x78] sm:$0xff] }
  0xde   :  { %6697 = vmatprep.subr.bf16.mxu1 %v7322_v13  ;;  %v62_v12 = vld [vmem:[%s9419_s0 + $0x178] sm:$0xff]  ;;  %v5849_v13 = vcombine.low %v29_v9, %v61_v10 }
  0xdf   :  { %v5852_v16 = vcombine.high %v30_v11, %v62_v12 }
  0xe0   :  { %6676 = vmatpush3.bf16.msra.mxu0 %v7323_v14  ;;  %v5850_v14 = vcombine.high %v29_v9, %v61_v10  ;;  %v7389_v9 = vld [vmem:[%s9418_s1 + $0x940] sm:$0xff]  }
  0xe1   :  { %6698 = vmatpush3.bf16.msra.mxu1 %v7324_v15  ;;  %6705 = vmatprep.subr.bf16.mxu0 %v7325_v24  ;;  %v5851_v15 = vcombine.low %v30_v11, %v62_v12  ;;  %v7364_v24 = vld [vmem:[%s9418_s1 + $0x888] sm:$0xff]   ;;  %v7390_v10 = vld [vmem:[%s9418_s1 + $0x9c0] sm:$0xff]  }
  0xe2   :  { %6727 = vmatprep.subr.bf16.mxu1 %v7326_v25  ;;  %v7365_v25 = vld [vmem:[%s9418_s1 + $0x850] sm:$0xff]   ;;  %v7391_v11 = vld [vmem:[%s9418_s1 + $0x900] sm:$0xff]  }
  0xe3   :  { %5027 = vmatmul.mubr.bf16.vlgmr.msra.gmra.mrb[24].mxu0 %v5845_v19  ;;  %v7359_v19 = vld [vmem:[%s9418_s1 + $0x800] sm:$0xff]  }
  0xe4   :  { %5068 = vmatmul.mubr.bf16.vlgmr.msra.gmra.mrb[24].mxu1 %v5847_v22  ;;  %6706 = vmatpush3.bf16.msra.mxu0 %v7327_v26  ;;  %v7362_v22 = vld [vmem:[%s9418_s1 + $0x8c8] sm:$0xff]   ;;  %v7366_v26 = vld [vmem:[%s9418_s1 + $0x8d0] sm:$0xff]   ;;  %v7392_v12 = vld [vmem:[%s9418_s1 + $0x980] sm:$0xff]  }
  0xe5   :  { %6728 = vmatpush3.bf16.msra.mxu1 %v7328_v27  ;;  %6707 = vmatprep.subr.bf16.mxu0 %v7329_v28  ;;  %v7367_v27 = vld [vmem:[%s9418_s1 + $0x810] sm:$0xff]  }
  0xe6   :  { %6729 = vmatprep.subr.bf16.mxu1 %v7330_v29  ;;  %5108 = vmatprep.mubr.bf16.mxu0 %v5850_v14  ;;  %v7368_v28 = vld [vmem:[%s9418_s1 + $0x890] sm:$0xff]   ;;  %v7369_v29 = vld [vmem:[%s9418_s1 + $0x858] sm:$0xff]   ;;  %v7394_v14 = vld [vmem:[%s9418_s1 + $0x9c8] sm:$0xff]  }
  0xe7   :  { %5149 = vmatprep.mubr.bf16.mxu1 %v5852_v16  ;;  %v7396_v16 = vld [vmem:[%s9418_s1 + $0x988] sm:$0xff]  }
  0xe8   :  { %6708 = vmatpush3.bf16.msra.mxu0 %v7331_v30  ;;  %v7370_v30 = vld [vmem:[%s9418_s1 + $0x8d8] sm:$0xff]  }
  0xe9   :  { %6730 = vmatpush3.bf16.msra.mxu1 %v7332_v31  ;;  %6709 = vmatprep.subr.bf16.mxu0 %v7333_v32  ;;  %v7371_v32 = vld [vmem:[%s9418_s1 + $0x818] sm:$0xff]  }
  0xea   :  { %6731 = vmatprep.subr.bf16.mxu1 %v7334_v33 }
  0xec   :  { %6710 = vmatpush3.bf16.msra.mxu0 %v7335_v34  ;;  %v7372_v34 = vld [vmem:[%s9418_s1 + $0x898] sm:$0xff]  }
  0xed   :  { %6732 = vmatpush3.bf16.msra.mxu1 %v7336_v35  ;;  %6711 = vmatprep.subr.bf16.mxu0 %v7337_v36  ;;  %v7373_v36 = vld [vmem:[%s9418_s1 + $0x860] sm:$0xff]  }
  0xee   :  { %6733 = vmatprep.subr.bf16.mxu1 %v7338_v37 }
  0xf0   :  { %6712 = vmatpush3.bf16.msra.mxu0 %v7339_v39  ;;  %v7374_v39 = vld [vmem:[%s9418_s1 + $0x8e0] sm:$0xff]  }
  0xf1   :  { %6734 = vmatpush3.bf16.msra.mxu1 %v7340_v41  ;;  %6713 = vmatprep.subr.bf16.mxu0 %v7341_v43 }
  0xf2   :  { %6735 = vmatprep.subr.bf16.mxu1 %v7342_v46 }
  0xf4   :  { %6714 = vmatpush3.bf16.msra.mxu0 %v7343_v49 }
  0xf5   :  { %6736 = vmatpush3.bf16.msra.mxu1 %v7344_v51  ;;  %6715 = vmatprep.subr.bf16.mxu0 %v7345_v55  ;;  %v7378_v51 = vld [vmem:[%s9418_s1 + $0x8e8] sm:$0xff]  }
  0xf6   :  { %v6413_v38 = vpop.f32.mrb[0].mxu0  ;;  %6737 = vmatprep.subr.bf16.mxu1 %v7346_v58  ;;  %v7380_v55 = vld [vmem:[%s9418_s1 + $0x8a8] sm:$0xff]   ;;  %v7382_v58 = vld [vmem:[%s9418_s1 + $0x8f0] sm:$0xff]  }
  0xf7   :  { %v6435_v40 = vpop.f32.mrb[0].mxu1  ;;  %v6414_v42 = vpop.f32.mrb[1].mxu0 }
  0xf8   :  { %v6415_v44 = vadd.f32 %v6414_v42, %v6413_v38  ;;  %v6436_v45 = vpop.f32.mrb[1].mxu1  ;;  %v6416_v48 = vpop.f32.mrb[2].mxu0  ;;  %6716 = vmatpush3.bf16.msra.mxu0 %v7347_v61  ;;  %v7375_v42 = vld [vmem:[%s9418_s1 + $0x820] sm:$0xff]   ;;  %v7385_v61 = vld [vmem:[%s9418_s1 + $0x878] sm:$0xff]  }
  0xf9   :  { %v6437_v47 = vadd.f32 %v6436_v45, %v6435_v40  ;;  %v6438_v50 = vpop.f32.mrb[2].mxu1  ;;  %v6417_v53 = vpop.f32.mrb[3].mxu0  ;;  %6738 = vmatpush3.bf16.msra.mxu1 %v7348_v63  ;;  %6717 = vmatprep.subr.bf16.mxu0 %v7349_v1  ;;  %v7376_v45 = vld [vmem:[%s9418_s1 + $0x8a0] sm:$0xff]   ;;  %v7387_v63 = vld [vmem:[%s9418_s1 + $0x838] sm:$0xff]  }
  0xfa   :  { %v4537_v54 = vadd.f32 %v6415_v44, %v5820_v52  ;;  %v6418_v56 = vadd.f32 %v6417_v53, %v6416_v48  ;;  %v6439_v57 = vpop.f32.mrb[3].mxu1  ;;  %6739 = vmatprep.subr.bf16.mxu1 %v7350_v2  ;;  %v7377_v48 = vld [vmem:[%s9418_s1 + $0x868] sm:$0xff]   ;;  %v31_v1 = vld [vmem:[%s9419_s0 + $0x80] sm:$0xff] }
  0xfb   :  { %v6440_v59 = vadd.f32 %v6439_v57, %v6438_v50  ;;  %v7379_v53 = vld [vmem:[%s9418_s1 + $0x828] sm:$0xff]   ;;  %v7381_v57 = vld [vmem:[%s9418_s1 + $0x870] sm:$0xff]   ;;  %v63_v2 = vld [vmem:[%s9419_s0 + $0x180] sm:$0xff] }
  0xfc   :  { %v8458_v60 = vadd.f32 %v6437_v47, %v4537_v54  ;;  %v4540_v62 = vadd.f32 %v6418_v56, %v5820_v52  ;;  %6718 = vmatpush3.bf16.msra.mxu0 %v7351_v3  ;;  %v32_v3 = vld [vmem:[%s9419_s0 + $0x88] sm:$0xff] }
  0xfd   :  { %6740 = vmatpush3.bf16.msra.mxu1 %v7352_v4  ;;  %6719 = vmatprep.subr.bf16.mxu0 %v7353_v5  ;;  %v5853_v4 = vcombine.low %v31_v1, %v63_v2  ;;  %v5854_v5 = vcombine.high %v31_v1, %v63_v2  ;;  %v7421_v1 = vld [vmem:[%s9418_s1 + $0xa40] sm:$0xff]  }
  0xfe   :  { %v8466_v0 = vadd.f32 %v6440_v59, %v4540_v62  ;;  %6741 = vmatprep.subr.bf16.mxu1 %v7354_v6  ;;  %v7383_v59 = vld [vmem:[%s9418_s1 + $0x830] sm:$0xff]   ;;  %v7386_v62 = vld [vmem:[%s9418_s1 + $0x8f8] sm:$0xff]   ;;  %v64_v6 = vld [vmem:[%s9419_s0 + $0x188] sm:$0xff] }
  0xff   :  { %v7422_v2 = vld [vmem:[%s9418_s1 + $0xac0] sm:$0xff]  }
 0x100   :  { %6720 = vmatpush3.bf16.msra.mxu0 %v7355_v7  ;;  %v5855_v7 = vcombine.low %v32_v3, %v64_v6 }
 0x101   :  { %6742 = vmatpush3.bf16.msra.mxu1 %v7356_v8  ;;  %6749 = vmatprep.subr.bf16.mxu0 %v7357_v17  ;;  %v5856_v8 = vcombine.high %v32_v3, %v64_v6  ;;  %v7397_v17 = vld [vmem:[%s9418_s1 + $0x950] sm:$0xff]   ;;  %v7423_v3 = vld [vmem:[%s9418_s1 + $0xa00] sm:$0xff]   ;;  %v7426_v6 = vld [vmem:[%s9418_s1 + $0xac8] sm:$0xff]  }
 0x102   :  { %6771 = vmatprep.subr.bf16.mxu1 %v7358_v18  ;;  %v7398_v18 = vld [vmem:[%s9418_s1 + $0x9d0] sm:$0xff]  }
 0x103   :  { %5109 = vmatmul.mubr.bf16.vlgmr.msra.gmra.mrb[28].mxu0 %v5849_v13  ;;  %v7393_v13 = vld [vmem:[%s9418_s1 + $0x948] sm:$0xff]  }
 0x104   :  { %5150 = vmatmul.mubr.bf16.vlgmr.msra.gmra.mrb[28].mxu1 %v5851_v15  ;;  %6750 = vmatpush3.bf16.msra.mxu0 %v7359_v19  ;;  %v7395_v15 = vld [vmem:[%s9418_s1 + $0x908] sm:$0xff]   ;;  %v7399_v19 = vld [vmem:[%s9418_s1 + $0x910] sm:$0xff]  }
 0x105   :  { %6772 = vmatpush3.bf16.msra.mxu1 %v7360_v20  ;;  %6751 = vmatprep.subr.bf16.mxu0 %v7361_v21  ;;  %v7400_v20 = vld [vmem:[%s9418_s1 + $0x990] sm:$0xff]   ;;  %v7401_v21 = vld [vmem:[%s9418_s1 + $0x958] sm:$0xff]  }
 0x106   :  { %6773 = vmatprep.subr.bf16.mxu1 %v7362_v22  ;;  %5190 = vmatprep.mubr.bf16.mxu0 %v5854_v5  ;;  %v7402_v22 = vld [vmem:[%s9418_s1 + $0x9d8] sm:$0xff]   ;;  %v7425_v5 = vld [vmem:[%s9418_s1 + $0xa48] sm:$0xff]  }
 0x107   :  { %5231 = vmatprep.mubr.bf16.mxu1 %v5856_v8  ;;  %v7428_v8 = vld [vmem:[%s9418_s1 + $0xa88] sm:$0xff]  }
 0x108   :  { %6752 = vmatpush3.bf16.msra.mxu0 %v7363_v23 }
 0x109   :  { %6774 = vmatpush3.bf16.msra.mxu1 %v7364_v24  ;;  %6753 = vmatprep.subr.bf16.mxu0 %v7365_v25  ;;  %v7403_v24 = vld [vmem:[%s9418_s1 + $0x918] sm:$0xff]  }
 0x10a   :  { %6775 = vmatprep.subr.bf16.mxu1 %v7366_v26  ;;  %v7404_v26 = vld [vmem:[%s9418_s1 + $0x998] sm:$0xff]  }
 0x10c   :  { %6754 = vmatpush3.bf16.msra.mxu0 %v7367_v27 }
 0x10d   :  { %6776 = vmatpush3.bf16.msra.mxu1 %v7368_v28  ;;  %6755 = vmatprep.subr.bf16.mxu0 %v7369_v29  ;;  %v7405_v28 = vld [vmem:[%s9418_s1 + $0x960] sm:$0xff]  }
 0x10e   :  { %6777 = vmatprep.subr.bf16.mxu1 %v7370_v30 }
 0x110   :  { %6756 = vmatpush3.bf16.msra.mxu0 %v7371_v32 }
 0x111   :  { %6778 = vmatpush3.bf16.msra.mxu1 %v7372_v34  ;;  %6757 = vmatprep.subr.bf16.mxu0 %v7373_v36  ;;  %v7407_v34 = vld [vmem:[%s9418_s1 + $0x920] sm:$0xff]  }
 0x112   :  { %6779 = vmatprep.subr.bf16.mxu1 %v7374_v39 }
 0x114   :  { %6758 = vmatpush3.bf16.msra.mxu0 %v7375_v42 }
 0x115   :  { %6780 = vmatpush3.bf16.msra.mxu1 %v7376_v45  ;;  %6759 = vmatprep.subr.bf16.mxu0 %v7377_v48  ;;  %v7411_v45 = vld [vmem:[%s9418_s1 + $0x928] sm:$0xff]  }
 0x116   :  { %v6457_v31 = vpop.f32.mrb[4].mxu0  ;;  %6781 = vmatprep.subr.bf16.mxu1 %v7378_v51  ;;  %v7415_v51 = vld [vmem:[%s9418_s1 + $0x930] sm:$0xff]  }
 0x117   :  { %v6479_v33 = vpop.f32.mrb[4].mxu1  ;;  %v6458_v35 = vpop.f32.mrb[5].mxu0 }
 0x118   :  { %v6459_v37 = vadd.f32 %v6458_v35, %v6457_v31  ;;  %v6480_v38 = vpop.f32.mrb[5].mxu1  ;;  %v6460_v41 = vpop.f32.mrb[6].mxu0  ;;  %6760 = vmatpush3.bf16.msra.mxu0 %v7379_v53  ;;  %v7406_v31 = vld [vmem:[%s9418_s1 + $0x9e0] sm:$0xff]   ;;  %v7417_v53 = vld [vmem:[%s9418_s1 + $0x978] sm:$0xff]  }
 0x119   :  { %v6481_v40 = vadd.f32 %v6480_v38, %v6479_v33  ;;  %v6482_v44 = vpop.f32.mrb[6].mxu1  ;;  %v6461_v46 = vpop.f32.mrb[7].mxu0  ;;  %6782 = vmatpush3.bf16.msra.mxu1 %v7380_v55  ;;  %6761 = vmatprep.subr.bf16.mxu0 %v7381_v57  ;;  %v7419_v55 = vld [vmem:[%s9418_s1 + $0x938] sm:$0xff]   ;;  %v33_v57 = vld [vmem:[%s9419_s0 + $0x90] sm:$0xff] }
 0x11a   :  { %v4619_v43 = vadd.f32 %v6459_v37, %v8458_v60  ;;  %v6462_v49 = vadd.f32 %v6461_v46, %v6460_v41  ;;  %v6483_v50 = vpop.f32.mrb[7].mxu1  ;;  %6783 = vmatprep.subr.bf16.mxu1 %v7382_v58  ;;  %v7384_v60 = vld [vmem:[%s9418_s1 + $0x8b0] sm:$0xff]   ;;  %v7408_v37 = vld [vmem:[%s9418_s1 + $0x9a0] sm:$0xff]  }
 0x11b   :  { %v6484_v52 = vadd.f32 %v6483_v50, %v6482_v44  ;;  %v7414_v50 = vld [vmem:[%s9418_s1 + $0x9f0] sm:$0xff]  }
 0x11c   :  { %v8565_v47 = vadd.f32 %v6481_v40, %v4619_v43  ;;  %v4622_v54 = vadd.f32 %v6462_v49, %v8466_v0  ;;  %6762 = vmatpush3.bf16.msra.mxu0 %v7383_v59  ;;  %v7388_v0 = vld [vmem:[%s9418_s1 + $0x8b8] sm:$0xff]   ;;  %v7409_v40 = vld [vmem:[%s9418_s1 + $0x968] sm:$0xff]   ;;  %v7413_v49 = vld [vmem:[%s9418_s1 + $0x970] sm:$0xff]  }
 0x11d   :  { %6784 = vmatpush3.bf16.msra.mxu1 %v7384_v60  ;;  %6763 = vmatprep.subr.bf16.mxu0 %v7385_v61  ;;  %v7410_v43 = vld [vmem:[%s9418_s1 + $0x9e8] sm:$0xff]   ;;  %v65_v58 = vld [vmem:[%s9419_s0 + $0x190] sm:$0xff]  ;;  %v34_v61 = vld [vmem:[%s9419_s0 + $0x98] sm:$0xff] }
 0x11e   :  { %v8580_v56 = vadd.f32 %v6484_v52, %v4622_v54  ;;  %6785 = vmatprep.subr.bf16.mxu1 %v7386_v62  ;;  %v7416_v52 = vld [vmem:[%s9418_s1 + $0x9b0] sm:$0xff]   ;;  %v7418_v54 = vld [vmem:[%s9418_s1 + $0x9f8] sm:$0xff]   ;;  %v5857_v59 = vcombine.low %v33_v57, %v65_v58  ;;  %v5858_v60 = vcombine.high %v33_v57, %v65_v58  ;;  %v7453_v57 = vld [vmem:[%s9418_s1 + $0xb40] sm:$0xff]  }
 0x11f   :  { %v66_v62 = vld [vmem:[%s9419_s0 + $0x198] sm:$0xff]  ;;  %v7454_v58 = vld [vmem:[%s9418_s1 + $0xbc0] sm:$0xff]  }
 0x120   :  { %6764 = vmatpush3.bf16.msra.mxu0 %v7387_v63  ;;  %v5859_v63 = vcombine.low %v34_v61, %v66_v62 }
 0x121   :  { %6786 = vmatpush3.bf16.msra.mxu1 %v7388_v0  ;;  %6793 = vmatprep.subr.bf16.mxu0 %v7389_v9  ;;  %v5860_v0 = vcombine.high %v34_v61, %v66_v62  ;;  %v7429_v9 = vld [vmem:[%s9418_s1 + $0xa50] sm:$0xff]   ;;  %v7457_v61 = vld [vmem:[%s9418_s1 + $0xb48] sm:$0xff]  }
 0x122   :  { %6815 = vmatprep.subr.bf16.mxu1 %v7390_v10  ;;  %v7430_v10 = vld [vmem:[%s9418_s1 + $0xad0] sm:$0xff]   ;;  %v7458_v62 = vld [vmem:[%s9418_s1 + $0xbc8] sm:$0xff]  }
 0x123   :  { %5191 = vmatmul.mubr.bf16.vlgmr.msra.gmra.mrb[32].mxu0 %v5853_v4  ;;  %v7424_v4 = vld [vmem:[%s9418_s1 + $0xa80] sm:$0xff]  }
 0x124   :  { %5232 = vmatmul.mubr.bf16.vlgmr.msra.gmra.mrb[32].mxu1 %v5855_v7  ;;  %6794 = vmatpush3.bf16.msra.mxu0 %v7391_v11  ;;  %v7427_v7 = vld [vmem:[%s9418_s1 + $0xa08] sm:$0xff]   ;;  %v7431_v11 = vld [vmem:[%s9418_s1 + $0xa10] sm:$0xff]  }
 0x125   :  { %6816 = vmatpush3.bf16.msra.mxu1 %v7392_v12  ;;  %6795 = vmatprep.subr.bf16.mxu0 %v7393_v13  ;;  %v7432_v12 = vld [vmem:[%s9418_s1 + $0xa90] sm:$0xff]   ;;  %v7433_v13 = vld [vmem:[%s9418_s1 + $0xa58] sm:$0xff]  }
 0x126   :  { %6817 = vmatprep.subr.bf16.mxu1 %v7394_v14  ;;  %5272 = vmatprep.mubr.bf16.mxu0 %v5858_v60  ;;  %v7434_v14 = vld [vmem:[%s9418_s1 + $0xad8] sm:$0xff]   ;;  %v7456_v60 = vld [vmem:[%s9418_s1 + $0xb80] sm:$0xff]  }
 0x127   :  { %5313 = vmatprep.mubr.bf16.mxu1 %v5860_v0  ;;  %v7460_v0 = vld [vmem:[%s9418_s1 + $0xb88] sm:$0xff]  }
 0x128   :  { %6796 = vmatpush3.bf16.msra.mxu0 %v7395_v15 }
 0x129   :  { %6818 = vmatpush3.bf16.msra.mxu1 %v7396_v16  ;;  %6797 = vmatprep.subr.bf16.mxu0 %v7397_v17  ;;  %v7435_v16 = vld [vmem:[%s9418_s1 + $0xa18] sm:$0xff]  }
 0x12a   :  { %6819 = vmatprep.subr.bf16.mxu1 %v7398_v18  ;;  %v7436_v18 = vld [vmem:[%s9418_s1 + $0xa98] sm:$0xff]  }
 0x12c   :  { %6798 = vmatpush3.bf16.msra.mxu0 %v7399_v19 }
 0x12d   :  { %6820 = vmatpush3.bf16.msra.mxu1 %v7400_v20  ;;  %6799 = vmatprep.subr.bf16.mxu0 %v7401_v21  ;;  %v7437_v20 = vld [vmem:[%s9418_s1 + $0xa60] sm:$0xff]  }
 0x12e   :  { %6821 = vmatprep.subr.bf16.mxu1 %v7402_v22 }
 0x130   :  { %6800 = vmatpush3.bf16.msra.mxu0 %v7403_v24 }
 0x131   :  { %6822 = vmatpush3.bf16.msra.mxu1 %v7404_v26  ;;  %6801 = vmatprep.subr.bf16.mxu0 %v7405_v28  ;;  %v7439_v26 = vld [vmem:[%s9418_s1 + $0xa20] sm:$0xff]  }
 0x132   :  { %6823 = vmatprep.subr.bf16.mxu1 %v7406_v31 }
 0x134   :  { %6802 = vmatpush3.bf16.msra.mxu0 %v7407_v34 }
 0x135   :  { %6824 = vmatpush3.bf16.msra.mxu1 %v7408_v37  ;;  %6803 = vmatprep.subr.bf16.mxu0 %v7409_v40  ;;  %v7443_v37 = vld [vmem:[%s9418_s1 + $0xa28] sm:$0xff]  }
 0x136   :  { %v6501_v23 = vpop.f32.mrb[8].mxu0  ;;  %6825 = vmatprep.subr.bf16.mxu1 %v7410_v43  ;;  %v7447_v43 = vld [vmem:[%s9418_s1 + $0xa30] sm:$0xff]  }
 0x137   :  { %v6523_v25 = vpop.f32.mrb[8].mxu1  ;;  %v6502_v27 = vpop.f32.mrb[9].mxu0 }
 0x138   :  { %v6503_v29 = vadd.f32 %v6502_v27, %v6501_v23  ;;  %v6524_v30 = vpop.f32.mrb[9].mxu1  ;;  %v6504_v33 = vpop.f32.mrb[10].mxu0  ;;  %6804 = vmatpush3.bf16.msra.mxu0 %v7411_v45  ;;  %v7438_v23 = vld [vmem:[%s9418_s1 + $0xae0] sm:$0xff]   ;;  %v7449_v45 = vld [vmem:[%s9418_s1 + $0xa78] sm:$0xff]  }
 0x139   :  { %v6525_v32 = vadd.f32 %v6524_v30, %v6523_v25  ;;  %v6526_v36 = vpop.f32.mrb[10].mxu1  ;;  %v6505_v38 = vpop.f32.mrb[11].mxu0  ;;  %6805 = vmatprep.subr.bf16.mxu0 %v7413_v49  ;;  %v35_v49 = vld [vmem:[%s9419_s0 + $0xa0] sm:$0xff] }
 0x13a   :  { %v4701_v35 = vadd.f32 %v6503_v29, %v8565_v47  ;;  %v6506_v41 = vadd.f32 %v6505_v38, %v6504_v33  ;;  %v6527_v42 = vpop.f32.mrb[11].mxu1  ;;  %v7412_v47 = vld [vmem:[%s9418_s1 + $0x9a8] sm:$0xff]   ;;  %v7440_v29 = vld [vmem:[%s9418_s1 + $0xaa0] sm:$0xff]  }
 0x13b   :  { %v6528_v44 = vadd.f32 %v6527_v42, %v6526_v36  ;;  %6826 = vmatpush3.bf16.msra.mxu1 %v7412_v47  ;;  %v7446_v42 = vld [vmem:[%s9418_s1 + $0xaf0] sm:$0xff]   ;;  %v7451_v47 = vld [vmem:[%s9418_s1 + $0xa38] sm:$0xff]  }
 0x13c   :  { %v8679_v39 = vadd.f32 %v6525_v32, %v4701_v35  ;;  %v4704_v46 = vadd.f32 %v6506_v41, %v8580_v56  ;;  %6827 = vmatprep.subr.bf16.mxu1 %v7414_v50  ;;  %6806 = vmatpush3.bf16.msra.mxu0 %v7415_v51  ;;  %v7420_v56 = vld [vmem:[%s9418_s1 + $0x9b8] sm:$0xff]   ;;  %v7441_v32 = vld [vmem:[%s9418_s1 + $0xa68] sm:$0xff]   ;;  %v7445_v41 = vld [vmem:[%s9418_s1 + $0xa70] sm:$0xff]  }
 0x13d   :  { %6807 = vmatprep.subr.bf16.mxu0 %v7417_v53  ;;  %v7442_v35 = vld [vmem:[%s9418_s1 + $0xae8] sm:$0xff]   ;;  %v67_v50 = vld [vmem:[%s9419_s0 + $0x1a0] sm:$0xff] }
 0x13e   :  { %v8694_v48 = vadd.f32 %v6528_v44, %v4704_v46  ;;  %v7448_v44 = vld [vmem:[%s9418_s1 + $0xab0] sm:$0xff]   ;;  %v7450_v46 = vld [vmem:[%s9418_s1 + $0xaf8] sm:$0xff]   ;;  %v36_v51 = vld [vmem:[%s9419_s0 + $0xa8] sm:$0xff]  ;;  %v5861_v53 = vcombine.low %v35_v49, %v67_v50 }
 0x13f   :  { %6828 = vmatpush3.bf16.msra.mxu1 %v7416_v52  ;;  %v68_v52 = vld [vmem:[%s9419_s0 + $0x1a8] sm:$0xff] }
 0x140   :  { %6829 = vmatprep.subr.bf16.mxu1 %v7418_v54  ;;  %6808 = vmatpush3.bf16.msra.mxu0 %v7419_v55  ;;  %v5862_v54 = vcombine.high %v35_v49, %v67_v50  ;;  %v5863_v55 = vcombine.low %v36_v51, %v68_v52  ;;  %v7485_v49 = vld [vmem:[%s9418_s1 + $0xc40] sm:$0xff]  }
 0x141   :  { %6837 = vmatprep.subr.bf16.mxu0 %v7421_v1  ;;  %v7461_v1 = vld [vmem:[%s9418_s1 + $0xb50] sm:$0xff]   ;;  %v7486_v50 = vld [vmem:[%s9418_s1 + $0xcc0] sm:$0xff]  }
 0x143   :  { %6830 = vmatpush3.bf16.msra.mxu1 %v7420_v56  ;;  %5273 = vmatmul.mubr.bf16.vlgmr.msra.gmra.mrb[36].mxu0 %v5857_v59  ;;  %v5864_v56 = vcombine.high %v36_v51, %v68_v52  ;;  %v7455_v59 = vld [vmem:[%s9418_s1 + $0xb00] sm:$0xff]  }
 0x144   :  { %6859 = vmatprep.subr.bf16.mxu1 %v7422_v2  ;;  %6838 = vmatpush3.bf16.msra.mxu0 %v7423_v3  ;;  %v7462_v2 = vld [vmem:[%s9418_s1 + $0xbd0] sm:$0xff]   ;;  %v7487_v51 = vld [vmem:[%s9418_s1 + $0xc00] sm:$0xff]  }
 0x145   :  { %6839 = vmatprep.subr.bf16.mxu0 %v7425_v5  ;;  %5354 = vmatprep.mubr.bf16.mxu0 %v5862_v54  ;;  %v7463_v3 = vld [vmem:[%s9418_s1 + $0xb10] sm:$0xff]   ;;  %v7465_v5 = vld [vmem:[%s9418_s1 + $0xb58] sm:$0xff]   ;;  %v7488_v52 = vld [vmem:[%s9418_s1 + $0xc80] sm:$0xff]  }
 0x146   :  { %5314 = vmatmul.mubr.bf16.vlgmr.msra.gmra.mrb[36].mxu1 %v5859_v63  ;;  %v7459_v63 = vld [vmem:[%s9418_s1 + $0xb08] sm:$0xff]  }
 0x147   :  { %6860 = vmatpush3.bf16.msra.mxu1 %v7424_v4  ;;  %5395 = vmatprep.mubr.bf16.mxu1 %v5864_v56  ;;  %v7464_v4 = vld [vmem:[%s9418_s1 + $0xb90] sm:$0xff]   ;;  %v7490_v54 = vld [vmem:[%s9418_s1 + $0xcc8] sm:$0xff]  }
 0x148   :  { %6861 = vmatprep.subr.bf16.mxu1 %v7426_v6  ;;  %6840 = vmatpush3.bf16.msra.mxu0 %v7427_v7  ;;  %v7466_v6 = vld [vmem:[%s9418_s1 + $0xbd8] sm:$0xff]   ;;  %v7492_v56 = vld [vmem:[%s9418_s1 + $0xc88] sm:$0xff]  }
 0x149   :  { %6841 = vmatprep.subr.bf16.mxu0 %v7429_v9 }
 0x14b   :  { %6862 = vmatpush3.bf16.msra.mxu1 %v7428_v8  ;;  %v7467_v8 = vld [vmem:[%s9418_s1 + $0xb18] sm:$0xff]  }
 0x14c   :  { %6863 = vmatprep.subr.bf16.mxu1 %v7430_v10  ;;  %6842 = vmatpush3.bf16.msra.mxu0 %v7431_v11  ;;  %v7468_v10 = vld [vmem:[%s9418_s1 + $0xb98] sm:$0xff]  }
 0x14d   :  { %6843 = vmatprep.subr.bf16.mxu0 %v7433_v13 }
 0x14f   :  { %6864 = vmatpush3.bf16.msra.mxu1 %v7432_v12  ;;  %v7469_v12 = vld [vmem:[%s9418_s1 + $0xb60] sm:$0xff]  }
 0x150   :  { %6865 = vmatprep.subr.bf16.mxu1 %v7434_v14  ;;  %6844 = vmatpush3.bf16.msra.mxu0 %v7435_v16 }
 0x151   :  { %6845 = vmatprep.subr.bf16.mxu0 %v7437_v20 }
 0x153   :  { %6866 = vmatpush3.bf16.msra.mxu1 %v7436_v18  ;;  %v7471_v18 = vld [vmem:[%s9418_s1 + $0xb20] sm:$0xff]  }
 0x154   :  { %6867 = vmatprep.subr.bf16.mxu1 %v7438_v23  ;;  %6846 = vmatpush3.bf16.msra.mxu0 %v7439_v26 }
 0x155   :  { %6847 = vmatprep.subr.bf16.mxu0 %v7441_v32 }
 0x156   :  { %v6545_v15 = vpop.f32.mrb[12].mxu0 }
 0x157   :  { %v6567_v17 = vpop.f32.mrb[12].mxu1  ;;  %v6546_v19 = vpop.f32.mrb[13].mxu0  ;;  %6868 = vmatpush3.bf16.msra.mxu1 %v7440_v29  ;;  %v7475_v29 = vld [vmem:[%s9418_s1 + $0xb28] sm:$0xff]  }
 0x158   :  { %v6547_v21 = vadd.f32 %v6546_v19, %v6545_v15  ;;  %v6568_v22 = vpop.f32.mrb[13].mxu1  ;;  %v6548_v25 = vpop.f32.mrb[14].mxu0  ;;  %6869 = vmatprep.subr.bf16.mxu1 %v7442_v35  ;;  %6848 = vmatpush3.bf16.msra.mxu0 %v7443_v37  ;;  %v7470_v15 = vld [vmem:[%s9418_s1 + $0xbe0] sm:$0xff]   ;;  %v7479_v35 = vld [vmem:[%s9418_s1 + $0xb30] sm:$0xff]   ;;  %v7481_v37 = vld [vmem:[%s9418_s1 + $0xb78] sm:$0xff]  }
 0x159   :  { %v6569_v24 = vadd.f32 %v6568_v22, %v6567_v17  ;;  %v6570_v28 = vpop.f32.mrb[14].mxu1  ;;  %v6549_v30 = vpop.f32.mrb[15].mxu0  ;;  %6849 = vmatprep.subr.bf16.mxu0 %v7445_v41  ;;  %v37_v41 = vld [vmem:[%s9419_s0 + $0xb0] sm:$0xff] }
 0x15a   :  { %v4783_v27 = vadd.f32 %v6547_v21, %v8679_v39  ;;  %v6550_v33 = vadd.f32 %v6549_v30, %v6548_v25  ;;  %v6571_v34 = vpop.f32.mrb[15].mxu1  ;;  %v7444_v39 = vld [vmem:[%s9418_s1 + $0xaa8] sm:$0xff]   ;;  %v7472_v21 = vld [vmem:[%s9418_s1 + $0xba0] sm:$0xff]  }
 0x15b   :  { %v6572_v36 = vadd.f32 %v6571_v34, %v6570_v28  ;;  %6870 = vmatpush3.bf16.msra.mxu1 %v7444_v39  ;;  %v7478_v34 = vld [vmem:[%s9418_s1 + $0xbf0] sm:$0xff]   ;;  %v7483_v39 = vld [vmem:[%s9418_s1 + $0xb38] sm:$0xff]  }
 0x15c   :  { %v8793_v31 = vadd.f32 %v6569_v24, %v4783_v27  ;;  %v4786_v38 = vadd.f32 %v6550_v33, %v8694_v48  ;;  %6871 = vmatprep.subr.bf16.mxu1 %v7446_v42  ;;  %6850 = vmatpush3.bf16.msra.mxu0 %v7447_v43  ;;  %v7452_v48 = vld [vmem:[%s9418_s1 + $0xab8] sm:$0xff]   ;;  %v7473_v24 = vld [vmem:[%s9418_s1 + $0xb68] sm:$0xff]   ;;  %v7477_v33 = vld [vmem:[%s9418_s1 + $0xb70] sm:$0xff]  }
 0x15d   :  { %6851 = vmatprep.subr.bf16.mxu0 %v7449_v45  ;;  %v7474_v27 = vld [vmem:[%s9418_s1 + $0xbe8] sm:$0xff]   ;;  %v69_v42 = vld [vmem:[%s9419_s0 + $0x1b0] sm:$0xff]  ;;  %v38_v43 = vld [vmem:[%s9419_s0 + $0xb8] sm:$0xff] }
 0x15e   :  { %v8808_v40 = vadd.f32 %v6572_v36, %v4786_v38  ;;  %v7480_v36 = vld [vmem:[%s9418_s1 + $0xbb0] sm:$0xff]   ;;  %v7482_v38 = vld [vmem:[%s9418_s1 + $0xbf8] sm:$0xff]   ;;  %v5866_v45 = vcombine.high %v37_v41, %v69_v42 }
 0x15f   :  { %6872 = vmatpush3.bf16.msra.mxu1 %v7448_v44  ;;  %v5865_v44 = vcombine.low %v37_v41, %v69_v42  ;;  %v7517_v41 = vld [vmem:[%s9418_s1 + $0xd40] sm:$0xff]  }
 0x160   :  { %6873 = vmatprep.subr.bf16.mxu1 %v7450_v46  ;;  %6852 = vmatpush3.bf16.msra.mxu0 %v7451_v47  ;;  %v70_v46 = vld [vmem:[%s9419_s0 + $0x1b8] sm:$0xff]  ;;  %v7518_v42 = vld [vmem:[%s9418_s1 + $0xdc0] sm:$0xff]  }
 0x161   :  { %6881 = vmatprep.subr.bf16.mxu0 %v7453_v57  ;;  %v5867_v47 = vcombine.low %v38_v43, %v70_v46  ;;  %v7493_v57 = vld [vmem:[%s9418_s1 + $0xc50] sm:$0xff]  }
 0x163   :  { %6874 = vmatpush3.bf16.msra.mxu1 %v7452_v48  ;;  %5355 = vmatmul.mubr.bf16.vlgmr.msra.gmra.mrb[40].mxu0 %v5861_v53  ;;  %v5868_v48 = vcombine.high %v38_v43, %v70_v46  ;;  %v7489_v53 = vld [vmem:[%s9418_s1 + $0xc48] sm:$0xff]   ;;  %v7519_v43 = vld [vmem:[%s9418_s1 + $0xd00] sm:$0xff]  }
 0x164   :  { %6903 = vmatprep.subr.bf16.mxu1 %v7454_v58  ;;  %6882 = vmatpush3.bf16.msra.mxu0 %v7455_v59  ;;  %v7494_v58 = vld [vmem:[%s9418_s1 + $0xcd0] sm:$0xff]   ;;  %v7522_v46 = vld [vmem:[%s9418_s1 + $0xdc8] sm:$0xff]  }
 0x165   :  { %6883 = vmatprep.subr.bf16.mxu0 %v7457_v61  ;;  %5436 = vmatprep.mubr.bf16.mxu0 %v5866_v45  ;;  %v7495_v59 = vld [vmem:[%s9418_s1 + $0xc10] sm:$0xff]   ;;  %v7497_v61 = vld [vmem:[%s9418_s1 + $0xc58] sm:$0xff]   ;;  %v7521_v45 = vld [vmem:[%s9418_s1 + $0xd48] sm:$0xff]  }
 0x166   :  { %5396 = vmatmul.mubr.bf16.vlgmr.msra.gmra.mrb[40].mxu1 %v5863_v55  ;;  %v7491_v55 = vld [vmem:[%s9418_s1 + $0xc08] sm:$0xff]  }
 0x167   :  { %6904 = vmatpush3.bf16.msra.mxu1 %v7456_v60  ;;  %5477 = vmatprep.mubr.bf16.mxu1 %v5868_v48  ;;  %v7496_v60 = vld [vmem:[%s9418_s1 + $0xc90] sm:$0xff]   ;;  %v7524_v48 = vld [vmem:[%s9418_s1 + $0xd88] sm:$0xff]  }
 0x168   :  { %6905 = vmatprep.subr.bf16.mxu1 %v7458_v62  ;;  %6884 = vmatpush3.bf16.msra.mxu0 %v7459_v63  ;;  %v7498_v62 = vld [vmem:[%s9418_s1 + $0xcd8] sm:$0xff]  }
 0x169   :  { %6885 = vmatprep.subr.bf16.mxu0 %v7461_v1 }
 0x16b   :  { %6906 = vmatpush3.bf16.msra.mxu1 %v7460_v0  ;;  %v7499_v0 = vld [vmem:[%s9418_s1 + $0xc18] sm:$0xff]  }
 0x16c   :  { %6907 = vmatprep.subr.bf16.mxu1 %v7462_v2  ;;  %6886 = vmatpush3.bf16.msra.mxu0 %v7463_v3  ;;  %v7500_v2 = vld [vmem:[%s9418_s1 + $0xc98] sm:$0xff]  }
 0x16d   :  { %6887 = vmatprep.subr.bf16.mxu0 %v7465_v5 }
 0x16f   :  { %6908 = vmatpush3.bf16.msra.mxu1 %v7464_v4  ;;  %v7501_v4 = vld [vmem:[%s9418_s1 + $0xc60] sm:$0xff]  }
 0x170   :  { %6909 = vmatprep.subr.bf16.mxu1 %v7466_v6  ;;  %6888 = vmatpush3.bf16.msra.mxu0 %v7467_v8 }
 0x171   :  { %6889 = vmatprep.subr.bf16.mxu0 %v7469_v12 }
 0x173   :  { %6910 = vmatpush3.bf16.msra.mxu1 %v7468_v10  ;;  %v7503_v10 = vld [vmem:[%s9418_s1 + $0xc20] sm:$0xff]  }
 0x174   :  { %6911 = vmatprep.subr.bf16.mxu1 %v7470_v15  ;;  %6890 = vmatpush3.bf16.msra.mxu0 %v7471_v18 }
 0x175   :  { %6891 = vmatprep.subr.bf16.mxu0 %v7473_v24 }
 0x176   :  { %v6589_v7 = vpop.f32.mrb[16].mxu0 }
 0x177   :  { %v6611_v9 = vpop.f32.mrb[16].mxu1  ;;  %v6590_v11 = vpop.f32.mrb[17].mxu0  ;;  %6912 = vmatpush3.bf16.msra.mxu1 %v7472_v21  ;;  %v7507_v21 = vld [vmem:[%s9418_s1 + $0xc28] sm:$0xff]  }
 0x178   :  { %v6591_v13 = vadd.f32 %v6590_v11, %v6589_v7  ;;  %v6612_v14 = vpop.f32.mrb[17].mxu1  ;;  %v6592_v17 = vpop.f32.mrb[18].mxu0  ;;  %6913 = vmatprep.subr.bf16.mxu1 %v7474_v27  ;;  %6892 = vmatpush3.bf16.msra.mxu0 %v7475_v29  ;;  %v7502_v7 = vld [vmem:[%s9418_s1 + $0xce0] sm:$0xff]   ;;  %v7511_v27 = vld [vmem:[%s9418_s1 + $0xc30] sm:$0xff]   ;;  %v7513_v29 = vld [vmem:[%s9418_s1 + $0xc78] sm:$0xff]  }
 0x179   :  { %v6613_v16 = vadd.f32 %v6612_v14, %v6611_v9  ;;  %v6614_v20 = vpop.f32.mrb[18].mxu1  ;;  %v6593_v22 = vpop.f32.mrb[19].mxu0  ;;  %6893 = vmatprep.subr.bf16.mxu0 %v7477_v33  ;;  %v39_v33 = vld [vmem:[%s9419_s0 + $0xc0] sm:$0xff] }
 0x17a   :  { %v4865_v19 = vadd.f32 %v6591_v13, %v8793_v31  ;;  %v6594_v25 = vadd.f32 %v6593_v22, %v6592_v17  ;;  %v6615_v26 = vpop.f32.mrb[19].mxu1  ;;  %v7476_v31 = vld [vmem:[%s9418_s1 + $0xba8] sm:$0xff]   ;;  %v7504_v13 = vld [vmem:[%s9418_s1 + $0xca0] sm:$0xff]  }
 0x17b   :  { %v6616_v28 = vadd.f32 %v6615_v26, %v6614_v20  ;;  %6914 = vmatpush3.bf16.msra.mxu1 %v7476_v31  ;;  %v7510_v26 = vld [vmem:[%s9418_s1 + $0xcf0] sm:$0xff]   ;;  %v7515_v31 = vld [vmem:[%s9418_s1 + $0xc38] sm:$0xff]  }
 0x17c   :  { %v8907_v23 = vadd.f32 %v6613_v16, %v4865_v19  ;;  %v4868_v30 = vadd.f32 %v6594_v25, %v8808_v40  ;;  %6915 = vmatprep.subr.bf16.mxu1 %v7478_v34  ;;  %6894 = vmatpush3.bf16.msra.mxu0 %v7479_v35  ;;  %v7484_v40 = vld [vmem:[%s9418_s1 + $0xbb8] sm:$0xff]   ;;  %v7505_v16 = vld [vmem:[%s9418_s1 + $0xc68] sm:$0xff]   ;;  %v7509_v25 = vld [vmem:[%s9418_s1 + $0xc70] sm:$0xff]  }
 0x17d   :  { %6895 = vmatprep.subr.bf16.mxu0 %v7481_v37  ;;  %v7506_v19 = vld [vmem:[%s9418_s1 + $0xce8] sm:$0xff]   ;;  %v71_v34 = vld [vmem:[%s9419_s0 + $0x1c0] sm:$0xff] }
 0x17e   :  { %v8922_v32 = vadd.f32 %v6616_v28, %v4868_v30  ;;  %v7512_v28 = vld [vmem:[%s9418_s1 + $0xcb0] sm:$0xff]   ;;  %v7514_v30 = vld [vmem:[%s9418_s1 + $0xcf8] sm:$0xff]   ;;  %v5869_v35 = vcombine.low %v39_v33, %v71_v34  ;;  %v40_v37 = vld [vmem:[%s9419_s0 + $0xc8] sm:$0xff] }
 0x17f   :  { %6916 = vmatpush3.bf16.msra.mxu1 %v7480_v36  ;;  %v5870_v36 = vcombine.high %v39_v33, %v71_v34  ;;  %v7549_v33 = vld [vmem:[%s9418_s1 + $0xe40] sm:$0xff]  }
 0x180   :  { %6917 = vmatprep.subr.bf16.mxu1 %v7482_v38  ;;  %6896 = vmatpush3.bf16.msra.mxu0 %v7483_v39  ;;  %v72_v38 = vld [vmem:[%s9419_s0 + $0x1c8] sm:$0xff]  ;;  %v7550_v34 = vld [vmem:[%s9418_s1 + $0xec0] sm:$0xff]  }
 0x181   :  { %6925 = vmatprep.subr.bf16.mxu0 %v7485_v49  ;;  %v5871_v39 = vcombine.low %v40_v37, %v72_v38  ;;  %v7525_v49 = vld [vmem:[%s9418_s1 + $0xd50] sm:$0xff]  }
 0x183   :  { %6918 = vmatpush3.bf16.msra.mxu1 %v7484_v40  ;;  %5437 = vmatmul.mubr.bf16.vlgmr.msra.gmra.mrb[44].mxu0 %v5865_v44  ;;  %v5872_v40 = vcombine.high %v40_v37, %v72_v38  ;;  %v7520_v44 = vld [vmem:[%s9418_s1 + $0xd80] sm:$0xff]   ;;  %v7553_v37 = vld [vmem:[%s9418_s1 + $0xe48] sm:$0xff]  }
 0x184   :  { %6947 = vmatprep.subr.bf16.mxu1 %v7486_v50  ;;  %6926 = vmatpush3.bf16.msra.mxu0 %v7487_v51  ;;  %v7526_v50 = vld [vmem:[%s9418_s1 + $0xdd0] sm:$0xff]   ;;  %v7554_v38 = vld [vmem:[%s9418_s1 + $0xec8] sm:$0xff]  }
 0x185   :  { %6927 = vmatprep.subr.bf16.mxu0 %v7489_v53  ;;  %5518 = vmatprep.mubr.bf16.mxu0 %v5870_v36  ;;  %v7527_v51 = vld [vmem:[%s9418_s1 + $0xd10] sm:$0xff]   ;;  %v7529_v53 = vld [vmem:[%s9418_s1 + $0xd58] sm:$0xff]   ;;  %v7552_v36 = vld [vmem:[%s9418_s1 + $0xe80] sm:$0xff]  }
 0x186   :  { %5478 = vmatmul.mubr.bf16.vlgmr.msra.gmra.mrb[44].mxu1 %v5867_v47  ;;  %v7523_v47 = vld [vmem:[%s9418_s1 + $0xd08] sm:$0xff]  }
 0x187   :  { %6948 = vmatpush3.bf16.msra.mxu1 %v7488_v52  ;;  %5559 = vmatprep.mubr.bf16.mxu1 %v5872_v40  ;;  %v7528_v52 = vld [vmem:[%s9418_s1 + $0xd90] sm:$0xff]   ;;  %v7556_v40 = vld [vmem:[%s9418_s1 + $0xe88] sm:$0xff]  }
 0x188   :  { %6949 = vmatprep.subr.bf16.mxu1 %v7490_v54  ;;  %6928 = vmatpush3.bf16.msra.mxu0 %v7491_v55  ;;  %v7530_v54 = vld [vmem:[%s9418_s1 + $0xdd8] sm:$0xff]  }
 0x189   :  { %6929 = vmatprep.subr.bf16.mxu0 %v7493_v57 }
 0x18b   :  { %6950 = vmatpush3.bf16.msra.mxu1 %v7492_v56  ;;  %v7531_v56 = vld [vmem:[%s9418_s1 + $0xd18] sm:$0xff]  }
 0x18c   :  { %6951 = vmatprep.subr.bf16.mxu1 %v7494_v58  ;;  %6930 = vmatpush3.bf16.msra.mxu0 %v7495_v59  ;;  %v7532_v58 = vld [vmem:[%s9418_s1 + $0xd98] sm:$0xff]  }
 0x18d   :  { %6931 = vmatprep.subr.bf16.mxu0 %v7497_v61 }
 0x18f   :  { %6952 = vmatpush3.bf16.msra.mxu1 %v7496_v60  ;;  %v7533_v60 = vld [vmem:[%s9418_s1 + $0xd60] sm:$0xff]  }
 0x190   :  { %6953 = vmatprep.subr.bf16.mxu1 %v7498_v62  ;;  %6932 = vmatpush3.bf16.msra.mxu0 %v7499_v0 }
 0x191   :  { %6933 = vmatprep.subr.bf16.mxu0 %v7501_v4 }
 0x193   :  { %6954 = vmatpush3.bf16.msra.mxu1 %v7500_v2  ;;  %v7535_v2 = vld [vmem:[%s9418_s1 + $0xd20] sm:$0xff]  }
 0x194   :  { %6955 = vmatprep.subr.bf16.mxu1 %v7502_v7  ;;  %6934 = vmatpush3.bf16.msra.mxu0 %v7503_v10 }
 0x195   :  { %6935 = vmatprep.subr.bf16.mxu0 %v7505_v16 }
 0x196   :  { %v6633_v63 = vpop.f32.mrb[20].mxu0 }
 0x197   :  { %v6655_v1 = vpop.f32.mrb[20].mxu1  ;;  %v6634_v3 = vpop.f32.mrb[21].mxu0  ;;  %6956 = vmatpush3.bf16.msra.mxu1 %v7504_v13  ;;  %v7539_v13 = vld [vmem:[%s9418_s1 + $0xd28] sm:$0xff]  }
 0x198   :  { %v6635_v5 = vadd.f32 %v6634_v3, %v6633_v63  ;;  %v6656_v6 = vpop.f32.mrb[21].mxu1  ;;  %v6636_v9 = vpop.f32.mrb[22].mxu0  ;;  %6957 = vmatprep.subr.bf16.mxu1 %v7506_v19  ;;  %6936 = vmatpush3.bf16.msra.mxu0 %v7507_v21  ;;  %v7534_v63 = vld [vmem:[%s9418_s1 + $0xde0] sm:$0xff]   ;;  %v7543_v19 = vld [vmem:[%s9418_s1 + $0xd30] sm:$0xff]   ;;  %v7545_v21 = vld [vmem:[%s9418_s1 + $0xd78] sm:$0xff]  }
 0x199   :  { %v6657_v8 = vadd.f32 %v6656_v6, %v6655_v1  ;;  %v6658_v12 = vpop.f32.mrb[22].mxu1  ;;  %v6637_v14 = vpop.f32.mrb[23].mxu0  ;;  %6937 = vmatprep.subr.bf16.mxu0 %v7509_v25  ;;  %v41_v25 = vld [vmem:[%s9419_s0 + $0xd0] sm:$0xff] }
 0x19a   :  { %v4947_v11 = vadd.f32 %v6635_v5, %v8907_v23  ;;  %v6638_v17 = vadd.f32 %v6637_v14, %v6636_v9  ;;  %v6659_v18 = vpop.f32.mrb[23].mxu1  ;;  %v7508_v23 = vld [vmem:[%s9418_s1 + $0xca8] sm:$0xff]   ;;  %v7536_v5 = vld [vmem:[%s9418_s1 + $0xda0] sm:$0xff]  }
 0x19b   :  { %v6660_v20 = vadd.f32 %v6659_v18, %v6658_v12  ;;  %6958 = vmatpush3.bf16.msra.mxu1 %v7508_v23  ;;  %v7542_v18 = vld [vmem:[%s9418_s1 + $0xdf0] sm:$0xff]   ;;  %v7547_v23 = vld [vmem:[%s9418_s1 + $0xd38] sm:$0xff]  }
 0x19c   :  { %v9021_v15 = vadd.f32 %v6657_v8, %v4947_v11  ;;  %v4950_v22 = vadd.f32 %v6638_v17, %v8922_v32  ;;  %6959 = vmatprep.subr.bf16.mxu1 %v7510_v26  ;;  %6938 = vmatpush3.bf16.msra.mxu0 %v7511_v27  ;;  %v7516_v32 = vld [vmem:[%s9418_s1 + $0xcb8] sm:$0xff]   ;;  %v7537_v8 = vld [vmem:[%s9418_s1 + $0xd68] sm:$0xff]   ;;  %v7541_v17 = vld [vmem:[%s9418_s1 + $0xd70] sm:$0xff]  }
 0x19d   :  { %6939 = vmatprep.subr.bf16.mxu0 %v7513_v29  ;;  %v7538_v11 = vld [vmem:[%s9418_s1 + $0xde8] sm:$0xff]   ;;  %v73_v26 = vld [vmem:[%s9419_s0 + $0x1d0] sm:$0xff]  ;;  %v42_v27 = vld [vmem:[%s9419_s0 + $0xd8] sm:$0xff] }
 0x19e   :  { %v9036_v24 = vadd.f32 %v6660_v20, %v4950_v22  ;;  %v7544_v20 = vld [vmem:[%s9418_s1 + $0xdb0] sm:$0xff]   ;;  %v7546_v22 = vld [vmem:[%s9418_s1 + $0xdf8] sm:$0xff]   ;;  %v5873_v29 = vcombine.low %v41_v25, %v73_v26 }
 0x19f   :  { %6960 = vmatpush3.bf16.msra.mxu1 %v7512_v28  ;;  %v74_v28 = vld [vmem:[%s9419_s0 + $0x1d8] sm:$0xff] }
 0x1a0   :  { %6961 = vmatprep.subr.bf16.mxu1 %v7514_v30  ;;  %6940 = vmatpush3.bf16.msra.mxu0 %v7515_v31  ;;  %v5874_v30 = vcombine.high %v41_v25, %v73_v26  ;;  %v5875_v31 = vcombine.low %v42_v27, %v74_v28  ;;  %v7581_v25 = vld [vmem:[%s9418_s1 + $0xf40] sm:$0xff]  }
 0x1a1   :  { %6969 = vmatprep.subr.bf16.mxu0 %v7517_v41  ;;  %v7557_v41 = vld [vmem:[%s9418_s1 + $0xe50] sm:$0xff]   ;;  %v7582_v26 = vld [vmem:[%s9418_s1 + $0xfc0] sm:$0xff]  }
 0x1a3   :  { %6962 = vmatpush3.bf16.msra.mxu1 %v7516_v32  ;;  %5519 = vmatmul.mubr.bf16.vlgmr.msra.gmra.mrb[48].mxu0 %v5869_v35  ;;  %v5876_v32 = vcombine.high %v42_v27, %v74_v28  ;;  %v7551_v35 = vld [vmem:[%s9418_s1 + $0xe00] sm:$0xff]  }
 0x1a4   :  { %6991 = vmatprep.subr.bf16.mxu1 %v7518_v42  ;;  %6970 = vmatpush3.bf16.msra.mxu0 %v7519_v43  ;;  %v7558_v42 = vld [vmem:[%s9418_s1 + $0xed0] sm:$0xff]   ;;  %v7583_v27 = vld [vmem:[%s9418_s1 + $0xf00] sm:$0xff]  }
 0x1a5   :  { %6971 = vmatprep.subr.bf16.mxu0 %v7521_v45  ;;  %5600 = vmatprep.mubr.bf16.mxu0 %v5874_v30  ;;  %v7559_v43 = vld [vmem:[%s9418_s1 + $0xe10] sm:$0xff]   ;;  %v7561_v45 = vld [vmem:[%s9418_s1 + $0xe58] sm:$0xff]   ;;  %v7584_v28 = vld [vmem:[%s9418_s1 + $0xf80] sm:$0xff]  }
 0x1a6   :  { %5560 = vmatmul.mubr.bf16.vlgmr.msra.gmra.mrb[48].mxu1 %v5871_v39  ;;  %v7555_v39 = vld [vmem:[%s9418_s1 + $0xe08] sm:$0xff]  }
 0x1a7   :  { %6992 = vmatpush3.bf16.msra.mxu1 %v7520_v44  ;;  %5641 = vmatprep.mubr.bf16.mxu1 %v5876_v32  ;;  %v7560_v44 = vld [vmem:[%s9418_s1 + $0xe90] sm:$0xff]   ;;  %v7586_v30 = vld [vmem:[%s9418_s1 + $0xfc8] sm:$0xff]  }
 0x1a8   :  { %6993 = vmatprep.subr.bf16.mxu1 %v7522_v46  ;;  %6972 = vmatpush3.bf16.msra.mxu0 %v7523_v47  ;;  %v7562_v46 = vld [vmem:[%s9418_s1 + $0xed8] sm:$0xff]   ;;  %v7588_v32 = vld [vmem:[%s9418_s1 + $0xf88] sm:$0xff]  }
 0x1a9   :  { %6973 = vmatprep.subr.bf16.mxu0 %v7525_v49  ;;  %v7563_v47 = vld [vmem:[%s9418_s1 + $0xe18] sm:$0xff]  }
 0x1aa   :  { %v7564_v49 = vld [vmem:[%s9418_s1 + $0xe98] sm:$0xff]  }
 0x1ab   :  { %6994 = vmatpush3.bf16.msra.mxu1 %v7524_v48 }
 0x1ac   :  { %6995 = vmatprep.subr.bf16.mxu1 %v7526_v50  ;;  %6974 = vmatpush3.bf16.msra.mxu0 %v7527_v51  ;;  %v7565_v51 = vld [vmem:[%s9418_s1 + $0xe60] sm:$0xff]  }
 0x1ad   :  { %6975 = vmatprep.subr.bf16.mxu0 %v7529_v53  ;;  %v7566_v53 = vld [vmem:[%s9418_s1 + $0xee0] sm:$0xff]  }
 0x1af   :  { %6996 = vmatpush3.bf16.msra.mxu1 %v7528_v52 }
 0x1b0   :  { %6997 = vmatprep.subr.bf16.mxu1 %v7530_v54  ;;  %6976 = vmatpush3.bf16.msra.mxu0 %v7531_v56  ;;  %v7567_v56 = vld [vmem:[%s9418_s1 + $0xe20] sm:$0xff]  }
 0x1b1   :  { %6977 = vmatprep.subr.bf16.mxu0 %v7533_v60 }
 0x1b3   :  { %6998 = vmatpush3.bf16.msra.mxu1 %v7532_v58 }
 0x1b4   :  { %6999 = vmatprep.subr.bf16.mxu1 %v7534_v63  ;;  %6978 = vmatpush3.bf16.msra.mxu0 %v7535_v2 }
 0x1b5   :  { %6979 = vmatprep.subr.bf16.mxu0 %v7537_v8  ;;  %v7573_v8 = vld [vmem:[%s9418_s1 + $0xe70] sm:$0xff]  }
 0x1b6   :  { %v6677_v55 = vpop.f32.mrb[24].mxu0 }
 0x1b7   :  { %v6699_v57 = vpop.f32.mrb[24].mxu1  ;;  %v6678_v59 = vpop.f32.mrb[25].mxu0  ;;  %7000 = vmatpush3.bf16.msra.mxu1 %v7536_v5 }
 0x1b8   :  { %v6679_v61 = vadd.f32 %v6678_v59, %v6677_v55  ;;  %v6700_v62 = vpop.f32.mrb[25].mxu1  ;;  %v6680_v1 = vpop.f32.mrb[26].mxu0  ;;  %7001 = vmatprep.subr.bf16.mxu1 %v7538_v11  ;;  %6980 = vmatpush3.bf16.msra.mxu0 %v7539_v13  ;;  %v7568_v59 = vld [vmem:[%s9418_s1 + $0xea0] sm:$0xff]   ;;  %v7575_v11 = vld [vmem:[%s9418_s1 + $0xe30] sm:$0xff]   ;;  %v7577_v13 = vld [vmem:[%s9418_s1 + $0xe78] sm:$0xff]  }
 0x1b9   :  { %v6701_v0 = vadd.f32 %v6700_v62, %v6699_v57  ;;  %v6702_v4 = vpop.f32.mrb[26].mxu1  ;;  %v6681_v6 = vpop.f32.mrb[27].mxu0  ;;  %6981 = vmatprep.subr.bf16.mxu0 %v7541_v17  ;;  %v7569_v62 = vld [vmem:[%s9418_s1 + $0xe68] sm:$0xff]   ;;  %v43_v17 = vld [vmem:[%s9419_s0 + $0xe0] sm:$0xff] }
 0x1ba   :  { %v5029_v3 = vadd.f32 %v6679_v61, %v9021_v15  ;;  %v6682_v9 = vadd.f32 %v6681_v6, %v6680_v1  ;;  %v6703_v10 = vpop.f32.mrb[27].mxu1  ;;  %v7540_v15 = vld [vmem:[%s9418_s1 + $0xda8] sm:$0xff]  }
 0x1bb   :  { %v6704_v12 = vadd.f32 %v6703_v10, %v6702_v4  ;;  %7002 = vmatpush3.bf16.msra.mxu1 %v7540_v15  ;;  %v7570_v1 = vld [vmem:[%s9418_s1 + $0xee8] sm:$0xff]   ;;  %v7574_v10 = vld [vmem:[%s9418_s1 + $0xef0] sm:$0xff]   ;;  %v7579_v15 = vld [vmem:[%s9418_s1 + $0xe38] sm:$0xff]  }
 0x1bc   :  { %v9135_v7 = vadd.f32 %v6701_v0, %v5029_v3  ;;  %v5032_v14 = vadd.f32 %v6682_v9, %v9036_v24  ;;  %7003 = vmatprep.subr.bf16.mxu1 %v7542_v18  ;;  %6982 = vmatpush3.bf16.msra.mxu0 %v7543_v19  ;;  %v7548_v24 = vld [vmem:[%s9418_s1 + $0xdb8] sm:$0xff]   ;;  %v7571_v4 = vld [vmem:[%s9418_s1 + $0xe28] sm:$0xff]   ;;  %v75_v18 = vld [vmem:[%s9419_s0 + $0x1e0] sm:$0xff] }
 0x1bd   :  { %6983 = vmatprep.subr.bf16.mxu0 %v7545_v21  ;;  %v7572_v6 = vld [vmem:[%s9418_s1 + $0xea8] sm:$0xff]   ;;  %v5878_v21 = vcombine.high %v43_v17, %v75_v18 }
 0x1be   :  { %v9150_v16 = vadd.f32 %v6704_v12, %v5032_v14  ;;  %v7576_v12 = vld [vmem:[%s9418_s1 + $0xeb0] sm:$0xff]   ;;  %v7578_v14 = vld [vmem:[%s9418_s1 + $0xef8] sm:$0xff]   ;;  %v44_v19 = vld [vmem:[%s9419_s0 + $0xe8] sm:$0xff] }
 0x1bf   :  { %7004 = vmatpush3.bf16.msra.mxu1 %v7544_v20  ;;  %v5877_v20 = vcombine.low %v43_v17, %v75_v18 }
 0x1c0   :  { %7005 = vmatprep.subr.bf16.mxu1 %v7546_v22  ;;  %6984 = vmatpush3.bf16.msra.mxu0 %v7547_v23  ;;  %v76_v22 = vld [vmem:[%s9419_s0 + $0x1e8] sm:$0xff] }
 0x1c1   :  { %7013 = vmatprep.subr.bf16.mxu0 %v7549_v33  ;;  %v5879_v23 = vcombine.low %v44_v19, %v76_v22  ;;  %v7589_v33 = vld [vmem:[%s9418_s1 + $0xf50] sm:$0xff]  }
 0x1c3   :  { %7006 = vmatpush3.bf16.msra.mxu1 %v7548_v24  ;;  %5601 = vmatmul.mubr.bf16.vlgmr.msra.gmra.mrb[52].mxu0 %v5873_v29  ;;  %v5880_v24 = vcombine.high %v44_v19, %v76_v22  ;;  %v7585_v29 = vld [vmem:[%s9418_s1 + $0xf48] sm:$0xff]  }
 0x1c4   :  { %7035 = vmatprep.subr.bf16.mxu1 %v7550_v34  ;;  %7014 = vmatpush3.bf16.msra.mxu0 %v7551_v35  ;;  %v7590_v34 = vld [vmem:[%s9418_s1 + $0xfd0] sm:$0xff]  }
 0x1c5   :  { %7015 = vmatprep.subr.bf16.mxu0 %v7553_v37  ;;  %5682 = vmatprep.mubr.bf16.mxu0 %v5878_v21  ;;  %v7591_v35 = vld [vmem:[%s9418_s1 + $0xf10] sm:$0xff]   ;;  %v7593_v37 = vld [vmem:[%s9418_s1 + $0xf58] sm:$0xff]  }
 0x1c6   :  { %5642 = vmatmul.mubr.bf16.vlgmr.msra.gmra.mrb[52].mxu1 %v5875_v31  ;;  %v7587_v31 = vld [vmem:[%s9418_s1 + $0xf08] sm:$0xff]  }
 0x1c7   :  { %7036 = vmatpush3.bf16.msra.mxu1 %v7552_v36  ;;  %5723 = vmatprep.mubr.bf16.mxu1 %v5880_v24  ;;  %v7592_v36 = vld [vmem:[%s9418_s1 + $0xf90] sm:$0xff]  }
 0x1c8   :  { %7037 = vmatprep.subr.bf16.mxu1 %v7554_v38  ;;  %7016 = vmatpush3.bf16.msra.mxu0 %v7555_v39  ;;  %v7594_v38 = vld [vmem:[%s9418_s1 + $0xfd8] sm:$0xff]  }
 0x1c9   :  { %7017 = vmatprep.subr.bf16.mxu0 %v7557_v41 }
 0x1cb   :  { %7038 = vmatpush3.bf16.msra.mxu1 %v7556_v40  ;;  %v7595_v40 = vld [vmem:[%s9418_s1 + $0xf18] sm:$0xff]  }
 0x1cc   :  { %7039 = vmatprep.subr.bf16.mxu1 %v7558_v42  ;;  %7018 = vmatpush3.bf16.msra.mxu0 %v7559_v43  ;;  %v7596_v42 = vld [vmem:[%s9418_s1 + $0xf98] sm:$0xff]  }
 0x1cd   :  { %7019 = vmatprep.subr.bf16.mxu0 %v7561_v45 }
 0x1cf   :  { %7040 = vmatpush3.bf16.msra.mxu1 %v7560_v44  ;;  %v7597_v44 = vld [vmem:[%s9418_s1 + $0xf60] sm:$0xff]  }
 0x1d0   :  { %7041 = vmatprep.subr.bf16.mxu1 %v7562_v46  ;;  %7020 = vmatpush3.bf16.msra.mxu0 %v7563_v47  ;;  %v7598_v47 = vld [vmem:[%s9418_s1 + $0xfe0] sm:$0xff]  }
 0x1d1   :  { %7021 = vmatprep.subr.bf16.mxu0 %v7565_v51 }
 0x1d3   :  { %7042 = vmatpush3.bf16.msra.mxu1 %v7564_v49 }
 0x1d4   :  { %7043 = vmatprep.subr.bf16.mxu1 %v7566_v53  ;;  %7022 = vmatpush3.bf16.msra.mxu0 %v7567_v56  ;;  %v7600_v53 = vld [vmem:[%s9418_s1 + $0xfa0] sm:$0xff]   ;;  %v7601_v56 = vld [vmem:[%s9418_s1 + $0xf68] sm:$0xff]  }
 0x1d5   :  { %7023 = vmatprep.subr.bf16.mxu0 %v7569_v62 }
 0x1d6   :  { %v6721_v48 = vpop.f32.mrb[28].mxu0 }
 0x1d7   :  { %v6743_v50 = vpop.f32.mrb[28].mxu1  ;;  %v6722_v52 = vpop.f32.mrb[29].mxu0  ;;  %7044 = vmatpush3.bf16.msra.mxu1 %v7568_v59  ;;  %v7602_v59 = vld [vmem:[%s9418_s1 + $0xfe8] sm:$0xff]  }
 0x1d8   :  { %v6723_v54 = vadd.f32 %v6722_v52, %v6721_v48  ;;  %v6744_v55 = vpop.f32.mrb[29].mxu1  ;;  %v6724_v58 = vpop.f32.mrb[30].mxu0  ;;  %7045 = vmatprep.subr.bf16.mxu1 %v7570_v1  ;;  %7024 = vmatpush3.bf16.msra.mxu0 %v7571_v4  ;;  %v7605_v1 = vld [vmem:[%s9418_s1 + $0xf70] sm:$0xff]  }
 0x1d9   :  { %v6745_v57 = vadd.f32 %v6744_v55, %v6743_v50  ;;  %v6746_v61 = vpop.f32.mrb[30].mxu1  ;;  %v6725_v63 = vpop.f32.mrb[31].mxu0  ;;  %7025 = vmatprep.subr.bf16.mxu0 %v7573_v8  ;;  %v7599_v50 = vld [vmem:[%s9418_s1 + $0xf20] sm:$0xff]   ;;  %v7608_v4 = vld [vmem:[%s9418_s1 + $0xfb0] sm:$0xff]   ;;  %v7612_v8 = vld [vmem:[%s9418_s1 + $0xfb8] sm:$0xff]  }
 0x1da   :  { %v5111_v60 = vadd.f32 %v6723_v54, %v9135_v7  ;;  %v6726_v2 = vadd.f32 %v6725_v63, %v6724_v58  ;;  %v6747_v3 = vpop.f32.mrb[31].mxu1  ;;  %v7604_v63 = vld [vmem:[%s9418_s1 + $0xfa8] sm:$0xff]  }
 0x1db   :  { %v6748_v5 = vadd.f32 %v6747_v3, %v6746_v61  ;;  %7046 = vmatpush3.bf16.msra.mxu1 %v7572_v6  ;;  %v7603_v61 = vld [vmem:[%s9418_s1 + $0xf28] sm:$0xff]   ;;  %v7607_v3 = vld [vmem:[%s9418_s1 + $0xf30] sm:$0xff]   ;;  %v7610_v6 = vld [vmem:[%s9418_s1 + $0xff8] sm:$0xff]  }
 0x1dc   :  { %v9252_v0 = vadd.f32 %v6745_v57, %v5111_v60  ;;  %v5114_v7 = vadd.f32 %v6726_v2, %v9150_v16  ;;  %7047 = vmatprep.subr.bf16.mxu1 %v7574_v10  ;;  %7026 = vmatpush3.bf16.msra.mxu0 %v7575_v11  ;;  %v7580_v16 = vld [vmem:[%s9418_s1 + $0xeb8] sm:$0xff]   ;;  %v7606_v2 = vld [vmem:[%s9418_s1 + $0xff0] sm:$0xff]  }
 0x1dd   :  { %7027 = vmatprep.subr.bf16.mxu0 %v7577_v13  ;;  %v77_v10 = vld [vmem:[%s9419_s0 + $0x1f0] sm:$0xff]  ;;  %v46_v13 = vld [vmem:[%s9419_s0 + $0xf8] sm:$0xff] }
 0x1de   :  { %v9267_v9 = vadd.f32 %v6748_v5, %v5114_v7  ;;  %v7609_v5 = vld [vmem:[%s9418_s1 + $0xf78] sm:$0xff]  }
 0x1df   :  { %7048 = vmatpush3.bf16.msra.mxu1 %v7576_v12  ;;  %v7611_v7 = vld [vmem:[%s9418_s1 + $0xf38] sm:$0xff]  }
 0x1e0   :  { %7049 = vmatprep.subr.bf16.mxu1 %v7578_v14  ;;  %7028 = vmatpush3.bf16.msra.mxu0 %v7579_v15  ;;  %v78_v14 = vld [vmem:[%s9419_s0 + $0x1f8] sm:$0xff] }
 0x1e1   :  { %7057 = vmatprep.subr.bf16.mxu0 %v7581_v25  ;;  %v5883_v15 = vcombine.low %v46_v13, %v78_v14 }
 0x1e3   :  { %7050 = vmatpush3.bf16.msra.mxu1 %v7580_v16  ;;  %5683 = vmatmul.mubr.bf16.vlgmr.msra.gmra.mrb[56].mxu0 %v5877_v20  ;;  %v5884_v16 = vcombine.high %v46_v13, %v78_v14 }
 0x1e4   :  { %7079 = vmatprep.subr.bf16.mxu1 %v7582_v26  ;;  %7058 = vmatpush3.bf16.msra.mxu0 %v7583_v27 }
 0x1e5   :  { %7059 = vmatprep.subr.bf16.mxu0 %v7585_v29 }
 0x1e6   :  { %5724 = vmatmul.mubr.bf16.vlgmr.msra.gmra.mrb[56].mxu1 %v5879_v23 }
 0x1e7   :  { %7080 = vmatpush3.bf16.msra.mxu1 %v7584_v28  ;;  %5805 = vmatprep.mubr.bf16.mxu1 %v5884_v16 }
 0x1e8   :  { %7081 = vmatprep.subr.bf16.mxu1 %v7586_v30  ;;  %7060 = vmatpush3.bf16.msra.mxu0 %v7587_v31 }
 0x1e9   :  { %7061 = vmatprep.subr.bf16.mxu0 %v7589_v33 }
 0x1eb   :  { %7082 = vmatpush3.bf16.msra.mxu1 %v7588_v32 }
 0x1ec   :  { %7083 = vmatprep.subr.bf16.mxu1 %v7590_v34  ;;  %7062 = vmatpush3.bf16.msra.mxu0 %v7591_v35 }
 0x1ed   :  { %7063 = vmatprep.subr.bf16.mxu0 %v7593_v37 }
 0x1ef   :  { %7084 = vmatpush3.bf16.msra.mxu1 %v7592_v36 }
 0x1f0   :  { %7085 = vmatprep.subr.bf16.mxu1 %v7594_v38  ;;  %7064 = vmatpush3.bf16.msra.mxu0 %v7595_v40 }
 0x1f1   :  { %7065 = vmatprep.subr.bf16.mxu0 %v7597_v44 }
 0x1f3   :  { %7086 = vmatpush3.bf16.msra.mxu1 %v7596_v42 }
 0x1f4   :  { %7087 = vmatprep.subr.bf16.mxu1 %v7598_v47  ;;  %7066 = vmatpush3.bf16.msra.mxu0 %v7599_v50 }
 0x1f5   :  { %7067 = vmatprep.subr.bf16.mxu0 %v7601_v56 }
 0x1f6   :  { %v6765_v39 = vpop.f32.mrb[32].mxu0 }
 0x1f7   :  { %v6787_v41 = vpop.f32.mrb[32].mxu1  ;;  %v6766_v43 = vpop.f32.mrb[33].mxu0  ;;  %7088 = vmatpush3.bf16.msra.mxu1 %v7600_v53 }
 0x1f8   :  { %v6767_v45 = vadd.f32 %v6766_v43, %v6765_v39  ;;  %v6788_v46 = vpop.f32.mrb[33].mxu1  ;;  %v6768_v49 = vpop.f32.mrb[34].mxu0  ;;  %7089 = vmatprep.subr.bf16.mxu1 %v7602_v59  ;;  %7068 = vmatpush3.bf16.msra.mxu0 %v7603_v61 }
 0x1f9   :  { %v6789_v48 = vadd.f32 %v6788_v46, %v6787_v41  ;;  %v6790_v52 = vpop.f32.mrb[34].mxu1  ;;  %v6769_v54 = vpop.f32.mrb[35].mxu0  ;;  %7069 = vmatprep.subr.bf16.mxu0 %v7605_v1 }
 0x1fa   :  { %v5193_v51 = vadd.f32 %v6767_v45, %v9252_v0  ;;  %v6770_v57 = vadd.f32 %v6769_v54, %v6768_v49  ;;  %v6791_v58 = vpop.f32.mrb[35].mxu1 }
 0x1fb   :  { %v6792_v60 = vadd.f32 %v6791_v58, %v6790_v52  ;;  %7090 = vmatpush3.bf16.msra.mxu1 %v7604_v63 }
 0x1fc   :  { %v5234_v55 = vadd.f32 %v6789_v48, %v5193_v51  ;;  %v5196_v62 = vadd.f32 %v6770_v57, %v9267_v9  ;;  %7091 = vmatprep.subr.bf16.mxu1 %v7606_v2  ;;  %7070 = vmatpush3.bf16.msra.mxu0 %v7607_v3  ;;  %v45_v9 = vld [vmem:[%s9419_s0 + $0xf0] sm:$0xff] }
 0x1fd   :  { %7071 = vmatprep.subr.bf16.mxu0 %v7609_v5  ;;  %v5881_v11 = vcombine.low %v45_v9, %v77_v10  ;;  %v5882_v12 = vcombine.high %v45_v9, %v77_v10 }
 0x1fe   :  { %v5237_v0 = vadd.f32 %v6792_v60, %v5196_v62 }
 0x1ff   :  { %7092 = vmatpush3.bf16.msra.mxu1 %v7608_v4  ;;  %5764 = vmatprep.mubr.bf16.mxu0 %v5882_v12 }
 0x200   :  { %7093 = vmatprep.subr.bf16.mxu1 %v7610_v6  ;;  %7072 = vmatpush3.bf16.msra.mxu0 %v7611_v7 }
 0x203   :  { %7094 = vmatpush3.bf16.msra.mxu1 %v7612_v8  ;;  %5765 = vmatmul.mubr.bf16.vlgmr.msra.gmra.mrb[60].mxu0 %v5881_v11 }
 0x206   :  { %5806 = vmatmul.mubr.bf16.vlgmr.msra.gmra.mrb[60].mxu1 %v5883_v15 }
 0x216   :  { %v6809_v17 = vpop.f32.mrb[36].mxu0 }
 0x217   :  { %v6810_v19 = vpop.f32.mrb[37].mxu0 }
 0x218   :  { %v6811_v20 = vadd.f32 %v6810_v19, %v6809_v17  ;;  %v6812_v22 = vpop.f32.mrb[38].mxu0 }
 0x219   :  { %v6831_v18 = vpop.f32.mrb[36].mxu1  ;;  %v6813_v25 = vpop.f32.mrb[39].mxu0 }
 0x21a   :  { %v6832_v21 = vpop.f32.mrb[37].mxu1  ;;  %v5275_v26 = vadd.f32 %v6811_v20, %v5234_v55  ;;  %v6814_v27 = vadd.f32 %v6813_v25, %v6812_v22 }
 0x21b   :  { %v6833_v23 = vadd.f32 %v6832_v21, %v6831_v18  ;;  %v6834_v24 = vpop.f32.mrb[38].mxu1 }
 0x21c   :  { %v6835_v28 = vpop.f32.mrb[39].mxu1  ;;  %v5278_v31 = vadd.f32 %v6814_v27, %v5237_v0 }
 0x21d   :  { %v6836_v29 = vadd.f32 %v6835_v28, %v6834_v24  ;;  %v5316_v30 = vadd.f32 %v6833_v23, %v5275_v26 }
 0x21f   :  { %v5319_v32 = vadd.f32 %v6836_v29, %v5278_v31 }
 0x236   :  { %v6853_v33 = vpop.f32.mrb[40].mxu0 }
 0x237   :  { %v6854_v35 = vpop.f32.mrb[41].mxu0 }
 0x238   :  { %v6855_v37 = vadd.f32 %v6854_v35, %v6853_v33  ;;  %v6856_v39 = vpop.f32.mrb[42].mxu0 }
 0x239   :  { %v6875_v34 = vpop.f32.mrb[40].mxu1  ;;  %v6857_v41 = vpop.f32.mrb[43].mxu0 }
 0x23a   :  { %v6876_v36 = vpop.f32.mrb[41].mxu1  ;;  %v5357_v43 = vadd.f32 %v6855_v37, %v5316_v30  ;;  %v6858_v44 = vadd.f32 %v6857_v41, %v6856_v39 }
 0x23b   :  { %v6877_v38 = vadd.f32 %v6876_v36, %v6875_v34  ;;  %v6878_v40 = vpop.f32.mrb[42].mxu1 }
 0x23c   :  { %v6879_v42 = vpop.f32.mrb[43].mxu1  ;;  %v5360_v47 = vadd.f32 %v6858_v44, %v5319_v32 }
 0x23d   :  { %v6880_v45 = vadd.f32 %v6879_v42, %v6878_v40  ;;  %v5398_v46 = vadd.f32 %v6877_v38, %v5357_v43 }
 0x23f   :  { %v5401_v48 = vadd.f32 %v6880_v45, %v5360_v47 }
 0x256   :  { %v6897_v49 = vpop.f32.mrb[44].mxu0 }
 0x257   :  { %v6898_v51 = vpop.f32.mrb[45].mxu0 }
 0x258   :  { %v6899_v52 = vadd.f32 %v6898_v51, %v6897_v49  ;;  %v6900_v54 = vpop.f32.mrb[46].mxu0 }
 0x259   :  { %v6919_v50 = vpop.f32.mrb[44].mxu1  ;;  %v6901_v57 = vpop.f32.mrb[47].mxu0 }
 0x25a   :  { %v6920_v53 = vpop.f32.mrb[45].mxu1  ;;  %v5439_v58 = vadd.f32 %v6899_v52, %v5398_v46  ;;  %v6902_v59 = vadd.f32 %v6901_v57, %v6900_v54 }
 0x25b   :  { %v6921_v55 = vadd.f32 %v6920_v53, %v6919_v50  ;;  %v6922_v56 = vpop.f32.mrb[46].mxu1 }
 0x25c   :  { %v6923_v60 = vpop.f32.mrb[47].mxu1  ;;  %v5442_v63 = vadd.f32 %v6902_v59, %v5401_v48 }
 0x25d   :  { %v6924_v61 = vadd.f32 %v6923_v60, %v6922_v56  ;;  %v5480_v62 = vadd.f32 %v6921_v55, %v5439_v58 }
 0x25f   :  { %v5483_v0 = vadd.f32 %v6924_v61, %v5442_v63 }
 0x276   :  { %v6941_v1 = vpop.f32.mrb[48].mxu0 }
 0x277   :  { %v6942_v3 = vpop.f32.mrb[49].mxu0 }
 0x278   :  { %v6943_v4 = vadd.f32 %v6942_v3, %v6941_v1  ;;  %v6944_v6 = vpop.f32.mrb[50].mxu0 }
 0x279   :  { %v6963_v2 = vpop.f32.mrb[48].mxu1  ;;  %v6945_v9 = vpop.f32.mrb[51].mxu0 }
 0x27a   :  { %v6964_v5 = vpop.f32.mrb[49].mxu1  ;;  %v5521_v10 = vadd.f32 %v6943_v4, %v5480_v62  ;;  %v6946_v11 = vadd.f32 %v6945_v9, %v6944_v6 }
 0x27b   :  { %v6965_v7 = vadd.f32 %v6964_v5, %v6963_v2  ;;  %v6966_v8 = vpop.f32.mrb[50].mxu1 }
 0x27c   :  { %v6967_v12 = vpop.f32.mrb[51].mxu1  ;;  %v5524_v15 = vadd.f32 %v6946_v11, %v5483_v0 }
 0x27d   :  { %v6968_v13 = vadd.f32 %v6967_v12, %v6966_v8  ;;  %v5562_v14 = vadd.f32 %v6965_v7, %v5521_v10 }
 0x27f   :  { %v5565_v16 = vadd.f32 %v6968_v13, %v5524_v15 }
 0x296   :  { %v6985_v17 = vpop.f32.mrb[52].mxu0 }
 0x297   :  { %v6986_v19 = vpop.f32.mrb[53].mxu0 }
 0x298   :  { %v6987_v21 = vadd.f32 %v6986_v19, %v6985_v17  ;;  %v6988_v23 = vpop.f32.mrb[54].mxu0 }
 0x299   :  { %v7007_v18 = vpop.f32.mrb[52].mxu1  ;;  %v6989_v25 = vpop.f32.mrb[55].mxu0 }
 0x29a   :  { %v7008_v20 = vpop.f32.mrb[53].mxu1  ;;  %v5603_v27 = vadd.f32 %v6987_v21, %v5562_v14  ;;  %v6990_v28 = vadd.f32 %v6989_v25, %v6988_v23 }
 0x29b   :  { %v7009_v22 = vadd.f32 %v7008_v20, %v7007_v18  ;;  %v7010_v24 = vpop.f32.mrb[54].mxu1 }
 0x29c   :  { %v7011_v26 = vpop.f32.mrb[55].mxu1  ;;  %v5606_v31 = vadd.f32 %v6990_v28, %v5565_v16 }
 0x29d   :  { %v7012_v29 = vadd.f32 %v7011_v26, %v7010_v24  ;;  %v5644_v30 = vadd.f32 %v7009_v22, %v5603_v27 }
 0x29f   :  { %v5647_v32 = vadd.f32 %v7012_v29, %v5606_v31 }
 0x2b6   :  { %v7029_v33 = vpop.f32.mrb[56].mxu0 }
 0x2b7   :  { %v7030_v35 = vpop.f32.mrb[57].mxu0 }
 0x2b8   :  { %v7031_v36 = vadd.f32 %v7030_v35, %v7029_v33  ;;  %v7032_v38 = vpop.f32.mrb[58].mxu0 }
 0x2b9   :  { %v7051_v34 = vpop.f32.mrb[56].mxu1  ;;  %v7033_v41 = vpop.f32.mrb[59].mxu0 }
 0x2ba   :  { %v7052_v37 = vpop.f32.mrb[57].mxu1  ;;  %v5685_v42 = vadd.f32 %v7031_v36, %v5644_v30  ;;  %v7034_v43 = vadd.f32 %v7033_v41, %v7032_v38 }
 0x2bb   :  { %v7053_v39 = vadd.f32 %v7052_v37, %v7051_v34  ;;  %v7054_v40 = vpop.f32.mrb[58].mxu1 }
 0x2bc   :  { %v7055_v44 = vpop.f32.mrb[59].mxu1  ;;  %v5688_v47 = vadd.f32 %v7034_v43, %v5647_v32 }
 0x2bd   :  { %v7056_v45 = vadd.f32 %v7055_v44, %v7054_v40  ;;  %v5726_v46 = vadd.f32 %v7053_v39, %v5685_v42 }
 0x2bf   :  { %v5729_v48 = vadd.f32 %v7056_v45, %v5688_v47 }
 0x2d6   :  { %v7073_v49 = vpop.f32.mrb[60].mxu0 }
 0x2d7   :  { %v7074_v51 = vpop.f32.mrb[61].mxu0 }
 0x2d8   :  { %v7075_v52 = vadd.f32 %v7074_v51, %v7073_v49  ;;  %v7076_v54 = vpop.f32.mrb[62].mxu0 }
 0x2d9   :  { %v7095_v50 = vpop.f32.mrb[60].mxu1  ;;  %v7077_v57 = vpop.f32.mrb[63].mxu0 }
 0x2da   :  { %v7096_v53 = vpop.f32.mrb[61].mxu1  ;;  %v5767_v58 = vadd.f32 %v7075_v52, %v5726_v46  ;;  %v7078_v59 = vadd.f32 %v7077_v57, %v7076_v54 }
 0x2db   :  { %v7097_v55 = vadd.f32 %v7096_v53, %v7095_v50  ;;  %v7098_v56 = vpop.f32.mrb[62].mxu1 }
 0x2dc   :  { %v7099_v60 = vpop.f32.mrb[63].mxu1  ;;  %v5770_v63 = vadd.f32 %v7078_v59, %v5729_v48 }
 0x2dd   :  { %v7100_v61 = vadd.f32 %v7099_v60, %v7098_v56  ;;  %v5808_v62 = vadd.f32 %v7097_v55, %v5767_v58 }
 0x2df   :  { %5814 = vst [vmem:[%s9421_s3] sm:$0xff] %v5808_v62  ;;  %v5811_v0 = vadd.f32 %v7100_v61, %v5770_v63 }
 0x2e1   :  { %5815 = vst [vmem:[%s9421_s3 + $0x8] sm:$0xff] %v5811_v0 }

</bundles_post_ra>
